<compile_context>
chip_gen: v7x
topology: tpu7x:2x2x1
jax: 0.10.0
libtpu: 0.0.40
codegen_flags: <defaults>
</compile_context>

<pallas_src>
import jax
import jax.numpy as jnp
from jax.experimental import pallas as pl
from jax.experimental.pallas import tpu as pltpu


def _fused_kernel(x_ref, w_ref, sb1_ref, b2_ref, o_ref):
    # x_ref   : [1, Cin, HW]  f32   channel-major input (whole spatial extent)
    # w_ref   : [Cout, Cin]   bf16  conv weight with BN2 scale folded in
    # sb1_ref : [Cin, 2]      f32   col 0 = BN1 scale, col 1 = BN1 shift
    # b2_ref  : [Cout, 1]     f32   BN2 shift
    # o_ref   : [1, Cout, HW] f32
    x = x_ref[0]                          # [Cin, HW]
    sb = sb1_ref[...]                     # single load of the sparse block
    s1 = sb[:, 0:1]                       # [Cin, 1]
    b1 = sb[:, 1:2]                       # [Cin, 1]
    h = jnp.maximum(x * s1 + b1, 0.0)     # BN1 (folded) + ReLU, f32 on VPU
    # 1x1 conv (+ folded BN2 scale): bf16 operands, f32 accumulation on MXU.
    y = jnp.dot(w_ref[...], h.astype(jnp.bfloat16),
                preferred_element_type=jnp.float32)       # [Cout, HW]
    o_ref[0] = jnp.maximum(y + b2_ref[...], 0.0)          # BN2 shift + ReLU


def fused_bn_relu_conv_bn_relu(x_nchw, conv_w, bn1, bn2, eps=1e-5):
    """x_nchw: [N, Cin, H, W] f32, conv_w: [Cout, Cin] (1x1 kernel squeezed).

    bn1 / bn2 are dicts with 'gamma', 'beta', 'mean', 'var' (eval-mode BN).
    Returns [N, Cout, H, W] f32.
    """
    N, Cin, H, W = x_nchw.shape
    Cout = conv_w.shape[0]
    HW = H * W

    # Channel-major, flattened spatial dims: a free view, no transpose.
    x3d = x_nchw.reshape(N, Cin, HW)

    # Fold BN params: y = x*scale + shift  (eval-mode / running-stats BN).
    # TODO(synk): PyTorch BatchNorm in training mode uses batch statistics;
    # this kernel implements the standard inference-mode normalization.
    def fold(p):
        scale = p["gamma"] / jnp.sqrt(p["var"] + eps)
        shift = p["beta"] - p["mean"] * scale
        return scale.astype(jnp.float32), shift.astype(jnp.float32)

    s1, b1 = fold(bn1)
    s2, b2 = fold(bn2)

    sb1 = jnp.stack([s1, b1], axis=1)                        # [Cin, 2] f32
    # Fold BN2 scale into the conv weight (valid: no nonlinearity in between),
    # and ship it as bf16 to halve the weight DMA.
    w_folded = (conv_w * s2[:, None]).astype(jnp.bfloat16)   # [Cout, Cin] bf16
    b2c = b2.reshape(Cout, 1)                                # [Cout, 1] f32

    # Grid-invariant operands: constant index_map + single-buffered (their
    # data never changes across grid steps, so no double buffer is needed).
    def const_spec(shape):
        kwargs = {}
        if hasattr(pl, "Buffered"):
            kwargs["pipeline_mode"] = pl.Buffered(1)
        return pl.BlockSpec(shape, lambda n: (0,) * len(shape), **kwargs)

    extra_kwargs = {}
    if hasattr(pl, "CostEstimate"):
        bytes_accessed = (
            x3d.size * 4 + w_folded.size * 2 + sb1.size * 4 + b2c.size * 4
            + N * Cout * HW * 4)
        extra_kwargs["cost_estimate"] = pl.CostEstimate(
            flops=2 * N * Cout * Cin * HW,
            transcendentals=0,
            bytes_accessed=bytes_accessed)

    # Single spatial tile (TM = HW): one grid step per batch element.  HW as
    # the last block dim equals the full array extent, so the (8,128) rule is
    # satisfied and there is no padded partial tile.
    out3d = pl.pallas_call(
        _fused_kernel,
        out_shape=jax.ShapeDtypeStruct((N, Cout, HW), jnp.float32),
        grid=(N,),
        in_specs=[
            pl.BlockSpec((1, Cin, HW), lambda n: (n, 0, 0)),   # x (whole image)
            const_spec((Cout, Cin)),                           # W (resident)
            const_spec((Cin, 2)),                              # BN1 scale/shift
            const_spec((Cout, 1)),                             # BN2 shift
        ],
        out_specs=pl.BlockSpec((1, Cout, HW), lambda n: (n, 0, 0)),
        compiler_params=pltpu.CompilerParams(
            dimension_semantics=("parallel",)),
        **extra_kwargs,
    )(x3d, w_folded, sb1, b2c)

    # [N, Cout, H*W] -> NCHW, again a free reshape (no transpose).
    return out3d.reshape(N, Cout, H, W)


def _reference(x_nchw, conv_w, bn1, bn2, eps=1e-5):
    """Plain-JAX f32 reference (eval-mode BN semantics)."""
    def bn(x, p, axis_c):
        shape = [1] * x.ndim
        shape[axis_c] = -1
        g = p["gamma"].reshape(shape)
        b = p["beta"].reshape(shape)
        m = p["mean"].reshape(shape)
        v = p["var"].reshape(shape)
        return (x - m) / jnp.sqrt(v + eps) * g + b

    h = jnp.maximum(bn(x_nchw, bn1, 1), 0.0)
    y = jnp.einsum("nchw,oc->nohw", h, conv_w,
                   precision=jax.lax.Precision.HIGHEST)
    return jnp.maximum(bn(y, bn2, 1), 0.0)


if __name__ == "__main__":
    # Shapes implied by the module: x [1, 1584, 14, 14], conv 1584 -> 192 (1x1).
    N, Cin, H, W = 1, 1584, 14, 14
    Cout = 192

    key = jax.random.PRNGKey(0)
    ks = jax.random.split(key, 10)

    x = jax.random.normal(ks[0], (N, Cin, H, W), dtype=jnp.float32)
    conv_w = jax.random.normal(ks[1], (Cout, Cin), dtype=jnp.float32) * 0.02

    bn1 = {
        "gamma": 1.0 + 0.1 * jax.random.normal(ks[2], (Cin,), dtype=jnp.float32),
        "beta": 0.1 * jax.random.normal(ks[3], (Cin,), dtype=jnp.float32),
        "mean": 0.05 * jax.random.normal(ks[4], (Cin,), dtype=jnp.float32),
        "var": jnp.abs(jax.random.normal(ks[5], (Cin,), dtype=jnp.float32)) + 0.5,
    }
    bn2 = {
        "gamma": 1.0 + 0.1 * jax.random.normal(ks[6], (Cout,), dtype=jnp.float32),
        "beta": 0.1 * jax.random.normal(ks[7], (Cout,), dtype=jnp.float32),
        "mean": 0.05 * jax.random.normal(ks[8], (Cout,), dtype=jnp.float32),
        "var": jnp.abs(jax.random.normal(ks[9], (Cout,), dtype=jnp.float32)) + 0.5,
    }

    out = fused_bn_relu_conv_bn_relu(x, conv_w, bn1, bn2)
    out = jax.block_until_ready(out)

    ref = _reference(x, conv_w, bn1, bn2)
    assert out.shape == (N, Cout, H, W), out.shape
    # bf16 matmul operands (f32 accumulation) vs. f32 reference -> loose tol.
    assert jnp.allclose(out, ref, atol=3e-2, rtol=3e-2), (
        float(jnp.max(jnp.abs(out - ref))))

    print("KERNEL_OK")
</pallas_src>

<mosaic_0001>
module attributes {stable_mosaic.version = 11 : i64} {
  func.func @_fused_kernel(%arg0: i32, %arg1: memref<1x1584x196xf32, #tpu.memory_space<vmem>>, %arg2: memref<192x1584xbf16, #tpu.memory_space<vmem>>, %arg3: memref<1584x2xf32, #tpu.memory_space<vmem>>, %arg4: memref<192x1xf32, #tpu.memory_space<vmem>>, %arg5: memref<1x192x196xf32, #tpu.memory_space<vmem>>) attributes {dimension_semantics = [#tpu.dimension_semantics<parallel>], iteration_bounds = array<i64: 1>, scalar_prefetch = 0 : i64, scratch_operands = 0 : i64, tpu.core_type = #tpu.core_type<tc>, window_params = [{transform_indices = @transform_0, window_bounds = array<i64: 1, 1584, 196>}, {pipeline_mode = #tpu.pipeline_mode<synchronous>, transform_indices = @transform_1, window_bounds = array<i64: 192, 1584>}, {pipeline_mode = #tpu.pipeline_mode<synchronous>, transform_indices = @transform_2, window_bounds = array<i64: 1584, 2>}, {pipeline_mode = #tpu.pipeline_mode<synchronous>, transform_indices = @transform_3, window_bounds = array<i64: 192, 1>}, {transform_indices = @transform_4, window_bounds = array<i64: 1, 192, 196>}]} {
    %c0 = arith.constant 0 : index
    %c0_0 = arith.constant 0 : index
    %c0_1 = arith.constant 0 : index
    %0 = vector.load %arg1[%c0, %c0_0, %c0_1] : memref<1x1584x196xf32, #tpu.memory_space<vmem>>, vector<1x1584x196xf32>
    %1 = vector.shape_cast %0 : vector<1x1584x196xf32> to vector<1584x196xf32>
    %c0_2 = arith.constant 0 : index
    %c0_3 = arith.constant 0 : index
    %2 = vector.load %arg3[%c0_2, %c0_3] : memref<1584x2xf32, #tpu.memory_space<vmem>>, vector<1584x2xf32>
    %3 = vector.extract_strided_slice %2 {offsets = [0, 0], sizes = [1584, 1], strides = [1, 1]} : vector<1584x2xf32> to vector<1584x1xf32>
    %4 = vector.extract_strided_slice %2 {offsets = [0, 1], sizes = [1584, 1], strides = [1, 1]} : vector<1584x2xf32> to vector<1584x1xf32>
    %5 = vector.broadcast %3 : vector<1584x1xf32> to vector<1584x196xf32>
    %6 = arith.mulf %1, %5 : vector<1584x196xf32>
    %7 = vector.broadcast %4 : vector<1584x1xf32> to vector<1584x196xf32>
    %8 = arith.addf %6, %7 : vector<1584x196xf32>
    %cst = arith.constant 0.000000e+00 : f32
    %9 = vector.broadcast %cst : f32 to vector<1584x196xf32>
    %10 = arith.maximumf %8, %9 : vector<1584x196xf32>
    %c0_4 = arith.constant 0 : index
    %c0_5 = arith.constant 0 : index
    %11 = vector.load %arg2[%c0_4, %c0_5] : memref<192x1584xbf16, #tpu.memory_space<vmem>>, vector<192x1584xbf16>
    %12 = arith.truncf %10 : vector<1584x196xf32> to vector<1584x196xbf16>
    %cst_6 = arith.constant dense<0.000000e+00> : vector<192x196xf32>
    %13 = tpu.matmul %11, %12, %cst_6 {dimension_numbers = #tpu.dot_dimension_numbers<[1], [0], [0], [1], [0, 0, 1, 1], [], []>} : vector<192x1584xbf16>, vector<1584x196xbf16>, vector<192x196xf32> -> vector<192x196xf32>
    %c0_7 = arith.constant 0 : index
    %c0_8 = arith.constant 0 : index
    %14 = vector.load %arg4[%c0_7, %c0_8] : memref<192x1xf32, #tpu.memory_space<vmem>>, vector<192x1xf32>
    %15 = vector.broadcast %14 : vector<192x1xf32> to vector<192x196xf32>
    %16 = arith.addf %13, %15 : vector<192x196xf32>
    %cst_9 = arith.constant 0.000000e+00 : f32
    %17 = vector.broadcast %cst_9 : f32 to vector<192x196xf32>
    %18 = arith.maximumf %16, %17 : vector<192x196xf32>
    %c0_10 = arith.constant 0 : index
    %c0_11 = arith.constant 0 : index
    %c0_12 = arith.constant 0 : index
    %19 = vector.load %arg5[%c0_10, %c0_11, %c0_12] : memref<1x192x196xf32, #tpu.memory_space<vmem>>, vector<1x192x196xf32>
    %20 = vector.shape_cast %19 : vector<1x192x196xf32> to vector<192x196xf32>
    %21 = vector.shape_cast %18 : vector<192x196xf32> to vector<1x192x196xf32>
    tpu.vector_store %arg5[%c0_10, %c0_11, %c0_12], %21 {strides = array<i32>} : memref<1x192x196xf32, #tpu.memory_space<vmem>>, vector<1x192x196xf32>,
    return
  }
  func.func @transform_0(%arg0: i32) -> (i32, i32, i32) {
    %c0_i32 = arith.constant 0 : i32
    %c0_i32_0 = arith.constant 0 : i32
    %c0_i32_1 = arith.constant 0 : i32
    return %arg0, %c0_i32, %c0_i32_0 : i32, i32, i32
  }
  func.func @transform_1(%arg0: i32) -> (i32, i32) {
    %c0_i32 = arith.constant 0 : i32
    %c0_i32_0 = arith.constant 0 : i32
    %c0_i32_1 = arith.constant 0 : i32
    return %c0_i32, %c0_i32_0 : i32, i32
  }
  func.func @transform_2(%arg0: i32) -> (i32, i32) {
    %c0_i32 = arith.constant 0 : i32
    %c0_i32_0 = arith.constant 0 : i32
    %c0_i32_1 = arith.constant 0 : i32
    return %c0_i32, %c0_i32_0 : i32, i32
  }
  func.func @transform_3(%arg0: i32) -> (i32, i32) {
    %c0_i32 = arith.constant 0 : i32
    %c0_i32_0 = arith.constant 0 : i32
    %c0_i32_1 = arith.constant 0 : i32
    return %c0_i32, %c0_i32_0 : i32, i32
  }
  func.func @transform_4(%arg0: i32) -> (i32, i32, i32) {
    %c0_i32 = arith.constant 0 : i32
    %c0_i32_0 = arith.constant 0 : i32
    %c0_i32_1 = arith.constant 0 : i32
    return %arg0, %c0_i32, %c0_i32_0 : i32, i32, i32
  }
}

</mosaic_0001>

<bundles_post_ra>
// kernel: tpu_custom_call.1
= control target key start
LH: loop header
LB: loop body
LE: loop exit
PB: predicated region body
PF: predicated region fallthrough
CT: control target
= control target key end

     0   :  { %v11274_v2 = vmov 0   ;;  %s11269_s0 = inlined_call_operand.vmem [shape: f32[1,1584,196], index: 0, kind: input, shape index: {}]   ;;  %s11270_s1 = inlined_call_operand.vmem [shape: bf16[192,1584], index: 1, kind: input, shape index: {}]   ;;  %s11271_s2 = inlined_call_operand.vmem [shape: f32[1584,2], index: 2, kind: input, shape index: {}]   ;;  %s11272_s3 = inlined_call_operand.vmem [shape: f32[192,1], index: 3, kind: input, shape index: {}]   ;;  %s11273_s4 = inlined_call_operand.hbm [shape: f32[1,192,196], index: 4, kind: output, shape index: {}]  }
   0x1   :  { %v417_v0 = vld [vmem:[%s11271_s2 + $0x10] sm:$0xff]  ;;  %v415_v1 = vld [vmem:[%s11271_s2] sm:$0xff]  ;;  %6636 = vset.pattern.permute.xlu1 %v11274_v2  ;;  %6635 = vset.pattern.permute.xlu0 %v11274_v2  ;;  %v418_v3 = vld [vmem:[%s11271_s2 + $0x18] sm:$0xff] }
   0x2   :  { %625 = vperm.xlu1 %6636, %v417_v0   ;;  %615 = vperm.xlu0 %6635, %v415_v1   ;;  %v416_v4 = vld [vmem:[%s11271_s2 + $0x8] sm:$0xff]  ;;  %v419_v6 = vld [vmem:[%s11271_s2 + $0x20] sm:$0xff]  ;;  %v422_v7 = vld [vmem:[%s11271_s2 + $0x38] sm:$0xff] }
   0x3   :  { %v420_v5 = vld [vmem:[%s11271_s2 + $0x28] sm:$0xff]  ;;  %v421_v8 = vld [vmem:[%s11271_s2 + $0x30] sm:$0xff]  ;;  %v423_v10 = vld [vmem:[%s11271_s2 + $0x40] sm:$0xff] }
   0x4   :  { %v424_v9 = vld [vmem:[%s11271_s2 + $0x48] sm:$0xff]  ;;  %v426_v11 = vld [vmem:[%s11271_s2 + $0x58] sm:$0xff]  ;;  %v425_v12 = vld [vmem:[%s11271_s2 + $0x50] sm:$0xff] }
   0x5   :  { %v428_v13 = vld [vmem:[%s11271_s2 + $0x68] sm:$0xff]  ;;  %v427_v14 = vld [vmem:[%s11271_s2 + $0x60] sm:$0xff]  ;;  %v430_v15 = vld [vmem:[%s11271_s2 + $0x78] sm:$0xff] }
   0x6   :  { %630 = vperm.xlu1 %6636, %v418_v3   ;;  %620 = vperm.xlu0 %6635, %v416_v4   ;;  %v429_v16 = vld [vmem:[%s11271_s2 + $0x70] sm:$0xff]  ;;  %v432_v17 = vld [vmem:[%s11271_s2 + $0x88] sm:$0xff]  ;;  %v431_v18 = vld [vmem:[%s11271_s2 + $0x80] sm:$0xff] }
   0x7   :  { %v434_v19 = vld [vmem:[%s11271_s2 + $0x98] sm:$0xff]  ;;  %v433_v20 = vld [vmem:[%s11271_s2 + $0x90] sm:$0xff]  ;;  %v436_v21 = vld [vmem:[%s11271_s2 + $0xa8] sm:$0xff] }
   0x8   :  { %v435_v22 = vld [vmem:[%s11271_s2 + $0xa0] sm:$0xff]  ;;  %v438_v23 = vld [vmem:[%s11271_s2 + $0xb8] sm:$0xff]  ;;  %v437_v24 = vld [vmem:[%s11271_s2 + $0xb0] sm:$0xff] }
   0x9   :  { %v440_v25 = vld [vmem:[%s11271_s2 + $0xc8] sm:$0xff]  ;;  %v439_v26 = vld [vmem:[%s11271_s2 + $0xc0] sm:$0xff]  ;;  %v442_v27 = vld [vmem:[%s11271_s2 + $0xd8] sm:$0xff] }
   0xa   :  { %640 = vperm.xlu1 %6636, %v420_v5   ;;  %635 = vperm.xlu0 %6635, %v419_v6   ;;  %v441_v28 = vld [vmem:[%s11271_s2 + $0xd0] sm:$0xff]  ;;  %v444_v29 = vld [vmem:[%s11271_s2 + $0xe8] sm:$0xff]  ;;  %v443_v30 = vld [vmem:[%s11271_s2 + $0xe0] sm:$0xff] }
   0xb   :  { %v446_v31 = vld [vmem:[%s11271_s2 + $0xf8] sm:$0xff]  ;;  %v445_v32 = vld [vmem:[%s11271_s2 + $0xf0] sm:$0xff]  ;;  %v448_v33 = vld [vmem:[%s11271_s2 + $0x108] sm:$0xff] }
   0xc   :  { %v447_v34 = vld [vmem:[%s11271_s2 + $0x100] sm:$0xff]  ;;  %v450_v35 = vld [vmem:[%s11271_s2 + $0x118] sm:$0xff]  ;;  %v449_v36 = vld [vmem:[%s11271_s2 + $0x110] sm:$0xff] }
   0xd   :  { %v452_v37 = vld [vmem:[%s11271_s2 + $0x128] sm:$0xff]  ;;  %v451_v38 = vld [vmem:[%s11271_s2 + $0x120] sm:$0xff]  ;;  %v454_v39 = vld [vmem:[%s11271_s2 + $0x138] sm:$0xff] }
   0xe   :  { %650 = vperm.xlu1 %6636, %v422_v7   ;;  %645 = vperm.xlu0 %6635, %v421_v8   ;;  %v453_v40 = vld [vmem:[%s11271_s2 + $0x130] sm:$0xff]  ;;  %v456_v41 = vld [vmem:[%s11271_s2 + $0x148] sm:$0xff]  ;;  %v455_v42 = vld [vmem:[%s11271_s2 + $0x140] sm:$0xff] }
   0xf   :  { %v458_v43 = vld [vmem:[%s11271_s2 + $0x158] sm:$0xff]  ;;  %v457_v44 = vld [vmem:[%s11271_s2 + $0x150] sm:$0xff]  ;;  %v460_v45 = vld [vmem:[%s11271_s2 + $0x168] sm:$0xff] }
  0x10   :  { %v459_v46 = vld [vmem:[%s11271_s2 + $0x160] sm:$0xff]  ;;  %v462_v47 = vld [vmem:[%s11271_s2 + $0x178] sm:$0xff]  ;;  %v461_v48 = vld [vmem:[%s11271_s2 + $0x170] sm:$0xff] }
  0x11   :  { %v464_v49 = vld [vmem:[%s11271_s2 + $0x188] sm:$0xff]  ;;  %v463_v50 = vld [vmem:[%s11271_s2 + $0x180] sm:$0xff]  ;;  %v466_v51 = vld [vmem:[%s11271_s2 + $0x198] sm:$0xff] }
  0x12   :  { %660 = vperm.xlu1 %6636, %v424_v9   ;;  %655 = vperm.xlu0 %6635, %v423_v10   ;;  %v465_v52 = vld [vmem:[%s11271_s2 + $0x190] sm:$0xff]  ;;  %v468_v53 = vld [vmem:[%s11271_s2 + $0x1a8] sm:$0xff]  ;;  %v467_v54 = vld [vmem:[%s11271_s2 + $0x1a0] sm:$0xff] }
  0x13   :  { %v470_v55 = vld [vmem:[%s11271_s2 + $0x1b8] sm:$0xff]  ;;  %v469_v56 = vld [vmem:[%s11271_s2 + $0x1b0] sm:$0xff]  ;;  %v472_v57 = vld [vmem:[%s11271_s2 + $0x1c8] sm:$0xff] }
  0x14   :  { %v471_v58 = vld [vmem:[%s11271_s2 + $0x1c0] sm:$0xff]  ;;  %v474_v59 = vld [vmem:[%s11271_s2 + $0x1d8] sm:$0xff]  ;;  %v473_v60 = vld [vmem:[%s11271_s2 + $0x1d0] sm:$0xff] }
  0x15   :  { %v476_v61 = vld [vmem:[%s11271_s2 + $0x1e8] sm:$0xff]  ;;  %v475_v62 = vld [vmem:[%s11271_s2 + $0x1e0] sm:$0xff]  ;;  %v478_v63 = vld [vmem:[%s11271_s2 + $0x1f8] sm:$0xff] }
  0x16   :  { %670 = vperm.xlu1 %6636, %v426_v11   ;;  %665 = vperm.xlu0 %6635, %v425_v12   ;;  %v477_v0 = vld [vmem:[%s11271_s2 + $0x1f0] sm:$0xff]  ;;  %v480_v1 = vld [vmem:[%s11271_s2 + $0x208] sm:$0xff]  ;;  %v479_v3 = vld [vmem:[%s11271_s2 + $0x200] sm:$0xff] }
  0x17   :  { %v482_v6 = vld [vmem:[%s11271_s2 + $0x218] sm:$0xff]  ;;  %v481_v7 = vld [vmem:[%s11271_s2 + $0x210] sm:$0xff]  ;;  %v484_v10 = vld [vmem:[%s11271_s2 + $0x228] sm:$0xff] }
  0x18   :  { %v483_v11 = vld [vmem:[%s11271_s2 + $0x220] sm:$0xff] }
  0x1a   :  { %680 = vperm.xlu1 %6636, %v428_v13   ;;  %675 = vperm.xlu0 %6635, %v427_v14   ;;  %v486_v14 = vld [vmem:[%s11271_s2 + $0x238] sm:$0xff] }
  0x1e   :  { %690 = vperm.xlu1 %6636, %v430_v15   ;;  %685 = vperm.xlu0 %6635, %v429_v16   ;;  %v485_v15 = vld [vmem:[%s11271_s2 + $0x230] sm:$0xff] }
  0x22   :  { %700 = vperm.xlu1 %6636, %v432_v17   ;;  %695 = vperm.xlu0 %6635, %v431_v18   ;;  %v488_v18 = vld [vmem:[%s11271_s2 + $0x248] sm:$0xff] }
  0x26   :  { %710 = vperm.xlu1 %6636, %v434_v19   ;;  %705 = vperm.xlu0 %6635, %v433_v20   ;;  %v487_v19 = vld [vmem:[%s11271_s2 + $0x240] sm:$0xff] }
  0x2a   :  { %720 = vperm.xlu1 %6636, %v436_v21   ;;  %715 = vperm.xlu0 %6635, %v435_v22   ;;  %v490_v22 = vld [vmem:[%s11271_s2 + $0x258] sm:$0xff] }
  0x2e   :  { %730 = vperm.xlu1 %6636, %v438_v23   ;;  %725 = vperm.xlu0 %6635, %v437_v24   ;;  %v489_v23 = vld [vmem:[%s11271_s2 + $0x250] sm:$0xff] }
  0x32   :  { %740 = vperm.xlu1 %6636, %v440_v25   ;;  %735 = vperm.xlu0 %6635, %v439_v26   ;;  %v492_v26 = vld [vmem:[%s11271_s2 + $0x268] sm:$0xff] }
  0x36   :  { %750 = vperm.xlu1 %6636, %v442_v27   ;;  %745 = vperm.xlu0 %6635, %v441_v28   ;;  %v491_v27 = vld [vmem:[%s11271_s2 + $0x260] sm:$0xff] }
  0x3a   :  { %760 = vperm.xlu1 %6636, %v444_v29   ;;  %755 = vperm.xlu0 %6635, %v443_v30   ;;  %v494_v30 = vld [vmem:[%s11271_s2 + $0x278] sm:$0xff] }
  0x3e   :  { %770 = vperm.xlu1 %6636, %v446_v31   ;;  %765 = vperm.xlu0 %6635, %v445_v32  }
  0x42   :  { %780 = vperm.xlu1 %6636, %v448_v33   ;;  %775 = vperm.xlu0 %6635, %v447_v34  }
  0x46   :  { %790 = vperm.xlu1 %6636, %v450_v35   ;;  %785 = vperm.xlu0 %6635, %v449_v36  }
  0x4a   :  { %800 = vperm.xlu1 %6636, %v452_v37   ;;  %795 = vperm.xlu0 %6635, %v451_v38  }
  0x4e   :  { %810 = vperm.xlu1 %6636, %v454_v39   ;;  %805 = vperm.xlu0 %6635, %v453_v40  }
  0x52   :  { %820 = vperm.xlu1 %6636, %v456_v41   ;;  %815 = vperm.xlu0 %6635, %v455_v42  }
  0x56   :  { %830 = vperm.xlu1 %6636, %v458_v43   ;;  %825 = vperm.xlu0 %6635, %v457_v44  }
  0x5a   :  { %840 = vperm.xlu1 %6636, %v460_v45   ;;  %835 = vperm.xlu0 %6635, %v459_v46  }
  0x5e   :  { %850 = vperm.xlu1 %6636, %v462_v47   ;;  %845 = vperm.xlu0 %6635, %v461_v48  }
  0x62   :  { %860 = vperm.xlu1 %6636, %v464_v49   ;;  %855 = vperm.xlu0 %6635, %v463_v50  }
  0x66   :  { %870 = vperm.xlu1 %6636, %v466_v51   ;;  %865 = vperm.xlu0 %6635, %v465_v52  }
  0x6a   :  { %880 = vperm.xlu1 %6636, %v468_v53   ;;  %875 = vperm.xlu0 %6635, %v467_v54  }
  0x6e   :  { %890 = vperm.xlu1 %6636, %v470_v55   ;;  %885 = vperm.xlu0 %6635, %v469_v56  }
  0x72   :  { %900 = vperm.xlu1 %6636, %v472_v57   ;;  %895 = vperm.xlu0 %6635, %v471_v58  }
  0x76   :  { %910 = vperm.xlu1 %6636, %v474_v59   ;;  %905 = vperm.xlu0 %6635, %v473_v60  }
  0x7a   :  { %920 = vperm.xlu1 %6636, %v476_v61   ;;  %915 = vperm.xlu0 %6635, %v475_v62  }
  0x7e   :  { %930 = vperm.xlu1 %6636, %v478_v63   ;;  %925 = vperm.xlu0 %6635, %v477_v0  }
  0x81   :  { %v7297_v4 = vpop.permute.xlu1 %625  ;;  %v7299_v5 = vpop.permute.xlu0 %615 }
  0x82   :  { %940 = vperm.xlu1 %6636, %v480_v1   ;;  %935 = vperm.xlu0 %6635, %v479_v3  }
  0x85   :  { %v7307_v8 = vpop.permute.xlu1 %630  ;;  %v7309_v9 = vpop.permute.xlu0 %620 }
  0x86   :  { %950 = vperm.xlu1 %6636, %v482_v6   ;;  %945 = vperm.xlu0 %6635, %v481_v7  }
  0x89   :  { %v7317_v12 = vpop.permute.xlu1 %640  ;;  %v7319_v13 = vpop.permute.xlu0 %635 }
  0x8a   :  { %960 = vperm.xlu1 %6636, %v484_v10   ;;  %955 = vperm.xlu0 %6635, %v483_v11  }
  0x8d   :  { %v7327_v16 = vpop.permute.xlu1 %650  ;;  %v7329_v17 = vpop.permute.xlu0 %645 }
  0x8e   :  { %970 = vperm.xlu1 %6636, %v486_v14   ;;  %965 = vperm.xlu0 %6635, %v485_v15  }
  0x91   :  { %v7337_v20 = vpop.permute.xlu1 %660  ;;  %v7339_v21 = vpop.permute.xlu0 %655 }
  0x92   :  { %980 = vperm.xlu1 %6636, %v488_v18   ;;  %975 = vperm.xlu0 %6635, %v487_v19  }
  0x95   :  { %v7347_v24 = vpop.permute.xlu1 %670  ;;  %v7349_v25 = vpop.permute.xlu0 %665 }
  0x96   :  { %990 = vperm.xlu1 %6636, %v490_v22   ;;  %985 = vperm.xlu0 %6635, %v489_v23  }
  0x99   :  { %v7357_v28 = vpop.permute.xlu1 %680  ;;  %v7359_v29 = vpop.permute.xlu0 %675 }
  0x9a   :  { %1000 = vperm.xlu1 %6636, %v492_v26   ;;  %995 = vperm.xlu0 %6635, %v491_v27  }
  0x9b   :  { %9 = vsyncpa [#allocation3], 0  ;;  %v493_v31 = vld [vmem:[%s11271_s2 + $0x270] sm:$0xff]  ;;  %v496_v34 = vld [vmem:[%s11271_s2 + $0x288] sm:$0xff]  ;;  %vm4873_vm0 = vcmask 392192   ;;  %vm6030_vm1 = vcmask 556032  }
  0x9c   :  { %v495_v35 = vld [vmem:[%s11271_s2 + $0x280] sm:$0xff]  ;;  %v498_v38 = vld [vmem:[%s11271_s2 + $0x298] sm:$0xff]  ;;  %v497_v39 = vld [vmem:[%s11271_s2 + $0x290] sm:$0xff] }
  0x9d   :  { %v7367_v32 = vpop.permute.xlu1 %690  ;;  %v7369_v33 = vpop.permute.xlu0 %685  ;;  %v500_v42 = vld [vmem:[%s11271_s2 + $0x2a8] sm:$0xff]  ;;  %v499_v43 = vld [vmem:[%s11271_s2 + $0x2a0] sm:$0xff]  ;;  %v502_v46 = vld [vmem:[%s11271_s2 + $0x2b8] sm:$0xff] }
  0x9e   :  { %1010 = vperm.xlu1 %6636, %v494_v30   ;;  %1005 = vperm.xlu0 %6635, %v493_v31   ;;  %v501_v47 = vld [vmem:[%s11271_s2 + $0x2b0] sm:$0xff]  ;;  %v504_v50 = vld [vmem:[%s11271_s2 + $0x2c8] sm:$0xff]  ;;  %v503_v51 = vld [vmem:[%s11271_s2 + $0x2c0] sm:$0xff] }
  0x9f   :  { %v506_v54 = vld [vmem:[%s11271_s2 + $0x2d8] sm:$0xff]  ;;  %v505_v55 = vld [vmem:[%s11271_s2 + $0x2d0] sm:$0xff]  ;;  %v508_v58 = vld [vmem:[%s11271_s2 + $0x2e8] sm:$0xff] }
  0xa0   :  { %v507_v59 = vld [vmem:[%s11271_s2 + $0x2e0] sm:$0xff]  ;;  %v510_v62 = vld [vmem:[%s11271_s2 + $0x2f8] sm:$0xff]  ;;  %v509_v63 = vld [vmem:[%s11271_s2 + $0x2f0] sm:$0xff] }
  0xa1   :  { %v7377_v36 = vpop.permute.xlu1 %700  ;;  %v7379_v37 = vpop.permute.xlu0 %695  ;;  %v7454_v3 = vld [vmem:[%s11271_s2 + $0x308] sm:$0xff]  ;;  %v7459_v6 = vld [vmem:[%s11271_s2 + $0x300] sm:$0xff]  ;;  %v7470_v11 = vld [vmem:[%s11271_s2 + $0x318] sm:$0xff] }
  0xa2   :  { %1020 = vperm.xlu1 %6636, %v496_v34   ;;  %1015 = vperm.xlu0 %6635, %v495_v35   ;;  %v7475_v14 = vld [vmem:[%s11271_s2 + $0x310] sm:$0xff]  ;;  %v7486_v19 = vld [vmem:[%s11271_s2 + $0x328] sm:$0xff]  ;;  %v7491_v22 = vld [vmem:[%s11271_s2 + $0x320] sm:$0xff] }
  0xa3   :  { %v7502_v27 = vld [vmem:[%s11271_s2 + $0x338] sm:$0xff]  ;;  %v7507_v30 = vld [vmem:[%s11271_s2 + $0x330] sm:$0xff]  ;;  %v7518_v35 = vld [vmem:[%s11271_s2 + $0x348] sm:$0xff] }
  0xa5   :  { %v7387_v40 = vpop.permute.xlu1 %710  ;;  %v7389_v41 = vpop.permute.xlu0 %705 }
  0xa6   :  { %1030 = vperm.xlu1 %6636, %v498_v38   ;;  %1025 = vperm.xlu0 %6635, %v497_v39   ;;  %v7523_v38 = vld [vmem:[%s11271_s2 + $0x340] sm:$0xff] }
  0xa9   :  { %v7397_v44 = vpop.permute.xlu1 %720  ;;  %v7399_v45 = vpop.permute.xlu0 %715 }
  0xaa   :  { %1040 = vperm.xlu1 %6636, %v500_v42   ;;  %1035 = vperm.xlu0 %6635, %v499_v43   ;;  %v7534_v43 = vld [vmem:[%s11271_s2 + $0x358] sm:$0xff] }
  0xad   :  { %v7407_v48 = vpop.permute.xlu1 %730  ;;  %v7409_v49 = vpop.permute.xlu0 %725 }
  0xae   :  { %1050 = vperm.xlu1 %6636, %v502_v46   ;;  %1045 = vperm.xlu0 %6635, %v501_v47   ;;  %v7539_v46 = vld [vmem:[%s11271_s2 + $0x350] sm:$0xff] }
  0xb1   :  { %v7417_v52 = vpop.permute.xlu1 %740  ;;  %v7419_v53 = vpop.permute.xlu0 %735 }
  0xb2   :  { %1060 = vperm.xlu1 %6636, %v504_v50   ;;  %1055 = vperm.xlu0 %6635, %v503_v51   ;;  %v7550_v51 = vld [vmem:[%s11271_s2 + $0x368] sm:$0xff] }
  0xb5   :  { %v7427_v56 = vpop.permute.xlu1 %750  ;;  %v7429_v57 = vpop.permute.xlu0 %745 }
  0xb6   :  { %1070 = vperm.xlu1 %6636, %v506_v54   ;;  %1065 = vperm.xlu0 %6635, %v505_v55   ;;  %v7555_v54 = vld [vmem:[%s11271_s2 + $0x360] sm:$0xff] }
  0xb9   :  { %v7437_v60 = vpop.permute.xlu1 %760  ;;  %v7439_v61 = vpop.permute.xlu0 %755 }
  0xba   :  { %1080 = vperm.xlu1 %6636, %v508_v58   ;;  %1075 = vperm.xlu0 %6635, %v507_v59   ;;  %v7566_v59 = vld [vmem:[%s11271_s2 + $0x378] sm:$0xff] }
  0xbd   :  { %v7447_v0 = vpop.permute.xlu1 %770  ;;  %v7449_v1 = vpop.permute.xlu0 %765 }
  0xbe   :  { %11441 = vst [vmem:[#allocation5_spill] sm:$0xff] %v7447_v0  ;;  %1090 = vperm.xlu1 %6636, %v510_v62   ;;  %1085 = vperm.xlu0 %6635, %v509_v63   ;;  %v7571_v62 = vld [vmem:[%s11271_s2 + $0x370] sm:$0xff] }
  0xc1   :  { %v7461_v7 = vpop.permute.xlu1 %780  ;;  %v7463_v10 = vpop.permute.xlu0 %775 }
  0xc2   :  { %11442 = vst [vmem:[#allocation6_spill] sm:$0xff] %v7461_v7  ;;  %11443 = vst [vmem:[#allocation7_spill] sm:$0xff] %v7463_v10  ;;  %1100 = vperm.xlu1 %6636, %v7454_v3   ;;  %1095 = vperm.xlu0 %6635, %v7459_v6  }
  0xc5   :  { %v7477_v15 = vpop.permute.xlu1 %790  ;;  %v7479_v18 = vpop.permute.xlu0 %785 }
  0xc6   :  { %11444 = vst [vmem:[#allocation8_spill] sm:$0xff] %v7477_v15  ;;  %11445 = vst [vmem:[#allocation9_spill] sm:$0xff] %v7479_v18  ;;  %1110 = vperm.xlu1 %6636, %v7470_v11   ;;  %1105 = vperm.xlu0 %6635, %v7475_v14  }
  0xc9   :  { %v7493_v23 = vpop.permute.xlu1 %800  ;;  %v7495_v26 = vpop.permute.xlu0 %795 }
  0xca   :  { %11446 = vst [vmem:[#allocation10_spill] sm:$0xff] %v7493_v23  ;;  %11447 = vst [vmem:[#allocation11_spill] sm:$0xff] %v7495_v26  ;;  %1120 = vperm.xlu1 %6636, %v7486_v19   ;;  %1115 = vperm.xlu0 %6635, %v7491_v22  }
  0xcd   :  { %v7509_v31 = vpop.permute.xlu1 %810  ;;  %v7511_v34 = vpop.permute.xlu0 %805 }
  0xce   :  { %11448 = vst [vmem:[#allocation12_spill] sm:$0xff] %v7509_v31  ;;  %11449 = vst [vmem:[#allocation13_spill] sm:$0xff] %v7511_v34  ;;  %1130 = vperm.xlu1 %6636, %v7502_v27   ;;  %1125 = vperm.xlu0 %6635, %v7507_v30  }
  0xd1   :  { %v7525_v39 = vpop.permute.xlu1 %820  ;;  %v7527_v42 = vpop.permute.xlu0 %815 }
  0xd2   :  { %11450 = vst [vmem:[#allocation14_spill] sm:$0xff] %v7525_v39  ;;  %11451 = vst [vmem:[#allocation15_spill] sm:$0xff] %v7527_v42  ;;  %1140 = vperm.xlu1 %6636, %v7518_v35   ;;  %1135 = vperm.xlu0 %6635, %v7523_v38  }
  0xd5   :  { %v7541_v47 = vpop.permute.xlu1 %830  ;;  %v7543_v50 = vpop.permute.xlu0 %825 }
  0xd6   :  { %11452 = vst [vmem:[#allocation16_spill] sm:$0xff] %v7541_v47  ;;  %11453 = vst [vmem:[#allocation17_spill] sm:$0xff] %v7543_v50  ;;  %1150 = vperm.xlu1 %6636, %v7534_v43   ;;  %1145 = vperm.xlu0 %6635, %v7539_v46  }
  0xd9   :  { %v7557_v55 = vpop.permute.xlu1 %840  ;;  %v7559_v58 = vpop.permute.xlu0 %835 }
  0xda   :  { %11454 = vst [vmem:[#allocation18_spill] sm:$0xff] %v7557_v55  ;;  %11455 = vst [vmem:[#allocation19_spill] sm:$0xff] %v7559_v58  ;;  %1160 = vperm.xlu1 %6636, %v7550_v51   ;;  %1155 = vperm.xlu0 %6635, %v7555_v54   ;;  %v7582_v55 = vld [vmem:[%s11271_s2 + $0x388] sm:$0xff]  ;;  %v7587_v58 = vld [vmem:[%s11271_s2 + $0x380] sm:$0xff] }
  0xdd   :  { %v7573_v63 = vpop.permute.xlu1 %850  ;;  %v7575_v2 = vpop.permute.xlu0 %845 }
  0xde   :  { %11456 = vst [vmem:[#allocation20_spill] sm:$0xff] %v7573_v63  ;;  %11457 = vst [vmem:[#allocation21_spill] sm:$0xff] %v7575_v2  ;;  %1170 = vperm.xlu1 %6636, %v7566_v59   ;;  %1165 = vperm.xlu0 %6635, %v7571_v62   ;;  %v7598_v63 = vld [vmem:[%s11271_s2 + $0x398] sm:$0xff]  ;;  %v7603_v2 = vld [vmem:[%s11271_s2 + $0x390] sm:$0xff] }
  0xe1   :  { %v7589_v47 = vpop.permute.xlu1 %860  ;;  %v7591_v50 = vpop.permute.xlu0 %855 }
  0xe2   :  { %11458 = vst [vmem:[#allocation22_spill] sm:$0xff] %v7589_v47  ;;  %11459 = vst [vmem:[#allocation23_spill] sm:$0xff] %v7591_v50  ;;  %1180 = vperm.xlu1 %6636, %v7582_v55   ;;  %1175 = vperm.xlu0 %6635, %v7587_v58   ;;  %v7614_v47 = vld [vmem:[%s11271_s2 + $0x3a8] sm:$0xff]  ;;  %v7619_v50 = vld [vmem:[%s11271_s2 + $0x3a0] sm:$0xff] }
  0xe5   :  { %v7605_v39 = vpop.permute.xlu1 %870  ;;  %v7607_v42 = vpop.permute.xlu0 %865 }
  0xe6   :  { %11460 = vst [vmem:[#allocation24_spill] sm:$0xff] %v7605_v39  ;;  %11461 = vst [vmem:[#allocation25_spill] sm:$0xff] %v7607_v42  ;;  %1190 = vperm.xlu1 %6636, %v7598_v63   ;;  %1185 = vperm.xlu0 %6635, %v7603_v2   ;;  %v7630_v39 = vld [vmem:[%s11271_s2 + $0x3b8] sm:$0xff]  ;;  %v7635_v42 = vld [vmem:[%s11271_s2 + $0x3b0] sm:$0xff] }
  0xe9   :  { %v7621_v31 = vpop.permute.xlu1 %880  ;;  %v7623_v34 = vpop.permute.xlu0 %875 }
  0xea   :  { %11462 = vst [vmem:[#allocation26_spill] sm:$0xff] %v7621_v31  ;;  %11463 = vst [vmem:[#allocation27_spill] sm:$0xff] %v7623_v34  ;;  %1200 = vperm.xlu1 %6636, %v7614_v47   ;;  %1195 = vperm.xlu0 %6635, %v7619_v50   ;;  %v536_v31 = vld [vmem:[%s11271_s2 + $0x3c8] sm:$0xff]  ;;  %v535_v34 = vld [vmem:[%s11271_s2 + $0x3c0] sm:$0xff] }
  0xed   :  { %v7637_v23 = vpop.permute.xlu1 %890  ;;  %v7639_v26 = vpop.permute.xlu0 %885 }
  0xee   :  { %11464 = vst [vmem:[#allocation28_spill] sm:$0xff] %v7637_v23  ;;  %11465 = vst [vmem:[#allocation29_spill] sm:$0xff] %v7639_v26  ;;  %1210 = vperm.xlu1 %6636, %v7630_v39   ;;  %1205 = vperm.xlu0 %6635, %v7635_v42   ;;  %v538_v23 = vld [vmem:[%s11271_s2 + $0x3d8] sm:$0xff]  ;;  %v537_v26 = vld [vmem:[%s11271_s2 + $0x3d0] sm:$0xff] }
  0xf1   :  { %v7649_v15 = vpop.permute.xlu1 %900  ;;  %v7651_v18 = vpop.permute.xlu0 %895 }
  0xf2   :  { %11466 = vst [vmem:[#allocation30_spill] sm:$0xff] %v7649_v15  ;;  %11467 = vst [vmem:[#allocation31_spill] sm:$0xff] %v7651_v18  ;;  %1220 = vperm.xlu1 %6636, %v536_v31   ;;  %1215 = vperm.xlu0 %6635, %v535_v34   ;;  %v540_v15 = vld [vmem:[%s11271_s2 + $0x3e8] sm:$0xff]  ;;  %v539_v31 = vld [vmem:[%s11271_s2 + $0x3e0] sm:$0xff] }
  0xf5   :  { %v7659_v7 = vpop.permute.xlu1 %910  ;;  %v7661_v10 = vpop.permute.xlu0 %905 }
  0xf6   :  { %11468 = vst [vmem:[#allocation32_spill] sm:$0xff] %v7659_v7  ;;  %11469 = vst [vmem:[#allocation33_spill] sm:$0xff] %v7661_v10  ;;  %1230 = vperm.xlu1 %6636, %v538_v23   ;;  %1225 = vperm.xlu0 %6635, %v537_v26   ;;  %v542_v7 = vld [vmem:[%s11271_s2 + $0x3f8] sm:$0xff]  ;;  %v541_v23 = vld [vmem:[%s11271_s2 + $0x3f0] sm:$0xff] }
  0xf9   :  { %v7669_v34 = vpop.permute.xlu1 %920  ;;  %v7671_v18 = vpop.permute.xlu0 %915 }
  0xfa   :  { %11470 = vst [vmem:[#allocation34_spill] sm:$0xff] %v7669_v34  ;;  %11471 = vst [vmem:[#allocation35_spill] sm:$0xff] %v7671_v18  ;;  %1240 = vperm.xlu1 %6636, %v540_v15   ;;  %1235 = vperm.xlu0 %6635, %v539_v31   ;;  %v544_v34 = vld [vmem:[%s11271_s2 + $0x408] sm:$0xff]  ;;  %v543_v15 = vld [vmem:[%s11271_s2 + $0x400] sm:$0xff] }
  0xfd   :  { %v7679_v26 = vpop.permute.xlu1 %930  ;;  %v7681_v10 = vpop.permute.xlu0 %925 }
  0xfe   :  { %11472 = vst [vmem:[#allocation36_spill] sm:$0xff] %v7679_v26  ;;  %11473 = vst [vmem:[#allocation37_spill] sm:$0xff] %v7681_v10  ;;  %1250 = vperm.xlu1 %6636, %v542_v7   ;;  %1245 = vperm.xlu0 %6635, %v541_v23   ;;  %v546_v26 = vld [vmem:[%s11271_s2 + $0x418] sm:$0xff]  ;;  %v545_v7 = vld [vmem:[%s11271_s2 + $0x410] sm:$0xff] }
 0x101   :  { %v7689_v31 = vpop.permute.xlu1 %940  ;;  %v7691_v18 = vpop.permute.xlu0 %935 }
 0x102   :  { %11474 = vst [vmem:[#allocation38_spill] sm:$0xff] %v7689_v31  ;;  %11475 = vst [vmem:[#allocation39_spill] sm:$0xff] %v7691_v18  ;;  %1260 = vperm.xlu1 %6636, %v544_v34   ;;  %1255 = vperm.xlu0 %6635, %v543_v15   ;;  %v548_v31 = vld [vmem:[%s11271_s2 + $0x428] sm:$0xff]  ;;  %v547_v34 = vld [vmem:[%s11271_s2 + $0x420] sm:$0xff] }
 0x105   :  { %v7699_v23 = vpop.permute.xlu1 %950  ;;  %v7701_v10 = vpop.permute.xlu0 %945 }
 0x106   :  { %11476 = vst [vmem:[#allocation40_spill] sm:$0xff] %v7699_v23  ;;  %11477 = vst [vmem:[#allocation41_spill] sm:$0xff] %v7701_v10  ;;  %1270 = vperm.xlu1 %6636, %v546_v26   ;;  %1265 = vperm.xlu0 %6635, %v545_v7   ;;  %v550_v23 = vld [vmem:[%s11271_s2 + $0x438] sm:$0xff]  ;;  %v549_v26 = vld [vmem:[%s11271_s2 + $0x430] sm:$0xff] }
 0x109   :  { %v7709_v15 = vpop.permute.xlu1 %960  ;;  %v7711_v18 = vpop.permute.xlu0 %955 }
 0x10a   :  { %11478 = vst [vmem:[#allocation42_spill] sm:$0xff] %v7709_v15  ;;  %11479 = vst [vmem:[#allocation43_spill] sm:$0xff] %v7711_v18  ;;  %1280 = vperm.xlu1 %6636, %v548_v31   ;;  %1275 = vperm.xlu0 %6635, %v547_v34   ;;  %v552_v15 = vld [vmem:[%s11271_s2 + $0x448] sm:$0xff]  ;;  %v551_v31 = vld [vmem:[%s11271_s2 + $0x440] sm:$0xff] }
 0x10d   :  { %v7719_v7 = vpop.permute.xlu1 %970  ;;  %v7721_v10 = vpop.permute.xlu0 %965 }
 0x10e   :  { %11480 = vst [vmem:[#allocation44_spill] sm:$0xff] %v7719_v7  ;;  %11481 = vst [vmem:[#allocation45_spill] sm:$0xff] %v7721_v10  ;;  %1290 = vperm.xlu1 %6636, %v550_v23   ;;  %1285 = vperm.xlu0 %6635, %v549_v26   ;;  %v554_v7 = vld [vmem:[%s11271_s2 + $0x458] sm:$0xff]  ;;  %v553_v23 = vld [vmem:[%s11271_s2 + $0x450] sm:$0xff] }
 0x111   :  { %v7729_v34 = vpop.permute.xlu1 %980  ;;  %v7731_v18 = vpop.permute.xlu0 %975 }
 0x112   :  { %11482 = vst [vmem:[#allocation46_spill] sm:$0xff] %v7729_v34  ;;  %11483 = vst [vmem:[#allocation47_spill] sm:$0xff] %v7731_v18  ;;  %1300 = vperm.xlu1 %6636, %v552_v15   ;;  %1295 = vperm.xlu0 %6635, %v551_v31   ;;  %v556_v34 = vld [vmem:[%s11271_s2 + $0x468] sm:$0xff]  ;;  %v555_v15 = vld [vmem:[%s11271_s2 + $0x460] sm:$0xff] }
 0x115   :  { %v7739_v26 = vpop.permute.xlu1 %990  ;;  %v7741_v10 = vpop.permute.xlu0 %985 }
 0x116   :  { %11484 = vst [vmem:[#allocation48_spill] sm:$0xff] %v7739_v26  ;;  %11485 = vst [vmem:[#allocation49_spill] sm:$0xff] %v7741_v10  ;;  %1310 = vperm.xlu1 %6636, %v554_v7   ;;  %1305 = vperm.xlu0 %6635, %v553_v23   ;;  %v558_v26 = vld [vmem:[%s11271_s2 + $0x478] sm:$0xff]  ;;  %v557_v7 = vld [vmem:[%s11271_s2 + $0x470] sm:$0xff] }
 0x119   :  { %v7749_v31 = vpop.permute.xlu1 %1000  ;;  %v7751_v18 = vpop.permute.xlu0 %995 }
 0x11a   :  { %11486 = vst [vmem:[#allocation50_spill] sm:$0xff] %v7749_v31  ;;  %11487 = vst [vmem:[#allocation51_spill] sm:$0xff] %v7751_v18  ;;  %1320 = vperm.xlu1 %6636, %v556_v34   ;;  %1315 = vperm.xlu0 %6635, %v555_v15   ;;  %v560_v31 = vld [vmem:[%s11271_s2 + $0x488] sm:$0xff]  ;;  %v559_v34 = vld [vmem:[%s11271_s2 + $0x480] sm:$0xff] }
 0x11d   :  { %v7759_v23 = vpop.permute.xlu1 %1010  ;;  %v7761_v10 = vpop.permute.xlu0 %1005 }
 0x11e   :  { %11488 = vst [vmem:[#allocation52_spill] sm:$0xff] %v7759_v23  ;;  %11489 = vst [vmem:[#allocation53_spill] sm:$0xff] %v7761_v10  ;;  %1330 = vperm.xlu1 %6636, %v558_v26   ;;  %1325 = vperm.xlu0 %6635, %v557_v7   ;;  %v562_v23 = vld [vmem:[%s11271_s2 + $0x498] sm:$0xff]  ;;  %v561_v26 = vld [vmem:[%s11271_s2 + $0x490] sm:$0xff] }
 0x121   :  { %v7769_v15 = vpop.permute.xlu1 %1020  ;;  %v7771_v18 = vpop.permute.xlu0 %1015 }
 0x122   :  { %11490 = vst [vmem:[#allocation54_spill] sm:$0xff] %v7769_v15  ;;  %11491 = vst [vmem:[#allocation55_spill] sm:$0xff] %v7771_v18  ;;  %1340 = vperm.xlu1 %6636, %v560_v31   ;;  %1335 = vperm.xlu0 %6635, %v559_v34   ;;  %v564_v15 = vld [vmem:[%s11271_s2 + $0x4a8] sm:$0xff]  ;;  %v563_v31 = vld [vmem:[%s11271_s2 + $0x4a0] sm:$0xff] }
 0x125   :  { %v7779_v7 = vpop.permute.xlu1 %1030  ;;  %v7781_v10 = vpop.permute.xlu0 %1025 }
 0x126   :  { %11492 = vst [vmem:[#allocation56_spill] sm:$0xff] %v7779_v7  ;;  %11493 = vst [vmem:[#allocation57_spill] sm:$0xff] %v7781_v10  ;;  %1350 = vperm.xlu1 %6636, %v562_v23   ;;  %1345 = vperm.xlu0 %6635, %v561_v26   ;;  %v566_v7 = vld [vmem:[%s11271_s2 + $0x4b8] sm:$0xff]  ;;  %v565_v23 = vld [vmem:[%s11271_s2 + $0x4b0] sm:$0xff] }
 0x129   :  { %v7789_v34 = vpop.permute.xlu1 %1040  ;;  %v7791_v18 = vpop.permute.xlu0 %1035 }
 0x12a   :  { %11494 = vst [vmem:[#allocation58_spill] sm:$0xff] %v7789_v34  ;;  %11495 = vst [vmem:[#allocation59_spill] sm:$0xff] %v7791_v18  ;;  %1360 = vperm.xlu1 %6636, %v564_v15   ;;  %1355 = vperm.xlu0 %6635, %v563_v31   ;;  %v568_v34 = vld [vmem:[%s11271_s2 + $0x4c8] sm:$0xff]  ;;  %v567_v15 = vld [vmem:[%s11271_s2 + $0x4c0] sm:$0xff] }
 0x12d   :  { %v7799_v26 = vpop.permute.xlu1 %1050  ;;  %v7801_v10 = vpop.permute.xlu0 %1045 }
 0x12e   :  { %11496 = vst [vmem:[#allocation60_spill] sm:$0xff] %v7799_v26  ;;  %11497 = vst [vmem:[#allocation61_spill] sm:$0xff] %v7801_v10  ;;  %1370 = vperm.xlu1 %6636, %v566_v7   ;;  %1365 = vperm.xlu0 %6635, %v565_v23   ;;  %v570_v26 = vld [vmem:[%s11271_s2 + $0x4d8] sm:$0xff]  ;;  %v569_v7 = vld [vmem:[%s11271_s2 + $0x4d0] sm:$0xff] }
 0x131   :  { %v7809_v31 = vpop.permute.xlu1 %1060  ;;  %v7811_v18 = vpop.permute.xlu0 %1055 }
 0x132   :  { %11498 = vst [vmem:[#allocation62_spill] sm:$0xff] %v7809_v31  ;;  %11499 = vst [vmem:[#allocation63_spill] sm:$0xff] %v7811_v18  ;;  %1380 = vperm.xlu1 %6636, %v568_v34   ;;  %1375 = vperm.xlu0 %6635, %v567_v15   ;;  %v572_v31 = vld [vmem:[%s11271_s2 + $0x4e8] sm:$0xff]  ;;  %v571_v34 = vld [vmem:[%s11271_s2 + $0x4e0] sm:$0xff] }
 0x135   :  { %v7819_v23 = vpop.permute.xlu1 %1070  ;;  %v7821_v10 = vpop.permute.xlu0 %1065 }
 0x136   :  { %11500 = vst [vmem:[#allocation64_spill] sm:$0xff] %v7819_v23  ;;  %11501 = vst [vmem:[#allocation65_spill] sm:$0xff] %v7821_v10  ;;  %1390 = vperm.xlu1 %6636, %v570_v26   ;;  %1385 = vperm.xlu0 %6635, %v569_v7   ;;  %v574_v23 = vld [vmem:[%s11271_s2 + $0x4f8] sm:$0xff]  ;;  %v573_v26 = vld [vmem:[%s11271_s2 + $0x4f0] sm:$0xff] }
 0x139   :  { %v7829_v15 = vpop.permute.xlu1 %1080  ;;  %v7831_v18 = vpop.permute.xlu0 %1075 }
 0x13a   :  { %11502 = vst [vmem:[#allocation66_spill] sm:$0xff] %v7829_v15  ;;  %11503 = vst [vmem:[#allocation67_spill] sm:$0xff] %v7831_v18  ;;  %1400 = vperm.xlu1 %6636, %v572_v31   ;;  %1395 = vperm.xlu0 %6635, %v571_v34   ;;  %v576_v15 = vld [vmem:[%s11271_s2 + $0x508] sm:$0xff]  ;;  %v575_v31 = vld [vmem:[%s11271_s2 + $0x500] sm:$0xff] }
 0x13d   :  { %v7839_v7 = vpop.permute.xlu1 %1090  ;;  %v7841_v10 = vpop.permute.xlu0 %1085 }
 0x13e   :  { %11504 = vst [vmem:[#allocation68_spill] sm:$0xff] %v7839_v7  ;;  %11505 = vst [vmem:[#allocation69_spill] sm:$0xff] %v7841_v10  ;;  %1410 = vperm.xlu1 %6636, %v574_v23   ;;  %1405 = vperm.xlu0 %6635, %v573_v26   ;;  %v578_v7 = vld [vmem:[%s11271_s2 + $0x518] sm:$0xff]  ;;  %v577_v23 = vld [vmem:[%s11271_s2 + $0x510] sm:$0xff] }
 0x141   :  { %v7849_v34 = vpop.permute.xlu1 %1100  ;;  %v7851_v18 = vpop.permute.xlu0 %1095 }
 0x142   :  { %11506 = vst [vmem:[#allocation70_spill] sm:$0xff] %v7849_v34  ;;  %11507 = vst [vmem:[#allocation71_spill] sm:$0xff] %v7851_v18  ;;  %1420 = vperm.xlu1 %6636, %v576_v15   ;;  %1415 = vperm.xlu0 %6635, %v575_v31   ;;  %v580_v34 = vld [vmem:[%s11271_s2 + $0x528] sm:$0xff]  ;;  %v579_v15 = vld [vmem:[%s11271_s2 + $0x520] sm:$0xff] }
 0x145   :  { %v7859_v26 = vpop.permute.xlu1 %1110  ;;  %v7861_v10 = vpop.permute.xlu0 %1105 }
 0x146   :  { %11508 = vst [vmem:[#allocation72_spill] sm:$0xff] %v7859_v26  ;;  %11509 = vst [vmem:[#allocation73_spill] sm:$0xff] %v7861_v10  ;;  %1430 = vperm.xlu1 %6636, %v578_v7   ;;  %1425 = vperm.xlu0 %6635, %v577_v23   ;;  %v582_v26 = vld [vmem:[%s11271_s2 + $0x538] sm:$0xff]  ;;  %v581_v7 = vld [vmem:[%s11271_s2 + $0x530] sm:$0xff] }
 0x149   :  { %v7869_v31 = vpop.permute.xlu1 %1120  ;;  %v7871_v18 = vpop.permute.xlu0 %1115 }
 0x14a   :  { %11510 = vst [vmem:[#allocation74_spill] sm:$0xff] %v7869_v31  ;;  %11511 = vst [vmem:[#allocation75_spill] sm:$0xff] %v7871_v18  ;;  %1440 = vperm.xlu1 %6636, %v580_v34   ;;  %1435 = vperm.xlu0 %6635, %v579_v15   ;;  %v584_v31 = vld [vmem:[%s11271_s2 + $0x548] sm:$0xff]  ;;  %v583_v34 = vld [vmem:[%s11271_s2 + $0x540] sm:$0xff] }
 0x14d   :  { %v7879_v23 = vpop.permute.xlu1 %1130  ;;  %v7881_v10 = vpop.permute.xlu0 %1125 }
 0x14e   :  { %11512 = vst [vmem:[#allocation76_spill] sm:$0xff] %v7879_v23  ;;  %11513 = vst [vmem:[#allocation77_spill] sm:$0xff] %v7881_v10  ;;  %1450 = vperm.xlu1 %6636, %v582_v26   ;;  %1445 = vperm.xlu0 %6635, %v581_v7   ;;  %v586_v23 = vld [vmem:[%s11271_s2 + $0x558] sm:$0xff]  ;;  %v585_v26 = vld [vmem:[%s11271_s2 + $0x550] sm:$0xff] }
 0x151   :  { %v7889_v15 = vpop.permute.xlu1 %1140  ;;  %v7891_v18 = vpop.permute.xlu0 %1135 }
 0x152   :  { %11514 = vst [vmem:[#allocation78_spill] sm:$0xff] %v7889_v15  ;;  %11515 = vst [vmem:[#allocation79_spill] sm:$0xff] %v7891_v18  ;;  %1460 = vperm.xlu1 %6636, %v584_v31   ;;  %1455 = vperm.xlu0 %6635, %v583_v34   ;;  %v588_v15 = vld [vmem:[%s11271_s2 + $0x568] sm:$0xff]  ;;  %v587_v31 = vld [vmem:[%s11271_s2 + $0x560] sm:$0xff] }
 0x155   :  { %v7899_v7 = vpop.permute.xlu1 %1150  ;;  %v7901_v10 = vpop.permute.xlu0 %1145 }
 0x156   :  { %11516 = vst [vmem:[#allocation80_spill] sm:$0xff] %v7899_v7  ;;  %11517 = vst [vmem:[#allocation81_spill] sm:$0xff] %v7901_v10  ;;  %1470 = vperm.xlu1 %6636, %v586_v23   ;;  %1465 = vperm.xlu0 %6635, %v585_v26   ;;  %v590_v7 = vld [vmem:[%s11271_s2 + $0x578] sm:$0xff]  ;;  %v589_v23 = vld [vmem:[%s11271_s2 + $0x570] sm:$0xff] }
 0x159   :  { %v7909_v34 = vpop.permute.xlu1 %1160  ;;  %v7911_v18 = vpop.permute.xlu0 %1155 }
 0x15a   :  { %11518 = vst [vmem:[#allocation82_spill] sm:$0xff] %v7909_v34  ;;  %11519 = vst [vmem:[#allocation83_spill] sm:$0xff] %v7911_v18  ;;  %1480 = vperm.xlu1 %6636, %v588_v15   ;;  %1475 = vperm.xlu0 %6635, %v587_v31   ;;  %v592_v34 = vld [vmem:[%s11271_s2 + $0x588] sm:$0xff]  ;;  %v591_v15 = vld [vmem:[%s11271_s2 + $0x580] sm:$0xff] }
 0x15d   :  { %v7919_v26 = vpop.permute.xlu1 %1170  ;;  %v7921_v10 = vpop.permute.xlu0 %1165 }
 0x15e   :  { %11520 = vst [vmem:[#allocation84_spill] sm:$0xff] %v7919_v26  ;;  %11521 = vst [vmem:[#allocation85_spill] sm:$0xff] %v7921_v10  ;;  %1490 = vperm.xlu1 %6636, %v590_v7   ;;  %1485 = vperm.xlu0 %6635, %v589_v23   ;;  %v594_v26 = vld [vmem:[%s11271_s2 + $0x598] sm:$0xff]  ;;  %v593_v7 = vld [vmem:[%s11271_s2 + $0x590] sm:$0xff] }
 0x161   :  { %v7929_v31 = vpop.permute.xlu1 %1180  ;;  %v7931_v18 = vpop.permute.xlu0 %1175 }
 0x162   :  { %11522 = vst [vmem:[#allocation86_spill] sm:$0xff] %v7929_v31  ;;  %11523 = vst [vmem:[#allocation87_spill] sm:$0xff] %v7931_v18  ;;  %1500 = vperm.xlu1 %6636, %v592_v34   ;;  %1495 = vperm.xlu0 %6635, %v591_v15   ;;  %v596_v31 = vld [vmem:[%s11271_s2 + $0x5a8] sm:$0xff]  ;;  %v595_v34 = vld [vmem:[%s11271_s2 + $0x5a0] sm:$0xff] }
 0x165   :  { %v7939_v23 = vpop.permute.xlu1 %1190  ;;  %v7941_v10 = vpop.permute.xlu0 %1185 }
 0x166   :  { %11524 = vst [vmem:[#allocation88_spill] sm:$0xff] %v7939_v23  ;;  %11525 = vst [vmem:[#allocation89_spill] sm:$0xff] %v7941_v10  ;;  %1510 = vperm.xlu1 %6636, %v594_v26   ;;  %1505 = vperm.xlu0 %6635, %v593_v7   ;;  %v598_v23 = vld [vmem:[%s11271_s2 + $0x5b8] sm:$0xff]  ;;  %v597_v26 = vld [vmem:[%s11271_s2 + $0x5b0] sm:$0xff] }
 0x169   :  { %v7949_v15 = vpop.permute.xlu1 %1200  ;;  %v7951_v18 = vpop.permute.xlu0 %1195 }
 0x16a   :  { %11526 = vst [vmem:[#allocation90_spill] sm:$0xff] %v7949_v15  ;;  %11527 = vst [vmem:[#allocation91_spill] sm:$0xff] %v7951_v18  ;;  %1520 = vperm.xlu1 %6636, %v596_v31   ;;  %1515 = vperm.xlu0 %6635, %v595_v34   ;;  %v600_v15 = vld [vmem:[%s11271_s2 + $0x5c8] sm:$0xff]  ;;  %v599_v31 = vld [vmem:[%s11271_s2 + $0x5c0] sm:$0xff] }
 0x16d   :  { %v7959_v7 = vpop.permute.xlu1 %1210  ;;  %v7961_v10 = vpop.permute.xlu0 %1205 }
 0x16e   :  { %11528 = vst [vmem:[#allocation92_spill] sm:$0xff] %v7959_v7  ;;  %11529 = vst [vmem:[#allocation93_spill] sm:$0xff] %v7961_v10  ;;  %1530 = vperm.xlu1 %6636, %v598_v23   ;;  %1525 = vperm.xlu0 %6635, %v597_v26   ;;  %v602_v7 = vld [vmem:[%s11271_s2 + $0x5d8] sm:$0xff]  ;;  %v601_v23 = vld [vmem:[%s11271_s2 + $0x5d0] sm:$0xff] }
 0x171   :  { %v7969_v34 = vpop.permute.xlu1 %1220  ;;  %v7971_v18 = vpop.permute.xlu0 %1215 }
 0x172   :  { %11530 = vst [vmem:[#allocation94_spill] sm:$0xff] %v7969_v34  ;;  %11531 = vst [vmem:[#allocation95_spill] sm:$0xff] %v7971_v18  ;;  %1540 = vperm.xlu1 %6636, %v600_v15   ;;  %1535 = vperm.xlu0 %6635, %v599_v31   ;;  %v604_v34 = vld [vmem:[%s11271_s2 + $0x5e8] sm:$0xff]  ;;  %v603_v15 = vld [vmem:[%s11271_s2 + $0x5e0] sm:$0xff] }
 0x175   :  { %v7979_v26 = vpop.permute.xlu1 %1230  ;;  %v7981_v10 = vpop.permute.xlu0 %1225 }
 0x176   :  { %11532 = vst [vmem:[#allocation96_spill] sm:$0xff] %v7979_v26  ;;  %11533 = vst [vmem:[#allocation97_spill] sm:$0xff] %v7981_v10  ;;  %1550 = vperm.xlu1 %6636, %v602_v7   ;;  %1545 = vperm.xlu0 %6635, %v601_v23   ;;  %v606_v26 = vld [vmem:[%s11271_s2 + $0x5f8] sm:$0xff]  ;;  %v605_v7 = vld [vmem:[%s11271_s2 + $0x5f0] sm:$0xff] }
 0x179   :  { %v7989_v31 = vpop.permute.xlu1 %1240  ;;  %v7991_v18 = vpop.permute.xlu0 %1235 }
 0x17a   :  { %11534 = vst [vmem:[#allocation98_spill] sm:$0xff] %v7989_v31  ;;  %11535 = vst [vmem:[#allocation99_spill] sm:$0xff] %v7991_v18  ;;  %1560 = vperm.xlu1 %6636, %v604_v34   ;;  %1555 = vperm.xlu0 %6635, %v603_v15   ;;  %v608_v31 = vld [vmem:[%s11271_s2 + $0x608] sm:$0xff]  ;;  %v607_v34 = vld [vmem:[%s11271_s2 + $0x600] sm:$0xff] }
 0x17d   :  { %v7999_v23 = vpop.permute.xlu1 %1250  ;;  %v8001_v10 = vpop.permute.xlu0 %1245 }
 0x17e   :  { %11536 = vst [vmem:[#allocation100_spill] sm:$0xff] %v7999_v23  ;;  %11537 = vst [vmem:[#allocation101_spill] sm:$0xff] %v8001_v10  ;;  %1570 = vperm.xlu1 %6636, %v606_v26   ;;  %1565 = vperm.xlu0 %6635, %v605_v7   ;;  %v610_v23 = vld [vmem:[%s11271_s2 + $0x618] sm:$0xff]  ;;  %v609_v26 = vld [vmem:[%s11271_s2 + $0x610] sm:$0xff] }
 0x181   :  { %v8009_v15 = vpop.permute.xlu1 %1260  ;;  %v8011_v18 = vpop.permute.xlu0 %1255 }
 0x182   :  { %11538 = vst [vmem:[#allocation102_spill] sm:$0xff] %v8009_v15  ;;  %11539 = vst [vmem:[#allocation103_spill] sm:$0xff] %v8011_v18  ;;  %1580 = vperm.xlu1 %6636, %v608_v31   ;;  %1575 = vperm.xlu0 %6635, %v607_v34   ;;  %v612_v15 = vld [vmem:[%s11271_s2 + $0x628] sm:$0xff]  ;;  %v611_v31 = vld [vmem:[%s11271_s2 + $0x620] sm:$0xff] }
 0x185   :  { %v8019_v7 = vpop.permute.xlu1 %1270  ;;  %v8021_v10 = vpop.permute.xlu0 %1265 }
 0x186   :  { %11540 = vst [vmem:[#allocation104_spill] sm:$0xff] %v8019_v7  ;;  %1590 = vperm.xlu1 %6636, %v610_v23   ;;  %1585 = vperm.xlu0 %6635, %v609_v26   ;;  %v7068_v23 = vmov 1   ;;  %v6869_v26 = vld [vmem:[%s11271_s2 + $0x8] sm:$0xff] }
 0x189   :  { %v8029_v34 = vpop.permute.xlu1 %1280  ;;  %v8031_v18 = vpop.permute.xlu0 %1275 }
 0x18a   :  { %11541 = vst [vmem:[#allocation105_spill] sm:$0xff] %v8029_v34  ;;  %11542 = vst [vmem:[#allocation106_spill] sm:$0xff] %v8031_v18  ;;  %1600 = vperm.xlu1 %6636, %v612_v15   ;;  %1595 = vperm.xlu0 %6635, %v611_v31   ;;  %v6870_v34 = vld [vmem:[%s11271_s2] sm:$0xff]  ;;  %v6871_v31 = vld [vmem:[%s11271_s2 + $0x10] sm:$0xff] }
 0x18d   :  { %v8033_v0 = vpop.permute.xlu1 %1290  ;;  %v8035_v7 = vpop.permute.xlu0 %1285 }
 0x18e   :  { %11543 = vst [vmem:[#allocation107_spill] sm:$0xff] %v8033_v0  ;;  %6638 = vset.pattern.permute.xlu1 %v7068_v23  ;;  %6637 = vset.pattern.permute.xlu0 %v7068_v23  ;;  %v6872_v23 = vld [vmem:[%s11271_s2 + $0x18] sm:$0xff] }
 0x18f   :  { %2004 = vperm.xlu1 %6638, %v6869_v26   ;;  %2000 = vperm.xlu0 %6637, %v6870_v34   ;;  %v6873_v34 = vld [vmem:[%s11271_s2 + $0x20] sm:$0xff] }
 0x191   :  { %v8043_v18 = vpop.permute.xlu1 %1300  ;;  %v8045_v15 = vpop.permute.xlu0 %1295 }
 0x192   :  { %11544 = vst [vmem:[#allocation108_spill] sm:$0xff] %v8043_v18  ;;  %11545 = vst [vmem:[#allocation109_spill] sm:$0xff] %v8045_v15  ;;  %v6874_v18 = vld [vmem:[%s11271_s2 + $0x28] sm:$0xff] }
 0x193   :  { %2008 = vperm.xlu1 %6638, %v6871_v31   ;;  %2012 = vperm.xlu0 %6637, %v6872_v23   ;;  %v6875_v23 = vld [vmem:[%s11271_s2 + $0x30] sm:$0xff] }
 0x195   :  { %v8053_v26 = vpop.permute.xlu1 %1310  ;;  %v8055_v0 = vpop.permute.xlu0 %1305 }
 0x196   :  { %11546 = vst [vmem:[#allocation110_spill] sm:$0xff] %v8053_v26  ;;  %11547 = vst [vmem:[#allocation111_spill] sm:$0xff] %v8055_v0  ;;  %v6876_v26 = vld [vmem:[%s11271_s2 + $0x38] sm:$0xff] }
 0x197   :  { %2016 = vperm.xlu1 %6638, %v6873_v34   ;;  %2020 = vperm.xlu0 %6637, %v6874_v18   ;;  %v6877_v18 = vld [vmem:[%s11271_s2 + $0x40] sm:$0xff] }
 0x199   :  { %v8063_v31 = vpop.permute.xlu1 %1320  ;;  %v8065_v15 = vpop.permute.xlu0 %1315 }
 0x19a   :  { %11548 = vst [vmem:[#allocation112_spill] sm:$0xff] %v8063_v31  ;;  %11549 = vst [vmem:[#allocation113_spill] sm:$0xff] %v8065_v15  ;;  %v6878_v31 = vld [vmem:[%s11271_s2 + $0x48] sm:$0xff] }
 0x19b   :  { %2024 = vperm.xlu1 %6638, %v6875_v23   ;;  %2028 = vperm.xlu0 %6637, %v6876_v26   ;;  %v6879_v26 = vld [vmem:[%s11271_s2 + $0x50] sm:$0xff] }
 0x19d   :  { %v8073_v34 = vpop.permute.xlu1 %1330  ;;  %v8075_v0 = vpop.permute.xlu0 %1325 }
 0x19e   :  { %11550 = vst [vmem:[#allocation114_spill] sm:$0xff] %v8073_v34  ;;  %11551 = vst [vmem:[#allocation115_spill] sm:$0xff] %v8075_v0  ;;  %v6880_v34 = vld [vmem:[%s11271_s2 + $0x58] sm:$0xff] }
 0x19f   :  { %2032 = vperm.xlu1 %6638, %v6877_v18   ;;  %2036 = vperm.xlu0 %6637, %v6878_v31   ;;  %v6881_v31 = vld [vmem:[%s11271_s2 + $0x60] sm:$0xff] }
 0x1a1   :  { %v8083_v23 = vpop.permute.xlu1 %1340  ;;  %v8085_v15 = vpop.permute.xlu0 %1335 }
 0x1a2   :  { %11552 = vst [vmem:[#allocation116_spill] sm:$0xff] %v8083_v23  ;;  %11553 = vst [vmem:[#allocation117_spill] sm:$0xff] %v8085_v15  ;;  %v6882_v23 = vld [vmem:[%s11271_s2 + $0x68] sm:$0xff] }
 0x1a3   :  { %2040 = vperm.xlu1 %6638, %v6879_v26   ;;  %2044 = vperm.xlu0 %6637, %v6880_v34   ;;  %v6883_v34 = vld [vmem:[%s11271_s2 + $0x70] sm:$0xff] }
 0x1a5   :  { %v8093_v18 = vpop.permute.xlu1 %1350  ;;  %v8095_v0 = vpop.permute.xlu0 %1345 }
 0x1a6   :  { %11554 = vst [vmem:[#allocation118_spill] sm:$0xff] %v8093_v18  ;;  %11555 = vst [vmem:[#allocation119_spill] sm:$0xff] %v8095_v0  ;;  %v6884_v18 = vld [vmem:[%s11271_s2 + $0x78] sm:$0xff] }
 0x1a7   :  { %2048 = vperm.xlu1 %6638, %v6881_v31   ;;  %2052 = vperm.xlu0 %6637, %v6882_v23   ;;  %v6885_v23 = vld [vmem:[%s11271_s2 + $0x80] sm:$0xff] }
 0x1a9   :  { %v8103_v26 = vpop.permute.xlu1 %1360  ;;  %v8105_v15 = vpop.permute.xlu0 %1355 }
 0x1aa   :  { %11556 = vst [vmem:[#allocation120_spill] sm:$0xff] %v8103_v26  ;;  %11557 = vst [vmem:[#allocation121_spill] sm:$0xff] %v8105_v15  ;;  %v6886_v26 = vld [vmem:[%s11271_s2 + $0x88] sm:$0xff] }
 0x1ab   :  { %2056 = vperm.xlu1 %6638, %v6883_v34   ;;  %2060 = vperm.xlu0 %6637, %v6884_v18   ;;  %v6887_v18 = vld [vmem:[%s11271_s2 + $0x90] sm:$0xff] }
 0x1ad   :  { %v8113_v31 = vpop.permute.xlu1 %1370  ;;  %v8115_v0 = vpop.permute.xlu0 %1365 }
 0x1ae   :  { %11558 = vst [vmem:[#allocation122_spill] sm:$0xff] %v8113_v31  ;;  %11559 = vst [vmem:[#allocation123_spill] sm:$0xff] %v8115_v0  ;;  %v6888_v31 = vld [vmem:[%s11271_s2 + $0x98] sm:$0xff] }
 0x1af   :  { %2064 = vperm.xlu1 %6638, %v6885_v23   ;;  %2068 = vperm.xlu0 %6637, %v6886_v26   ;;  %v6889_v26 = vld [vmem:[%s11271_s2 + $0xa0] sm:$0xff] }
 0x1b1   :  { %v8123_v34 = vpop.permute.xlu1 %1380  ;;  %v8125_v15 = vpop.permute.xlu0 %1375 }
 0x1b2   :  { %11560 = vst [vmem:[#allocation124_spill] sm:$0xff] %v8123_v34  ;;  %11561 = vst [vmem:[#allocation125_spill] sm:$0xff] %v8125_v15  ;;  %v6890_v34 = vld [vmem:[%s11271_s2 + $0xa8] sm:$0xff] }
 0x1b3   :  { %2072 = vperm.xlu1 %6638, %v6887_v18   ;;  %2076 = vperm.xlu0 %6637, %v6888_v31   ;;  %v6891_v31 = vld [vmem:[%s11271_s2 + $0xb0] sm:$0xff] }
 0x1b5   :  { %v8133_v23 = vpop.permute.xlu1 %1390  ;;  %v8135_v0 = vpop.permute.xlu0 %1385 }
 0x1b6   :  { %11562 = vst [vmem:[#allocation126_spill] sm:$0xff] %v8133_v23  ;;  %11563 = vst [vmem:[#allocation127_spill] sm:$0xff] %v8135_v0  ;;  %v6892_v23 = vld [vmem:[%s11271_s2 + $0xb8] sm:$0xff] }
 0x1b7   :  { %2080 = vperm.xlu1 %6638, %v6889_v26   ;;  %2084 = vperm.xlu0 %6637, %v6890_v34   ;;  %v6893_v34 = vld [vmem:[%s11271_s2 + $0xc0] sm:$0xff] }
 0x1b9   :  { %v8143_v18 = vpop.permute.xlu1 %1400  ;;  %v8145_v15 = vpop.permute.xlu0 %1395 }
 0x1ba   :  { %11564 = vst [vmem:[#allocation128_spill] sm:$0xff] %v8143_v18  ;;  %11565 = vst [vmem:[#allocation129_spill] sm:$0xff] %v8145_v15  ;;  %v6894_v18 = vld [vmem:[%s11271_s2 + $0xc8] sm:$0xff] }
 0x1bb   :  { %2088 = vperm.xlu1 %6638, %v6891_v31   ;;  %2092 = vperm.xlu0 %6637, %v6892_v23   ;;  %v6895_v23 = vld [vmem:[%s11271_s2 + $0xd0] sm:$0xff] }
 0x1bd   :  { %v8153_v26 = vpop.permute.xlu1 %1410  ;;  %v8155_v0 = vpop.permute.xlu0 %1405 }
 0x1be   :  { %11566 = vst [vmem:[#allocation130_spill] sm:$0xff] %v8153_v26  ;;  %11567 = vst [vmem:[#allocation131_spill] sm:$0xff] %v8155_v0  ;;  %v6896_v26 = vld [vmem:[%s11271_s2 + $0xd8] sm:$0xff] }
 0x1bf   :  { %2096 = vperm.xlu1 %6638, %v6893_v34   ;;  %2100 = vperm.xlu0 %6637, %v6894_v18   ;;  %v6897_v18 = vld [vmem:[%s11271_s2 + $0xe0] sm:$0xff] }
 0x1c1   :  { %v8163_v31 = vpop.permute.xlu1 %1420  ;;  %v8165_v15 = vpop.permute.xlu0 %1415 }
 0x1c2   :  { %11568 = vst [vmem:[#allocation132_spill] sm:$0xff] %v8163_v31  ;;  %11569 = vst [vmem:[#allocation133_spill] sm:$0xff] %v8165_v15  ;;  %v6898_v31 = vld [vmem:[%s11271_s2 + $0xe8] sm:$0xff] }
 0x1c3   :  { %2104 = vperm.xlu1 %6638, %v6895_v23   ;;  %2108 = vperm.xlu0 %6637, %v6896_v26   ;;  %v6899_v26 = vld [vmem:[%s11271_s2 + $0xf0] sm:$0xff] }
 0x1c5   :  { %v8173_v34 = vpop.permute.xlu1 %1430  ;;  %v8175_v0 = vpop.permute.xlu0 %1425 }
 0x1c6   :  { %11570 = vst [vmem:[#allocation134_spill] sm:$0xff] %v8173_v34  ;;  %11571 = vst [vmem:[#allocation135_spill] sm:$0xff] %v8175_v0  ;;  %v6900_v34 = vld [vmem:[%s11271_s2 + $0xf8] sm:$0xff] }
 0x1c7   :  { %2112 = vperm.xlu1 %6638, %v6897_v18   ;;  %2116 = vperm.xlu0 %6637, %v6898_v31   ;;  %v6901_v31 = vld [vmem:[%s11271_s2 + $0x100] sm:$0xff] }
 0x1c9   :  { %v8183_v23 = vpop.permute.xlu1 %1440  ;;  %v8185_v15 = vpop.permute.xlu0 %1435 }
 0x1ca   :  { %11572 = vst [vmem:[#allocation136_spill] sm:$0xff] %v8183_v23  ;;  %11573 = vst [vmem:[#allocation137_spill] sm:$0xff] %v8185_v15  ;;  %v6902_v23 = vld [vmem:[%s11271_s2 + $0x108] sm:$0xff] }
 0x1cb   :  { %2120 = vperm.xlu1 %6638, %v6899_v26   ;;  %2124 = vperm.xlu0 %6637, %v6900_v34   ;;  %v6903_v34 = vld [vmem:[%s11271_s2 + $0x110] sm:$0xff] }
 0x1cd   :  { %v8193_v18 = vpop.permute.xlu1 %1450  ;;  %v8195_v0 = vpop.permute.xlu0 %1445 }
 0x1ce   :  { %11574 = vst [vmem:[#allocation138_spill] sm:$0xff] %v8193_v18  ;;  %11575 = vst [vmem:[#allocation139_spill] sm:$0xff] %v8195_v0  ;;  %v6904_v18 = vld [vmem:[%s11271_s2 + $0x118] sm:$0xff] }
 0x1cf   :  { %2128 = vperm.xlu1 %6638, %v6901_v31   ;;  %2132 = vperm.xlu0 %6637, %v6902_v23   ;;  %v6643_v31 = vld [vmem:[%s11270_s1 + $0x4] ss:$52 sps:$4 sm:$0xff]  }
 0x1d0   :  { %4942 = vmatprep.mubr.bf16.mxu1 %v6643_v31  ;;  %v6908_v31 = vld [vmem:[%s11271_s2 + $0x138] sm:$0xff] }
 0x1d1   :  { %v8203_v26 = vpop.permute.xlu1 %1460  ;;  %v8205_v15 = vpop.permute.xlu0 %1455 }
 0x1d2   :  { %11576 = vst [vmem:[#allocation140_spill] sm:$0xff] %v8203_v26  ;;  %11577 = vst [vmem:[#allocation141_spill] sm:$0xff] %v8205_v15  ;;  %v6905_v26 = vld [vmem:[%s11271_s2 + $0x120] sm:$0xff] }
 0x1d3   :  { %2136 = vperm.xlu1 %6638, %v6903_v34   ;;  %2140 = vperm.xlu0 %6637, %v6904_v18   ;;  %v6906_v34 = vld [vmem:[%s11271_s2 + $0x128] sm:$0xff] }
 0x1d5   :  { %v8216_v0 = vpop.permute.xlu1 %1470  ;;  %v8218_v23 = vpop.permute.xlu0 %1465 }
 0x1d6   :  { %11578 = vst [vmem:[#allocation142_spill] sm:$0xff] %v8216_v0  ;;  %11579 = vst [vmem:[#allocation143_spill] sm:$0xff] %v8218_v23  ;;  %v6907_v0 = vld [vmem:[%s11271_s2 + $0x130] sm:$0xff] }
 0x1d7   :  { %2144 = vperm.xlu1 %6638, %v6905_v26   ;;  %2148 = vperm.xlu0 %6637, %v6906_v34   ;;  %v6909_v34 = vld [vmem:[%s11271_s2 + $0x140] sm:$0xff] }
 0x1d9   :  { %v8226_v18 = vpop.permute.xlu1 %1480  ;;  %v8228_v15 = vpop.permute.xlu0 %1475 }
 0x1da   :  { %11580 = vst [vmem:[#allocation144_spill] sm:$0xff] %v8226_v18  ;;  %11581 = vst [vmem:[#allocation145_spill] sm:$0xff] %v8228_v15  ;;  %v6910_v18 = vld [vmem:[%s11271_s2 + $0x148] sm:$0xff] }
 0x1db   :  { %2152 = vperm.xlu1 %6638, %v6907_v0   ;;  %2156 = vperm.xlu0 %6637, %v6908_v31   ;;  %v6911_v31 = vld [vmem:[%s11271_s2 + $0x150] sm:$0xff] }
 0x1dd   :  { %v8236_v26 = vpop.permute.xlu1 %1490  ;;  %v8238_v23 = vpop.permute.xlu0 %1485 }
 0x1de   :  { %11582 = vst [vmem:[#allocation146_spill] sm:$0xff] %v8236_v26  ;;  %11583 = vst [vmem:[#allocation147_spill] sm:$0xff] %v8238_v23  ;;  %v6912_v26 = vld [vmem:[%s11271_s2 + $0x158] sm:$0xff] }
 0x1df   :  { %2160 = vperm.xlu1 %6638, %v6909_v34   ;;  %2164 = vperm.xlu0 %6637, %v6910_v18   ;;  %v6913_v18 = vld [vmem:[%s11271_s2 + $0x160] sm:$0xff] }
 0x1e1   :  { %v8246_v0 = vpop.permute.xlu1 %1500  ;;  %v8248_v15 = vpop.permute.xlu0 %1495 }
 0x1e2   :  { %11584 = vst [vmem:[#allocation148_spill] sm:$0xff] %v8246_v0  ;;  %11585 = vst [vmem:[#allocation149_spill] sm:$0xff] %v8248_v15  ;;  %v6914_v0 = vld [vmem:[%s11271_s2 + $0x168] sm:$0xff] }
 0x1e3   :  { %2168 = vperm.xlu1 %6638, %v6911_v31   ;;  %2172 = vperm.xlu0 %6637, %v6912_v26   ;;  %v6915_v26 = vld [vmem:[%s11271_s2 + $0x170] sm:$0xff] }
 0x1e5   :  { %v8256_v34 = vpop.permute.xlu1 %1510  ;;  %v8258_v23 = vpop.permute.xlu0 %1505 }
 0x1e6   :  { %11586 = vst [vmem:[#allocation150_spill] sm:$0xff] %v8256_v34  ;;  %11587 = vst [vmem:[#allocation151_spill] sm:$0xff] %v8258_v23  ;;  %v6916_v34 = vld [vmem:[%s11271_s2 + $0x178] sm:$0xff] }
 0x1e7   :  { %2176 = vperm.xlu1 %6638, %v6913_v18   ;;  %2180 = vperm.xlu0 %6637, %v6914_v0   ;;  %v6917_v0 = vld [vmem:[%s11271_s2 + $0x180] sm:$0xff] }
 0x1e9   :  { %v8266_v31 = vpop.permute.xlu1 %1520  ;;  %v8268_v15 = vpop.permute.xlu0 %1515 }
 0x1ea   :  { %11588 = vst [vmem:[#allocation152_spill] sm:$0xff] %v8266_v31  ;;  %11589 = vst [vmem:[#allocation153_spill] sm:$0xff] %v8268_v15  ;;  %v6918_v31 = vld [vmem:[%s11271_s2 + $0x188] sm:$0xff] }
 0x1eb   :  { %2184 = vperm.xlu1 %6638, %v6915_v26   ;;  %2188 = vperm.xlu0 %6637, %v6916_v34   ;;  %v6919_v34 = vld [vmem:[%s11271_s2 + $0x190] sm:$0xff] }
 0x1ed   :  { %v8276_v18 = vpop.permute.xlu1 %1530  ;;  %v8278_v23 = vpop.permute.xlu0 %1525 }
 0x1ee   :  { %11590 = vst [vmem:[#allocation154_spill] sm:$0xff] %v8276_v18  ;;  %11591 = vst [vmem:[#allocation155_spill] sm:$0xff] %v8278_v23  ;;  %v6920_v18 = vld [vmem:[%s11271_s2 + $0x198] sm:$0xff] }
 0x1ef   :  { %2192 = vperm.xlu1 %6638, %v6917_v0   ;;  %2196 = vperm.xlu0 %6637, %v6918_v31  }
 0x1f1   :  { %v8286_v26 = vpop.permute.xlu1 %1540  ;;  %v8288_v15 = vpop.permute.xlu0 %1535 }
 0x1f2   :  { %11592 = vst [vmem:[#allocation156_spill] sm:$0xff] %v8286_v26  ;;  %11593 = vst [vmem:[#allocation157_spill] sm:$0xff] %v8288_v15 }
 0x1f3   :  { %2200 = vperm.xlu1 %6638, %v6919_v34   ;;  %2204 = vperm.xlu0 %6637, %v6920_v18  }
 0x1f5   :  { %v8296_v0 = vpop.permute.xlu1 %1550  ;;  %v8298_v23 = vpop.permute.xlu0 %1545 }
 0x1f6   :  { %11594 = vst [vmem:[#allocation158_spill] sm:$0xff] %v8296_v0  ;;  %11595 = vst [vmem:[#allocation159_spill] sm:$0xff] %v8298_v23 }
 0x1f7   :  { %2384 = vperm.xlu1 %6638, %v7459_v6   ;;  %2388 = vperm.xlu0 %6637, %v7454_v3  }
 0x1f9   :  { %v8302_v31 = vpop.permute.xlu1 %1560  ;;  %v8304_v26 = vpop.permute.xlu0 %1555 }
 0x1fa   :  { %11596 = vst [vmem:[#allocation160_spill] sm:$0xff] %v8302_v31  ;;  %11597 = vst [vmem:[#allocation161_spill] sm:$0xff] %v8304_v26 }
 0x1fb   :  { %2392 = vperm.xlu1 %6638, %v7475_v14   ;;  %2396 = vperm.xlu0 %6637, %v7470_v11  }
 0x1fd   :  { %v8308_v34 = vpop.permute.xlu1 %1570  ;;  %v8310_v15 = vpop.permute.xlu0 %1565 }
 0x1fe   :  { %11598 = vst [vmem:[#allocation162_spill] sm:$0xff] %v8308_v34  ;;  %11599 = vst [vmem:[#allocation163_spill] sm:$0xff] %v8310_v15 }
 0x1ff   :  { %2400 = vperm.xlu1 %6638, %v7491_v22   ;;  %2404 = vperm.xlu0 %6637, %v7486_v19   ;;  %v21_v19 = vld [vmem:[%s11269_s0 + $0x10] sm:$0xff]  ;;  %v22_v22 = vld [vmem:[%s11269_s0 + $0x18] sm:$0xff] }
 0x201   :  { %v8314_v18 = vpop.permute.xlu1 %1580  ;;  %v8316_v6 = vpop.permute.xlu0 %1575 }
 0x202   :  { %11600 = vst [vmem:[#allocation164_spill] sm:$0xff] %v8314_v18  ;;  %11601 = vst [vmem:[#allocation165_spill] sm:$0xff] %v8316_v6 }
 0x203   :  { %2408 = vperm.xlu1 %6638, %v7507_v30   ;;  %2412 = vperm.xlu0 %6637, %v7502_v27   ;;  %v19_v27 = vld [vmem:[%s11269_s0] sm:$0xff] }
 0x205   :  { %v8320_v3 = vpop.permute.xlu1 %1590  ;;  %v8322_v14 = vpop.permute.xlu0 %1585 }
 0x206   :  { %11602 = vst [vmem:[#allocation166_spill] sm:$0xff] %v8320_v3  ;;  %11603 = vst [vmem:[#allocation167_spill] sm:$0xff] %v8322_v14  ;;  %v24_v3 = vld [vmem:[%s11269_s0 + $0x28] sm:$0xff]  ;;  %v1603_v14 = vmul.f32 %v7299_v5, %v19_v27 }
 0x207   :  { %2416 = vperm.xlu1 %6638, %v7523_v38   ;;  %2420 = vperm.xlu0 %6637, %v7518_v35   ;;  %v20_v35 = vld [vmem:[%s11269_s0 + $0x8] sm:$0xff]  ;;  %v1605_v38 = vmul.f32 %v7309_v9, %v21_v19 }
 0x208   :  { %v1604_v18 = vmul.f32 %v7299_v5, %v20_v35  ;;  %v1608_v35 = vmul.f32 %v7297_v4, %v24_v3  ;;  %v30_v3 = vld [vmem:[%s11269_s0 + $0x58] sm:$0xff] }
 0x209   :  { %v8326_v11 = vpop.permute.xlu1 %1600  ;;  %v8334_v30 = vpop.permute.xlu0 %1595 }
 0x20a   :  { %11604 = vst [vmem:[#allocation168_spill] sm:$0xff] %v8326_v11  ;;  %11605 = vst [vmem:[#allocation169_spill] sm:$0xff] %v8334_v30  ;;  %v1606_v11 = vmul.f32 %v7309_v9, %v22_v22  ;;  %v23_v30 = vld [vmem:[%s11269_s0 + $0x20] sm:$0xff]  ;;  %v26_v9 = vld [vmem:[%s11269_s0 + $0x38] sm:$0xff] }
 0x20b   :  { %2424 = vperm.xlu1 %6638, %v7539_v46   ;;  %2428 = vperm.xlu0 %6637, %v7534_v43   ;;  %v25_v43 = vld [vmem:[%s11269_s0 + $0x30] sm:$0xff]  ;;  %v1607_v5 = vmul.f32 %v7297_v4, %v23_v30  ;;  %v1610_v0 = vmul.f32 %v7307_v8, %v26_v9 }
 0x20c   :  { %v1609_v26 = vmul.f32 %v7307_v8, %v25_v43  ;;  %v29_v4 = vld [vmem:[%s11269_s0 + $0x50] sm:$0xff] }
 0x20d   :  { %v1613_v23 = vmul.f32 %v7317_v12, %v29_v4 }
 0x20e   :  { %v2005_v6 = vpop.permute.xlu1 %2004  ;;  %v2001_v19 = vpop.permute.xlu0 %2000 }
 0x20f   :  { %v2793_v46 = vadd.f32 %v2005_v6, %v1605_v38  ;;  %2432 = vperm.xlu1 %6638, %v7555_v54   ;;  %v2794_v22 = vadd.f32 %v2005_v6, %v1606_v11  ;;  %v2791_v34 = vadd.f32 %v2001_v19, %v1603_v14  ;;  %2436 = vperm.xlu0 %6637, %v7550_v51   ;;  %v27_v38 = vld [vmem:[%s11269_s0 + $0x40] sm:$0xff]  ;;  %v28_v54 = vld [vmem:[%s11269_s0 + $0x48] sm:$0xff] }
 0x210   :  { %v2792_v27 = vadd.f32 %v2001_v19, %v1604_v18  ;;  %v1612_v19 = vmul.f32 %v7319_v13, %v28_v54 }
 0x211   :  { %v3190_v15 = vmax.f32 %v2794_v22, 0.0  ;;  %v3189_v31 = vmax.f32 %v2793_v46, 0.0  ;;  %v3187_v6 = vmax.f32 %v2791_v34, 0.0  ;;  %v1611_v34 = vmul.f32 %v7319_v13, %v27_v38  ;;  %v33_v13 = vld [vmem:[%s11269_s0 + $0x70] sm:$0xff] }
 0x212   :  { %v2009_v51 = vpop.permute.xlu1 %2008  ;;  %v3188_v18 = vmax.f32 %v2792_v27, 0.0  ;;  %v2013_v11 = vpop.permute.xlu0 %2012 }
 0x213   :  { %v2795_v8 = vadd.f32 %v2009_v51, %v1607_v5  ;;  %v2796_v14 = vadd.f32 %v2009_v51, %v1608_v35  ;;  %2440 = vperm.xlu1 %6638, %v7571_v62   ;;  %v2797_v30 = vadd.f32 %v2013_v11, %v1609_v26  ;;  %v2798_v43 = vadd.f32 %v2013_v11, %v1610_v0  ;;  %v31_v62 = vld [vmem:[%s11269_s0 + $0x60] sm:$0xff] }
 0x214   :  { %2444 = vperm.xlu0 %6637, %v7566_v59   ;;  %v3752_v9 = vpack.c.bf16 %v3190_v15, %v3188_v18  ;;  %v3751_v46 = vpack.c.bf16 %v3189_v31, %v3187_v6  ;;  %v1614_v5 = vmul.f32 %v7317_v12, %v30_v3  ;;  %v32_v59 = vld [vmem:[%s11269_s0 + $0x68] sm:$0xff]  ;;  %v34_v12 = vld [vmem:[%s11269_s0 + $0x78] sm:$0xff]  ;;  %v1615_v4 = vmul.f32 %v7329_v17, %v31_v62 }
 0x215   :  { %v3191_v22 = vmax.f32 %v2795_v8, 0.0  ;;  %v3192_v27 = vmax.f32 %v2796_v14, 0.0  ;;  %v3193_v15 = vmax.f32 %v2797_v30, 0.0  ;;  %v3194_v26 = vmax.f32 %v2798_v43, 0.0 }
 0x216   :  { %4910 = vmatprep.subr.bf16.mxu1 %v3752_v9  ;;  %v2017_v0 = vpop.permute.xlu1 %2016  ;;  %v2021_v38 = vpop.permute.xlu0 %2020  ;;  %v1616_v3 = vmul.f32 %v7329_v17, %v32_v59  ;;  %v1617_v11 = vmul.f32 %v7327_v16, %v33_v13  ;;  %v1618_v30 = vmul.f32 %v7327_v16, %v34_v12  ;;  %v37_v17 = vld [vmem:[%s11269_s0 + $0x90] sm:$0xff]  ;;  %v38_v16 = vld [vmem:[%s11269_s0 + $0x98] sm:$0xff] }
 0x217   :  { %v2799_v31 = vadd.f32 %v2017_v0, %v1611_v34  ;;  %v2800_v35 = vadd.f32 %v2017_v0, %v1612_v19  ;;  %4911 = vmatpush1.bf16.msra.mxu1 %v3751_v46  ;;  %2448 = vperm.xlu1 %6638, %v7587_v58   ;;  %v2801_v54 = vadd.f32 %v2021_v38, %v1613_v23  ;;  %v35_v58 = vld [vmem:[%s11269_s0 + $0x80] sm:$0xff] }
 0x218   :  { %v2802_v51 = vadd.f32 %v2021_v38, %v1614_v5  ;;  %2452 = vperm.xlu0 %6637, %v7582_v55   ;;  %v3754_v18 = vpack.c.bf16 %v3194_v26, %v3192_v27  ;;  %v3753_v6 = vpack.c.bf16 %v3193_v15, %v3191_v22  ;;  %v36_v55 = vld [vmem:[%s11269_s0 + $0x88] sm:$0xff]  ;;  %v1619_v59 = vmul.f32 %v7339_v21, %v35_v58 }
 0x219   :  { %v3195_v8 = vmax.f32 %v2799_v31, 0.0  ;;  %v3196_v14 = vmax.f32 %v2800_v35, 0.0  ;;  %v3197_v23 = vmax.f32 %v2801_v54, 0.0  ;;  %v1620_v15 = vmul.f32 %v7339_v21, %v36_v55  ;;  %v41_v21 = vld [vmem:[%s11269_s0 + $0xb0] sm:$0xff] }
 0x21a   :  { %v3198_v43 = vmax.f32 %v2802_v51, 0.0  ;;  %4912 = vmatprep.subr.bf16.mxu1 %v3754_v18  ;;  %v2025_v9 = vpop.permute.xlu1 %2024  ;;  %v2029_v19 = vpop.permute.xlu0 %2028  ;;  %v1621_v13 = vmul.f32 %v7337_v20, %v37_v17  ;;  %v1622_v12 = vmul.f32 %v7337_v20, %v38_v16  ;;  %v42_v20 = vld [vmem:[%s11269_s0 + $0xb8] sm:$0xff]  ;;  %v1625_v55 = vmul.f32 %v7347_v24, %v41_v21  ;;  %v6921_v21 = vld [vmem:[%s11271_s2 + $0x3c0] sm:$0xff] }
 0x21b   :  { %v2803_v46 = vadd.f32 %v2025_v9, %v1615_v4  ;;  %v2804_v34 = vadd.f32 %v2025_v9, %v1616_v3  ;;  %4913 = vmatpush1.bf16.msra.mxu1 %v3753_v6  ;;  %2456 = vperm.xlu1 %6638, %v7603_v2   ;;  %v2805_v22 = vadd.f32 %v2029_v19, %v1617_v11  ;;  %v39_v2 = vld [vmem:[%s11269_s0 + $0xa0] sm:$0xff] }
 0x21c   :  { %v2806_v27 = vadd.f32 %v2029_v19, %v1618_v30  ;;  %2460 = vperm.xlu0 %6637, %v7598_v63   ;;  %v3756_v5 = vpack.c.bf16 %v3198_v43, %v3196_v14  ;;  %v3755_v62 = vpack.c.bf16 %v3197_v23, %v3195_v8  ;;  %v40_v63 = vld [vmem:[%s11269_s0 + $0xa8] sm:$0xff]  ;;  %v1623_v14 = vmul.f32 %v7349_v25, %v39_v2 }
 0x21d   :  { %v3199_v26 = vmax.f32 %v2803_v46, 0.0  ;;  %v3200_v0 = vmax.f32 %v2804_v34, 0.0  ;;  %v3201_v31 = vmax.f32 %v2805_v22, 0.0  ;;  %v1624_v11 = vmul.f32 %v7349_v25, %v40_v63  ;;  %v45_v25 = vld [vmem:[%s11269_s0 + $0xd0] sm:$0xff] }
 0x21e   :  { %v3202_v35 = vmax.f32 %v2806_v27, 0.0  ;;  %4914 = vmatprep.subr.bf16.mxu1 %v3756_v5  ;;  %v2033_v38 = vpop.permute.xlu1 %2032  ;;  %v2037_v18 = vpop.permute.xlu0 %2036  ;;  %v1626_v23 = vmul.f32 %v7347_v24, %v42_v20  ;;  %v46_v24 = vld [vmem:[%s11269_s0 + $0xd8] sm:$0xff] }
 0x21f   :  { %v2807_v54 = vadd.f32 %v2033_v38, %v1619_v59  ;;  %v2808_v51 = vadd.f32 %v2033_v38, %v1620_v15  ;;  %4915 = vmatpush1.bf16.msra.mxu1 %v3755_v62  ;;  %2464 = vperm.xlu1 %6638, %v7619_v50   ;;  %v2809_v6 = vadd.f32 %v2037_v18, %v1621_v13  ;;  %v43_v50 = vld [vmem:[%s11269_s0 + $0xc0] sm:$0xff] }
 0x220   :  { %v2810_v4 = vadd.f32 %v2037_v18, %v1622_v12  ;;  %2468 = vperm.xlu0 %6637, %v7614_v47   ;;  %v3758_v3 = vpack.c.bf16 %v3202_v35, %v3200_v0  ;;  %v3757_v8 = vpack.c.bf16 %v3201_v31, %v3199_v26  ;;  %v44_v47 = vld [vmem:[%s11269_s0 + $0xc8] sm:$0xff]  ;;  %v1627_v62 = vmul.f32 %v7359_v29, %v43_v50 }
 0x221   :  { %v3203_v30 = vmax.f32 %v2807_v54, 0.0  ;;  %v3204_v58 = vmax.f32 %v2808_v51, 0.0  ;;  %v3205_v43 = vmax.f32 %v2809_v6, 0.0  ;;  %v1628_v59 = vmul.f32 %v7359_v29, %v44_v47  ;;  %v49_v29 = vld [vmem:[%s11269_s0 + $0xf0] sm:$0xff]  ;;  %v6922_v51 = vld [vmem:[%s11271_s2 + $0x3c8] sm:$0xff] }
 0x222   :  { %v3206_v9 = vmax.f32 %v2810_v4, 0.0  ;;  %4916 = vmatprep.subr.bf16.mxu1 %v3758_v3  ;;  %v2041_v17 = vpop.permute.xlu1 %2040  ;;  %v2045_v34 = vpop.permute.xlu0 %2044  ;;  %v1629_v0 = vmul.f32 %v7357_v28, %v45_v25  ;;  %v1630_v13 = vmul.f32 %v7357_v28, %v46_v24  ;;  %v50_v28 = vld [vmem:[%s11269_s0 + $0xf8] sm:$0xff]  ;;  %v6923_v25 = vld [vmem:[%s11271_s2 + $0x3d0] sm:$0xff] }
 0x223   :  { %v2811_v16 = vadd.f32 %v2041_v17, %v1623_v14  ;;  %v2812_v46 = vadd.f32 %v2041_v17, %v1624_v11  ;;  %4917 = vmatpush1.bf16.msra.mxu1 %v3757_v8  ;;  %2472 = vperm.xlu1 %6638, %v7635_v42   ;;  %v2813_v19 = vadd.f32 %v2045_v34, %v1625_v55  ;;  %v47_v42 = vld [vmem:[%s11269_s0 + $0xe0] sm:$0xff]  ;;  %v52_v55 = vld [vmem:[%s11269_s0 + $0x108] sm:$0xff] }
 0x224   :  { %v2814_v22 = vadd.f32 %v2045_v34, %v1626_v23  ;;  %2476 = vperm.xlu0 %6637, %v7630_v39   ;;  %v3760_v27 = vpack.c.bf16 %v3206_v9, %v3204_v58  ;;  %v3759_v5 = vpack.c.bf16 %v3205_v43, %v3203_v30  ;;  %v48_v39 = vld [vmem:[%s11269_s0 + $0xe8] sm:$0xff]  ;;  %v1631_v4 = vmul.f32 %v7369_v33, %v47_v42  ;;  %v51_v58 = vld [vmem:[%s11269_s0 + $0x100] sm:$0xff] }
 0x225   :  { %v3207_v15 = vmax.f32 %v2811_v16, 0.0  ;;  %v3208_v26 = vmax.f32 %v2812_v46, 0.0  ;;  %v3209_v12 = vmax.f32 %v2813_v19, 0.0  ;;  %v1632_v3 = vmul.f32 %v7369_v33, %v48_v39  ;;  %v53_v33 = vld [vmem:[%s11269_s0 + $0x110] sm:$0xff]  ;;  %v6924_v46 = vld [vmem:[%s11271_s2 + $0x3d8] sm:$0xff] }
 0x226   :  { %v3210_v2 = vmax.f32 %v2814_v22, 0.0  ;;  %4918 = vmatprep.subr.bf16.mxu1 %v3760_v27  ;;  %v2049_v63 = vpop.permute.xlu1 %2048  ;;  %v2053_v38 = vpop.permute.xlu0 %2052  ;;  %v1633_v11 = vmul.f32 %v7367_v32, %v49_v29  ;;  %v1634_v30 = vmul.f32 %v7367_v32, %v50_v28  ;;  %v54_v32 = vld [vmem:[%s11269_s0 + $0x118] sm:$0xff]  ;;  %v1635_v22 = vmul.f32 %v7379_v37, %v51_v58  ;;  %v6925_v29 = vld [vmem:[%s11271_s2 + $0x3e0] sm:$0xff] }
 0x227   :  { %v2815_v31 = vadd.f32 %v2049_v63, %v1627_v62  ;;  %v2816_v35 = vadd.f32 %v2049_v63, %v1628_v59  ;;  %4919 = vmatpush1.bf16.msra.mxu1 %v3759_v5  ;;  %2480 = vperm.xlu1 %6638, %v6921_v21   ;;  %v2817_v20 = vadd.f32 %v2053_v38, %v1629_v0  ;;  %v56_v0 = vld [vmem:[%s11269_s0 + $0x128] sm:$0xff] }
 0x228   :  { %v2818_v54 = vadd.f32 %v2053_v38, %v1630_v13  ;;  %2484 = vperm.xlu0 %6637, %v6922_v51   ;;  %v3762_v18 = vpack.c.bf16 %v3210_v2, %v3208_v26  ;;  %v3761_v6 = vpack.c.bf16 %v3209_v12, %v3207_v15  ;;  %v1636_v27 = vmul.f32 %v7379_v37, %v52_v55  ;;  %v55_v26 = vld [vmem:[%s11269_s0 + $0x120] sm:$0xff]  ;;  %v57_v37 = vld [vmem:[%s11269_s0 + $0x130] sm:$0xff] }
 0x229   :  { %v3211_v8 = vmax.f32 %v2815_v31, 0.0  ;;  %v3212_v14 = vmax.f32 %v2816_v35, 0.0  ;;  %v3213_v23 = vmax.f32 %v2817_v20, 0.0  ;;  %v1637_v59 = vmul.f32 %v7377_v36, %v53_v33  ;;  %v6926_v35 = vld [vmem:[%s11271_s2 + $0x3e8] sm:$0xff] }
 0x22a   :  { %v3214_v50 = vmax.f32 %v2818_v54, 0.0  ;;  %4920 = vmatprep.subr.bf16.mxu1 %v3762_v18  ;;  %v2057_v47 = vpop.permute.xlu1 %2056  ;;  %v2061_v17 = vpop.permute.xlu0 %2060  ;;  %v1638_v15 = vmul.f32 %v7377_v36, %v54_v32  ;;  %v58_v36 = vld [vmem:[%s11269_s0 + $0x138] sm:$0xff]  ;;  %v1639_v20 = vmul.f32 %v7389_v41, %v55_v26  ;;  %v1640_v54 = vmul.f32 %v7389_v41, %v56_v0  ;;  %v61_v41 = vld [vmem:[%s11269_s0 + $0x150] sm:$0xff]  ;;  %v6929_v0 = vld [vmem:[%s11271_s2 + $0x400] sm:$0xff] }
 0x22b   :  { %v2819_v43 = vadd.f32 %v2057_v47, %v1631_v4  ;;  %v2820_v9 = vadd.f32 %v2057_v47, %v1632_v3  ;;  %4921 = vmatpush1.bf16.msra.mxu1 %v3761_v6  ;;  %2488 = vperm.xlu1 %6638, %v6923_v25   ;;  %v2821_v24 = vadd.f32 %v2061_v17, %v1633_v11  ;;  %v59_v3 = vld [vmem:[%s11269_s0 + $0x140] sm:$0xff]  ;;  %v6928_v32 = vld [vmem:[%s11271_s2 + $0x3f8] sm:$0xff] }
 0x22c   :  { %v2822_v16 = vadd.f32 %v2061_v17, %v1634_v30  ;;  %2492 = vperm.xlu0 %6637, %v6924_v46   ;;  %v3764_v34 = vpack.c.bf16 %v3214_v50, %v3212_v14  ;;  %v3763_v19 = vpack.c.bf16 %v3213_v23, %v3211_v8  ;;  %v1641_v6 = vmul.f32 %v7387_v40, %v57_v37  ;;  %v60_v8 = vld [vmem:[%s11269_s0 + $0x148] sm:$0xff]  ;;  %v6927_v50 = vld [vmem:[%s11271_s2 + $0x3f0] sm:$0xff] }
 0x22d   :  { %v3215_v5 = vmax.f32 %v2819_v43, 0.0  ;;  %v3216_v62 = vmax.f32 %v2820_v9, 0.0  ;;  %v3217_v13 = vmax.f32 %v2821_v24, 0.0  ;;  %v1642_v4 = vmul.f32 %v7387_v40, %v58_v36  ;;  %v62_v40 = vld [vmem:[%s11269_s0 + $0x158] sm:$0xff] }
 0x22e   :  { %v3218_v42 = vmax.f32 %v2822_v16, 0.0  ;;  %4922 = vmatprep.subr.bf16.mxu1 %v3764_v34  ;;  %v2065_v39 = vpop.permute.xlu1 %2064  ;;  %v2069_v63 = vpop.permute.xlu0 %2068  ;;  %v1643_v17 = vmul.f32 %v7399_v45, %v59_v3  ;;  %v1644_v25 = vmul.f32 %v7399_v45, %v60_v8  ;;  %v1645_v46 = vmul.f32 %v7397_v44, %v61_v41  ;;  %v65_v45 = vld [vmem:[%s11269_s0 + $0x170] sm:$0xff] }
 0x22f   :  { %v2823_v12 = vadd.f32 %v2065_v39, %v1635_v22  ;;  %v2824_v2 = vadd.f32 %v2065_v39, %v1636_v27  ;;  %4923 = vmatpush1.bf16.msra.mxu1 %v3763_v19  ;;  %2496 = vperm.xlu1 %6638, %v6925_v29   ;;  %v2825_v28 = vadd.f32 %v2069_v63, %v1637_v59  ;;  %v63_v19 = vld [vmem:[%s11269_s0 + $0x160] sm:$0xff]  ;;  %v64_v22 = vld [vmem:[%s11269_s0 + $0x168] sm:$0xff]  ;;  %v6646_v3 = vld [vmem:[%s11270_s1 + $0x1c] ss:$52 sps:$4 sm:$0xff]  }
 0x230   :  { %v2826_v31 = vadd.f32 %v2069_v63, %v1638_v15  ;;  %2500 = vperm.xlu0 %6637, %v6926_v35   ;;  %v3766_v38 = vpack.c.bf16 %v3218_v42, %v3216_v62  ;;  %v3765_v21 = vpack.c.bf16 %v3217_v13, %v3215_v5  ;;  %v1646_v34 = vmul.f32 %v7397_v44, %v62_v40  ;;  %v66_v44 = vld [vmem:[%s11269_s0 + $0x178] sm:$0xff]  ;;  %v6930_v39 = vld [vmem:[%s11271_s2 + $0x408] sm:$0xff]  ;;  %v67_v35 = vld [vmem:[%s11269_s0 + $0x180] sm:$0xff] }
 0x231   :  { %v3219_v51 = vmax.f32 %v2823_v12, 0.0  ;;  %v3220_v18 = vmax.f32 %v2824_v2, 0.0  ;;  %v3221_v14 = vmax.f32 %v2825_v28, 0.0  ;;  %v1647_v12 = vmul.f32 %v7409_v49, %v63_v19  ;;  %5401 = vmatprep.mubr.bf16.mxu0 %v6646_v3 }
 0x232   :  { %v3222_v11 = vmax.f32 %v2826_v31, 0.0  ;;  %4924 = vmatprep.subr.bf16.mxu1 %v3766_v38  ;;  %v2073_v30 = vpop.permute.xlu1 %2072  ;;  %v2077_v23 = vpop.permute.xlu0 %2076  ;;  %v1648_v2 = vmul.f32 %v7409_v49, %v64_v22  ;;  %v1649_v28 = vmul.f32 %v7407_v48, %v65_v45  ;;  %v1650_v31 = vmul.f32 %v7407_v48, %v66_v44  ;;  %v68_v38 = vld [vmem:[%s11269_s0 + $0x188] sm:$0xff]  ;;  %v69_v49 = vld [vmem:[%s11269_s0 + $0x190] sm:$0xff]  ;;  %v70_v48 = vld [vmem:[%s11269_s0 + $0x198] sm:$0xff] }
 0x233   :  { %v2827_v58 = vadd.f32 %v2073_v30, %v1639_v20  ;;  %v2828_v55 = vadd.f32 %v2073_v30, %v1640_v54  ;;  %4925 = vmatpush1.bf16.msra.mxu1 %v3765_v21  ;;  %2504 = vperm.xlu1 %6638, %v6927_v50   ;;  %v2829_v47 = vadd.f32 %v2077_v23, %v1641_v6  ;;  %v6934_v22 = vld [vmem:[%s11271_s2 + $0x428] sm:$0xff] }
 0x234   :  { %v2830_v33 = vadd.f32 %v2077_v23, %v1642_v4  ;;  %2508 = vperm.xlu0 %6637, %v6928_v32   ;;  %v3768_v43 = vpack.c.bf16 %v3222_v11, %v3220_v18  ;;  %v3767_v9 = vpack.c.bf16 %v3221_v14, %v3219_v51  ;;  %v6931_v4 = vld [vmem:[%s11271_s2 + $0x410] sm:$0xff]  ;;  %v6932_v11 = vld [vmem:[%s11271_s2 + $0x418] sm:$0xff]  ;;  %v1651_v40 = vmul.f32 %v7419_v53, %v67_v35  ;;  %v72_v32 = vld [vmem:[%s11269_s0 + $0x1a8] sm:$0xff] }
 0x235   :  { %v3223_v24 = vmax.f32 %v2827_v58, 0.0  ;;  %v3224_v16 = vmax.f32 %v2828_v55, 0.0  ;;  %v3225_v27 = vmax.f32 %v2829_v47, 0.0  ;;  %v1652_v58 = vmul.f32 %v7419_v53, %v68_v38  ;;  %v73_v53 = vld [vmem:[%s11269_s0 + $0x1b0] sm:$0xff] }
 0x236   :  { %v3226_v5 = vmax.f32 %v2830_v33, 0.0  ;;  %4926 = vmatprep.subr.bf16.mxu1 %v3768_v43  ;;  %v2081_v62 = vpop.permute.xlu1 %2080  ;;  %v2085_v26 = vpop.permute.xlu0 %2084  ;;  %v1653_v50 = vmul.f32 %v7417_v52, %v69_v49  ;;  %v1654_v47 = vmul.f32 %v7417_v52, %v70_v48  ;;  %v71_v33 = vld [vmem:[%s11269_s0 + $0x1a0] sm:$0xff]  ;;  %v74_v52 = vld [vmem:[%s11269_s0 + $0x1b8] sm:$0xff]  ;;  %v1656_v45 = vmul.f32 %v7429_v57, %v72_v32 }
 0x237   :  { %v2831_v59 = vadd.f32 %v2081_v62, %v1643_v17  ;;  %v2832_v15 = vadd.f32 %v2081_v62, %v1644_v25  ;;  %4927 = vmatpush1.bf16.msra.mxu1 %v3767_v9  ;;  %2512 = vperm.xlu1 %6638, %v6929_v0   ;;  %v2833_v13 = vadd.f32 %v2085_v26, %v1645_v46  ;;  %v6933_v46 = vld [vmem:[%s11271_s2 + $0x420] sm:$0xff] }
 0x238   :  { %v2834_v42 = vadd.f32 %v2085_v26, %v1646_v34  ;;  %2516 = vperm.xlu0 %6637, %v6930_v39   ;;  %v3770_v37 = vpack.c.bf16 %v3226_v5, %v3224_v16  ;;  %v3769_v36 = vpack.c.bf16 %v3225_v27, %v3223_v24  ;;  %v1655_v62 = vmul.f32 %v7429_v57, %v71_v33  ;;  %v75_v0 = vld [vmem:[%s11269_s0 + $0x1c0] sm:$0xff]  ;;  %v77_v57 = vld [vmem:[%s11269_s0 + $0x1d0] sm:$0xff] }
 0x239   :  { %v3227_v63 = vmax.f32 %v2831_v59, 0.0  ;;  %v3228_v29 = vmax.f32 %v2832_v15, 0.0  ;;  %v3229_v21 = vmax.f32 %v2833_v13, 0.0  ;;  %v1657_v15 = vmul.f32 %v7427_v56, %v73_v53  ;;  %v76_v13 = vld [vmem:[%s11269_s0 + $0x1c8] sm:$0xff] }
 0x23a   :  { %v3230_v20 = vmax.f32 %v2834_v42, 0.0  ;;  %4928 = vmatprep.subr.bf16.mxu1 %v3770_v37  ;;  %v2089_v54 = vpop.permute.xlu1 %2088  ;;  %v2093_v6 = vpop.permute.xlu0 %2092  ;;  %v1658_v26 = vmul.f32 %v7427_v56, %v74_v52  ;;  %v78_v56 = vld [vmem:[%s11269_s0 + $0x1d8] sm:$0xff]  ;;  %v1661_v48 = vmul.f32 %v7437_v60, %v77_v57  ;;  %v83_v52 = vld [vmem:[%s11269_s0 + $0x200] sm:$0xff] }
 0x23b   :  { %v2835_v51 = vadd.f32 %v2089_v54, %v1647_v12  ;;  %v2836_v18 = vadd.f32 %v2089_v54, %v1648_v2  ;;  %4929 = vmatpush1.bf16.msra.mxu1 %v3769_v36  ;;  %2520 = vperm.xlu1 %6638, %v6931_v4   ;;  %v2837_v8 = vadd.f32 %v2093_v6, %v1649_v28 }
 0x23c   :  { %v2838_v14 = vadd.f32 %v2093_v6, %v1650_v31  ;;  %2524 = vperm.xlu0 %6637, %v6932_v11   ;;  %v3772_v30 = vpack.c.bf16 %v3230_v20, %v3228_v29  ;;  %v3771_v41 = vpack.c.bf16 %v3229_v21, %v3227_v63  ;;  %v6935_v63 = vld [vmem:[%s11271_s2 + $0x430] sm:$0xff]  ;;  %v6936_v31 = vld [vmem:[%s11271_s2 + $0x438] sm:$0xff]  ;;  %v1659_v21 = vmul.f32 %v7439_v61, %v75_v0  ;;  %v80_v6 = vld [vmem:[%s11269_s0 + $0x1e8] sm:$0xff] }
 0x23d   :  { %v3231_v55 = vmax.f32 %v2835_v51, 0.0  ;;  %v3232_v23 = vmax.f32 %v2836_v18, 0.0  ;;  %v3233_v43 = vmax.f32 %v2837_v8, 0.0  ;;  %v1660_v20 = vmul.f32 %v7439_v61, %v76_v13  ;;  %v79_v18 = vld [vmem:[%s11269_s0 + $0x1e0] sm:$0xff]  ;;  %v81_v61 = vld [vmem:[%s11269_s0 + $0x1f0] sm:$0xff] }
 0x23e   :  { %v3234_v9 = vmax.f32 %v2838_v14, 0.0  ;;  %4930 = vmatprep.subr.bf16.mxu1 %v3772_v30  ;;  %v2097_v17 = vpop.permute.xlu1 %2096  ;;  %v2101_v16 = vpop.permute.xlu0 %2100  ;;  %v1662_v51 = vmul.f32 %v7437_v60, %v78_v56  ;;  %v82_v60 = vld [vmem:[%s11269_s0 + $0x1f8] sm:$0xff]  ;;  %v1664_v33 = vmul.f32 %v7449_v1, %v80_v6  ;;  %v11609_v6 = vld [vmem:[#allocation9_spill] sm:$0xff] }
 0x23f   :  { %v2839_v25 = vadd.f32 %v2097_v17, %v1651_v40  ;;  %v2840_v24 = vadd.f32 %v2097_v17, %v1652_v58  ;;  %4931 = vmatpush1.bf16.msra.mxu1 %v3771_v41  ;;  %2528 = vperm.xlu1 %6638, %v6933_v46   ;;  %v2841_v34 = vadd.f32 %v2101_v16, %v1653_v50  ;;  %v6937_v41 = vld [vmem:[%s11271_s2 + $0x440] sm:$0xff] }
 0x240   :  { %v2842_v19 = vadd.f32 %v2101_v16, %v1654_v47  ;;  %2532 = vperm.xlu0 %6637, %v6934_v22   ;;  %v3774_v27 = vpack.c.bf16 %v3234_v9, %v3232_v23  ;;  %v3773_v5 = vpack.c.bf16 %v3233_v43, %v3231_v55  ;;  %v6938_v55 = vld [vmem:[%s11271_s2 + $0x448] sm:$0xff]  ;;  %v1663_v47 = vmul.f32 %v7449_v1, %v79_v18  ;;  %v11606_v9 = vld [vmem:[#allocation5_spill] sm:$0xff]  ;;  %v85_v1 = vld [vmem:[%s11269_s0 + $0x210] sm:$0xff] }
 0x241   :  { %v3235_v44 = vmax.f32 %v2839_v25, 0.0  ;;  %v3236_v59 = vmax.f32 %v2840_v24, 0.0  ;;  %v3237_v42 = vmax.f32 %v2841_v34, 0.0  ;;  %v1665_v17 = vmul.f32 %v11606_v9, %v81_v61  ;;  %v84_v25 = vld [vmem:[%s11269_s0 + $0x208] sm:$0xff]  ;;  %v86_v34 = vld [vmem:[%s11269_s0 + $0x218] sm:$0xff] }
 0x242   :  { %v3238_v39 = vmax.f32 %v2842_v19, 0.0  ;;  %4932 = vmatprep.subr.bf16.mxu1 %v3774_v27  ;;  %v2105_v37 = vpop.permute.xlu1 %2104  ;;  %v2109_v2 = vpop.permute.xlu0 %2108  ;;  %v1666_v53 = vmul.f32 %v11606_v9, %v82_v60  ;;  %v11610_v60 = vld [vmem:[#allocation8_spill] sm:$0xff]  ;;  %v6943_v9 = vld [vmem:[%s11271_s2 + $0x470] sm:$0xff] }
 0x243   :  { %v2843_v36 = vadd.f32 %v2105_v37, %v1655_v62  ;;  %v2844_v12 = vadd.f32 %v2105_v37, %v1656_v45  ;;  %4933 = vmatpush1.bf16.msra.mxu1 %v3773_v5  ;;  %2536 = vperm.xlu1 %6638, %v6935_v63   ;;  %v2845_v29 = vadd.f32 %v2109_v2, %v1657_v15  ;;  %v6939_v5 = vld [vmem:[%s11271_s2 + $0x450] sm:$0xff]  ;;  %v11608_v37 = vld [vmem:[#allocation6_spill] sm:$0xff] }
 0x244   :  { %v2846_v28 = vadd.f32 %v2109_v2, %v1658_v26  ;;  %2540 = vperm.xlu0 %6637, %v6936_v31   ;;  %v3776_v35 = vpack.c.bf16 %v3238_v39, %v3236_v59  ;;  %v3775_v38 = vpack.c.bf16 %v3237_v42, %v3235_v44  ;;  %v6940_v44 = vld [vmem:[%s11271_s2 + $0x458] sm:$0xff]  ;;  %v11607_v26 = vld [vmem:[#allocation7_spill] sm:$0xff]  ;;  %v1669_v57 = vmul.f32 %v11608_v37, %v85_v1 }
 0x245   :  { %v3239_v54 = vmax.f32 %v2843_v36, 0.0  ;;  %v3240_v49 = vmax.f32 %v2844_v12, 0.0  ;;  %v3241_v4 = vmax.f32 %v2845_v29, 0.0  ;;  %v1667_v0 = vmul.f32 %v11607_v26, %v83_v52  ;;  %v87_v36 = vld [vmem:[%s11269_s0 + $0x220] sm:$0xff]  ;;  %v88_v12 = vld [vmem:[%s11269_s0 + $0x228] sm:$0xff]  ;;  %v90_v31 = vld [vmem:[%s11269_s0 + $0x238] sm:$0xff] }
 0x246   :  { %v3242_v3 = vmax.f32 %v2846_v28, 0.0  ;;  %4934 = vmatprep.subr.bf16.mxu1 %v3776_v35  ;;  %v2113_v8 = vpop.permute.xlu1 %2112  ;;  %v2117_v30 = vpop.permute.xlu0 %2116  ;;  %v1668_v13 = vmul.f32 %v11607_v26, %v84_v25  ;;  %v1670_v56 = vmul.f32 %v11608_v37, %v86_v34  ;;  %v89_v28 = vld [vmem:[%s11269_s0 + $0x230] sm:$0xff]  ;;  %v6944_v25 = vld [vmem:[%s11271_s2 + $0x478] sm:$0xff] }
 0x247   :  { %v2847_v14 = vadd.f32 %v2113_v8, %v1659_v21  ;;  %v2848_v11 = vadd.f32 %v2113_v8, %v1660_v20  ;;  %4935 = vmatpush1.bf16.msra.mxu1 %v3775_v38  ;;  %2544 = vperm.xlu1 %6638, %v6937_v41   ;;  %v2849_v40 = vadd.f32 %v2117_v30, %v1661_v48  ;;  %v6941_v20 = vld [vmem:[%s11271_s2 + $0x460] sm:$0xff]  ;;  %v6942_v48 = vld [vmem:[%s11271_s2 + $0x468] sm:$0xff] }
 0x248   :  { %v2850_v58 = vadd.f32 %v2117_v30, %v1662_v51  ;;  %2548 = vperm.xlu0 %6637, %v6938_v55   ;;  %v3778_v23 = vpack.c.bf16 %v3242_v3, %v3240_v49  ;;  %v3777_v50 = vpack.c.bf16 %v3241_v4, %v3239_v54  ;;  %v1671_v4 = vmul.f32 %v11609_v6, %v87_v36  ;;  %v91_v30 = vld [vmem:[%s11269_s0 + $0x240] sm:$0xff]  ;;  %v92_v41 = vld [vmem:[%s11269_s0 + $0x248] sm:$0xff] }
 0x249   :  { %v3243_v32 = vmax.f32 %v2847_v14, 0.0  ;;  %v3244_v43 = vmax.f32 %v2848_v11, 0.0  ;;  %v3245_v24 = vmax.f32 %v2849_v40, 0.0  ;;  %v1672_v3 = vmul.f32 %v11609_v6, %v88_v12 }
 0x24a   :  { %v3246_v16 = vmax.f32 %v2850_v58, 0.0  ;;  %4936 = vmatprep.subr.bf16.mxu1 %v3778_v23  ;;  %v2121_v46 = vpop.permute.xlu1 %2120  ;;  %v2125_v27 = vpop.permute.xlu0 %2124  ;;  %v1673_v14 = vmul.f32 %v11610_v60, %v89_v28  ;;  %v1674_v11 = vmul.f32 %v11610_v60, %v90_v31  ;;  %v6641_v23 = vld [vmem:[%s11270_s1] ss:$52 sps:$4 sm:$0xff]  }
 0x24b   :  { %v2851_v19 = vadd.f32 %v2121_v46, %v1663_v47  ;;  %v2852_v22 = vadd.f32 %v2121_v46, %v1664_v33  ;;  %4937 = vmatpush1.bf16.msra.mxu1 %v3777_v50  ;;  %2552 = vperm.xlu1 %6638, %v6939_v5   ;;  %v2853_v62 = vadd.f32 %v2125_v27, %v1665_v17  ;;  %v93_v50 = vld [vmem:[%s11269_s0 + $0x250] sm:$0xff]  ;;  %v94_v47 = vld [vmem:[%s11269_s0 + $0x258] sm:$0xff] }
 0x24c   :  { %v2854_v45 = vadd.f32 %v2125_v27, %v1666_v53  ;;  %2556 = vperm.xlu0 %6637, %v6940_v44   ;;  %v3780_v59 = vpack.c.bf16 %v3246_v16, %v3244_v43  ;;  %v3779_v15 = vpack.c.bf16 %v3245_v24, %v3243_v32  ;;  %v11611_v16 = vld [vmem:[#allocation11_spill] sm:$0xff]  ;;  %v11612_v27 = vld [vmem:[#allocation10_spill] sm:$0xff] }
 0x24d   :  { %v3247_v42 = vmax.f32 %v2851_v19, 0.0  ;;  %v3248_v39 = vmax.f32 %v2852_v22, 0.0  ;;  %v3249_v2 = vmax.f32 %v2853_v62, 0.0  ;;  %v1675_v46 = vmul.f32 %v11611_v16, %v91_v30  ;;  %v6647_v22 = vld [vmem:[%s11270_s1 + $0x6c] ss:$52 sps:$4 sm:$0xff]  }
 0x24e   :  { %v3250_v63 = vmax.f32 %v2854_v45, 0.0  ;;  %4938 = vmatprep.subr.bf16.mxu1 %v3780_v59  ;;  %v2129_v29 = vpop.permute.xlu1 %2128  ;;  %v2133_v21 = vpop.permute.xlu0 %2132  ;;  %v1676_v1 = vmul.f32 %v11611_v16, %v92_v41  ;;  %v1677_v5 = vmul.f32 %v11612_v27, %v93_v50  ;;  %v1678_v62 = vmul.f32 %v11612_v27, %v94_v47  ;;  %v95_v45 = vld [vmem:[%s11269_s0 + $0x260] sm:$0xff]  ;;  %v96_v44 = vld [vmem:[%s11269_s0 + $0x268] sm:$0xff] }
 0x24f   :  { %v2855_v35 = vadd.f32 %v2129_v29, %v1667_v0  ;;  %v2856_v38 = vadd.f32 %v2129_v29, %v1668_v13  ;;  %4939 = vmatpush1.bf16.msra.mxu1 %v3779_v15  ;;  %2560 = vperm.xlu1 %6638, %v6941_v20   ;;  %v2857_v54 = vadd.f32 %v2133_v21, %v1669_v57  ;;  %v97_v0 = vld [vmem:[%s11269_s0 + $0x270] sm:$0xff]  ;;  %v98_v13 = vld [vmem:[%s11269_s0 + $0x278] sm:$0xff]  ;;  %v6945_v57 = vld [vmem:[%s11271_s2 + $0x480] sm:$0xff] }
 0x250   :  { %v2858_v49 = vadd.f32 %v2133_v21, %v1670_v56  ;;  %2564 = vperm.xlu0 %6637, %v6942_v48   ;;  %v3782_v51 = vpack.c.bf16 %v3250_v63, %v3248_v39  ;;  %v3781_v18 = vpack.c.bf16 %v3249_v2, %v3247_v42  ;;  %v6946_v2 = vld [vmem:[%s11271_s2 + $0x488] sm:$0xff]  ;;  %v11613_v29 = vld [vmem:[#allocation13_spill] sm:$0xff]  ;;  %v11614_v21 = vld [vmem:[#allocation12_spill] sm:$0xff] }
 0x251   :  { %v3251_v8 = vmax.f32 %v2855_v35, 0.0  ;;  %v3252_v61 = vmax.f32 %v2856_v38, 0.0  ;;  %v3253_v40 = vmax.f32 %v2857_v54, 0.0  ;;  %v1679_v28 = vmul.f32 %v11613_v29, %v95_v45  ;;  %v100_v48 = vld [vmem:[%s11269_s0 + $0x288] sm:$0xff] }
 0x252   :  { %v3254_v58 = vmax.f32 %v2858_v49, 0.0  ;;  %4940 = vmatprep.subr.bf16.mxu1 %v3782_v51  ;;  %v2137_v55 = vpop.permute.xlu1 %2136  ;;  %v2141_v43 = vpop.permute.xlu0 %2140  ;;  %v1680_v31 = vmul.f32 %v11613_v29, %v96_v44  ;;  %v1681_v20 = vmul.f32 %v11614_v21, %v97_v0  ;;  %v1682_v54 = vmul.f32 %v11614_v21, %v98_v13  ;;  %v99_v49 = vld [vmem:[%s11269_s0 + $0x280] sm:$0xff] }
 0x253   :  { %v2859_v33 = vadd.f32 %v2137_v55, %v1671_v4  ;;  %v2860_v32 = vadd.f32 %v2137_v55, %v1672_v3  ;;  %4941 = vmatpush1.bf16.msra.mxu1 %v3781_v18  ;;  %2568 = vperm.xlu1 %6638, %v6943_v9   ;;  %v3783_v17 = vpack.c.bf16 %v3253_v40, %v3251_v8  ;;  %v6649_v4 = vld [vmem:[%s11270_s1 + $0x68] ss:$52 sps:$4 sm:$0xff]   ;;  %v101_v3 = vld [vmem:[%s11269_s0 + $0x290] sm:$0xff] }
 0x254   :  { %v2861_v53 = vadd.f32 %v2141_v43, %v1673_v14  ;;  %v2862_v52 = vadd.f32 %v2141_v43, %v1674_v11  ;;  %2572 = vperm.xlu0 %6637, %v6944_v25   ;;  %v3784_v24 = vpack.c.bf16 %v3254_v58, %v3252_v61  ;;  %v102_v8 = vld [vmem:[%s11269_s0 + $0x298] sm:$0xff]  ;;  %v6947_v11 = vld [vmem:[%s11271_s2 + $0x490] sm:$0xff]  ;;  %v11616_v9 = vld [vmem:[#allocation14_spill] sm:$0xff] }
 0x255   :  { %v3255_v34 = vmax.f32 %v2859_v33, 0.0  ;;  %v3256_v19 = vmax.f32 %v2860_v32, 0.0  ;;  %v6948_v58 = vld [vmem:[%s11271_s2 + $0x498] sm:$0xff]  ;;  %v6652_v43 = vld [vmem:[%s11270_s1 + $0xd4] ss:$52 sps:$4 sm:$0xff]  }
 0x256   :  { %v3257_v59 = vmax.f32 %v2861_v53, 0.0  ;;  %v3258_v15 = vmax.f32 %v2862_v52, 0.0  ;;  %5063 = vmatprep.subr.bf16.mxu1 %v3784_v24  ;;  %v2145_v26 = vpop.permute.xlu1 %2144  ;;  %4943 = vmatmul.mubr.bf16.vlgmr.msra.gmra.mrb[0].mxu1 %v6641_v23  ;;  %v2149_v37 = vpop.permute.xlu0 %2148  ;;  %v11615_v23 = vld [vmem:[#allocation15_spill] sm:$0xff]  ;;  %v1686_v53 = vmul.f32 %v11616_v9, %v102_v8  ;;  %v103_v52 = vld [vmem:[%s11269_s0 + $0x2a0] sm:$0xff]  ;;  %v104_v25 = vld [vmem:[%s11269_s0 + $0x2a8] sm:$0xff] }
 0x257   :  { %v2863_v42 = vadd.f32 %v2145_v26, %v1675_v46  ;;  %v2864_v39 = vadd.f32 %v2145_v26, %v1676_v1  ;;  %5064 = vmatpush1.bf16.msra.mxu1 %v3783_v17  ;;  %2576 = vperm.xlu1 %6638, %v6945_v57   ;;  %v2865_v36 = vadd.f32 %v2149_v37, %v1677_v5  ;;  %v105_v1 = vld [vmem:[%s11269_s0 + $0x2b0] sm:$0xff]  ;;  %v6949_v5 = vld [vmem:[%s11271_s2 + $0x1a0] sm:$0xff] }
 0x258   :  { %v3785_v56 = vpack.c.bf16 %v3257_v59, %v3255_v34  ;;  %v2866_v12 = vadd.f32 %v2149_v37, %v1678_v62  ;;  %2580 = vperm.xlu0 %6637, %v6946_v2   ;;  %v3786_v63 = vpack.c.bf16 %v3258_v15, %v3256_v19  ;;  %4952 = vmatprep.mubr.bf16.mxu1 %v6647_v22  ;;  %v106_v34 = vld [vmem:[%s11269_s0 + $0x2b8] sm:$0xff]  ;;  %v6950_v59 = vld [vmem:[%s11271_s2 + $0x1a8] sm:$0xff]  ;;  %v11617_v26 = vld [vmem:[#allocation17_spill] sm:$0xff] }
 0x259   :  { %v3259_v35 = vmax.f32 %v2863_v42, 0.0  ;;  %v3260_v38 = vmax.f32 %v2864_v39, 0.0  ;;  %v3261_v51 = vmax.f32 %v2865_v36, 0.0  ;;  %v1683_v50 = vmul.f32 %v11615_v23, %v99_v49  ;;  %v11618_v37 = vld [vmem:[#allocation16_spill] sm:$0xff]  ;;  %v107_v36 = vld [vmem:[%s11269_s0 + $0x2c0] sm:$0xff] }
 0x25a   :  { %v3262_v18 = vmax.f32 %v2866_v12, 0.0  ;;  %5065 = vmatprep.subr.bf16.mxu1 %v3786_v63  ;;  %v2153_v6 = vpop.permute.xlu1 %2152  ;;  %v2157_v14 = vpop.permute.xlu0 %2156  ;;  %v1684_v47 = vmul.f32 %v11615_v23, %v100_v48  ;;  %v1685_v17 = vmul.f32 %v11616_v9, %v101_v3  ;;  %v1687_v0 = vmul.f32 %v11617_v26, %v103_v52  ;;  %v108_v12 = vld [vmem:[%s11269_s0 + $0x2c8] sm:$0xff] }
 0x25b   :  { %v2867_v61 = vadd.f32 %v2153_v6, %v1679_v28  ;;  %v2868_v60 = vadd.f32 %v2153_v6, %v1680_v31  ;;  %5066 = vmatpush1.bf16.msra.mxu1 %v3785_v56  ;;  %2584 = vperm.xlu1 %6638, %v6947_v11   ;;  %v3787_v30 = vpack.c.bf16 %v3261_v51, %v3259_v35  ;;  %v6655_v28 = vld [vmem:[%s11270_s1 + $0xd0] ss:$52 sps:$4 sm:$0xff]   ;;  %v110_v35 = vld [vmem:[%s11269_s0 + $0x2d8] sm:$0xff]  ;;  %v11620_v11 = vld [vmem:[#allocation18_spill] sm:$0xff] }
 0x25c   :  { %v2869_v41 = vadd.f32 %v2157_v14, %v1681_v20  ;;  %v2870_v40 = vadd.f32 %v2157_v14, %v1682_v54  ;;  %2588 = vperm.xlu0 %6637, %v6948_v58   ;;  %v3788_v55 = vpack.c.bf16 %v3262_v18, %v3260_v38  ;;  %v1688_v13 = vmul.f32 %v11617_v26, %v104_v25  ;;  %v109_v31 = vld [vmem:[%s11269_s0 + $0x2d0] sm:$0xff]  ;;  %v6951_v54 = vld [vmem:[%s11271_s2 + $0x4a0] sm:$0xff]  ;;  %v6952_v18 = vld [vmem:[%s11271_s2 + $0x4a8] sm:$0xff] }
 0x25d   :  { %v3263_v33 = vmax.f32 %v2867_v61, 0.0  ;;  %v3264_v32 = vmax.f32 %v2868_v60, 0.0  ;;  %v1689_v57 = vmul.f32 %v11618_v37, %v105_v1  ;;  %v1690_v56 = vmul.f32 %v11618_v37, %v106_v34  ;;  %v6658_v14 = vld [vmem:[%s11270_s1 + $0x13c] ss:$52 sps:$4 sm:$0xff]   ;;  %v112_v58 = vld [vmem:[%s11269_s0 + $0x2e8] sm:$0xff] }
 0x25e   :  { %v3265_v24 = vmax.f32 %v2869_v41, 0.0  ;;  %v3266_v16 = vmax.f32 %v2870_v40, 0.0  ;;  %5067 = vmatprep.subr.bf16.mxu1 %v3788_v55  ;;  %v2161_v46 = vpop.permute.xlu1 %2160  ;;  %4953 = vmatmul.mubr.bf16.gmra.mrb[4].mxu1 %v6649_v4  ;;  %v2165_v27 = vpop.permute.xlu0 %2164  ;;  %v11619_v4 = vld [vmem:[#allocation19_spill] sm:$0xff]  ;;  %v1694_v41 = vmul.f32 %v11620_v11, %v110_v35  ;;  %v111_v40 = vld [vmem:[%s11269_s0 + $0x2e0] sm:$0xff] }
 0x25f   :  { %v2871_v19 = vadd.f32 %v2161_v46, %v1683_v50  ;;  %v2872_v22 = vadd.f32 %v2161_v46, %v1684_v47  ;;  %5068 = vmatpush1.bf16.msra.mxu1 %v3787_v30  ;;  %2208 = vperm.xlu1 %6638, %v6949_v5   ;;  %v2873_v45 = vadd.f32 %v2165_v27, %v1685_v17  ;;  %v113_v47 = vld [vmem:[%s11269_s0 + $0x2f0] sm:$0xff]  ;;  %v11621_v46 = vld [vmem:[#allocation21_spill] sm:$0xff] }
 0x260   :  { %v3789_v62 = vpack.c.bf16 %v3265_v24, %v3263_v33  ;;  %v2874_v44 = vadd.f32 %v2165_v27, %v1686_v53  ;;  %2212 = vperm.xlu0 %6637, %v6950_v59   ;;  %v3790_v15 = vpack.c.bf16 %v3266_v16, %v3264_v32  ;;  %4962 = vmatprep.mubr.bf16.mxu1 %v6652_v43  ;;  %v114_v33 = vld [vmem:[%s11269_s0 + $0x2f8] sm:$0xff]  ;;  %v6953_v17 = vld [vmem:[%s11271_s2 + $0x1b0] sm:$0xff] }
 0x261   :  { %v3267_v42 = vmax.f32 %v2871_v19, 0.0  ;;  %v3268_v39 = vmax.f32 %v2872_v22, 0.0  ;;  %v3269_v2 = vmax.f32 %v2873_v45, 0.0  ;;  %v1691_v3 = vmul.f32 %v11619_v4, %v107_v36  ;;  %v6954_v24 = vld [vmem:[%s11271_s2 + $0x1b8] sm:$0xff]  ;;  %v115_v45 = vld [vmem:[%s11269_s0 + $0x300] sm:$0xff] }
 0x262   :  { %v3270_v63 = vmax.f32 %v2874_v44, 0.0  ;;  %5069 = vmatprep.subr.bf16.mxu1 %v3790_v15  ;;  %v2169_v29 = vpop.permute.xlu1 %2168  ;;  %v2173_v20 = vpop.permute.xlu0 %2172  ;;  %v1692_v8 = vmul.f32 %v11619_v4, %v108_v12  ;;  %v1693_v30 = vmul.f32 %v11620_v11, %v109_v31  ;;  %v1695_v1 = vmul.f32 %v11621_v46, %v111_v40  ;;  %v11622_v27 = vld [vmem:[#allocation20_spill] sm:$0xff]  ;;  %v116_v44 = vld [vmem:[%s11269_s0 + $0x308] sm:$0xff] }
 0x263   :  { %v2875_v38 = vadd.f32 %v2169_v29, %v1687_v0  ;;  %v2876_v21 = vadd.f32 %v2169_v29, %v1688_v13  ;;  %5070 = vmatpush1.bf16.msra.mxu1 %v3789_v62  ;;  %2592 = vperm.xlu1 %6638, %v6951_v54   ;;  %v3791_v49 = vpack.c.bf16 %v3269_v2, %v3267_v42  ;;  %v6661_v0 = vld [vmem:[%s11270_s1 + $0x138] ss:$52 sps:$4 sm:$0xff]   ;;  %v117_v13 = vld [vmem:[%s11269_s0 + $0x310] sm:$0xff] }
 0x264   :  { %v2877_v48 = vadd.f32 %v2173_v20, %v1689_v57  ;;  %v2878_v51 = vadd.f32 %v2173_v20, %v1690_v56  ;;  %2596 = vperm.xlu0 %6637, %v6952_v18   ;;  %v3792_v6 = vpack.c.bf16 %v3270_v63, %v3268_v39  ;;  %v1696_v34 = vmul.f32 %v11621_v46, %v112_v58  ;;  %v118_v42 = vld [vmem:[%s11269_s0 + $0x318] sm:$0xff]  ;;  %v6955_v56 = vld [vmem:[%s11271_s2 + $0x4b0] sm:$0xff]  ;;  %v11624_v54 = vld [vmem:[#allocation22_spill] sm:$0xff] }
 0x265   :  { %v3271_v61 = vmax.f32 %v2875_v38, 0.0  ;;  %v3272_v60 = vmax.f32 %v2876_v21, 0.0  ;;  %v1697_v5 = vmul.f32 %v11622_v27, %v113_v47  ;;  %v1698_v62 = vmul.f32 %v11622_v27, %v114_v33  ;;  %v6956_v63 = vld [vmem:[%s11271_s2 + $0x4b8] sm:$0xff]  ;;  %v120_v18 = vld [vmem:[%s11269_s0 + $0x328] sm:$0xff] }
 0x266   :  { %v3273_v55 = vmax.f32 %v2877_v48, 0.0  ;;  %v3274_v23 = vmax.f32 %v2878_v51, 0.0  ;;  %5071 = vmatprep.subr.bf16.mxu1 %v3792_v6  ;;  %v2177_v50 = vpop.permute.xlu1 %2176  ;;  %4963 = vmatmul.mubr.bf16.gmra.mrb[8].mxu1 %v6655_v28  ;;  %v2181_v9 = vpop.permute.xlu0 %2180  ;;  %v11623_v28 = vld [vmem:[#allocation23_spill] sm:$0xff]  ;;  %v6664_v20 = vld [vmem:[%s11270_s1 + $0x1a4] ss:$52 sps:$4 sm:$0xff]   ;;  %v1702_v48 = vmul.f32 %v11624_v54, %v118_v42 }
 0x267   :  { %v2879_v32 = vadd.f32 %v2177_v50, %v1691_v3  ;;  %v2880_v43 = vadd.f32 %v2177_v50, %v1692_v8  ;;  %5072 = vmatpush1.bf16.msra.mxu1 %v3791_v49  ;;  %2216 = vperm.xlu1 %6638, %v6953_v17   ;;  %v2881_v52 = vadd.f32 %v2181_v9, %v1693_v30  ;;  %v119_v51 = vld [vmem:[%s11269_s0 + $0x320] sm:$0xff]  ;;  %v121_v8 = vld [vmem:[%s11269_s0 + $0x330] sm:$0xff] }
 0x268   :  { %v3793_v53 = vpack.c.bf16 %v3273_v55, %v3271_v61  ;;  %v2882_v25 = vadd.f32 %v2181_v9, %v1694_v41  ;;  %2220 = vperm.xlu0 %6637, %v6954_v24   ;;  %v3794_v16 = vpack.c.bf16 %v3274_v23, %v3272_v60  ;;  %4972 = vmatprep.mubr.bf16.mxu1 %v6658_v14  ;;  %v122_v61 = vld [vmem:[%s11269_s0 + $0x338] sm:$0xff]  ;;  %v6957_v30 = vld [vmem:[%s11271_s2 + $0x1c0] sm:$0xff]  ;;  %v6958_v55 = vld [vmem:[%s11271_s2 + $0x1c8] sm:$0xff] }
 0x269   :  { %v3275_v19 = vmax.f32 %v2879_v32, 0.0  ;;  %v3276_v22 = vmax.f32 %v2880_v43, 0.0  ;;  %v3277_v59 = vmax.f32 %v2881_v52, 0.0  ;;  %v1699_v31 = vmul.f32 %v11623_v28, %v115_v45  ;;  %v11625_v50 = vld [vmem:[#allocation25_spill] sm:$0xff]  ;;  %v11626_v9 = vld [vmem:[#allocation24_spill] sm:$0xff] }
 0x26a   :  { %v3278_v15 = vmax.f32 %v2882_v25, 0.0  ;;  %5073 = vmatprep.subr.bf16.mxu1 %v3794_v16  ;;  %v2185_v26 = vpop.permute.xlu1 %2184  ;;  %v2189_v57 = vpop.permute.xlu0 %2188  ;;  %v1700_v35 = vmul.f32 %v11623_v28, %v116_v44  ;;  %v1701_v49 = vmul.f32 %v11624_v54, %v117_v13  ;;  %v1703_v47 = vmul.f32 %v11625_v50, %v119_v51  ;;  %v211_v52 = vld [vmem:[%s11269_s0 + $0x600] sm:$0xff]  ;;  %v212_v25 = vld [vmem:[%s11269_s0 + $0x608] sm:$0xff]  ;;  %v6961_v54 = vld [vmem:[%s11271_s2 + $0x1d0] sm:$0xff] }
 0x26b   :  { %v2883_v39 = vadd.f32 %v2185_v26, %v1695_v1  ;;  %v2884_v37 = vadd.f32 %v2185_v26, %v1696_v34  ;;  %5074 = vmatpush1.bf16.msra.mxu1 %v3793_v53  ;;  %2600 = vperm.xlu1 %6638, %v6955_v56   ;;  %v3795_v36 = vpack.c.bf16 %v3277_v59, %v3275_v19  ;;  %v6667_v1 = vld [vmem:[%s11270_s1 + $0x1a0] ss:$52 sps:$4 sm:$0xff]   ;;  %v214_v19 = vld [vmem:[%s11269_s0 + $0x618] sm:$0xff]  ;;  %v11628_v56 = vld [vmem:[#allocation70_spill] sm:$0xff] }
 0x26c   :  { %v2885_v12 = vadd.f32 %v2189_v57, %v1697_v5  ;;  %v2886_v2 = vadd.f32 %v2189_v57, %v1698_v62  ;;  %2604 = vperm.xlu0 %6637, %v6956_v63   ;;  %v3796_v29 = vpack.c.bf16 %v3278_v15, %v3276_v22  ;;  %v1704_v33 = vmul.f32 %v11625_v50, %v120_v18  ;;  %v213_v34 = vld [vmem:[%s11269_s0 + $0x610] sm:$0xff]  ;;  %v6959_v62 = vld [vmem:[%s11271_s2 + $0x4c0] sm:$0xff]  ;;  %v6960_v15 = vld [vmem:[%s11271_s2 + $0x4c8] sm:$0xff] }
 0x26d   :  { %v3279_v38 = vmax.f32 %v2883_v39, 0.0  ;;  %v3280_v21 = vmax.f32 %v2884_v37, 0.0  ;;  %v1705_v17 = vmul.f32 %v11626_v9, %v121_v8  ;;  %v1706_v53 = vmul.f32 %v11626_v9, %v122_v61  ;;  %v6670_v57 = vld [vmem:[%s11270_s1 + $0x20c] ss:$52 sps:$4 sm:$0xff]   ;;  %v6962_v18 = vld [vmem:[%s11271_s2 + $0x1d8] sm:$0xff] }
 0x26e   :  { %v3281_v6 = vmax.f32 %v2885_v12, 0.0  ;;  %v3282_v4 = vmax.f32 %v2886_v2, 0.0  ;;  %5075 = vmatprep.subr.bf16.mxu1 %v3796_v29  ;;  %v2193_v3 = vpop.permute.xlu1 %2192  ;;  %4973 = vmatmul.mubr.bf16.gmra.mrb[12].mxu1 %v6661_v0  ;;  %v2197_v11 = vpop.permute.xlu0 %2196  ;;  %v11627_v0 = vld [vmem:[#allocation71_spill] sm:$0xff]  ;;  %v1798_v12 = vmul.f32 %v11628_v56, %v214_v19  ;;  %v215_v2 = vld [vmem:[%s11269_s0 + $0x620] sm:$0xff]  ;;  %v216_v63 = vld [vmem:[%s11269_s0 + $0x628] sm:$0xff] }
 0x26f   :  { %v2887_v60 = vadd.f32 %v2193_v3, %v1699_v31  ;;  %v2888_v14 = vadd.f32 %v2193_v3, %v1700_v35  ;;  %5076 = vmatpush1.bf16.msra.mxu1 %v3795_v36  ;;  %2224 = vperm.xlu1 %6638, %v6957_v30   ;;  %v2889_v40 = vadd.f32 %v2197_v11, %v1701_v49  ;;  %v217_v35 = vld [vmem:[%s11269_s0 + $0x630] sm:$0xff]  ;;  %v11629_v3 = vld [vmem:[#allocation73_spill] sm:$0xff] }
 0x270   :  { %v3797_v41 = vpack.c.bf16 %v3281_v6, %v3279_v38  ;;  %v2890_v58 = vadd.f32 %v2197_v11, %v1702_v48  ;;  %2228 = vperm.xlu0 %6637, %v6958_v55   ;;  %v3798_v23 = vpack.c.bf16 %v3282_v4, %v3280_v21  ;;  %4982 = vmatprep.mubr.bf16.mxu1 %v6664_v20  ;;  %v218_v38 = vld [vmem:[%s11269_s0 + $0x638] sm:$0xff] }
 0x271   :  { %v3283_v32 = vmax.f32 %v2887_v60, 0.0  ;;  %v3284_v43 = vmax.f32 %v2888_v14, 0.0  ;;  %v3285_v24 = vmax.f32 %v2889_v40, 0.0  ;;  %v1795_v13 = vmul.f32 %v11627_v0, %v211_v52  ;;  %v11630_v11 = vld [vmem:[#allocation72_spill] sm:$0xff]  ;;  %v219_v40 = vld [vmem:[%s11269_s0 + $0x640] sm:$0xff] }
 0x272   :  { %v3286_v16 = vmax.f32 %v2890_v58, 0.0  ;;  %5077 = vmatprep.subr.bf16.mxu1 %v3798_v23  ;;  %v2201_v46 = vpop.permute.xlu1 %2200  ;;  %v2205_v5 = vpop.permute.xlu0 %2204  ;;  %v1796_v42 = vmul.f32 %v11627_v0, %v212_v25  ;;  %v1797_v36 = vmul.f32 %v11628_v56, %v213_v34  ;;  %v1799_v8 = vmul.f32 %v11629_v3, %v215_v2  ;;  %v220_v58 = vld [vmem:[%s11269_s0 + $0x648] sm:$0xff] }
 0x273   :  { %v2891_v22 = vadd.f32 %v2201_v46, %v1703_v47  ;;  %v2892_v27 = vadd.f32 %v2201_v46, %v1704_v33  ;;  %5078 = vmatpush1.bf16.msra.mxu1 %v3797_v41  ;;  %2608 = vperm.xlu1 %6638, %v6959_v62   ;;  %v3799_v45 = vpack.c.bf16 %v3285_v24, %v3283_v32  ;;  %v6673_v47 = vld [vmem:[%s11270_s1 + $0x208] ss:$52 sps:$4 sm:$0xff]   ;;  %v221_v33 = vld [vmem:[%s11269_s0 + $0x650] sm:$0xff] }
 0x274   :  { %v2893_v44 = vadd.f32 %v2205_v5, %v1705_v17  ;;  %v2894_v59 = vadd.f32 %v2205_v5, %v1706_v53  ;;  %2612 = vperm.xlu0 %6637, %v6960_v15   ;;  %v3800_v26 = vpack.c.bf16 %v3286_v16, %v3284_v43  ;;  %v1800_v61 = vmul.f32 %v11629_v3, %v216_v63  ;;  %v222_v32 = vld [vmem:[%s11269_s0 + $0x658] sm:$0xff]  ;;  %v6963_v53 = vld [vmem:[%s11271_s2 + $0x4d0] sm:$0xff]  ;;  %v11632_v62 = vld [vmem:[#allocation74_spill] sm:$0xff] }
 0x275   :  { %v3287_v39 = vmax.f32 %v2891_v22, 0.0  ;;  %v3288_v37 = vmax.f32 %v2892_v27, 0.0  ;;  %v1801_v30 = vmul.f32 %v11630_v11, %v217_v35  ;;  %v1802_v41 = vmul.f32 %v11630_v11, %v218_v38  ;;  %v6964_v24 = vld [vmem:[%s11271_s2 + $0x4d8] sm:$0xff]  ;;  %v6676_v5 = vld [vmem:[%s11270_s1 + $0x274] ss:$52 sps:$4 sm:$0xff]  }
 0x276   :  { %v3289_v29 = vmax.f32 %v2893_v44, 0.0  ;;  %v3290_v28 = vmax.f32 %v2894_v59, 0.0  ;;  %5079 = vmatprep.subr.bf16.mxu1 %v3800_v26  ;;  %v2385_v31 = vpop.permute.xlu1 %2384  ;;  %4983 = vmatmul.mubr.bf16.gmra.mrb[16].mxu1 %v6667_v1  ;;  %v2389_v20 = vpop.permute.xlu0 %2388  ;;  %v11631_v1 = vld [vmem:[#allocation75_spill] sm:$0xff]  ;;  %v1806_v44 = vmul.f32 %v11632_v62, %v222_v32  ;;  %v223_v59 = vld [vmem:[%s11269_s0 + $0x660] sm:$0xff]  ;;  %v224_v15 = vld [vmem:[%s11269_s0 + $0x668] sm:$0xff] }
 0x277   :  { %v2983_v21 = vadd.f32 %v2385_v31, %v1795_v13  ;;  %5080 = vmatpush1.bf16.msra.mxu1 %v3799_v45  ;;  %2232 = vperm.xlu1 %6638, %v6961_v54   ;;  %v2984_v49 = vadd.f32 %v2385_v31, %v1796_v42  ;;  %v2985_v51 = vadd.f32 %v2389_v20, %v1797_v36  ;;  %v225_v42 = vld [vmem:[%s11269_s0 + $0x670] sm:$0xff]  ;;  %v6965_v36 = vld [vmem:[%s11271_s2 + $0x1e0] sm:$0xff]  ;;  %v6966_v63 = vld [vmem:[%s11271_s2 + $0x1e8] sm:$0xff] }
 0x278   :  { %v3801_v48 = vpack.c.bf16 %v3289_v29, %v3287_v39  ;;  %2236 = vperm.xlu0 %6637, %v6962_v18   ;;  %v3802_v6 = vpack.c.bf16 %v3290_v28, %v3288_v37  ;;  %v2986_v4 = vadd.f32 %v2389_v20, %v1798_v12  ;;  %4992 = vmatprep.mubr.bf16.mxu1 %v6670_v57  ;;  %v226_v39 = vld [vmem:[%s11269_s0 + $0x678] sm:$0xff]  ;;  %v11633_v31 = vld [vmem:[#allocation77_spill] sm:$0xff]  ;;  %v228_v18 = vld [vmem:[%s11269_s0 + $0x688] sm:$0xff] }
 0x279   :  { %v3380_v60 = vmax.f32 %v2984_v49, 0.0  ;;  %v3379_v14 = vmax.f32 %v2983_v21, 0.0  ;;  %v3381_v50 = vmax.f32 %v2985_v51, 0.0  ;;  %v1803_v34 = vmul.f32 %v11631_v1, %v219_v40  ;;  %v11634_v54 = vld [vmem:[#allocation76_spill] sm:$0xff]  ;;  %v227_v51 = vld [vmem:[%s11269_s0 + $0x680] sm:$0xff] }
 0x27a   :  { %5081 = vmatprep.subr.bf16.mxu1 %v3802_v6  ;;  %v2393_v55 = vpop.permute.xlu1 %2392  ;;  %v3382_v23 = vmax.f32 %v2986_v4, 0.0  ;;  %v2397_v17 = vpop.permute.xlu0 %2396  ;;  %v1804_v19 = vmul.f32 %v11631_v1, %v220_v58  ;;  %v1805_v45 = vmul.f32 %v11632_v62, %v221_v33  ;;  %v1807_v35 = vmul.f32 %v11633_v31, %v223_v59 }
 0x27b   :  { %v2987_v43 = vadd.f32 %v2393_v55, %v1799_v8  ;;  %v2988_v9 = vadd.f32 %v2393_v55, %v1800_v61  ;;  %5082 = vmatpush1.bf16.msra.mxu1 %v3801_v48  ;;  %2616 = vperm.xlu1 %6638, %v6963_v53   ;;  %v2989_v52 = vadd.f32 %v2397_v17, %v1801_v30  ;;  %v6679_v8 = vld [vmem:[%s11270_s1 + $0x270] ss:$52 sps:$4 sm:$0xff]   ;;  %v6968_v55 = vld [vmem:[%s11271_s2 + $0x4e8] sm:$0xff] }
 0x27c   :  { %v2990_v25 = vadd.f32 %v2397_v17, %v1802_v41  ;;  %2620 = vperm.xlu0 %6637, %v6964_v24   ;;  %v3848_v16 = vpack.c.bf16 %v3382_v23, %v3380_v60  ;;  %v3847_v46 = vpack.c.bf16 %v3381_v50, %v3379_v14  ;;  %v1808_v38 = vmul.f32 %v11633_v31, %v224_v15  ;;  %v229_v61 = vld [vmem:[%s11269_s0 + $0x690] sm:$0xff]  ;;  %v230_v60 = vld [vmem:[%s11269_s0 + $0x698] sm:$0xff]  ;;  %v6967_v41 = vld [vmem:[%s11271_s2 + $0x4e0] sm:$0xff] }
 0x27d   :  { %v3383_v22 = vmax.f32 %v2987_v43, 0.0  ;;  %v3384_v27 = vmax.f32 %v2988_v9, 0.0  ;;  %v3385_v26 = vmax.f32 %v2989_v52, 0.0  ;;  %v1809_v49 = vmul.f32 %v11634_v54, %v225_v42  ;;  %v6682_v17 = vld [vmem:[%s11270_s1 + $0x2dc] ss:$52 sps:$4 sm:$0xff]   ;;  %v11636_v53 = vld [vmem:[#allocation78_spill] sm:$0xff] }
 0x27e   :  { %v3386_v0 = vmax.f32 %v2990_v25, 0.0  ;;  %5369 = vmatprep.subr.bf16.mxu0 %v3848_v16  ;;  %v2401_v13 = vpop.permute.xlu1 %2400  ;;  %4993 = vmatmul.mubr.bf16.gmra.mrb[20].mxu1 %v6673_v47  ;;  %v2405_v56 = vpop.permute.xlu0 %2404  ;;  %v1810_v48 = vmul.f32 %v11634_v54, %v226_v39  ;;  %v11635_v47 = vld [vmem:[#allocation79_spill] sm:$0xff]  ;;  %v1813_v52 = vmul.f32 %v11636_v53, %v229_v61  ;;  %v1814_v25 = vmul.f32 %v11636_v53, %v230_v60  ;;  %v231_v24 = vld [vmem:[%s11269_s0 + $0x6a0] sm:$0xff]  ;;  %v232_v16 = vld [vmem:[%s11269_s0 + $0x6a8] sm:$0xff] }
 0x27f   :  { %v2991_v37 = vadd.f32 %v2401_v13, %v1803_v34  ;;  %v2992_v57 = vadd.f32 %v2401_v13, %v1804_v19  ;;  %5370 = vmatpush1.bf16.msra.mxu0 %v3847_v46  ;;  %2240 = vperm.xlu1 %6638, %v6965_v36   ;;  %v2993_v12 = vadd.f32 %v2405_v56, %v1805_v45  ;;  %v233_v19 = vld [vmem:[%s11269_s0 + $0x6b0] sm:$0xff]  ;;  %v6970_v15 = vld [vmem:[%s11271_s2 + $0x1f8] sm:$0xff]  ;;  %v11637_v13 = vld [vmem:[#allocation81_spill] sm:$0xff] }
 0x280   :  { %v2994_v2 = vadd.f32 %v2405_v56, %v1806_v44  ;;  %2244 = vperm.xlu0 %6637, %v6966_v63   ;;  %v3850_v29 = vpack.c.bf16 %v3386_v0, %v3384_v27  ;;  %v3849_v28 = vpack.c.bf16 %v3385_v26, %v3383_v22  ;;  %5002 = vmatprep.mubr.bf16.mxu1 %v6676_v5  ;;  %v234_v22 = vld [vmem:[%s11269_s0 + $0x6b8] sm:$0xff]  ;;  %v6969_v45 = vld [vmem:[%s11271_s2 + $0x1f0] sm:$0xff]  ;;  %v236_v63 = vld [vmem:[%s11269_s0 + $0x6c8] sm:$0xff] }
 0x281   :  { %v3387_v21 = vmax.f32 %v2991_v37, 0.0  ;;  %v3388_v20 = vmax.f32 %v2992_v57, 0.0  ;;  %v3389_v6 = vmax.f32 %v2993_v12, 0.0  ;;  %v1811_v33 = vmul.f32 %v11635_v47, %v227_v51  ;;  %v11638_v56 = vld [vmem:[#allocation80_spill] sm:$0xff] }
 0x282   :  { %v3390_v4 = vmax.f32 %v2994_v2, 0.0  ;;  %5371 = vmatprep.subr.bf16.mxu0 %v3850_v29  ;;  %v2409_v3 = vpop.permute.xlu1 %2408  ;;  %v2413_v30 = vpop.permute.xlu0 %2412  ;;  %v1812_v32 = vmul.f32 %v11635_v47, %v228_v18  ;;  %v1815_v42 = vmul.f32 %v11637_v13, %v231_v24  ;;  %v1816_v39 = vmul.f32 %v11637_v13, %v232_v16  ;;  %v235_v2 = vld [vmem:[%s11269_s0 + $0x6c0] sm:$0xff]  ;;  %v6974_v16 = vld [vmem:[%s11271_s2 + $0x208] sm:$0xff] }
 0x283   :  { %v2995_v14 = vadd.f32 %v2409_v3, %v1807_v35  ;;  %v2996_v11 = vadd.f32 %v2409_v3, %v1808_v38  ;;  %5372 = vmatpush1.bf16.msra.mxu0 %v3849_v28  ;;  %2624 = vperm.xlu1 %6638, %v6967_v41   ;;  %v2997_v40 = vadd.f32 %v2413_v30, %v1809_v49  ;;  %v6685_v35 = vld [vmem:[%s11270_s1 + $0x2d8] ss:$52 sps:$4 sm:$0xff]   ;;  %v237_v38 = vld [vmem:[%s11269_s0 + $0x6d0] sm:$0xff] }
 0x284   :  { %v2998_v58 = vadd.f32 %v2413_v30, %v1810_v48  ;;  %2628 = vperm.xlu0 %6637, %v6968_v55   ;;  %v3852_v23 = vpack.c.bf16 %v3390_v4, %v3388_v20  ;;  %v3851_v50 = vpack.c.bf16 %v3389_v6, %v3387_v21  ;;  %v1817_v36 = vmul.f32 %v11638_v56, %v233_v19  ;;  %v238_v21 = vld [vmem:[%s11269_s0 + $0x6d8] sm:$0xff]  ;;  %v6971_v48 = vld [vmem:[%s11271_s2 + $0x4f0] sm:$0xff]  ;;  %v11640_v41 = vld [vmem:[#allocation82_spill] sm:$0xff] }
 0x285   :  { %v3391_v43 = vmax.f32 %v2995_v14, 0.0  ;;  %v3392_v9 = vmax.f32 %v2996_v11, 0.0  ;;  %v3393_v46 = vmax.f32 %v2997_v40, 0.0  ;;  %v1818_v12 = vmul.f32 %v11638_v56, %v234_v22  ;;  %v6972_v6 = vld [vmem:[%s11271_s2 + $0x4f8] sm:$0xff]  ;;  %v239_v55 = vld [vmem:[%s11269_s0 + $0x6e0] sm:$0xff] }
 0x286   :  { %v3394_v1 = vmax.f32 %v2998_v58, 0.0  ;;  %5373 = vmatprep.subr.bf16.mxu0 %v3852_v23  ;;  %v2417_v34 = vpop.permute.xlu1 %2416  ;;  %5003 = vmatmul.mubr.bf16.gmra.mrb[24].mxu1 %v6679_v8  ;;  %v2421_v62 = vpop.permute.xlu0 %2420  ;;  %v11639_v8 = vld [vmem:[#allocation83_spill] sm:$0xff]  ;;  %v6688_v30 = vld [vmem:[%s11270_s1 + $0x344] ss:$52 sps:$4 sm:$0xff]   ;;  %v1821_v40 = vmul.f32 %v11640_v41, %v237_v38  ;;  %v1822_v58 = vmul.f32 %v11640_v41, %v238_v21  ;;  %v240_v23 = vld [vmem:[%s11269_s0 + $0x6e8] sm:$0xff] }
 0x287   :  { %v2999_v27 = vadd.f32 %v2417_v34, %v1811_v33  ;;  %v3000_v5 = vadd.f32 %v2417_v34, %v1812_v32  ;;  %5374 = vmatpush1.bf16.msra.mxu0 %v3851_v50  ;;  %2248 = vperm.xlu1 %6638, %v6969_v45   ;;  %v3001_v44 = vadd.f32 %v2421_v62, %v1813_v52  ;;  %v241_v32 = vld [vmem:[%s11269_s0 + $0x6f0] sm:$0xff]  ;;  %v6973_v52 = vld [vmem:[%s11271_s2 + $0x200] sm:$0xff] }
 0x288   :  { %v3002_v59 = vadd.f32 %v2421_v62, %v1814_v25  ;;  %2252 = vperm.xlu0 %6637, %v6970_v15   ;;  %v3854_v26 = vpack.c.bf16 %v3394_v1, %v3392_v9  ;;  %v3853_v0 = vpack.c.bf16 %v3393_v46, %v3391_v43  ;;  %5012 = vmatprep.mubr.bf16.mxu1 %v6682_v17  ;;  %v242_v43 = vld [vmem:[%s11269_s0 + $0x6f8] sm:$0xff]  ;;  %v11641_v34 = vld [vmem:[#allocation85_spill] sm:$0xff]  ;;  %v244_v15 = vld [vmem:[%s11269_s0 + $0x708] sm:$0xff] }
 0x289   :  { %v3395_v37 = vmax.f32 %v2999_v27, 0.0  ;;  %v3396_v57 = vmax.f32 %v3000_v5, 0.0  ;;  %v3397_v29 = vmax.f32 %v3001_v44, 0.0  ;;  %v1819_v61 = vmul.f32 %v11639_v8, %v235_v2  ;;  %v11642_v62 = vld [vmem:[#allocation84_spill] sm:$0xff] }
 0x28a   :  { %v3398_v28 = vmax.f32 %v3002_v59, 0.0  ;;  %5375 = vmatprep.subr.bf16.mxu0 %v3854_v26  ;;  %v2425_v31 = vpop.permute.xlu1 %2424  ;;  %v2429_v49 = vpop.permute.xlu0 %2428  ;;  %v1820_v60 = vmul.f32 %v11639_v8, %v236_v63  ;;  %v1823_v19 = vmul.f32 %v11641_v34, %v239_v55  ;;  %v1824_v22 = vmul.f32 %v11641_v34, %v240_v23  ;;  %v243_v59 = vld [vmem:[%s11269_s0 + $0x700] sm:$0xff]  ;;  %v6978_v23 = vld [vmem:[%s11271_s2 + $0x218] sm:$0xff] }
 0x28b   :  { %v3003_v20 = vadd.f32 %v2425_v31, %v1815_v42  ;;  %v3004_v54 = vadd.f32 %v2425_v31, %v1816_v39  ;;  %5376 = vmatpush1.bf16.msra.mxu0 %v3853_v0  ;;  %2632 = vperm.xlu1 %6638, %v6971_v48   ;;  %v3005_v51 = vadd.f32 %v2429_v49, %v1817_v36  ;;  %v6691_v42 = vld [vmem:[%s11270_s1 + $0x340] ss:$52 sps:$4 sm:$0xff]   ;;  %v11644_v48 = vld [vmem:[#allocation86_spill] sm:$0xff] }
 0x28c   :  { %v3006_v18 = vadd.f32 %v2429_v49, %v1818_v12  ;;  %2636 = vperm.xlu0 %6637, %v6972_v6   ;;  %v3856_v4 = vpack.c.bf16 %v3398_v28, %v3396_v57  ;;  %v3855_v3 = vpack.c.bf16 %v3397_v29, %v3395_v37  ;;  %v1825_v45 = vmul.f32 %v11642_v62, %v241_v32  ;;  %v245_v39 = vld [vmem:[%s11269_s0 + $0x710] sm:$0xff]  ;;  %v246_v37 = vld [vmem:[%s11269_s0 + $0x718] sm:$0xff]  ;;  %v6975_v12 = vld [vmem:[%s11271_s2 + $0x500] sm:$0xff] }
 0x28d   :  { %v3399_v14 = vmax.f32 %v3003_v20, 0.0  ;;  %v3400_v11 = vmax.f32 %v3004_v54, 0.0  ;;  %v3401_v50 = vmax.f32 %v3005_v51, 0.0  ;;  %v1826_v44 = vmul.f32 %v11642_v62, %v242_v43  ;;  %v6976_v29 = vld [vmem:[%s11271_s2 + $0x508] sm:$0xff]  ;;  %v247_v6 = vld [vmem:[%s11269_s0 + $0x720] sm:$0xff] }
 0x28e   :  { %v3402_v47 = vmax.f32 %v3006_v18, 0.0  ;;  %5377 = vmatprep.subr.bf16.mxu0 %v3856_v4  ;;  %v2433_v33 = vpop.permute.xlu1 %2432  ;;  %5013 = vmatmul.mubr.bf16.gmra.mrb[28].mxu1 %v6685_v35  ;;  %v2437_v53 = vpop.permute.xlu0 %2436  ;;  %v11643_v35 = vld [vmem:[#allocation87_spill] sm:$0xff]  ;;  %v6694_v49 = vld [vmem:[%s11270_s1 + $0x3ac] ss:$52 sps:$4 sm:$0xff]   ;;  %v1829_v51 = vmul.f32 %v11644_v48, %v245_v39  ;;  %v1830_v18 = vmul.f32 %v11644_v48, %v246_v37 }
 0x28f   :  { %v3007_v9 = vadd.f32 %v2433_v33, %v1819_v61  ;;  %v3008_v17 = vadd.f32 %v2433_v33, %v1820_v60  ;;  %5378 = vmatpush1.bf16.msra.mxu0 %v3855_v3  ;;  %2256 = vperm.xlu1 %6638, %v6973_v52   ;;  %v3009_v25 = vadd.f32 %v2437_v53, %v1821_v40  ;;  %v248_v4 = vld [vmem:[%s11269_s0 + $0x728] sm:$0xff]  ;;  %v249_v60 = vld [vmem:[%s11269_s0 + $0x730] sm:$0xff]  ;;  %v11645_v33 = vld [vmem:[#allocation89_spill] sm:$0xff] }
 0x290   :  { %v3010_v24 = vadd.f32 %v2437_v53, %v1822_v58  ;;  %2260 = vperm.xlu0 %6637, %v6974_v16   ;;  %v3858_v46 = vpack.c.bf16 %v3402_v47, %v3400_v11  ;;  %v3857_v1 = vpack.c.bf16 %v3401_v50, %v3399_v14  ;;  %5022 = vmatprep.mubr.bf16.mxu1 %v6688_v30  ;;  %v250_v14 = vld [vmem:[%s11269_s0 + $0x738] sm:$0xff]  ;;  %v6977_v40 = vld [vmem:[%s11271_s2 + $0x210] sm:$0xff]  ;;  %v252_v16 = vld [vmem:[%s11269_s0 + $0x748] sm:$0xff] }
 0x291   :  { %v3403_v27 = vmax.f32 %v3007_v9, 0.0  ;;  %v3404_v5 = vmax.f32 %v3008_v17, 0.0  ;;  %v3405_v26 = vmax.f32 %v3009_v25, 0.0  ;;  %v1827_v38 = vmul.f32 %v11643_v35, %v243_v59  ;;  %v11646_v53 = vld [vmem:[#allocation88_spill] sm:$0xff] }
 0x292   :  { %v3406_v0 = vmax.f32 %v3010_v24, 0.0  ;;  %5379 = vmatprep.subr.bf16.mxu0 %v3858_v46  ;;  %v2441_v13 = vpop.permute.xlu1 %2440  ;;  %v1828_v21 = vmul.f32 %v11643_v35, %v244_v15  ;;  %v1831_v32 = vmul.f32 %v11645_v33, %v247_v6  ;;  %v1832_v43 = vmul.f32 %v11645_v33, %v248_v4  ;;  %v251_v24 = vld [vmem:[%s11269_s0 + $0x740] sm:$0xff]  ;;  %v6982_v4 = vld [vmem:[%s11271_s2 + $0x228] sm:$0xff] }
 0x293   :  { %v3011_v57 = vadd.f32 %v2441_v13, %v1823_v19  ;;  %v3012_v56 = vadd.f32 %v2441_v13, %v1824_v22  ;;  %v2445_v36 = vpop.permute.xlu0 %2444  ;;  %5380 = vmatpush1.bf16.msra.mxu0 %v3857_v1  ;;  %2640 = vperm.xlu1 %6638, %v6975_v12   ;;  %v3859_v31 = vpack.c.bf16 %v3405_v26, %v3403_v27  ;;  %v6697_v19 = vld [vmem:[%s11270_s1 + $0x3a8] ss:$52 sps:$4 sm:$0xff]   ;;  %v253_v22 = vld [vmem:[%s11269_s0 + $0x750] sm:$0xff] }
 0x294   :  { %v3013_v2 = vadd.f32 %v2445_v36, %v1825_v45  ;;  %v3014_v63 = vadd.f32 %v2445_v36, %v1826_v44  ;;  %2644 = vperm.xlu0 %6637, %v6976_v29   ;;  %v3860_v28 = vpack.c.bf16 %v3406_v0, %v3404_v5  ;;  %v1833_v52 = vmul.f32 %v11646_v53, %v249_v60  ;;  %v254_v27 = vld [vmem:[%s11269_s0 + $0x758] sm:$0xff]  ;;  %v6979_v44 = vld [vmem:[%s11271_s2 + $0x510] sm:$0xff]  ;;  %v11648_v12 = vld [vmem:[#allocation90_spill] sm:$0xff] }
 0x295   :  { %v3407_v20 = vmax.f32 %v3011_v57, 0.0  ;;  %v3408_v54 = vmax.f32 %v3012_v56, 0.0  ;;  %v1834_v25 = vmul.f32 %v11646_v53, %v250_v14  ;;  %v6980_v26 = vld [vmem:[%s11271_s2 + $0x518] sm:$0xff]  ;;  %v6700_v36 = vld [vmem:[%s11270_s1 + $0x414] ss:$52 sps:$4 sm:$0xff]   ;;  %v255_v29 = vld [vmem:[%s11269_s0 + $0x760] sm:$0xff] }
 0x296   :  { %v3409_v3 = vmax.f32 %v3013_v2, 0.0  ;;  %v3410_v8 = vmax.f32 %v3014_v63, 0.0  ;;  %5381 = vmatprep.subr.bf16.mxu0 %v3860_v28  ;;  %v2449_v61 = vpop.permute.xlu1 %2448  ;;  %5023 = vmatmul.mubr.bf16.gmra.mrb[32].mxu1 %v6691_v42  ;;  %v11647_v42 = vld [vmem:[#allocation91_spill] sm:$0xff]  ;;  %v1837_v2 = vmul.f32 %v11648_v12, %v253_v22  ;;  %v1838_v63 = vmul.f32 %v11648_v12, %v254_v27  ;;  %v256_v28 = vld [vmem:[%s11269_s0 + $0x768] sm:$0xff] }
 0x297   :  { %v3015_v11 = vadd.f32 %v2449_v61, %v1827_v38  ;;  %v3016_v30 = vadd.f32 %v2449_v61, %v1828_v21  ;;  %v2453_v41 = vpop.permute.xlu0 %2452  ;;  %5382 = vmatpush1.bf16.msra.mxu0 %v3859_v31  ;;  %2264 = vperm.xlu1 %6638, %v6977_v40   ;;  %v1835_v39 = vmul.f32 %v11647_v42, %v251_v24  ;;  %v257_v21 = vld [vmem:[%s11269_s0 + $0x770] sm:$0xff]  ;;  %v11649_v61 = vld [vmem:[#allocation93_spill] sm:$0xff] }
 0x298   :  { %v3017_v58 = vadd.f32 %v2453_v41, %v1829_v51  ;;  %v3018_v55 = vadd.f32 %v2453_v41, %v1830_v18  ;;  %2268 = vperm.xlu0 %6637, %v6978_v23   ;;  %v3862_v50 = vpack.c.bf16 %v3410_v8, %v3408_v54  ;;  %v3861_v47 = vpack.c.bf16 %v3409_v3, %v3407_v20  ;;  %v258_v20 = vld [vmem:[%s11269_s0 + $0x778] sm:$0xff]  ;;  %v6981_v51 = vld [vmem:[%s11271_s2 + $0x220] sm:$0xff]  ;;  %v260_v23 = vld [vmem:[%s11269_s0 + $0x788] sm:$0xff] }
 0x299   :  { %v3411_v9 = vmax.f32 %v3015_v11, 0.0  ;;  %v3412_v17 = vmax.f32 %v3016_v30, 0.0  ;;  %5032 = vmatprep.mubr.bf16.mxu1 %v6694_v49  ;;  %v1836_v37 = vmul.f32 %v11647_v42, %v252_v16  ;;  %v1839_v60 = vmul.f32 %v11649_v61, %v255_v29  ;;  %v11650_v41 = vld [vmem:[#allocation92_spill] sm:$0xff] }
 0x29a   :  { %v3413_v46 = vmax.f32 %v3017_v58, 0.0  ;;  %v3414_v1 = vmax.f32 %v3018_v55, 0.0  ;;  %5383 = vmatprep.subr.bf16.mxu0 %v3862_v50  ;;  %v2457_v34 = vpop.permute.xlu1 %2456  ;;  %v1840_v14 = vmul.f32 %v11649_v61, %v256_v28  ;;  %v1841_v40 = vmul.f32 %v11650_v41, %v257_v21  ;;  %v259_v55 = vld [vmem:[%s11269_s0 + $0x780] sm:$0xff]  ;;  %v6986_v28 = vld [vmem:[%s11271_s2 + $0x238] sm:$0xff] }
 0x29b   :  { %v3019_v5 = vadd.f32 %v2457_v34, %v1831_v32  ;;  %v3020_v62 = vadd.f32 %v2457_v34, %v1832_v43  ;;  %v2461_v45 = vpop.permute.xlu0 %2460  ;;  %5384 = vmatpush1.bf16.msra.mxu0 %v3861_v47  ;;  %2648 = vperm.xlu1 %6638, %v6979_v44   ;;  %v1842_v58 = vmul.f32 %v11650_v41, %v258_v20  ;;  %v6703_v32 = vld [vmem:[%s11270_s1 + $0x410] ss:$52 sps:$4 sm:$0xff]   ;;  %v11652_v44 = vld [vmem:[#allocation94_spill] sm:$0xff] }
 0x29c   :  { %v3021_v59 = vadd.f32 %v2461_v45, %v1833_v52  ;;  %v3022_v15 = vadd.f32 %v2461_v45, %v1834_v25  ;;  %2652 = vperm.xlu0 %6637, %v6980_v26   ;;  %v3864_v0 = vpack.c.bf16 %v3414_v1, %v3412_v17  ;;  %v3863_v13 = vpack.c.bf16 %v3413_v46, %v3411_v9  ;;  %v261_v43 = vld [vmem:[%s11269_s0 + $0x790] sm:$0xff]  ;;  %v262_v9 = vld [vmem:[%s11269_s0 + $0x798] sm:$0xff]  ;;  %v6983_v25 = vld [vmem:[%s11271_s2 + $0x520] sm:$0xff] }
 0x29d   :  { %v3415_v57 = vmax.f32 %v3019_v5, 0.0  ;;  %v3416_v56 = vmax.f32 %v3020_v62, 0.0  ;;  %v6984_v46 = vld [vmem:[%s11271_s2 + $0x528] sm:$0xff]  ;;  %v6706_v45 = vld [vmem:[%s11270_s1 + $0x47c] ss:$52 sps:$4 sm:$0xff]   ;;  %v263_v26 = vld [vmem:[%s11269_s0 + $0x7a0] sm:$0xff] }
 0x29e   :  { %v3417_v31 = vmax.f32 %v3021_v59, 0.0  ;;  %v3418_v35 = vmax.f32 %v3022_v15, 0.0  ;;  %5385 = vmatprep.subr.bf16.mxu0 %v3864_v0  ;;  %v2465_v38 = vpop.permute.xlu1 %2464  ;;  %5033 = vmatmul.mubr.bf16.gmra.mrb[36].mxu1 %v6697_v19  ;;  %v11651_v19 = vld [vmem:[#allocation95_spill] sm:$0xff]  ;;  %v1845_v59 = vmul.f32 %v11652_v44, %v261_v43  ;;  %v1846_v15 = vmul.f32 %v11652_v44, %v262_v9  ;;  %v264_v0 = vld [vmem:[%s11269_s0 + $0x7a8] sm:$0xff] }
 0x29f   :  { %v3023_v54 = vadd.f32 %v2465_v38, %v1835_v39  ;;  %v3024_v49 = vadd.f32 %v2465_v38, %v1836_v37  ;;  %v2469_v48 = vpop.permute.xlu0 %2468  ;;  %5386 = vmatpush1.bf16.msra.mxu0 %v3863_v13  ;;  %2272 = vperm.xlu1 %6638, %v6981_v51   ;;  %v1843_v22 = vmul.f32 %v11651_v19, %v259_v55  ;;  %v265_v37 = vld [vmem:[%s11269_s0 + $0x7b0] sm:$0xff]  ;;  %v11653_v38 = vld [vmem:[#allocation97_spill] sm:$0xff] }
 0x2a0   :  { %v3025_v18 = vadd.f32 %v2469_v48, %v1837_v2  ;;  %v3026_v6 = vadd.f32 %v2469_v48, %v1838_v63  ;;  %2276 = vperm.xlu0 %6637, %v6982_v4   ;;  %v3866_v3 = vpack.c.bf16 %v3418_v35, %v3416_v56  ;;  %v3865_v8 = vpack.c.bf16 %v3417_v31, %v3415_v57  ;;  %v266_v57 = vld [vmem:[%s11269_s0 + $0x7b8] sm:$0xff]  ;;  %v6985_v2 = vld [vmem:[%s11271_s2 + $0x230] sm:$0xff]  ;;  %v268_v4 = vld [vmem:[%s11269_s0 + $0x7c8] sm:$0xff] }
 0x2a1   :  { %v3419_v11 = vmax.f32 %v3023_v54, 0.0  ;;  %v3420_v30 = vmax.f32 %v3024_v49, 0.0  ;;  %5042 = vmatprep.mubr.bf16.mxu1 %v6700_v36  ;;  %v1844_v27 = vmul.f32 %v11651_v19, %v260_v23  ;;  %v1847_v21 = vmul.f32 %v11653_v38, %v263_v26  ;;  %v11654_v48 = vld [vmem:[#allocation96_spill] sm:$0xff] }
 0x2a2   :  { %v3421_v50 = vmax.f32 %v3025_v18, 0.0  ;;  %v3422_v47 = vmax.f32 %v3026_v6, 0.0  ;;  %5387 = vmatprep.subr.bf16.mxu0 %v3866_v3  ;;  %v2473_v33 = vpop.permute.xlu1 %2472  ;;  %v1848_v20 = vmul.f32 %v11653_v38, %v264_v0  ;;  %v1849_v51 = vmul.f32 %v11654_v48, %v265_v37  ;;  %v267_v6 = vld [vmem:[%s11269_s0 + $0x7c0] sm:$0xff]  ;;  %v6990_v0 = vld [vmem:[%s11271_s2 + $0x248] sm:$0xff] }
 0x2a3   :  { %v3027_v17 = vadd.f32 %v2473_v33, %v1839_v60  ;;  %v3028_v53 = vadd.f32 %v2473_v33, %v1840_v14  ;;  %v2477_v52 = vpop.permute.xlu0 %2476  ;;  %5388 = vmatpush1.bf16.msra.mxu0 %v3865_v8  ;;  %2656 = vperm.xlu1 %6638, %v6983_v25   ;;  %v1850_v18 = vmul.f32 %v11654_v48, %v266_v57  ;;  %v6709_v60 = vld [vmem:[%s11270_s1 + $0x478] ss:$52 sps:$4 sm:$0xff]   ;;  %v269_v14 = vld [vmem:[%s11269_s0 + $0x7d0] sm:$0xff] }
 0x2a4   :  { %v3029_v24 = vadd.f32 %v2477_v52, %v1841_v40  ;;  %v3030_v16 = vadd.f32 %v2477_v52, %v1842_v58  ;;  %2660 = vperm.xlu0 %6637, %v6984_v46   ;;  %v3868_v1 = vpack.c.bf16 %v3422_v47, %v3420_v30  ;;  %v3867_v34 = vpack.c.bf16 %v3421_v50, %v3419_v11  ;;  %v270_v11 = vld [vmem:[%s11269_s0 + $0x7d8] sm:$0xff]  ;;  %v6987_v58 = vld [vmem:[%s11271_s2 + $0x530] sm:$0xff]  ;;  %v6714_v52 = vld [vmem:[%s11270_s1 + $0xc] ss:$52 sps:$4 sm:$0xff]  }
 0x2a5   :  { %v3423_v5 = vmax.f32 %v3027_v17, 0.0  ;;  %v3424_v62 = vmax.f32 %v3028_v53, 0.0  ;;  %v6988_v50 = vld [vmem:[%s11271_s2 + $0x538] sm:$0xff]  ;;  %v11656_v25 = vld [vmem:[#allocation98_spill] sm:$0xff]  ;;  %v271_v46 = vld [vmem:[%s11269_s0 + $0x7e0] sm:$0xff] }
 0x2a6   :  { %v3425_v13 = vmax.f32 %v3029_v24, 0.0  ;;  %v3426_v42 = vmax.f32 %v3030_v16, 0.0  ;;  %5389 = vmatprep.subr.bf16.mxu0 %v3868_v1  ;;  %v2481_v39 = vpop.permute.xlu1 %2480  ;;  %5043 = vmatmul.mubr.bf16.gmra.mrb[40].mxu1 %v6703_v32  ;;  %v11655_v32 = vld [vmem:[#allocation99_spill] sm:$0xff]  ;;  %v1853_v24 = vmul.f32 %v11656_v25, %v269_v14  ;;  %v1854_v16 = vmul.f32 %v11656_v25, %v270_v11  ;;  %v272_v1 = vld [vmem:[%s11269_s0 + $0x7e8] sm:$0xff] }
 0x2a7   :  { %v3031_v56 = vadd.f32 %v2481_v39, %v1843_v22  ;;  %v3032_v36 = vadd.f32 %v2481_v39, %v1844_v27  ;;  %v2485_v12 = vpop.permute.xlu0 %2484  ;;  %5390 = vmatpush1.bf16.msra.mxu0 %v3867_v34  ;;  %2280 = vperm.xlu1 %6638, %v6985_v2   ;;  %v1851_v43 = vmul.f32 %v11655_v32, %v267_v6  ;;  %v273_v27 = vld [vmem:[%s11269_s0 + $0x7f0] sm:$0xff]  ;;  %v11657_v39 = vld [vmem:[#allocation101_spill] sm:$0xff] }
 0x2a8   :  { %v3033_v63 = vadd.f32 %v2485_v12, %v1845_v59  ;;  %v3034_v29 = vadd.f32 %v2485_v12, %v1846_v15  ;;  %2284 = vperm.xlu0 %6637, %v6986_v28   ;;  %v3870_v31 = vpack.c.bf16 %v3426_v42, %v3424_v62  ;;  %v3869_v35 = vpack.c.bf16 %v3425_v13, %v3423_v5  ;;  %v274_v5 = vld [vmem:[%s11269_s0 + $0x7f8] sm:$0xff]  ;;  %v6989_v59 = vld [vmem:[%s11271_s2 + $0x240] sm:$0xff]  ;;  %v276_v28 = vld [vmem:[%s11269_s0 + $0x808] sm:$0xff] }
 0x2a9   :  { %v3427_v54 = vmax.f32 %v3031_v56, 0.0  ;;  %v3428_v49 = vmax.f32 %v3032_v36, 0.0  ;;  %5052 = vmatprep.mubr.bf16.mxu1 %v6706_v45  ;;  %v1852_v9 = vmul.f32 %v11655_v32, %v268_v4  ;;  %v1855_v37 = vmul.f32 %v11657_v39, %v271_v46  ;;  %v11658_v12 = vld [vmem:[#allocation100_spill] sm:$0xff]  ;;  %v6992_v4 = vld [vmem:[%s11271_s2 + $0x548] sm:$0xff]  ;;  %v281_v32 = vld [vmem:[%s11269_s0 + $0x830] sm:$0xff] }
 0x2aa   :  { %v3429_v3 = vmax.f32 %v3033_v63, 0.0  ;;  %v3430_v8 = vmax.f32 %v3034_v29, 0.0  ;;  %5391 = vmatprep.subr.bf16.mxu0 %v3870_v31  ;;  %v2489_v61 = vpop.permute.xlu1 %2488  ;;  %v1856_v57 = vmul.f32 %v11657_v39, %v272_v1  ;;  %v1857_v2 = vmul.f32 %v11658_v12, %v273_v27  ;;  %v275_v29 = vld [vmem:[%s11269_s0 + $0x800] sm:$0xff] }
 0x2ab   :  { %v3035_v30 = vadd.f32 %v2489_v61, %v1847_v21  ;;  %v3036_v41 = vadd.f32 %v2489_v61, %v1848_v20  ;;  %v2493_v40 = vpop.permute.xlu0 %2492  ;;  %5392 = vmatpush1.bf16.msra.mxu0 %v3869_v35  ;;  %2664 = vperm.xlu1 %6638, %v6987_v58   ;;  %v1858_v63 = vmul.f32 %v11658_v12, %v274_v5  ;;  %v277_v21 = vld [vmem:[%s11269_s0 + $0x810] sm:$0xff]  ;;  %v278_v20 = vld [vmem:[%s11269_s0 + $0x818] sm:$0xff] }
 0x2ac   :  { %v3037_v55 = vadd.f32 %v2493_v40, %v1849_v51  ;;  %v3038_v23 = vadd.f32 %v2493_v40, %v1850_v18  ;;  %2668 = vperm.xlu0 %6637, %v6988_v50   ;;  %v3872_v47 = vpack.c.bf16 %v3430_v8, %v3428_v49  ;;  %v3871_v33 = vpack.c.bf16 %v3429_v3, %v3427_v54  ;;  %v6991_v51 = vld [vmem:[%s11271_s2 + $0x540] sm:$0xff]  ;;  %v11659_v61 = vld [vmem:[#allocation103_spill] sm:$0xff]  ;;  %v11661_v5 = vld [vmem:[#allocation104_spill] sm:$0xff] }
 0x2ad   :  { %v3431_v17 = vmax.f32 %v3035_v30, 0.0  ;;  %v3432_v53 = vmax.f32 %v3036_v41, 0.0  ;;  %v1860_v14 = vmul.f32 %v11659_v61, %v276_v28  ;;  %v11660_v41 = vld [vmem:[#allocation102_spill] sm:$0xff] }
 0x2ae   :  { %v3433_v34 = vmax.f32 %v3037_v55, 0.0  ;;  %v3434_v19 = vmax.f32 %v3038_v23, 0.0  ;;  %5393 = vmatprep.subr.bf16.mxu0 %v3872_v47  ;;  %v2497_v22 = vpop.permute.xlu1 %2496  ;;  %5053 = vmatmul.mubr.bf16.gmra.mrb[44].mxu1 %v6709_v60  ;;  %v1859_v60 = vmul.f32 %v11659_v61, %v275_v29  ;;  %v1861_v40 = vmul.f32 %v11660_v41, %v277_v21  ;;  %v279_v55 = vld [vmem:[%s11269_s0 + $0x820] sm:$0xff]  ;;  %v280_v23 = vld [vmem:[%s11269_s0 + $0x828] sm:$0xff]  ;;  %v290_v61 = vld [vmem:[%s11269_s0 + $0x878] sm:$0xff] }
 0x2af   :  { %v3039_v62 = vadd.f32 %v2497_v22, %v1851_v43  ;;  %v3040_v45 = vadd.f32 %v2497_v22, %v1852_v9  ;;  %v2501_v44 = vpop.permute.xlu0 %2500  ;;  %5394 = vmatpush1.bf16.msra.mxu0 %v3871_v33  ;;  %2288 = vperm.xlu1 %6638, %v6989_v59   ;;  %v1862_v58 = vmul.f32 %v11660_v41, %v278_v20  ;;  %v282_v43 = vld [vmem:[%s11269_s0 + $0x838] sm:$0xff]  ;;  %v284_v59 = vld [vmem:[%s11269_s0 + $0x848] sm:$0xff] }
 0x2b0   :  { %v3041_v15 = vadd.f32 %v2501_v44, %v1853_v24  ;;  %v3042_v26 = vadd.f32 %v2501_v44, %v1854_v16  ;;  %2292 = vperm.xlu0 %6637, %v6990_v0   ;;  %v3874_v13 = vpack.c.bf16 %v3434_v19, %v3432_v53  ;;  %v3873_v42 = vpack.c.bf16 %v3433_v34, %v3431_v17  ;;  %v6994_v16 = vld [vmem:[%s11271_s2 + $0x258] sm:$0xff]  ;;  %v283_v44 = vld [vmem:[%s11269_s0 + $0x840] sm:$0xff]  ;;  %v11662_v28 = vld [vmem:[#allocation106_spill] sm:$0xff] }
 0x2b1   :  { %v3435_v56 = vmax.f32 %v3039_v62, 0.0  ;;  %v3436_v36 = vmax.f32 %v3040_v45, 0.0  ;;  %5095 = vmatprep.mubr.bf16.mxu1 %v6714_v52  ;;  %v6993_v52 = vld [vmem:[%s11271_s2 + $0x250] sm:$0xff]  ;;  %v1863_v34 = vmul.f32 %v8021_v10, %v279_v55  ;;  %v1864_v19 = vmul.f32 %v8021_v10, %v280_v23  ;;  %v6644_v10 = vld [vmem:[%s11270_s1 + $0x18] ss:$52 sps:$4 sm:$0xff]  }
 0x2b2   :  { %v3437_v31 = vmax.f32 %v3041_v15, 0.0  ;;  %v3438_v35 = vmax.f32 %v3042_v26, 0.0  ;;  %5395 = vmatprep.subr.bf16.mxu0 %v3874_v13  ;;  %v2505_v38 = vpop.permute.xlu1 %2504  ;;  %v1865_v62 = vmul.f32 %v11661_v5, %v281_v32  ;;  %v1866_v45 = vmul.f32 %v11661_v5, %v282_v43  ;;  %v285_v13 = vld [vmem:[%s11269_s0 + $0x850] sm:$0xff]  ;;  %v6650_v20 = vld [vmem:[%s11270_s1 + $0x84] ss:$52 sps:$4 sm:$0xff]   ;;  %v6998_v55 = vld [vmem:[%s11271_s2 + $0x268] sm:$0xff] }
 0x2b3   :  { %v3043_v54 = vadd.f32 %v2505_v38, %v1855_v37  ;;  %v3044_v49 = vadd.f32 %v2505_v38, %v1856_v57  ;;  %v2509_v48 = vpop.permute.xlu0 %2508  ;;  %5396 = vmatpush1.bf16.msra.mxu0 %v3873_v42  ;;  %2672 = vperm.xlu1 %6638, %v6991_v51   ;;  %v286_v42 = vld [vmem:[%s11269_s0 + $0x858] sm:$0xff]  ;;  %v287_v51 = vld [vmem:[%s11269_s0 + $0x860] sm:$0xff]  ;;  %v11664_v43 = vld [vmem:[#allocation107_spill] sm:$0xff] }
 0x2b4   :  { %v3045_v18 = vadd.f32 %v2509_v48, %v1857_v2  ;;  %v3046_v6 = vadd.f32 %v2509_v48, %v1858_v63  ;;  %2676 = vperm.xlu0 %6637, %v6992_v4   ;;  %v3876_v3 = vpack.c.bf16 %v3438_v35, %v3436_v36  ;;  %v3875_v8 = vpack.c.bf16 %v3437_v31, %v3435_v56  ;;  %v6995_v56 = vld [vmem:[%s11271_s2 + $0x550] sm:$0xff]  ;;  %v6996_v63 = vld [vmem:[%s11271_s2 + $0x558] sm:$0xff] }
 0x2b5   :  { %v3439_v11 = vmax.f32 %v3043_v54, 0.0  ;;  %v3440_v30 = vmax.f32 %v3044_v49, 0.0  ;;  %v1867_v31 = vmul.f32 %v11662_v28, %v283_v44  ;;  %v1868_v35 = vmul.f32 %v11662_v28, %v284_v59  ;;  %v11663_v54 = vld [vmem:[#allocation105_spill] sm:$0xff]  ;;  %v7000_v44 = vld [vmem:[%s11271_s2 + $0x568] sm:$0xff]  ;;  %v298_v28 = vld [vmem:[%s11269_s0 + $0x8b8] sm:$0xff] }
 0x2b6   :  { %v3441_v50 = vmax.f32 %v3045_v18, 0.0  ;;  %v3442_v47 = vmax.f32 %v3046_v6, 0.0  ;;  %5397 = vmatprep.subr.bf16.mxu0 %v3876_v3  ;;  %v2513_v33 = vpop.permute.xlu1 %2512  ;;  %v1869_v49 = vmul.f32 %v11663_v54, %v285_v13  ;;  %v1870_v48 = vmul.f32 %v11663_v54, %v286_v42  ;;  %v288_v18 = vld [vmem:[%s11269_s0 + $0x868] sm:$0xff] }
 0x2b7   :  { %v3047_v9 = vadd.f32 %v2513_v33, %v1859_v60  ;;  %v3048_v17 = vadd.f32 %v2513_v33, %v1860_v14  ;;  %v2517_v53 = vpop.permute.xlu0 %2516  ;;  %5398 = vmatpush1.bf16.msra.mxu0 %v3875_v8  ;;  %2296 = vperm.xlu1 %6638, %v6993_v52   ;;  %v289_v8 = vld [vmem:[%s11269_s0 + $0x870] sm:$0xff]  ;;  %v292_v52 = vld [vmem:[%s11269_s0 + $0x888] sm:$0xff] }
 0x2b8   :  { %v3049_v25 = vadd.f32 %v2517_v53, %v1861_v40  ;;  %v3050_v24 = vadd.f32 %v2517_v53, %v1862_v58  ;;  %2300 = vperm.xlu0 %6637, %v6994_v16   ;;  %v3878_v46 = vpack.c.bf16 %v3442_v47, %v3440_v30  ;;  %v3877_v1 = vpack.c.bf16 %v3441_v50, %v3439_v11  ;;  %v6997_v30 = vld [vmem:[%s11271_s2 + $0x260] sm:$0xff] }
 0x2b9   :  { %v3443_v22 = vmax.f32 %v3047_v9, 0.0  ;;  %v3444_v27 = vmax.f32 %v3048_v17, 0.0  ;;  %v1871_v50 = vmul.f32 %v8035_v7, %v287_v51  ;;  %v1872_v47 = vmul.f32 %v8035_v7, %v288_v18  ;;  %v291_v53 = vld [vmem:[%s11269_s0 + $0x880] sm:$0xff]  ;;  %v11667_v18 = vld [vmem:[#allocation111_spill] sm:$0xff] }
 0x2ba   :  { %v3445_v15 = vmax.f32 %v3049_v25, 0.0  ;;  %v3446_v26 = vmax.f32 %v3050_v24, 0.0  ;;  %5399 = vmatprep.subr.bf16.mxu0 %v3878_v46  ;;  %v2521_v0 = vpop.permute.xlu1 %2520  ;;  %v1873_v9 = vmul.f32 %v11664_v43, %v289_v8  ;;  %v1874_v17 = vmul.f32 %v11664_v43, %v290_v61  ;;  %v6654_v7 = vld [vmem:[%s11270_s1 + $0x80] ss:$52 sps:$4 sm:$0xff]   ;;  %v11668_v61 = vld [vmem:[#allocation110_spill] sm:$0xff] }
 0x2bb   :  { %v3051_v39 = vadd.f32 %v2521_v0, %v1863_v34  ;;  %v3052_v37 = vadd.f32 %v2521_v0, %v1864_v19  ;;  %v2525_v57 = vpop.permute.xlu0 %2524  ;;  %5400 = vmatpush1.bf16.msra.mxu0 %v3877_v1  ;;  %2680 = vperm.xlu1 %6638, %v6995_v56   ;;  %v293_v46 = vld [vmem:[%s11269_s0 + $0x890] sm:$0xff]  ;;  %v294_v1 = vld [vmem:[%s11269_s0 + $0x898] sm:$0xff]  ;;  %v6656_v42 = vld [vmem:[%s11270_s1 + $0xec] ss:$52 sps:$4 sm:$0xff]  }
 0x2bc   :  { %v3879_v36 = vpack.c.bf16 %v3445_v15, %v3443_v22  ;;  %v3053_v12 = vadd.f32 %v2525_v57, %v1865_v62  ;;  %v3054_v2 = vadd.f32 %v2525_v57, %v1866_v45  ;;  %2684 = vperm.xlu0 %6637, %v6996_v63   ;;  %v3880_v29 = vpack.c.bf16 %v3446_v26, %v3444_v27  ;;  %v6999_v27 = vld [vmem:[%s11271_s2 + $0x560] sm:$0xff]  ;;  %v7003_v43 = vld [vmem:[%s11271_s2 + $0x570] sm:$0xff] }
 0x2bd   :  { %v3447_v38 = vmax.f32 %v3051_v39, 0.0  ;;  %v3448_v21 = vmax.f32 %v3052_v37, 0.0  ;;  %v11665_v15 = vld [vmem:[#allocation109_spill] sm:$0xff]  ;;  %v11666_v39 = vld [vmem:[#allocation108_spill] sm:$0xff] }
 0x2be   :  { %v3449_v6 = vmax.f32 %v3053_v12, 0.0  ;;  %v3450_v4 = vmax.f32 %v3054_v2, 0.0  ;;  %5402 = vmatmul.mubr.bf16.vlgmr.msra.gmra.mrb[0].mxu0 %v6644_v10  ;;  %5522 = vmatprep.subr.bf16.mxu0 %v3880_v29  ;;  %v2529_v3 = vpop.permute.xlu1 %2528  ;;  %v1875_v26 = vmul.f32 %v11665_v15, %v291_v53  ;;  %v1876_v0 = vmul.f32 %v11665_v15, %v292_v52  ;;  %v295_v56 = vld [vmem:[%s11269_s0 + $0x8a0] sm:$0xff]  ;;  %v297_v29 = vld [vmem:[%s11269_s0 + $0x8b0] sm:$0xff]  ;;  %v7004_v52 = vld [vmem:[%s11271_s2 + $0x578] sm:$0xff] }
 0x2bf   :  { %v3055_v60 = vadd.f32 %v2529_v3, %v1867_v31  ;;  %v3056_v14 = vadd.f32 %v2529_v3, %v1868_v35  ;;  %v2533_v11 = vpop.permute.xlu0 %2532  ;;  %5523 = vmatpush1.bf16.msra.mxu0 %v3879_v36  ;;  %2304 = vperm.xlu1 %6638, %v6997_v30   ;;  %v1877_v37 = vmul.f32 %v11666_v39, %v293_v46  ;;  %v296_v36 = vld [vmem:[%s11269_s0 + $0x8a8] sm:$0xff]  ;;  %v305_v15 = vld [vmem:[%s11269_s0 + $0x8f0] sm:$0xff] }
 0x2c0   :  { %v3881_v41 = vpack.c.bf16 %v3449_v6, %v3447_v38  ;;  %v3057_v40 = vadd.f32 %v2533_v11, %v1869_v49  ;;  %v3058_v58 = vadd.f32 %v2533_v11, %v1870_v48  ;;  %2308 = vperm.xlu0 %6637, %v6998_v55   ;;  %v3882_v23 = vpack.c.bf16 %v3450_v4, %v3448_v21  ;;  %v7001_v21 = vld [vmem:[%s11271_s2 + $0x270] sm:$0xff]  ;;  %v7002_v48 = vld [vmem:[%s11271_s2 + $0x278] sm:$0xff]  ;;  %v299_v11 = vld [vmem:[%s11269_s0 + $0x8c0] sm:$0xff] }
 0x2c1   :  { %v3451_v33 = vmax.f32 %v3055_v60, 0.0  ;;  %v3452_v32 = vmax.f32 %v3056_v14, 0.0  ;;  %5411 = vmatprep.mubr.bf16.mxu0 %v6650_v20  ;;  %v1878_v57 = vmul.f32 %v11666_v39, %v294_v1  ;;  %v1879_v6 = vmul.f32 %v11667_v18, %v295_v56  ;;  %v300_v30 = vld [vmem:[%s11269_s0 + $0x8c8] sm:$0xff] }
 0x2c2   :  { %v3453_v25 = vmax.f32 %v3057_v40, 0.0  ;;  %v3454_v24 = vmax.f32 %v3058_v58, 0.0  ;;  %5524 = vmatprep.subr.bf16.mxu0 %v3882_v23  ;;  %v2537_v16 = vpop.permute.xlu1 %2536  ;;  %v1880_v4 = vmul.f32 %v11667_v18, %v296_v36  ;;  %v1881_v60 = vmul.f32 %v11668_v61, %v297_v29  ;;  %v6660_v55 = vld [vmem:[%s11270_s1 + $0xe8] ss:$52 sps:$4 sm:$0xff]   ;;  %v301_v23 = vld [vmem:[%s11269_s0 + $0x8d0] sm:$0xff] }
 0x2c3   :  { %v3059_v34 = vadd.f32 %v2537_v16, %v1871_v50  ;;  %v3060_v19 = vadd.f32 %v2537_v16, %v1872_v47  ;;  %v2541_v22 = vpop.permute.xlu0 %2540  ;;  %5525 = vmatpush1.bf16.msra.mxu0 %v3881_v41  ;;  %2688 = vperm.xlu1 %6638, %v6999_v27   ;;  %v1882_v14 = vmul.f32 %v11668_v61, %v298_v28  ;;  %v302_v50 = vld [vmem:[%s11269_s0 + $0x8d8] sm:$0xff]  ;;  %v7006_v56 = vld [vmem:[%s11271_s2 + $0x288] sm:$0xff]  ;;  %v309_v18 = vld [vmem:[%s11269_s0 + $0x910] sm:$0xff] }
 0x2c4   :  { %v3883_v5 = vpack.c.bf16 %v3453_v25, %v3451_v33  ;;  %v3061_v62 = vadd.f32 %v2541_v22, %v1873_v9  ;;  %v3062_v45 = vadd.f32 %v2541_v22, %v1874_v17  ;;  %2692 = vperm.xlu0 %6637, %v7000_v44   ;;  %v3884_v59 = vpack.c.bf16 %v3454_v24, %v3452_v32  ;;  %v11669_v24 = vld [vmem:[#allocation113_spill] sm:$0xff] }
 0x2c5   :  { %v3455_v10 = vmax.f32 %v3059_v34, 0.0  ;;  %v3456_v13 = vmax.f32 %v3060_v19, 0.0  ;;  %v1883_v16 = vmul.f32 %v11669_v24, %v299_v11  ;;  %v6662_v34 = vld [vmem:[%s11270_s1 + $0x154] ss:$52 sps:$4 sm:$0xff]   ;;  %v11670_v19 = vld [vmem:[#allocation112_spill] sm:$0xff]  ;;  %v7007_v61 = vld [vmem:[%s11271_s2 + $0x580] sm:$0xff] }
 0x2c6   :  { %v3457_v12 = vmax.f32 %v3061_v62, 0.0  ;;  %v3458_v2 = vmax.f32 %v3062_v45, 0.0  ;;  %5412 = vmatmul.mubr.bf16.gmra.mrb[4].mxu0 %v6654_v7  ;;  %5526 = vmatprep.subr.bf16.mxu0 %v3884_v59  ;;  %v2545_v63 = vpop.permute.xlu1 %2544  ;;  %v1884_v7 = vmul.f32 %v11669_v24, %v300_v30  ;;  %v1885_v22 = vmul.f32 %v11670_v19, %v301_v23  ;;  %v304_v62 = vld [vmem:[%s11269_s0 + $0x8e8] sm:$0xff]  ;;  %v313_v24 = vld [vmem:[%s11269_s0 + $0x930] sm:$0xff] }
 0x2c7   :  { %v3063_v31 = vadd.f32 %v2545_v63, %v1875_v26  ;;  %v3064_v35 = vadd.f32 %v2545_v63, %v1876_v0  ;;  %v2549_v38 = vpop.permute.xlu0 %2548  ;;  %5527 = vmatpush1.bf16.msra.mxu0 %v3883_v5  ;;  %2312 = vperm.xlu1 %6638, %v7001_v21   ;;  %v1886_v27 = vmul.f32 %v11670_v19, %v302_v50  ;;  %v303_v5 = vld [vmem:[%s11269_s0 + $0x8e0] sm:$0xff]  ;;  %v306_v26 = vld [vmem:[%s11269_s0 + $0x8f8] sm:$0xff]  ;;  %v7008_v30 = vld [vmem:[%s11271_s2 + $0x588] sm:$0xff] }
 0x2c8   :  { %v3885_v20 = vpack.c.bf16 %v3457_v12, %v3455_v10  ;;  %v3065_v54 = vadd.f32 %v2549_v38, %v1877_v37  ;;  %v3066_v49 = vadd.f32 %v2549_v38, %v1878_v57  ;;  %2316 = vperm.xlu0 %6637, %v7002_v48   ;;  %v3886_v51 = vpack.c.bf16 %v3458_v2, %v3456_v13  ;;  %v11671_v12 = vld [vmem:[#allocation115_spill] sm:$0xff]  ;;  %v307_v21 = vld [vmem:[%s11269_s0 + $0x900] sm:$0xff] }
 0x2c9   :  { %v3459_v3 = vmax.f32 %v3063_v31, 0.0  ;;  %v3460_v8 = vmax.f32 %v3064_v35, 0.0  ;;  %5421 = vmatprep.mubr.bf16.mxu0 %v6656_v42  ;;  %v7005_v42 = vld [vmem:[%s11271_s2 + $0x280] sm:$0xff]  ;;  %v1887_v2 = vmul.f32 %v11671_v12, %v303_v5  ;;  %v1888_v63 = vmul.f32 %v11671_v12, %v304_v62  ;;  %v11672_v31 = vld [vmem:[#allocation114_spill] sm:$0xff]  ;;  %v7010_v5 = vld [vmem:[%s11271_s2 + $0x298] sm:$0xff] }
 0x2ca   :  { %v3461_v41 = vmax.f32 %v3065_v54, 0.0  ;;  %v3462_v40 = vmax.f32 %v3066_v49, 0.0  ;;  %5528 = vmatprep.subr.bf16.mxu0 %v3886_v51  ;;  %v2553_v58 = vpop.permute.xlu1 %2552  ;;  %v1889_v35 = vmul.f32 %v11672_v31, %v305_v15  ;;  %v1890_v38 = vmul.f32 %v11672_v31, %v306_v26  ;;  %v6666_v51 = vld [vmem:[%s11270_s1 + $0x150] ss:$52 sps:$4 sm:$0xff]  }
 0x2cb   :  { %v3067_v47 = vadd.f32 %v2553_v58, %v1879_v6  ;;  %v3068_v33 = vadd.f32 %v2553_v58, %v1880_v4  ;;  %v2557_v32 = vpop.permute.xlu0 %2556  ;;  %5529 = vmatpush1.bf16.msra.mxu0 %v3885_v20  ;;  %2696 = vperm.xlu1 %6638, %v7003_v43   ;;  %v308_v20 = vld [vmem:[%s11269_s0 + $0x908] sm:$0xff]  ;;  %v310_v6 = vld [vmem:[%s11269_s0 + $0x918] sm:$0xff]  ;;  %v125_v12 = vld [vmem:[%s11269_s0 + $0x350] sm:$0xff] }
 0x2cc   :  { %v3887_v9 = vpack.c.bf16 %v3461_v41, %v3459_v3  ;;  %v3069_v17 = vadd.f32 %v2557_v32, %v1881_v60  ;;  %v3070_v53 = vadd.f32 %v2557_v32, %v1882_v14  ;;  %2700 = vperm.xlu0 %6637, %v7004_v52   ;;  %v3888_v25 = vpack.c.bf16 %v3462_v40, %v3460_v8  ;;  %v11673_v40 = vld [vmem:[#allocation117_spill] sm:$0xff]  ;;  %v7011_v31 = vld [vmem:[%s11271_s2 + $0x590] sm:$0xff] }
 0x2cd   :  { %v3463_v46 = vmax.f32 %v3067_v47, 0.0  ;;  %v3464_v1 = vmax.f32 %v3068_v33, 0.0  ;;  %v1891_v58 = vmul.f32 %v11673_v40, %v307_v21  ;;  %v6668_v47 = vld [vmem:[%s11270_s1 + $0x1bc] ss:$52 sps:$4 sm:$0xff]  }
 0x2ce   :  { %v3465_v45 = vmax.f32 %v3069_v17, 0.0  ;;  %v3466_v44 = vmax.f32 %v3070_v53, 0.0  ;;  %5422 = vmatmul.mubr.bf16.gmra.mrb[8].mxu0 %v6660_v55  ;;  %5530 = vmatprep.subr.bf16.mxu0 %v3888_v25  ;;  %v2561_v59 = vpop.permute.xlu1 %2560  ;;  %v1892_v55 = vmul.f32 %v11673_v40, %v308_v20  ;;  %v11674_v33 = vld [vmem:[#allocation116_spill] sm:$0xff]  ;;  %v312_v17 = vld [vmem:[%s11269_s0 + $0x928] sm:$0xff]  ;;  %v317_v40 = vld [vmem:[%s11269_s0 + $0x950] sm:$0xff] }
 0x2cf   :  { %v3071_v0 = vadd.f32 %v2561_v59, %v1883_v16  ;;  %v3072_v10 = vadd.f32 %v2561_v59, %v1884_v7  ;;  %v2565_v13 = vpop.permute.xlu0 %2564  ;;  %5531 = vmatpush1.bf16.msra.mxu0 %v3887_v9  ;;  %2320 = vperm.xlu1 %6638, %v7005_v42   ;;  %v1893_v32 = vmul.f32 %v11674_v33, %v309_v18  ;;  %v311_v9 = vld [vmem:[%s11269_s0 + $0x920] sm:$0xff]  ;;  %v314_v16 = vld [vmem:[%s11269_s0 + $0x938] sm:$0xff] }
 0x2d0   :  { %v3889_v39 = vpack.c.bf16 %v3465_v45, %v3463_v46  ;;  %v3073_v37 = vadd.f32 %v2565_v13, %v1885_v22  ;;  %v3074_v57 = vadd.f32 %v2565_v13, %v1886_v27  ;;  %2324 = vperm.xlu0 %6637, %v7006_v56   ;;  %v3890_v36 = vpack.c.bf16 %v3466_v44, %v3464_v1  ;;  %v11675_v45 = vld [vmem:[#allocation119_spill] sm:$0xff]  ;;  %v11676_v13 = vld [vmem:[#allocation118_spill] sm:$0xff]  ;;  %v7012_v20 = vld [vmem:[%s11271_s2 + $0x598] sm:$0xff] }
 0x2d1   :  { %v3467_v29 = vmax.f32 %v3071_v0, 0.0  ;;  %v3468_v28 = vmax.f32 %v3072_v10, 0.0  ;;  %5431 = vmatprep.mubr.bf16.mxu0 %v6662_v34  ;;  %v1894_v43 = vmul.f32 %v11674_v33, %v310_v6  ;;  %v7009_v34 = vld [vmem:[%s11271_s2 + $0x290] sm:$0xff]  ;;  %v1895_v44 = vmul.f32 %v11675_v45, %v311_v9  ;;  %v123_v0 = vld [vmem:[%s11269_s0 + $0x340] sm:$0xff]  ;;  %v124_v10 = vld [vmem:[%s11269_s0 + $0x348] sm:$0xff] }
 0x2d2   :  { %v3469_v54 = vmax.f32 %v3073_v37, 0.0  ;;  %v3470_v49 = vmax.f32 %v3074_v57, 0.0  ;;  %5532 = vmatprep.subr.bf16.mxu0 %v3890_v36  ;;  %v2569_v48 = vpop.permute.xlu1 %2568  ;;  %v1896_v59 = vmul.f32 %v11675_v45, %v312_v17  ;;  %v1897_v42 = vmul.f32 %v11676_v13, %v313_v24  ;;  %v6672_v36 = vld [vmem:[%s11270_s1 + $0x1b8] ss:$52 sps:$4 sm:$0xff]   ;;  %v129_v45 = vld [vmem:[%s11269_s0 + $0x370] sm:$0xff] }
 0x2d3   :  { %v3075_v4 = vadd.f32 %v2569_v48, %v1887_v2  ;;  %v3076_v3 = vadd.f32 %v2569_v48, %v1888_v63  ;;  %v2573_v8 = vpop.permute.xlu0 %2572  ;;  %5533 = vmatpush1.bf16.msra.mxu0 %v3889_v39  ;;  %2704 = vperm.xlu1 %6638, %v7007_v61   ;;  %v1898_v39 = vmul.f32 %v11676_v13, %v314_v16  ;;  %v126_v2 = vld [vmem:[%s11269_s0 + $0x358] sm:$0xff]  ;;  %v7014_v9 = vld [vmem:[%s11271_s2 + $0x2a8] sm:$0xff] }
 0x2d4   :  { %v3891_v60 = vpack.c.bf16 %v3469_v54, %v3467_v29  ;;  %v3077_v14 = vadd.f32 %v2573_v8, %v1889_v35  ;;  %v3078_v11 = vadd.f32 %v2573_v8, %v1890_v38  ;;  %2708 = vperm.xlu0 %6637, %v7008_v30   ;;  %v3892_v41 = vpack.c.bf16 %v3470_v49, %v3468_v28  ;;  %v11677_v49 = vld [vmem:[#allocation27_spill] sm:$0xff] }
 0x2d5   :  { %v3471_v23 = vmax.f32 %v3075_v4, 0.0  ;;  %v3472_v50 = vmax.f32 %v3076_v3, 0.0  ;;  %v1707_v48 = vmul.f32 %v11677_v49, %v123_v0  ;;  %v6674_v4 = vld [vmem:[%s11270_s1 + $0x224] ss:$52 sps:$4 sm:$0xff]   ;;  %v11678_v3 = vld [vmem:[#allocation26_spill] sm:$0xff] }
 0x2d6   :  { %v3473_v53 = vmax.f32 %v3077_v14, 0.0  ;;  %v3474_v52 = vmax.f32 %v3078_v11, 0.0  ;;  %5432 = vmatmul.mubr.bf16.gmra.mrb[12].mxu0 %v6666_v51  ;;  %5534 = vmatprep.subr.bf16.mxu0 %v3892_v41  ;;  %v2577_v25 = vpop.permute.xlu1 %2576  ;;  %v1708_v51 = vmul.f32 %v11677_v49, %v124_v10  ;;  %v1709_v8 = vmul.f32 %v11678_v3, %v125_v12  ;;  %v316_v14 = vld [vmem:[%s11269_s0 + $0x948] sm:$0xff]  ;;  %v7015_v0 = vld [vmem:[%s11271_s2 + $0x5a0] sm:$0xff]  ;;  %v321_v49 = vld [vmem:[%s11269_s0 + $0x970] sm:$0xff] }
 0x2d7   :  { %v3079_v7 = vadd.f32 %v2577_v25, %v1891_v58  ;;  %v3080_v46 = vadd.f32 %v2577_v25, %v1892_v55  ;;  %v2581_v1 = vpop.permute.xlu0 %2580  ;;  %5535 = vmatpush1.bf16.msra.mxu0 %v3891_v60  ;;  %2328 = vperm.xlu1 %6638, %v7009_v34   ;;  %v1710_v61 = vmul.f32 %v11678_v3, %v126_v2  ;;  %v315_v60 = vld [vmem:[%s11269_s0 + $0x940] sm:$0xff]  ;;  %v318_v58 = vld [vmem:[%s11269_s0 + $0x958] sm:$0xff] }
 0x2d8   :  { %v3893_v19 = vpack.c.bf16 %v3473_v53, %v3471_v23  ;;  %v3081_v22 = vadd.f32 %v2581_v1, %v1893_v32  ;;  %v3082_v27 = vadd.f32 %v2581_v1, %v1894_v43  ;;  %2332 = vperm.xlu0 %6637, %v7010_v5   ;;  %v3894_v62 = vpack.c.bf16 %v3474_v52, %v3472_v50  ;;  %v11679_v53 = vld [vmem:[#allocation121_spill] sm:$0xff]  ;;  %v11680_v1 = vld [vmem:[#allocation120_spill] sm:$0xff] }
 0x2d9   :  { %v3475_v15 = vmax.f32 %v3079_v7, 0.0  ;;  %v3476_v26 = vmax.f32 %v3080_v46, 0.0  ;;  %5441 = vmatprep.mubr.bf16.mxu0 %v6668_v47  ;;  %v7013_v47 = vld [vmem:[%s11271_s2 + $0x2a0] sm:$0xff]  ;;  %v1899_v52 = vmul.f32 %v11679_v53, %v315_v60  ;;  %v1900_v25 = vmul.f32 %v11679_v53, %v316_v14  ;;  %v128_v46 = vld [vmem:[%s11269_s0 + $0x368] sm:$0xff]  ;;  %v7018_v60 = vld [vmem:[%s11271_s2 + $0x2b8] sm:$0xff] }
 0x2da   :  { %v3477_v37 = vmax.f32 %v3081_v22, 0.0  ;;  %v3478_v57 = vmax.f32 %v3082_v27, 0.0  ;;  %5536 = vmatprep.subr.bf16.mxu0 %v3894_v62  ;;  %v2585_v56 = vpop.permute.xlu1 %2584  ;;  %v127_v7 = vld [vmem:[%s11269_s0 + $0x360] sm:$0xff]  ;;  %v1901_v34 = vmul.f32 %v11680_v1, %v317_v40  ;;  %v133_v53 = vld [vmem:[%s11269_s0 + $0x390] sm:$0xff] }
 0x2db   :  { %v3083_v63 = vadd.f32 %v2585_v56, %v1895_v44  ;;  %v3084_v29 = vadd.f32 %v2585_v56, %v1896_v59  ;;  %v2589_v28 = vpop.permute.xlu0 %2588  ;;  %5537 = vmatpush1.bf16.msra.mxu0 %v3893_v19  ;;  %2712 = vperm.xlu1 %6638, %v7011_v31   ;;  %v1902_v19 = vmul.f32 %v11680_v1, %v318_v58  ;;  %v6678_v62 = vld [vmem:[%s11270_s1 + $0x220] ss:$52 sps:$4 sm:$0xff]   ;;  %v130_v44 = vld [vmem:[%s11269_s0 + $0x378] sm:$0xff] }
 0x2dc   :  { %v3895_v35 = vpack.c.bf16 %v3477_v37, %v3475_v15  ;;  %v3085_v38 = vadd.f32 %v2589_v28, %v1897_v42  ;;  %v3086_v21 = vadd.f32 %v2589_v28, %v1898_v39  ;;  %2716 = vperm.xlu0 %6637, %v7012_v20   ;;  %v3896_v54 = vpack.c.bf16 %v3478_v57, %v3476_v26  ;;  %v7016_v39 = vld [vmem:[%s11271_s2 + $0x5a8] sm:$0xff]  ;;  %v11681_v57 = vld [vmem:[#allocation29_spill] sm:$0xff] }
 0x2dd   :  { %v3479_v18 = vmax.f32 %v3083_v63, 0.0  ;;  %v3480_v6 = vmax.f32 %v3084_v29, 0.0  ;;  %v1711_v56 = vmul.f32 %v11681_v57, %v127_v7  ;;  %v6680_v63 = vld [vmem:[%s11270_s1 + $0x28c] ss:$52 sps:$4 sm:$0xff]   ;;  %v11682_v29 = vld [vmem:[#allocation28_spill] sm:$0xff]  ;;  %v7019_v7 = vld [vmem:[%s11271_s2 + $0x5b0] sm:$0xff] }
 0x2de   :  { %v3481_v11 = vmax.f32 %v3085_v38, 0.0  ;;  %v3482_v30 = vmax.f32 %v3086_v21, 0.0  ;;  %5442 = vmatmul.mubr.bf16.gmra.mrb[16].mxu0 %v6672_v36  ;;  %5538 = vmatprep.subr.bf16.mxu0 %v3896_v54  ;;  %v2209_v41 = vpop.permute.xlu1 %2208  ;;  %v1712_v36 = vmul.f32 %v11681_v57, %v128_v46  ;;  %v1713_v28 = vmul.f32 %v11682_v29, %v129_v45  ;;  %v320_v38 = vld [vmem:[%s11269_s0 + $0x968] sm:$0xff]  ;;  %v325_v57 = vld [vmem:[%s11269_s0 + $0x990] sm:$0xff] }
 0x2df   :  { %v2895_v55 = vadd.f32 %v2209_v41, %v1707_v48  ;;  %v2896_v23 = vadd.f32 %v2209_v41, %v1708_v51  ;;  %v2213_v50 = vpop.permute.xlu0 %2212  ;;  %5539 = vmatpush1.bf16.msra.mxu0 %v3895_v35  ;;  %2336 = vperm.xlu1 %6638, %v7013_v47   ;;  %v1714_v31 = vmul.f32 %v11682_v29, %v130_v44  ;;  %v319_v35 = vld [vmem:[%s11269_s0 + $0x960] sm:$0xff]  ;;  %v322_v48 = vld [vmem:[%s11269_s0 + $0x978] sm:$0xff] }
 0x2e0   :  { %v3897_v33 = vpack.c.bf16 %v3481_v11, %v3479_v18  ;;  %v2897_v32 = vadd.f32 %v2213_v50, %v1709_v8  ;;  %v2898_v43 = vadd.f32 %v2213_v50, %v1710_v61  ;;  %2340 = vperm.xlu0 %6637, %v7014_v9   ;;  %v3898_v17 = vpack.c.bf16 %v3482_v30, %v3480_v6  ;;  %v11683_v11 = vld [vmem:[#allocation123_spill] sm:$0xff]  ;;  %v11684_v50 = vld [vmem:[#allocation122_spill] sm:$0xff] }
 0x2e1   :  { %v3291_v24 = vmax.f32 %v2895_v55, 0.0  ;;  %v3292_v16 = vmax.f32 %v2896_v23, 0.0  ;;  %5451 = vmatprep.mubr.bf16.mxu0 %v6674_v4  ;;  %v7017_v4 = vld [vmem:[%s11271_s2 + $0x2b0] sm:$0xff]  ;;  %v1903_v30 = vmul.f32 %v11683_v11, %v319_v35  ;;  %v1904_v41 = vmul.f32 %v11683_v11, %v320_v38  ;;  %v131_v55 = vld [vmem:[%s11269_s0 + $0x380] sm:$0xff]  ;;  %v132_v23 = vld [vmem:[%s11269_s0 + $0x388] sm:$0xff] }
 0x2e2   :  { %v3293_v22 = vmax.f32 %v2897_v32, 0.0  ;;  %v3294_v27 = vmax.f32 %v2898_v43, 0.0  ;;  %5540 = vmatprep.subr.bf16.mxu0 %v3898_v17  ;;  %v2593_v5 = vpop.permute.xlu1 %2592  ;;  %v1905_v47 = vmul.f32 %v11684_v50, %v321_v49  ;;  %v6684_v17 = vld [vmem:[%s11270_s1 + $0x288] ss:$52 sps:$4 sm:$0xff]   ;;  %v137_v11 = vld [vmem:[%s11269_s0 + $0x3b0] sm:$0xff] }
 0x2e3   :  { %v3087_v59 = vadd.f32 %v2593_v5, %v1899_v52  ;;  %v3088_v15 = vadd.f32 %v2593_v5, %v1900_v25  ;;  %v2597_v26 = vpop.permute.xlu0 %2596  ;;  %5541 = vmatpush1.bf16.msra.mxu0 %v3897_v33  ;;  %2720 = vperm.xlu1 %6638, %v7015_v0   ;;  %v1906_v33 = vmul.f32 %v11684_v50, %v322_v48  ;;  %v134_v52 = vld [vmem:[%s11269_s0 + $0x398] sm:$0xff]  ;;  %v7022_v35 = vld [vmem:[%s11271_s2 + $0x2c8] sm:$0xff] }
 0x2e4   :  { %v3803_v10 = vpack.c.bf16 %v3293_v22, %v3291_v24  ;;  %v3089_v13 = vadd.f32 %v2597_v26, %v1901_v34  ;;  %v3090_v42 = vadd.f32 %v2597_v26, %v1902_v19  ;;  %2724 = vperm.xlu0 %6637, %v7016_v39   ;;  %v3804_v37 = vpack.c.bf16 %v3294_v27, %v3292_v16  ;;  %v7020_v19 = vld [vmem:[%s11271_s2 + $0x5b8] sm:$0xff]  ;;  %v11685_v27 = vld [vmem:[#allocation31_spill] sm:$0xff] }
 0x2e5   :  { %v3483_v12 = vmax.f32 %v3087_v59, 0.0  ;;  %v3484_v2 = vmax.f32 %v3088_v15, 0.0  ;;  %v1715_v5 = vmul.f32 %v11685_v27, %v131_v55  ;;  %v6686_v59 = vld [vmem:[%s11270_s1 + $0x2f4] ss:$52 sps:$4 sm:$0xff]   ;;  %v7023_v55 = vld [vmem:[%s11271_s2 + $0x5c0] sm:$0xff] }
 0x2e6   :  { %v3485_v21 = vmax.f32 %v3089_v13, 0.0  ;;  %v3486_v20 = vmax.f32 %v3090_v42, 0.0  ;;  %5083 = vmatprep.subr.bf16.mxu1 %v3804_v37  ;;  %5452 = vmatmul.mubr.bf16.gmra.mrb[20].mxu0 %v6678_v62  ;;  %v2217_v54 = vpop.permute.xlu1 %2216  ;;  %v1716_v62 = vmul.f32 %v11685_v27, %v132_v23  ;;  %v11686_v15 = vld [vmem:[#allocation30_spill] sm:$0xff]  ;;  %v329_v27 = vld [vmem:[%s11269_s0 + $0x9b0] sm:$0xff] }
 0x2e7   :  { %v2899_v51 = vadd.f32 %v2217_v54, %v1711_v56  ;;  %v2900_v18 = vadd.f32 %v2217_v54, %v1712_v36  ;;  %v2221_v6 = vpop.permute.xlu0 %2220  ;;  %5084 = vmatpush1.bf16.msra.mxu1 %v3803_v10  ;;  %2344 = vperm.xlu1 %6638, %v7017_v4   ;;  %v1717_v26 = vmul.f32 %v11686_v15, %v133_v53  ;;  %v323_v10 = vld [vmem:[%s11269_s0 + $0x980] sm:$0xff]  ;;  %v324_v13 = vld [vmem:[%s11269_s0 + $0x988] sm:$0xff]  ;;  %v326_v56 = vld [vmem:[%s11269_s0 + $0x998] sm:$0xff] }
 0x2e8   :  { %v3899_v3 = vpack.c.bf16 %v3485_v21, %v3483_v12  ;;  %v2901_v8 = vadd.f32 %v2221_v6, %v1713_v28  ;;  %v2902_v61 = vadd.f32 %v2221_v6, %v1714_v31  ;;  %2348 = vperm.xlu0 %6637, %v7018_v60   ;;  %v3900_v14 = vpack.c.bf16 %v3486_v20, %v3484_v2  ;;  %v11687_v21 = vld [vmem:[#allocation125_spill] sm:$0xff]  ;;  %v11688_v6 = vld [vmem:[#allocation124_spill] sm:$0xff] }
 0x2e9   :  { %v3295_v40 = vmax.f32 %v2899_v51, 0.0  ;;  %v3296_v58 = vmax.f32 %v2900_v18, 0.0  ;;  %5461 = vmatprep.mubr.bf16.mxu0 %v6680_v63  ;;  %v1718_v0 = vmul.f32 %v11686_v15, %v134_v52  ;;  %v7021_v63 = vld [vmem:[%s11271_s2 + $0x2c0] sm:$0xff]  ;;  %v1907_v20 = vmul.f32 %v11687_v21, %v323_v10  ;;  %v136_v18 = vld [vmem:[%s11269_s0 + $0x3a8] sm:$0xff]  ;;  %v7026_v10 = vld [vmem:[%s11271_s2 + $0x2d8] sm:$0xff] }
 0x2ea   :  { %v3297_v32 = vmax.f32 %v2901_v8, 0.0  ;;  %v3298_v43 = vmax.f32 %v2902_v61, 0.0  ;;  %5542 = vmatprep.subr.bf16.mxu0 %v3900_v14  ;;  %v2601_v9 = vpop.permute.xlu1 %2600  ;;  %v1908_v54 = vmul.f32 %v11687_v21, %v324_v13  ;;  %v135_v51 = vld [vmem:[%s11269_s0 + $0x3a0] sm:$0xff]  ;;  %v1909_v4 = vmul.f32 %v11688_v6, %v325_v57  ;;  %v141_v21 = vld [vmem:[%s11269_s0 + $0x3d0] sm:$0xff] }
 0x2eb   :  { %v3091_v25 = vadd.f32 %v2601_v9, %v1903_v30  ;;  %v3092_v24 = vadd.f32 %v2601_v9, %v1904_v41  ;;  %v2605_v16 = vpop.permute.xlu0 %2604  ;;  %5543 = vmatpush1.bf16.msra.mxu0 %v3899_v3  ;;  %2728 = vperm.xlu1 %6638, %v7019_v7   ;;  %v1910_v3 = vmul.f32 %v11688_v6, %v326_v56  ;;  %v6690_v14 = vld [vmem:[%s11270_s1 + $0x2f0] ss:$52 sps:$4 sm:$0xff]   ;;  %v138_v30 = vld [vmem:[%s11269_s0 + $0x3b8] sm:$0xff] }
 0x2ec   :  { %v3805_v46 = vpack.c.bf16 %v3297_v32, %v3295_v40  ;;  %v3093_v1 = vadd.f32 %v2605_v16, %v1905_v47  ;;  %v3094_v34 = vadd.f32 %v2605_v16, %v1906_v33  ;;  %2732 = vperm.xlu0 %6637, %v7020_v19   ;;  %v3806_v22 = vpack.c.bf16 %v3298_v43, %v3296_v58  ;;  %v7024_v33 = vld [vmem:[%s11271_s2 + $0x5c8] sm:$0xff]  ;;  %v11689_v43 = vld [vmem:[#allocation33_spill] sm:$0xff] }
 0x2ed   :  { %v3487_v45 = vmax.f32 %v3091_v25, 0.0  ;;  %v3488_v44 = vmax.f32 %v3092_v24, 0.0  ;;  %v1719_v9 = vmul.f32 %v11689_v43, %v135_v51  ;;  %v6692_v25 = vld [vmem:[%s11270_s1 + $0x35c] ss:$52 sps:$4 sm:$0xff]  }
 0x2ee   :  { %v3489_v42 = vmax.f32 %v3093_v1, 0.0  ;;  %v3490_v39 = vmax.f32 %v3094_v34, 0.0  ;;  %5085 = vmatprep.subr.bf16.mxu1 %v3806_v22  ;;  %5462 = vmatmul.mubr.bf16.gmra.mrb[24].mxu0 %v6684_v17  ;;  %v2225_v37 = vpop.permute.xlu1 %2224  ;;  %v1720_v17 = vmul.f32 %v11689_v43, %v136_v18  ;;  %v11690_v24 = vld [vmem:[#allocation32_spill] sm:$0xff]  ;;  %v328_v1 = vld [vmem:[%s11269_s0 + $0x9a8] sm:$0xff]  ;;  %v7027_v51 = vld [vmem:[%s11271_s2 + $0x5d0] sm:$0xff] }
 0x2ef   :  { %v2903_v36 = vadd.f32 %v2225_v37, %v1715_v5  ;;  %v2904_v12 = vadd.f32 %v2225_v37, %v1716_v62  ;;  %v2229_v2 = vpop.permute.xlu0 %2228  ;;  %5086 = vmatpush1.bf16.msra.mxu1 %v3805_v46  ;;  %2352 = vperm.xlu1 %6638, %v7021_v63   ;;  %v1721_v16 = vmul.f32 %v11690_v24, %v137_v11  ;;  %v327_v46 = vld [vmem:[%s11269_s0 + $0x9a0] sm:$0xff]  ;;  %v330_v5 = vld [vmem:[%s11269_s0 + $0x9b8] sm:$0xff]  ;;  %v333_v43 = vld [vmem:[%s11269_s0 + $0x9d0] sm:$0xff] }
 0x2f0   :  { %v3901_v29 = vpack.c.bf16 %v3489_v42, %v3487_v45  ;;  %v2905_v28 = vadd.f32 %v2229_v2, %v1717_v26  ;;  %v2906_v31 = vadd.f32 %v2229_v2, %v1718_v0  ;;  %2356 = vperm.xlu0 %6637, %v7022_v35   ;;  %v3902_v38 = vpack.c.bf16 %v3490_v39, %v3488_v44  ;;  %v11691_v42 = vld [vmem:[#allocation127_spill] sm:$0xff]  ;;  %v11692_v2 = vld [vmem:[#allocation126_spill] sm:$0xff] }
 0x2f1   :  { %v3299_v49 = vmax.f32 %v2903_v36, 0.0  ;;  %v3300_v48 = vmax.f32 %v2904_v12, 0.0  ;;  %5471 = vmatprep.mubr.bf16.mxu0 %v6686_v59  ;;  %v1722_v7 = vmul.f32 %v11690_v24, %v138_v30  ;;  %v7025_v59 = vld [vmem:[%s11271_s2 + $0x2d0] sm:$0xff]  ;;  %v1911_v39 = vmul.f32 %v11691_v42, %v327_v46  ;;  %v139_v36 = vld [vmem:[%s11269_s0 + $0x3c0] sm:$0xff]  ;;  %v140_v12 = vld [vmem:[%s11269_s0 + $0x3c8] sm:$0xff] }
 0x2f2   :  { %v3301_v8 = vmax.f32 %v2905_v28, 0.0  ;;  %v3302_v61 = vmax.f32 %v2906_v31, 0.0  ;;  %5544 = vmatprep.subr.bf16.mxu0 %v3902_v38  ;;  %v2609_v60 = vpop.permute.xlu1 %2608  ;;  %v1912_v37 = vmul.f32 %v11691_v42, %v328_v1  ;;  %v1913_v63 = vmul.f32 %v11692_v2, %v329_v27  ;;  %v6696_v38 = vld [vmem:[%s11270_s1 + $0x358] ss:$52 sps:$4 sm:$0xff]   ;;  %v145_v42 = vld [vmem:[%s11269_s0 + $0x3f0] sm:$0xff] }
 0x2f3   :  { %v3095_v41 = vadd.f32 %v2609_v60, %v1907_v20  ;;  %v3096_v40 = vadd.f32 %v2609_v60, %v1908_v54  ;;  %v2613_v58 = vpop.permute.xlu0 %2612  ;;  %5545 = vmatpush1.bf16.msra.mxu0 %v3901_v29  ;;  %2736 = vperm.xlu1 %6638, %v7023_v55   ;;  %v1914_v29 = vmul.f32 %v11692_v2, %v330_v5  ;;  %v142_v20 = vld [vmem:[%s11269_s0 + $0x3d8] sm:$0xff]  ;;  %v7030_v46 = vld [vmem:[%s11271_s2 + $0x2e8] sm:$0xff] }
 0x2f4   :  { %v3807_v23 = vpack.c.bf16 %v3301_v8, %v3299_v49  ;;  %v3097_v50 = vadd.f32 %v2613_v58, %v1909_v4  ;;  %v3098_v47 = vadd.f32 %v2613_v58, %v1910_v3  ;;  %2740 = vperm.xlu0 %6637, %v7024_v33   ;;  %v3808_v32 = vpack.c.bf16 %v3302_v61, %v3300_v48  ;;  %v7028_v3 = vld [vmem:[%s11271_s2 + $0x5d8] sm:$0xff]  ;;  %v11693_v61 = vld [vmem:[#allocation35_spill] sm:$0xff] }
 0x2f5   :  { %v3491_v53 = vmax.f32 %v3095_v41, 0.0  ;;  %v3492_v52 = vmax.f32 %v3096_v40, 0.0  ;;  %v1723_v60 = vmul.f32 %v11693_v61, %v139_v36  ;;  %v6698_v41 = vld [vmem:[%s11270_s1 + $0x3c4] ss:$52 sps:$4 sm:$0xff]   ;;  %v11694_v40 = vld [vmem:[#allocation34_spill] sm:$0xff] }
 0x2f6   :  { %v3493_v34 = vmax.f32 %v3097_v50, 0.0  ;;  %v3494_v19 = vmax.f32 %v3098_v47, 0.0  ;;  %5087 = vmatprep.subr.bf16.mxu1 %v3808_v32  ;;  %5472 = vmatmul.mubr.bf16.gmra.mrb[28].mxu0 %v6690_v14  ;;  %v2233_v22 = vpop.permute.xlu1 %2232  ;;  %v1724_v14 = vmul.f32 %v11693_v61, %v140_v12  ;;  %v1725_v58 = vmul.f32 %v11694_v40, %v141_v21  ;;  %v332_v50 = vld [vmem:[%s11269_s0 + $0x9c8] sm:$0xff]  ;;  %v7031_v36 = vld [vmem:[%s11271_s2 + $0x5e0] sm:$0xff]  ;;  %v337_v61 = vld [vmem:[%s11269_s0 + $0x9f0] sm:$0xff] }
 0x2f7   :  { %v2907_v62 = vadd.f32 %v2233_v22, %v1719_v9  ;;  %v2908_v45 = vadd.f32 %v2233_v22, %v1720_v17  ;;  %v2237_v44 = vpop.permute.xlu0 %2236  ;;  %5088 = vmatpush1.bf16.msra.mxu1 %v3807_v23  ;;  %2360 = vperm.xlu1 %6638, %v7025_v59   ;;  %v1726_v55 = vmul.f32 %v11694_v40, %v142_v20  ;;  %v331_v23 = vld [vmem:[%s11269_s0 + $0x9c0] sm:$0xff]  ;;  %v334_v9 = vld [vmem:[%s11269_s0 + $0x9d8] sm:$0xff] }
 0x2f8   :  { %v3903_v15 = vpack.c.bf16 %v3493_v34, %v3491_v53  ;;  %v2909_v26 = vadd.f32 %v2237_v44, %v1721_v16  ;;  %v2910_v0 = vadd.f32 %v2237_v44, %v1722_v7  ;;  %2364 = vperm.xlu0 %6637, %v7026_v10   ;;  %v3904_v13 = vpack.c.bf16 %v3494_v19, %v3492_v52  ;;  %v11695_v34 = vld [vmem:[#allocation129_spill] sm:$0xff]  ;;  %v11696_v44 = vld [vmem:[#allocation128_spill] sm:$0xff] }
 0x2f9   :  { %v3303_v57 = vmax.f32 %v2907_v62, 0.0  ;;  %v3304_v56 = vmax.f32 %v2908_v45, 0.0  ;;  %5481 = vmatprep.mubr.bf16.mxu0 %v6692_v25  ;;  %v7029_v25 = vld [vmem:[%s11271_s2 + $0x2e0] sm:$0xff]  ;;  %v1915_v19 = vmul.f32 %v11695_v34, %v331_v23  ;;  %v1916_v22 = vmul.f32 %v11695_v34, %v332_v50  ;;  %v144_v45 = vld [vmem:[%s11269_s0 + $0x3e8] sm:$0xff]  ;;  %v7034_v23 = vld [vmem:[%s11271_s2 + $0x2f8] sm:$0xff] }
 0x2fa   :  { %v3305_v28 = vmax.f32 %v2909_v26, 0.0  ;;  %v3306_v31 = vmax.f32 %v2910_v0, 0.0  ;;  %5546 = vmatprep.subr.bf16.mxu0 %v3904_v13  ;;  %v2617_v35 = vpop.permute.xlu1 %2616  ;;  %v143_v62 = vld [vmem:[%s11269_s0 + $0x3e0] sm:$0xff]  ;;  %v1917_v59 = vmul.f32 %v11696_v44, %v333_v43  ;;  %v149_v34 = vld [vmem:[%s11269_s0 + $0x410] sm:$0xff] }
 0x2fb   :  { %v3099_v54 = vadd.f32 %v2617_v35, %v1911_v39  ;;  %v3100_v49 = vadd.f32 %v2617_v35, %v1912_v37  ;;  %v2621_v48 = vpop.permute.xlu0 %2620  ;;  %5547 = vmatpush1.bf16.msra.mxu0 %v3903_v15  ;;  %2744 = vperm.xlu1 %6638, %v7027_v51   ;;  %v1918_v15 = vmul.f32 %v11696_v44, %v334_v9  ;;  %v6702_v13 = vld [vmem:[%s11270_s1 + $0x3c0] ss:$52 sps:$4 sm:$0xff]   ;;  %v146_v39 = vld [vmem:[%s11269_s0 + $0x3f8] sm:$0xff] }
 0x2fc   :  { %v3809_v18 = vpack.c.bf16 %v3305_v28, %v3303_v57  ;;  %v3101_v6 = vadd.f32 %v2621_v48, %v1913_v63  ;;  %v3102_v4 = vadd.f32 %v2621_v48, %v1914_v29  ;;  %2748 = vperm.xlu0 %6637, %v7028_v3   ;;  %v3810_v8 = vpack.c.bf16 %v3306_v31, %v3304_v56  ;;  %v7032_v29 = vld [vmem:[%s11271_s2 + $0x5e8] sm:$0xff]  ;;  %v11697_v31 = vld [vmem:[#allocation37_spill] sm:$0xff] }
 0x2fd   :  { %v3495_v11 = vmax.f32 %v3099_v54, 0.0  ;;  %v3496_v30 = vmax.f32 %v3100_v49, 0.0  ;;  %v1727_v35 = vmul.f32 %v11697_v31, %v143_v62  ;;  %v6704_v54 = vld [vmem:[%s11270_s1 + $0x42c] ss:$52 sps:$4 sm:$0xff]   ;;  %v11698_v49 = vld [vmem:[#allocation36_spill] sm:$0xff]  ;;  %v7035_v62 = vld [vmem:[%s11271_s2 + $0x5f0] sm:$0xff] }
 0x2fe   :  { %v3497_v47 = vmax.f32 %v3101_v6, 0.0  ;;  %v3498_v33 = vmax.f32 %v3102_v4, 0.0  ;;  %5089 = vmatprep.subr.bf16.mxu1 %v3810_v8  ;;  %5482 = vmatmul.mubr.bf16.gmra.mrb[32].mxu0 %v6696_v38  ;;  %v2241_v32 = vpop.permute.xlu1 %2240  ;;  %v1728_v38 = vmul.f32 %v11697_v31, %v144_v45  ;;  %v1729_v48 = vmul.f32 %v11698_v49, %v145_v42  ;;  %v336_v6 = vld [vmem:[%s11269_s0 + $0x9e8] sm:$0xff]  ;;  %v342_v31 = vld [vmem:[%s11269_s0 + $0xa18] sm:$0xff] }
 0x2ff   :  { %v2911_v17 = vadd.f32 %v2241_v32, %v1723_v60  ;;  %v2912_v53 = vadd.f32 %v2241_v32, %v1724_v14  ;;  %v2245_v52 = vpop.permute.xlu0 %2244  ;;  %5090 = vmatpush1.bf16.msra.mxu1 %v3809_v18  ;;  %2368 = vperm.xlu1 %6638, %v7029_v25   ;;  %v1730_v51 = vmul.f32 %v11698_v49, %v146_v39  ;;  %v335_v18 = vld [vmem:[%s11269_s0 + $0x9e0] sm:$0xff]  ;;  %v338_v60 = vld [vmem:[%s11269_s0 + $0x9f8] sm:$0xff] }
 0x300   :  { %v3905_v24 = vpack.c.bf16 %v3497_v47, %v3495_v11  ;;  %v2913_v16 = vadd.f32 %v2245_v52, %v1725_v58  ;;  %v2914_v7 = vadd.f32 %v2245_v52, %v1726_v55  ;;  %2372 = vperm.xlu0 %6637, %v7030_v46   ;;  %v3906_v1 = vpack.c.bf16 %v3498_v33, %v3496_v30  ;;  %v11699_v47 = vld [vmem:[#allocation131_spill] sm:$0xff]  ;;  %v11700_v52 = vld [vmem:[#allocation130_spill] sm:$0xff]  ;;  %v339_v49 = vld [vmem:[%s11269_s0 + $0xa00] sm:$0xff] }
 0x301   :  { %v3307_v27 = vmax.f32 %v2911_v17, 0.0  ;;  %v3308_v5 = vmax.f32 %v2912_v53, 0.0  ;;  %5491 = vmatprep.mubr.bf16.mxu0 %v6698_v41  ;;  %v7033_v41 = vld [vmem:[%s11271_s2 + $0x2f0] sm:$0xff]  ;;  %v1919_v33 = vmul.f32 %v11699_v47, %v335_v18  ;;  %v1920_v32 = vmul.f32 %v11699_v47, %v336_v6  ;;  %v147_v17 = vld [vmem:[%s11269_s0 + $0x400] sm:$0xff]  ;;  %v148_v53 = vld [vmem:[%s11269_s0 + $0x408] sm:$0xff] }
 0x302   :  { %v3309_v26 = vmax.f32 %v2913_v16, 0.0  ;;  %v3310_v0 = vmax.f32 %v2914_v7, 0.0  ;;  %5548 = vmatprep.subr.bf16.mxu0 %v3906_v1  ;;  %v2625_v10 = vpop.permute.xlu1 %2624  ;;  %v1921_v25 = vmul.f32 %v11700_v52, %v337_v61  ;;  %v6708_v1 = vld [vmem:[%s11270_s1 + $0x428] ss:$52 sps:$4 sm:$0xff]   ;;  %v153_v47 = vld [vmem:[%s11269_s0 + $0x430] sm:$0xff] }
 0x303   :  { %v3103_v37 = vadd.f32 %v2625_v10, %v1915_v19  ;;  %v3104_v57 = vadd.f32 %v2625_v10, %v1916_v22  ;;  %v2629_v56 = vpop.permute.xlu0 %2628  ;;  %5549 = vmatpush1.bf16.msra.mxu0 %v3905_v24  ;;  %2752 = vperm.xlu1 %6638, %v7031_v36   ;;  %v1922_v24 = vmul.f32 %v11700_v52, %v338_v60  ;;  %v150_v19 = vld [vmem:[%s11269_s0 + $0x418] sm:$0xff]  ;;  %v7038_v6 = vld [vmem:[%s11271_s2 + $0x608] sm:$0xff]  ;;  %v11705_v52 = vld [vmem:[#allocation41_spill] sm:$0xff] }
 0x304   :  { %v3811_v12 = vpack.c.bf16 %v3309_v26, %v3307_v27  ;;  %v3105_v2 = vadd.f32 %v2629_v56, %v1917_v59  ;;  %v3106_v63 = vadd.f32 %v2629_v56, %v1918_v15  ;;  %2756 = vperm.xlu0 %6637, %v7032_v29   ;;  %v3812_v28 = vpack.c.bf16 %v3310_v0, %v3308_v5  ;;  %v7036_v15 = vld [vmem:[%s11271_s2 + $0x5f8] sm:$0xff]  ;;  %v11701_v0 = vld [vmem:[#allocation39_spill] sm:$0xff] }
 0x305   :  { %v3499_v21 = vmax.f32 %v3103_v37, 0.0  ;;  %v3500_v20 = vmax.f32 %v3104_v57, 0.0  ;;  %v1731_v10 = vmul.f32 %v11701_v0, %v147_v17  ;;  %v6710_v37 = vld [vmem:[%s11270_s1 + $0x494] ss:$52 sps:$4 sm:$0xff]  }
 0x306   :  { %v3501_v4 = vmax.f32 %v3105_v2, 0.0  ;;  %v3502_v3 = vmax.f32 %v3106_v63, 0.0  ;;  %5091 = vmatprep.subr.bf16.mxu1 %v3812_v28  ;;  %5492 = vmatmul.mubr.bf16.gmra.mrb[36].mxu0 %v6702_v13  ;;  %v2249_v8 = vpop.permute.xlu1 %2248  ;;  %v1732_v13 = vmul.f32 %v11701_v0, %v148_v53  ;;  %v11702_v57 = vld [vmem:[#allocation38_spill] sm:$0xff]  ;;  %v7039_v53 = vld [vmem:[%s11271_s2 + $0x610] sm:$0xff] }
 0x307   :  { %v2915_v14 = vadd.f32 %v2249_v8, %v1727_v35  ;;  %v2916_v11 = vadd.f32 %v2249_v8, %v1728_v38  ;;  %v2253_v30 = vpop.permute.xlu0 %2252  ;;  %5092 = vmatpush1.bf16.msra.mxu1 %v3811_v12  ;;  %2376 = vperm.xlu1 %6638, %v7033_v41   ;;  %v1733_v56 = vmul.f32 %v11702_v57, %v149_v34  ;;  %v340_v12 = vld [vmem:[%s11269_s0 + $0xa08] sm:$0xff]  ;;  %v11703_v8 = vld [vmem:[#allocation133_spill] sm:$0xff]  ;;  %v11704_v41 = vld [vmem:[#allocation132_spill] sm:$0xff] }
 0x308   :  { %v3907_v40 = vpack.c.bf16 %v3501_v4, %v3499_v21  ;;  %v2917_v58 = vadd.f32 %v2253_v30, %v1729_v48  ;;  %v2918_v55 = vadd.f32 %v2253_v30, %v1730_v51  ;;  %2380 = vperm.xlu0 %6637, %v7034_v23   ;;  %v3908_v50 = vpack.c.bf16 %v3502_v3, %v3500_v20  ;;  %v6712_v28 = vld [vmem:[%s11270_s1 + $0x8] ss:$52 sps:$4 sm:$0xff]   ;;  %v7037_v20 = vld [vmem:[%s11271_s2 + $0x600] sm:$0xff] }
 0x309   :  { %v3311_v43 = vmax.f32 %v2915_v14, 0.0  ;;  %v3312_v9 = vmax.f32 %v2916_v11, 0.0  ;;  %5501 = vmatprep.mubr.bf16.mxu0 %v6704_v54  ;;  %v1734_v36 = vmul.f32 %v11702_v57, %v150_v19  ;;  %v341_v54 = vld [vmem:[%s11269_s0 + $0xa10] sm:$0xff]  ;;  %v151_v3 = vld [vmem:[%s11269_s0 + $0x420] sm:$0xff]  ;;  %v1924_v61 = vmul.f32 %v11703_v8, %v340_v12  ;;  %v152_v30 = vld [vmem:[%s11269_s0 + $0x428] sm:$0xff] }
 0x30a   :  { %v3313_v16 = vmax.f32 %v2917_v58, 0.0  ;;  %v3314_v7 = vmax.f32 %v2918_v55, 0.0  ;;  %5550 = vmatprep.subr.bf16.mxu0 %v3908_v50  ;;  %v2633_v46 = vpop.permute.xlu1 %2632  ;;  %v6728_v11 = vld [vmem:[%s11270_s1 + $0x74] ss:$52 sps:$4 sm:$0xff]   ;;  %v6715_v50 = vld [vmem:[%s11270_s1 + $0x490] ss:$52 sps:$4 sm:$0xff]   ;;  %v1736_v34 = vmul.f32 %v11705_v52, %v152_v30 }
 0x30b   :  { %v3107_v22 = vadd.f32 %v2633_v46, %v1919_v33  ;;  %v3108_v27 = vadd.f32 %v2633_v46, %v1920_v32  ;;  %v2637_v5 = vpop.permute.xlu0 %2636  ;;  %5551 = vmatpush1.bf16.msra.mxu0 %v3907_v40  ;;  %2760 = vperm.xlu1 %6638, %v7035_v62   ;;  %v1926_v40 = vmul.f32 %v11704_v41, %v342_v31  ;;  %v154_v33 = vld [vmem:[%s11269_s0 + $0x438] sm:$0xff]  ;;  %v344_v19 = vld [vmem:[%s11269_s0 + $0xa28] sm:$0xff]  ;;  %v6730_v0 = vld [vmem:[%s11270_s1 + $0x70] ss:$52 sps:$4 sm:$0xff]  }
 0x30c   :  { %v3813_v45 = vpack.c.bf16 %v3313_v16, %v3311_v43  ;;  %v3109_v44 = vadd.f32 %v2637_v5, %v1921_v25  ;;  %v3110_v59 = vadd.f32 %v2637_v5, %v1922_v24  ;;  %2764 = vperm.xlu0 %6637, %v7036_v15   ;;  %v3814_v26 = vpack.c.bf16 %v3314_v7, %v3312_v9  ;;  %v343_v24 = vld [vmem:[%s11269_s0 + $0xa20] sm:$0xff]  ;;  %v7040_v46 = vld [vmem:[%s11271_s2 + $0x618] sm:$0xff]  ;;  %v7042_v31 = vld [vmem:[%s11271_s2 + $0x628] sm:$0xff] }
 0x30d   :  { %v3503_v42 = vmax.f32 %v3107_v22, 0.0  ;;  %v3504_v39 = vmax.f32 %v3108_v27, 0.0  ;;  %v1925_v32 = vmul.f32 %v11704_v41, %v341_v54  ;;  %v1923_v43 = vmul.f32 %v11703_v8, %v339_v49  ;;  %v6718_v62 = vld [vmem:[%s11270_s1 + $0x24] ss:$52 sps:$4 sm:$0xff]   ;;  %v6734_v12 = vld [vmem:[%s11270_s1 + $0xdc] ss:$52 sps:$4 sm:$0xff]  }
 0x30e   :  { %v3505_v2 = vmax.f32 %v3109_v44, 0.0  ;;  %v3506_v63 = vmax.f32 %v3110_v59, 0.0  ;;  %5093 = vmatprep.subr.bf16.mxu1 %v3814_v26  ;;  %5502 = vmatmul.mubr.bf16.gmra.mrb[40].mxu0 %v6708_v1  ;;  %v2257_v29 = vpop.permute.xlu1 %2256  ;;  %v1735_v25 = vmul.f32 %v11705_v52, %v151_v3  ;;  %v156_v49 = vld [vmem:[%s11269_s0 + $0x448] sm:$0xff]  ;;  %v6716_v8 = vld [vmem:[%s11270_s1 + $0x20] ss:$52 sps:$4 sm:$0xff]  }
 0x30f   :  { %v2919_v35 = vadd.f32 %v2257_v29, %v1731_v10  ;;  %v2920_v38 = vadd.f32 %v2257_v29, %v1732_v13  ;;  %v2261_v21 = vpop.permute.xlu0 %2260  ;;  %5094 = vmatpush1.bf16.msra.mxu1 %v3813_v45  ;;  %2768 = vperm.xlu1 %6638, %v7037_v20   ;;  %v11706_v45 = vld [vmem:[#allocation40_spill] sm:$0xff]  ;;  %v345_v10 = vld [vmem:[%s11269_s0 + $0xa30] sm:$0xff] }
 0x310   :  { %v3909_v48 = vpack.c.bf16 %v3505_v2, %v3503_v42  ;;  %v2921_v51 = vadd.f32 %v2261_v21, %v1733_v56  ;;  %v2922_v18 = vadd.f32 %v2261_v21, %v1734_v36  ;;  %2772 = vperm.xlu0 %6637, %v7038_v6   ;;  %v3910_v4 = vpack.c.bf16 %v3506_v63, %v3504_v39  ;;  %v346_v13 = vld [vmem:[%s11269_s0 + $0xa38] sm:$0xff]  ;;  %v11707_v42 = vld [vmem:[#allocation135_spill] sm:$0xff]  ;;  %v7041_v36 = vld [vmem:[%s11271_s2 + $0x620] sm:$0xff] }
 0x311   :  { %v3315_v60 = vmax.f32 %v2919_v35, 0.0  ;;  %v3316_v14 = vmax.f32 %v2920_v38, 0.0  ;;  %5511 = vmatprep.mubr.bf16.mxu0 %v6710_v37  ;;  %v1737_v44 = vmul.f32 %v11706_v45, %v153_v47  ;;  %v1738_v59 = vmul.f32 %v11706_v45, %v154_v33  ;;  %v155_v2 = vld [vmem:[%s11269_s0 + $0x440] sm:$0xff] }
 0x312   :  { %v3317_v58 = vmax.f32 %v2921_v51, 0.0  ;;  %v3318_v55 = vmax.f32 %v2922_v18, 0.0  ;;  %5552 = vmatprep.subr.bf16.mxu0 %v3910_v4  ;;  %v2641_v23 = vpop.permute.xlu1 %2640  ;;  %5096 = vmatmul.mubr.bf16.vlgmr.msra.gmra.mrb[0].mxu1 %v6712_v28  ;;  %v1927_v39 = vmul.f32 %v11707_v42, %v343_v24  ;;  %v1928_v63 = vmul.f32 %v11707_v42, %v344_v19  ;;  %v6719_v33 = vld [vmem:[%s11270_s1 + $0x8c] ss:$52 sps:$4 sm:$0xff]   ;;  %v349_v19 = vld [vmem:[%s11269_s0 + $0xa50] sm:$0xff] }
 0x313   :  { %v3112_v9 = vadd.f32 %v2641_v23, %v1924_v61  ;;  %v2645_v17 = vpop.permute.xlu0 %2644  ;;  %5553 = vmatpush1.bf16.msra.mxu0 %v3909_v48  ;;  %2776 = vperm.xlu1 %6638, %v7039_v53   ;;  %v3111_v22 = vadd.f32 %v2641_v23, %v1923_v43  ;;  %v11708_v48 = vld [vmem:[#allocation134_spill] sm:$0xff]  ;;  %v157_v61 = vld [vmem:[%s11269_s0 + $0x450] sm:$0xff]  ;;  %v347_v24 = vld [vmem:[%s11269_s0 + $0xa40] sm:$0xff] }
 0x314   :  { %v3815_v16 = vpack.c.bf16 %v3317_v58, %v3315_v60  ;;  %v3114_v7 = vadd.f32 %v2645_v17, %v1926_v40  ;;  %2780 = vperm.xlu0 %6637, %v7040_v46   ;;  %v3816_v1 = vpack.c.bf16 %v3318_v55, %v3316_v14  ;;  %v3113_v5 = vadd.f32 %v2645_v17, %v1925_v32  ;;  %v158_v60 = vld [vmem:[%s11269_s0 + $0x458] sm:$0xff]  ;;  %v11709_v14 = vld [vmem:[#allocation43_spill] sm:$0xff]  ;;  %v11711_v53 = vld [vmem:[#allocation42_spill] sm:$0xff] }
 0x315   :  { %v3508_v27 = vmax.f32 %v3112_v9, 0.0  ;;  %5105 = vmatprep.mubr.bf16.mxu1 %v6728_v11  ;;  %v3507_v38 = vmax.f32 %v3111_v22, 0.0  ;;  %v1929_v51 = vmul.f32 %v11708_v48, %v345_v10  ;;  %v1930_v18 = vmul.f32 %v11708_v48, %v346_v13  ;;  %v350_v22 = vld [vmem:[%s11269_s0 + $0xa58] sm:$0xff] }
 0x316   :  { %v3510_v15 = vmax.f32 %v3114_v7, 0.0  ;;  %5216 = vmatprep.subr.bf16.mxu1 %v3816_v1  ;;  %5512 = vmatmul.mubr.bf16.gmra.mrb[44].mxu0 %v6715_v50  ;;  %v2265_v26 = vpop.permute.xlu1 %2264  ;;  %v3509_v21 = vmax.f32 %v3113_v5, 0.0  ;;  %v1739_v11 = vmul.f32 %v11709_v14, %v155_v2  ;;  %v11710_v58 = vmov 0   ;;  %v6740_v45 = vld [vmem:[%s11270_s1 + $0x144] ss:$52 sps:$4 sm:$0xff]  }
 0x317   :  { %v2923_v37 = vadd.f32 %v2265_v26, %v1735_v25  ;;  %v2924_v57 = vadd.f32 %v2265_v26, %v1736_v34  ;;  %v2269_v56 = vpop.permute.xlu0 %2268  ;;  %5217 = vmatpush1.bf16.msra.mxu1 %v3815_v16  ;;  %2784 = vperm.xlu1 %6638, %v7041_v36   ;;  %v1740_v32 = vmul.f32 %v11709_v14, %v156_v49  ;;  %v348_v16 = vld [vmem:[%s11269_s0 + $0xa48] sm:$0xff]  ;;  %v11715_v14 = vld [vmem:[#allocation44_spill] sm:$0xff] }
 0x318   :  { %v2925_v29 = vadd.f32 %v2269_v56, %v1737_v44  ;;  %v2926_v28 = vadd.f32 %v2269_v56, %v1738_v59  ;;  %2788 = vperm.xlu0 %6637, %v7042_v31   ;;  %v9958_v35 = vpack.c.bf16 %v3510_v15, %v3508_v27  ;;  %5554 = vmatprep.mubr.bf16.mxu0 %v6718_v62  ;;  %v6736_v34 = vld [vmem:[%s11270_s1 + $0xd8] ss:$52 sps:$4 sm:$0xff]   ;;  %v161_v31 = vld [vmem:[%s11269_s0 + $0x470] sm:$0xff] }
 0x319   :  { %v3319_v20 = vmax.f32 %v2923_v37, 0.0  ;;  %v3320_v54 = vmax.f32 %v2924_v57, 0.0  ;;  %v9982_v43 = vpack.c.bf16 %v3509_v21, %v3507_v38  ;;  %v1741_v52 = vmul.f32 %v11711_v53, %v157_v61  ;;  %v159_v37 = vld [vmem:[%s11269_s0 + $0x460] sm:$0xff]  ;;  %v160_v57 = vld [vmem:[%s11269_s0 + $0x468] sm:$0xff]  ;;  %v11713_v56 = vld [vmem:[#allocation136_spill] sm:$0xff] }
 0x31a   :  { %v3321_v6 = vmax.f32 %v2925_v29, 0.0  ;;  %v3322_v4 = vmax.f32 %v2926_v28, 0.0  ;;  %5675 = vmatprep.subr.bf16.mxu0 %v9958_v35  ;;  %v2649_v3 = vpop.permute.xlu1 %2648  ;;  %5106 = vmatmul.mubr.bf16.gmra.mrb[4].mxu1 %v6730_v0  ;;  %v1742_v25 = vmul.f32 %v11711_v53, %v158_v60  ;;  %v11712_v0 = vld [vmem:[#allocation137_spill] sm:$0xff]  ;;  %v1933_v36 = vmul.f32 %v11713_v56, %v349_v19  ;;  %v6721_v28 = vld [vmem:[%s11270_s1 + $0x88] ss:$52 sps:$4 sm:$0xff]  }
 0x31b   :  { %v3115_v30 = vadd.f32 %v2649_v3, %v1927_v39  ;;  %v3116_v41 = vadd.f32 %v2649_v3, %v1928_v63  ;;  %v2653_v40 = vpop.permute.xlu0 %2652  ;;  %5115 = vmatprep.mubr.bf16.mxu1 %v6734_v12  ;;  %6639 = vset.pattern.permute.xlu1 %v11710_v58  ;;  %v1931_v10 = vmul.f32 %v11712_v0, %v347_v24  ;;  %v162_v38 = vld [vmem:[%s11269_s0 + $0x478] sm:$0xff]  ;;  %v6722_v49 = vld [vmem:[%s11270_s1 + $0xf4] ss:$52 sps:$4 sm:$0xff]  }
 0x31c   :  { %v3817_v55 = vpack.c.bf16 %v3321_v6, %v3319_v20  ;;  %v3117_v23 = vadd.f32 %v2653_v40, %v1929_v51  ;;  %v3118_v50 = vadd.f32 %v2653_v40, %v1930_v18  ;;  %v3818_v47 = vpack.c.bf16 %v3322_v4, %v3320_v54  ;;  %6640 = vset.pattern.permute.xlu0 %v11710_v58  ;;  %v11714_v4 = vld [vmem:[#allocation45_spill] sm:$0xff]  ;;  %v352_v40 = vld [vmem:[%s11269_s0 + $0xa68] sm:$0xff] }
 0x31d   :  { %v3511_v9 = vmax.f32 %v3115_v30, 0.0  ;;  %v3512_v17 = vmax.f32 %v3116_v41, 0.0  ;;  %v1932_v13 = vmul.f32 %v11712_v0, %v348_v16  ;;  %v1934_v12 = vmul.f32 %v11713_v56, %v350_v22  ;;  %v351_v41 = vld [vmem:[%s11269_s0 + $0xa60] sm:$0xff] }
 0x31e   :  { %v3513_v7 = vmax.f32 %v3117_v23, 0.0  ;;  %v3514_v46 = vmax.f32 %v3118_v50, 0.0  ;;  %5218 = vmatprep.subr.bf16.mxu1 %v3818_v47  ;;  %5555 = vmatmul.mubr.bf16.vlgmr.msra.gmra.mrb[0].mxu0 %v6716_v8  ;;  %v2273_v1 = vpop.permute.xlu1 %2272  ;;  %v1743_v3 = vmul.f32 %v11714_v4, %v159_v37  ;;  %v1744_v8 = vmul.f32 %v11714_v4, %v160_v57  ;;  %v6742_v47 = vld [vmem:[%s11270_s1 + $0x140] ss:$52 sps:$4 sm:$0xff]  }
 0x31f   :  { %5676 = vmatpush1.bf16.msra.mxu0 %v9982_v43  ;;  %v2927_v27 = vadd.f32 %v2273_v1, %v1739_v11  ;;  %v2928_v5 = vadd.f32 %v2273_v1, %v1740_v32  ;;  %v2277_v62 = vpop.permute.xlu0 %2276  ;;  %5219 = vmatpush1.bf16.msra.mxu1 %v3817_v55  ;;  %v1745_v11 = vmul.f32 %v11715_v14, %v161_v31  ;;  %v354_v32 = vld [vmem:[%s11269_s0 + $0xa78] sm:$0xff] }
 0x320   :  { %v10005_v44 = vpack.c.bf16 %v3513_v7, %v3511_v9  ;;  %v2929_v59 = vadd.f32 %v2277_v62, %v1741_v52  ;;  %v2930_v15 = vadd.f32 %v2277_v62, %v1742_v25  ;;  %v10007_v26 = vpack.c.bf16 %v3514_v46, %v3512_v17  ;;  %5564 = vmatprep.mubr.bf16.mxu0 %v6719_v33  ;;  %v353_v33 = vld [vmem:[%s11269_s0 + $0xa70] sm:$0xff]  ;;  %v6746_v52 = vld [vmem:[%s11270_s1 + $0x1ac] ss:$52 sps:$4 sm:$0xff]  }
 0x321   :  { %v3323_v42 = vmax.f32 %v2927_v27, 0.0  ;;  %v3324_v39 = vmax.f32 %v2928_v5, 0.0  ;;  %v1746_v30 = vmul.f32 %v11715_v14, %v162_v38  ;;  %v11716_v46 = vld [vmem:[#allocation139_spill] sm:$0xff]  ;;  %v163_v27 = vld [vmem:[%s11269_s0 + $0x480] sm:$0xff]  ;;  %v164_v5 = vld [vmem:[%s11269_s0 + $0x488] sm:$0xff] }
 0x322   :  { %v3325_v2 = vmax.f32 %v2929_v59, 0.0  ;;  %v3326_v63 = vmax.f32 %v2930_v15, 0.0  ;;  %5677 = vmatprep.subr.bf16.mxu0 %v10007_v26  ;;  %v2657_v29 = vpop.permute.xlu1 %2656  ;;  %5116 = vmatmul.mubr.bf16.gmra.mrb[8].mxu1 %v6736_v34  ;;  %v1935_v1 = vmul.f32 %v11716_v46, %v351_v41  ;;  %v1936_v34 = vmul.f32 %v11716_v46, %v352_v40  ;;  %v11717_v62 = vld [vmem:[#allocation138_spill] sm:$0xff] }
 0x323   :  { %v3119_v21 = vadd.f32 %v2657_v29, %v1931_v10  ;;  %v3120_v20 = vadd.f32 %v2657_v29, %v1932_v13  ;;  %v2661_v54 = vpop.permute.xlu0 %2660  ;;  %5678 = vmatpush1.bf16.msra.mxu0 %v10005_v44  ;;  %5125 = vmatprep.mubr.bf16.mxu1 %v6740_v45  ;;  %v1937_v45 = vmul.f32 %v11717_v62, %v353_v33  ;;  %v6724_v13 = vld [vmem:[%s11270_s1 + $0xf0] ss:$52 sps:$4 sm:$0xff]   ;;  %v6752_v41 = vld [vmem:[%s11270_s1 + $0x214] ss:$52 sps:$4 sm:$0xff]  }
 0x324   :  { %v3819_v48 = vpack.c.bf16 %v3325_v2, %v3323_v42  ;;  %v3121_v51 = vadd.f32 %v2661_v54, %v1933_v36  ;;  %v3122_v18 = vadd.f32 %v2661_v54, %v1934_v12  ;;  %v3820_v6 = vpack.c.bf16 %v3326_v63, %v3324_v39  ;;  %v165_v42 = vld [vmem:[%s11269_s0 + $0x490] sm:$0xff]  ;;  %v166_v39 = vld [vmem:[%s11269_s0 + $0x498] sm:$0xff]  ;;  %v11719_v54 = vld [vmem:[#allocation46_spill] sm:$0xff] }
 0x325   :  { %v3515_v61 = vmax.f32 %v3119_v21, 0.0  ;;  %v3516_v60 = vmax.f32 %v3120_v20, 0.0  ;;  %v1938_v59 = vmul.f32 %v11717_v62, %v354_v32  ;;  %v6725_v36 = vld [vmem:[%s11270_s1 + $0x15c] ss:$52 sps:$4 sm:$0xff]  }
 0x326   :  { %v3517_v55 = vmax.f32 %v3121_v51, 0.0  ;;  %v3518_v23 = vmax.f32 %v3122_v18, 0.0  ;;  %5220 = vmatprep.subr.bf16.mxu1 %v3820_v6  ;;  %5565 = vmatmul.mubr.bf16.gmra.mrb[4].mxu0 %v6721_v28  ;;  %v2281_v50 = vpop.permute.xlu1 %2280  ;;  %v11718_v28 = vld [vmem:[#allocation47_spill] sm:$0xff]  ;;  %v355_v51 = vld [vmem:[%s11269_s0 + $0xa80] sm:$0xff]  ;;  %v356_v18 = vld [vmem:[%s11269_s0 + $0xa88] sm:$0xff] }
 0x327   :  { %v2931_v9 = vadd.f32 %v2281_v50, %v1743_v3  ;;  %v2932_v17 = vadd.f32 %v2281_v50, %v1744_v8  ;;  %v2285_v53 = vpop.permute.xlu0 %2284  ;;  %5221 = vmatpush1.bf16.msra.mxu1 %v3819_v48  ;;  %5574 = vmatprep.mubr.bf16.mxu0 %v6722_v49  ;;  %v1747_v31 = vmul.f32 %v11718_v28, %v163_v27  ;;  %v6748_v8 = vld [vmem:[%s11270_s1 + $0x1a8] ss:$52 sps:$4 sm:$0xff]   ;;  %v169_v27 = vld [vmem:[%s11269_s0 + $0x4b0] sm:$0xff] }
 0x328   :  { %v10055_v25 = vpack.c.bf16 %v3517_v55, %v3515_v61  ;;  %v2933_v24 = vadd.f32 %v2285_v53, %v1745_v11  ;;  %v2934_v16 = vadd.f32 %v2285_v53, %v1746_v30  ;;  %v10057_v7 = vpack.c.bf16 %v3518_v23, %v3516_v60  ;;  %v357_v61 = vld [vmem:[%s11269_s0 + $0xa90] sm:$0xff]  ;;  %v358_v60 = vld [vmem:[%s11269_s0 + $0xa98] sm:$0xff]  ;;  %v167_v53 = vld [vmem:[%s11269_s0 + $0x4a0] sm:$0xff] }
 0x329   :  { %v3327_v19 = vmax.f32 %v2931_v9, 0.0  ;;  %v3328_v22 = vmax.f32 %v2932_v17, 0.0  ;;  %v1748_v38 = vmul.f32 %v11718_v28, %v164_v5  ;;  %v1749_v49 = vmul.f32 %v11719_v54, %v165_v42  ;;  %v170_v5 = vld [vmem:[%s11269_s0 + $0x4b8] sm:$0xff]  ;;  %v360_v28 = vld [vmem:[%s11269_s0 + $0xaa8] sm:$0xff] }
 0x32a   :  { %v3329_v15 = vmax.f32 %v2933_v24, 0.0  ;;  %v3330_v0 = vmax.f32 %v2934_v16, 0.0  ;;  %5679 = vmatprep.subr.bf16.mxu0 %v10057_v7  ;;  %v2665_v10 = vpop.permute.xlu1 %2664  ;;  %5126 = vmatmul.mubr.bf16.gmra.mrb[12].mxu1 %v6742_v47  ;;  %v1750_v48 = vmul.f32 %v11719_v54, %v166_v39  ;;  %v11720_v47 = vld [vmem:[#allocation141_spill] sm:$0xff]  ;;  %v11721_v24 = vld [vmem:[#allocation140_spill] sm:$0xff]  ;;  %v361_v54 = vld [vmem:[%s11269_s0 + $0xab0] sm:$0xff] }
 0x32b   :  { %v3123_v37 = vadd.f32 %v2665_v10, %v1935_v1  ;;  %v3124_v57 = vadd.f32 %v2665_v10, %v1936_v34  ;;  %v2669_v56 = vpop.permute.xlu0 %2668  ;;  %5680 = vmatpush1.bf16.msra.mxu0 %v10055_v25  ;;  %5135 = vmatprep.mubr.bf16.mxu1 %v6746_v52  ;;  %v1939_v33 = vmul.f32 %v11720_v47, %v355_v51  ;;  %v168_v52 = vld [vmem:[%s11269_s0 + $0x4a8] sm:$0xff]  ;;  %v11722_v39 = vld [vmem:[#allocation49_spill] sm:$0xff] }
 0x32c   :  { %v3821_v12 = vpack.c.bf16 %v3329_v15, %v3327_v19  ;;  %v3125_v2 = vadd.f32 %v2669_v56, %v1937_v45  ;;  %v3126_v63 = vadd.f32 %v2669_v56, %v1938_v59  ;;  %v3822_v29 = vpack.c.bf16 %v3330_v0, %v3328_v22  ;;  %v6727_v22 = vld [vmem:[%s11270_s1 + $0x158] ss:$52 sps:$4 sm:$0xff]  }
 0x32d   :  { %v3519_v21 = vmax.f32 %v3123_v37, 0.0  ;;  %v3520_v20 = vmax.f32 %v3124_v57, 0.0  ;;  %v1940_v32 = vmul.f32 %v11720_v47, %v356_v18  ;;  %v1941_v16 = vmul.f32 %v11721_v24, %v357_v61  ;;  %v6731_v15 = vld [vmem:[%s11270_s1 + $0x1c4] ss:$52 sps:$4 sm:$0xff]   ;;  %v11725_v47 = vld [vmem:[#allocation142_spill] sm:$0xff] }
 0x32e   :  { %v3521_v6 = vmax.f32 %v3125_v2, 0.0  ;;  %v3522_v4 = vmax.f32 %v3126_v63, 0.0  ;;  %5222 = vmatprep.subr.bf16.mxu1 %v3822_v29  ;;  %5575 = vmatmul.mubr.bf16.gmra.mrb[8].mxu0 %v6724_v13  ;;  %v2289_v3 = vpop.permute.xlu1 %2288  ;;  %v1942_v46 = vmul.f32 %v11721_v24, %v358_v60  ;;  %v1751_v37 = vmul.f32 %v11722_v39, %v167_v53  ;;  %v359_v29 = vld [vmem:[%s11269_s0 + $0xaa0] sm:$0xff]  ;;  %v11724_v60 = vld [vmem:[#allocation143_spill] sm:$0xff] }
 0x32f   :  { %v2935_v14 = vadd.f32 %v2289_v3, %v1747_v31  ;;  %v2936_v11 = vadd.f32 %v2289_v3, %v1748_v38  ;;  %v2293_v30 = vpop.permute.xlu0 %2292  ;;  %5223 = vmatpush1.bf16.msra.mxu1 %v3821_v12  ;;  %5584 = vmatprep.mubr.bf16.mxu0 %v6725_v36  ;;  %v1752_v57 = vmul.f32 %v11722_v39, %v168_v52  ;;  %v11723_v12 = vld [vmem:[#allocation48_spill] sm:$0xff]  ;;  %v6733_v52 = vld [vmem:[%s11270_s1 + $0x1c0] ss:$52 sps:$4 sm:$0xff]  }
 0x330   :  { %v10105_v40 = vpack.c.bf16 %v3521_v6, %v3519_v21  ;;  %v2937_v55 = vadd.f32 %v2293_v30, %v1749_v49  ;;  %v2938_v23 = vadd.f32 %v2293_v30, %v1750_v48  ;;  %v10107_v50 = vpack.c.bf16 %v3522_v4, %v3520_v20  ;;  %v6754_v20 = vld [vmem:[%s11270_s1 + $0x210] ss:$52 sps:$4 sm:$0xff]   ;;  %v362_v49 = vld [vmem:[%s11269_s0 + $0xab8] sm:$0xff] }
 0x331   :  { %v3331_v9 = vmax.f32 %v2935_v14, 0.0  ;;  %v3332_v17 = vmax.f32 %v2936_v11, 0.0  ;;  %v1753_v2 = vmul.f32 %v11723_v12, %v169_v27  ;;  %v1754_v63 = vmul.f32 %v11723_v12, %v170_v5  ;;  %v6758_v6 = vld [vmem:[%s11270_s1 + $0x27c] ss:$52 sps:$4 sm:$0xff]  }
 0x332   :  { %v3333_v1 = vmax.f32 %v2937_v55, 0.0  ;;  %v3334_v34 = vmax.f32 %v2938_v23, 0.0  ;;  %5681 = vmatprep.subr.bf16.mxu0 %v10107_v50  ;;  %v2673_v19 = vpop.permute.xlu1 %2672  ;;  %5136 = vmatmul.mubr.bf16.gmra.mrb[16].mxu1 %v6748_v8  ;;  %v1943_v14 = vmul.f32 %v11724_v60, %v359_v29  ;;  %v1944_v11 = vmul.f32 %v11724_v60, %v360_v28  ;;  %v171_v55 = vld [vmem:[%s11269_s0 + $0x4c0] sm:$0xff]  ;;  %v172_v23 = vld [vmem:[%s11269_s0 + $0x4c8] sm:$0xff]  ;;  %v173_v24 = vld [vmem:[%s11269_s0 + $0x4d0] sm:$0xff] }
 0x333   :  { %v3127_v62 = vadd.f32 %v2673_v19, %v1939_v33  ;;  %v3128_v45 = vadd.f32 %v2673_v19, %v1940_v32  ;;  %v2677_v59 = vpop.permute.xlu0 %2676  ;;  %5682 = vmatpush1.bf16.msra.mxu0 %v10105_v40  ;;  %5145 = vmatprep.mubr.bf16.mxu1 %v6752_v41  ;;  %v1945_v33 = vmul.f32 %v11725_v47, %v361_v54  ;;  %v6737_v19 = vld [vmem:[%s11270_s1 + $0x22c] ss:$52 sps:$4 sm:$0xff]   ;;  %v366_v29 = vld [vmem:[%s11269_s0 + $0xad8] sm:$0xff] }
 0x334   :  { %v3823_v0 = vpack.c.bf16 %v3333_v1, %v3331_v9  ;;  %v3129_v10 = vadd.f32 %v2677_v59, %v1941_v16  ;;  %v3130_v13 = vadd.f32 %v2677_v59, %v1942_v46  ;;  %v3824_v42 = vpack.c.bf16 %v3334_v34, %v3332_v17  ;;  %v174_v16 = vld [vmem:[%s11269_s0 + $0x4d8] sm:$0xff]  ;;  %v175_v60 = vld [vmem:[%s11269_s0 + $0x4e0] sm:$0xff] }
 0x335   :  { %v3523_v56 = vmax.f32 %v3127_v62, 0.0  ;;  %v3524_v36 = vmax.f32 %v3128_v45, 0.0  ;;  %v1946_v32 = vmul.f32 %v11725_v47, %v362_v49  ;;  %v11726_v45 = vld [vmem:[#allocation51_spill] sm:$0xff] }
 0x336   :  { %v3525_v31 = vmax.f32 %v3129_v10, 0.0  ;;  %v3526_v38 = vmax.f32 %v3130_v13, 0.0  ;;  %5224 = vmatprep.subr.bf16.mxu1 %v3824_v42  ;;  %5585 = vmatmul.mubr.bf16.gmra.mrb[12].mxu0 %v6727_v22  ;;  %v2297_v21 = vpop.permute.xlu1 %2296  ;;  %v1755_v59 = vmul.f32 %v11726_v45, %v171_v55  ;;  %v11727_v13 = vld [vmem:[#allocation50_spill] sm:$0xff] }
 0x337   :  { %v2939_v48 = vadd.f32 %v2297_v21, %v1751_v37  ;;  %v2940_v51 = vadd.f32 %v2297_v21, %v1752_v57  ;;  %v2301_v18 = vpop.permute.xlu0 %2300  ;;  %5225 = vmatpush1.bf16.msra.mxu1 %v3823_v0  ;;  %5594 = vmatprep.mubr.bf16.mxu0 %v6731_v15  ;;  %v1756_v15 = vmul.f32 %v11726_v45, %v172_v23  ;;  %v363_v37 = vld [vmem:[%s11269_s0 + $0xac0] sm:$0xff]  ;;  %v364_v57 = vld [vmem:[%s11269_s0 + $0xac8] sm:$0xff]  ;;  %v11731_v45 = vld [vmem:[#allocation52_spill] sm:$0xff] }
 0x338   :  { %v10155_v4 = vpack.c.bf16 %v3525_v31, %v3523_v56  ;;  %v2941_v3 = vadd.f32 %v2301_v18, %v1753_v2  ;;  %v2942_v8 = vadd.f32 %v2301_v18, %v1754_v63  ;;  %v10157_v61 = vpack.c.bf16 %v3526_v38, %v3524_v36  ;;  %v6760_v2 = vld [vmem:[%s11270_s1 + $0x278] ss:$52 sps:$4 sm:$0xff]   ;;  %v365_v63 = vld [vmem:[%s11269_s0 + $0xad0] sm:$0xff] }
 0x339   :  { %v3335_v30 = vmax.f32 %v2939_v48, 0.0  ;;  %v3336_v41 = vmax.f32 %v2940_v51, 0.0  ;;  %v1757_v42 = vmul.f32 %v11727_v13, %v173_v24  ;;  %v1758_v39 = vmul.f32 %v11727_v13, %v174_v16  ;;  %v6764_v21 = vld [vmem:[%s11270_s1 + $0x2e4] ss:$52 sps:$4 sm:$0xff]   ;;  %v6743_v24 = vld [vmem:[%s11270_s1 + $0x294] ss:$52 sps:$4 sm:$0xff]  }
 0x33a   :  { %v3337_v9 = vmax.f32 %v2941_v3, 0.0  ;;  %v3338_v17 = vmax.f32 %v2942_v8, 0.0  ;;  %5683 = vmatprep.subr.bf16.mxu0 %v10157_v61  ;;  %v2681_v53 = vpop.permute.xlu1 %2680  ;;  %5146 = vmatmul.mubr.bf16.gmra.mrb[20].mxu1 %v6754_v20  ;;  %v11728_v51 = vld [vmem:[#allocation145_spill] sm:$0xff] }
 0x33b   :  { %v3131_v46 = vadd.f32 %v2681_v53, %v1943_v14  ;;  %v3132_v1 = vadd.f32 %v2681_v53, %v1944_v11  ;;  %v2685_v34 = vpop.permute.xlu0 %2684  ;;  %5684 = vmatpush1.bf16.msra.mxu0 %v10155_v4  ;;  %5155 = vmatprep.mubr.bf16.mxu1 %v6758_v6  ;;  %v1947_v18 = vmul.f32 %v11728_v51, %v363_v37  ;;  %v176_v14 = vld [vmem:[%s11269_s0 + $0x4e8] sm:$0xff]  ;;  %v11729_v11 = vld [vmem:[#allocation144_spill] sm:$0xff]  ;;  %v6766_v37 = vld [vmem:[%s11270_s1 + $0x2e0] ss:$52 sps:$4 sm:$0xff]  }
 0x33c   :  { %v3825_v22 = vpack.c.bf16 %v3337_v9, %v3335_v30  ;;  %v3133_v27 = vadd.f32 %v2685_v34, %v1945_v33  ;;  %v3134_v5 = vadd.f32 %v2685_v34, %v1946_v32  ;;  %v3826_v62 = vpack.c.bf16 %v3338_v17, %v3336_v41  ;;  %v6739_v33 = vld [vmem:[%s11270_s1 + $0x228] ss:$52 sps:$4 sm:$0xff]   ;;  %v177_v32 = vld [vmem:[%s11269_s0 + $0x4f0] sm:$0xff] }
 0x33d   :  { %v3527_v0 = vmax.f32 %v3131_v46, 0.0  ;;  %v3528_v10 = vmax.f32 %v3132_v1, 0.0  ;;  %v1948_v6 = vmul.f32 %v11728_v51, %v364_v57  ;;  %v1949_v30 = vmul.f32 %v11729_v11, %v365_v63  ;;  %v178_v9 = vld [vmem:[%s11269_s0 + $0x4f8] sm:$0xff]  ;;  %v369_v57 = vld [vmem:[%s11269_s0 + $0xaf0] sm:$0xff]  ;;  %v6770_v63 = vld [vmem:[%s11270_s1 + $0x34c] ss:$52 sps:$4 sm:$0xff]  }
 0x33e   :  { %v3529_v56 = vmax.f32 %v3133_v27, 0.0  ;;  %v3530_v36 = vmax.f32 %v3134_v5, 0.0  ;;  %5226 = vmatprep.subr.bf16.mxu1 %v3826_v62  ;;  %5595 = vmatmul.mubr.bf16.gmra.mrb[16].mxu0 %v6733_v52  ;;  %v2305_v12 = vpop.permute.xlu1 %2304  ;;  %v1950_v41 = vmul.f32 %v11729_v11, %v366_v29 }
 0x33f   :  { %v2943_v28 = vadd.f32 %v2305_v12, %v1755_v59  ;;  %v2944_v31 = vadd.f32 %v2305_v12, %v1756_v15  ;;  %v2309_v38 = vpop.permute.xlu0 %2308  ;;  %5227 = vmatpush1.bf16.msra.mxu1 %v3825_v22  ;;  %5604 = vmatprep.mubr.bf16.mxu0 %v6737_v19  ;;  %v11730_v19 = vld [vmem:[#allocation53_spill] sm:$0xff]  ;;  %v1761_v59 = vmul.f32 %v11731_v45, %v177_v32 }
 0x340   :  { %v10205_v20 = vpack.c.bf16 %v3529_v56, %v3527_v0  ;;  %v2945_v54 = vadd.f32 %v2309_v38, %v1757_v42  ;;  %v2946_v49 = vadd.f32 %v2309_v38, %v1758_v39  ;;  %v10207_v48 = vpack.c.bf16 %v3530_v36, %v3528_v10  ;;  %v367_v0 = vld [vmem:[%s11269_s0 + $0xae0] sm:$0xff]  ;;  %v368_v10 = vld [vmem:[%s11269_s0 + $0xae8] sm:$0xff]  ;;  %v370_v56 = vld [vmem:[%s11269_s0 + $0xaf8] sm:$0xff] }
 0x341   :  { %v3339_v3 = vmax.f32 %v2943_v28, 0.0  ;;  %v3340_v8 = vmax.f32 %v2944_v31, 0.0  ;;  %v1759_v22 = vmul.f32 %v11730_v19, %v175_v60  ;;  %v1760_v27 = vmul.f32 %v11730_v19, %v176_v14 }
 0x342   :  { %v3341_v55 = vmax.f32 %v2945_v54, 0.0  ;;  %v3342_v23 = vmax.f32 %v2946_v49, 0.0  ;;  %5685 = vmatprep.subr.bf16.mxu0 %v10207_v48  ;;  %v2689_v47 = vpop.permute.xlu1 %2688  ;;  %5156 = vmatmul.mubr.bf16.gmra.mrb[24].mxu1 %v6760_v2  ;;  %v1762_v15 = vmul.f32 %v11731_v45, %v178_v9  ;;  %v371_v45 = vld [vmem:[%s11269_s0 + $0xb00] sm:$0xff] }
 0x343   :  { %v3135_v17 = vadd.f32 %v2689_v47, %v1947_v18  ;;  %v3136_v53 = vadd.f32 %v2689_v47, %v1948_v6  ;;  %v2693_v52 = vpop.permute.xlu0 %2692  ;;  %5686 = vmatpush1.bf16.msra.mxu0 %v10205_v20  ;;  %5165 = vmatprep.mubr.bf16.mxu1 %v6764_v21  ;;  %v11732_v21 = vld [vmem:[#allocation147_spill] sm:$0xff]  ;;  %v179_v6 = vld [vmem:[%s11269_s0 + $0x500] sm:$0xff]  ;;  %v182_v47 = vld [vmem:[%s11269_s0 + $0x518] sm:$0xff] }
 0x344   :  { %v3827_v16 = vpack.c.bf16 %v3341_v55, %v3339_v3  ;;  %v3137_v46 = vadd.f32 %v2693_v52, %v1949_v30  ;;  %v3138_v1 = vadd.f32 %v2693_v52, %v1950_v41  ;;  %v3828_v34 = vpack.c.bf16 %v3342_v23, %v3340_v8  ;;  %v180_v3 = vld [vmem:[%s11269_s0 + $0x508] sm:$0xff]  ;;  %v6745_v55 = vld [vmem:[%s11270_s1 + $0x290] ss:$52 sps:$4 sm:$0xff]  }
 0x345   :  { %v3531_v5 = vmax.f32 %v3135_v17, 0.0  ;;  %v3532_v62 = vmax.f32 %v3136_v53, 0.0  ;;  %v1951_v54 = vmul.f32 %v11732_v21, %v367_v0  ;;  %v1952_v49 = vmul.f32 %v11732_v21, %v368_v10  ;;  %v11733_v8 = vld [vmem:[#allocation146_spill] sm:$0xff]  ;;  %v181_v23 = vld [vmem:[%s11269_s0 + $0x510] sm:$0xff]  ;;  %v11736_v21 = vld [vmem:[#allocation149_spill] sm:$0xff] }
 0x346   :  { %v3533_v13 = vmax.f32 %v3137_v46, 0.0  ;;  %v3534_v42 = vmax.f32 %v3138_v1, 0.0  ;;  %5228 = vmatprep.subr.bf16.mxu1 %v3828_v34  ;;  %5605 = vmatmul.mubr.bf16.gmra.mrb[20].mxu0 %v6739_v33  ;;  %v2313_v39 = vpop.permute.xlu1 %2312  ;;  %v1953_v60 = vmul.f32 %v11733_v8, %v369_v57  ;;  %v1954_v14 = vmul.f32 %v11733_v8, %v370_v56  ;;  %v6749_v17 = vld [vmem:[%s11270_s1 + $0x2fc] ss:$52 sps:$4 sm:$0xff]  }
 0x347   :  { %v2947_v36 = vadd.f32 %v2313_v39, %v1759_v22  ;;  %v2948_v12 = vadd.f32 %v2313_v39, %v1760_v27  ;;  %v2317_v2 = vpop.permute.xlu0 %2316  ;;  %5229 = vmatpush1.bf16.msra.mxu1 %v3827_v16  ;;  %5614 = vmatprep.mubr.bf16.mxu0 %v6743_v24  ;;  %v11734_v46 = vld [vmem:[#allocation55_spill] sm:$0xff]  ;;  %v11735_v27 = vld [vmem:[#allocation54_spill] sm:$0xff]  ;;  %v374_v39 = vld [vmem:[%s11269_s0 + $0xb18] sm:$0xff] }
 0x348   :  { %v10255_v29 = vpack.c.bf16 %v3533_v13, %v3531_v5  ;;  %v2949_v28 = vadd.f32 %v2317_v2, %v1761_v59  ;;  %v2950_v31 = vadd.f32 %v2317_v2, %v1762_v15  ;;  %v10257_v38 = vpack.c.bf16 %v3534_v42, %v3532_v62  ;;  %v372_v59 = vld [vmem:[%s11269_s0 + $0xb08] sm:$0xff]  ;;  %v373_v42 = vld [vmem:[%s11269_s0 + $0xb10] sm:$0xff] }
 0x349   :  { %v3343_v51 = vmax.f32 %v2947_v36, 0.0  ;;  %v3344_v18 = vmax.f32 %v2948_v12, 0.0  ;;  %v1763_v1 = vmul.f32 %v11734_v46, %v179_v6  ;;  %v1764_v34 = vmul.f32 %v11734_v46, %v180_v3  ;;  %v6772_v13 = vld [vmem:[%s11270_s1 + $0x348] ss:$52 sps:$4 sm:$0xff]   ;;  %v11738_v46 = vld [vmem:[#allocation57_spill] sm:$0xff] }
 0x34a   :  { %v3345_v11 = vmax.f32 %v2949_v28, 0.0  ;;  %v3346_v30 = vmax.f32 %v2950_v31, 0.0  ;;  %5687 = vmatprep.subr.bf16.mxu0 %v10257_v38  ;;  %v2697_v41 = vpop.permute.xlu1 %2696  ;;  %5166 = vmatmul.mubr.bf16.gmra.mrb[28].mxu1 %v6766_v37  ;;  %v1765_v5 = vmul.f32 %v11735_v27, %v181_v23  ;;  %v1766_v62 = vmul.f32 %v11735_v27, %v182_v47  ;;  %v6776_v36 = vld [vmem:[%s11270_s1 + $0x3b4] ss:$52 sps:$4 sm:$0xff]   ;;  %v183_v31 = vld [vmem:[%s11269_s0 + $0x520] sm:$0xff]  ;;  %v11737_v3 = vld [vmem:[#allocation148_spill] sm:$0xff] }
 0x34b   :  { %v3139_v33 = vadd.f32 %v2697_v41, %v1951_v54  ;;  %v3140_v32 = vadd.f32 %v2697_v41, %v1952_v49  ;;  %v2701_v9 = vpop.permute.xlu0 %2700  ;;  %5688 = vmatpush1.bf16.msra.mxu0 %v10255_v29  ;;  %5175 = vmatprep.mubr.bf16.mxu1 %v6770_v63  ;;  %v1955_v54 = vmul.f32 %v11736_v21, %v371_v45  ;;  %v184_v6 = vld [vmem:[%s11269_s0 + $0x528] sm:$0xff]  ;;  %v185_v23 = vld [vmem:[%s11269_s0 + $0x530] sm:$0xff]  ;;  %v186_v47 = vld [vmem:[%s11269_s0 + $0x538] sm:$0xff] }
 0x34c   :  { %v3829_v53 = vpack.c.bf16 %v3345_v11, %v3343_v51  ;;  %v3141_v52 = vadd.f32 %v2701_v9, %v1953_v60  ;;  %v3142_v24 = vadd.f32 %v2701_v9, %v1954_v14  ;;  %v3830_v16 = vpack.c.bf16 %v3346_v30, %v3344_v18  ;;  %v6751_v41 = vld [vmem:[%s11270_s1 + $0x2f8] ss:$52 sps:$4 sm:$0xff]  }
 0x34d   :  { %v3535_v19 = vmax.f32 %v3139_v33, 0.0  ;;  %v3536_v22 = vmax.f32 %v3140_v32, 0.0  ;;  %v1956_v49 = vmul.f32 %v11736_v21, %v372_v59  ;;  %v1957_v8 = vmul.f32 %v11737_v3, %v373_v42  ;;  %v376_v59 = vld [vmem:[%s11269_s0 + $0xb28] sm:$0xff]  ;;  %v3951_v42 = vld [vmem:[%s11272_s3 + $0x10] sm:$0xff] }
 0x34e   :  { %v3537_v15 = vmax.f32 %v3141_v52, 0.0  ;;  %v3538_v0 = vmax.f32 %v3142_v24, 0.0  ;;  %5230 = vmatprep.subr.bf16.mxu1 %v3830_v16  ;;  %5615 = vmatmul.mubr.bf16.gmra.mrb[24].mxu0 %v6745_v55  ;;  %v2321_v10 = vpop.permute.xlu1 %2320  ;;  %v1958_v60 = vmul.f32 %v11737_v3, %v374_v39  ;;  %v3949_v55 = vld [vmem:[%s11272_s3] sm:$0xff]  ;;  %v377_v39 = vld [vmem:[%s11269_s0 + $0xb30] sm:$0xff] }
 0x34f   :  { %v2951_v37 = vadd.f32 %v2321_v10, %v1763_v1  ;;  %v2952_v57 = vadd.f32 %v2321_v10, %v1764_v34  ;;  %v2325_v56 = vpop.permute.xlu0 %2324  ;;  %5231 = vmatpush1.bf16.msra.mxu1 %v3829_v53  ;;  %5624 = vmatprep.mubr.bf16.mxu0 %v6749_v17  ;;  %v6755_v17 = vld [vmem:[%s11270_s1 + $0x364] ss:$52 sps:$4 sm:$0xff]   ;;  %v1767_v1 = vmul.f32 %v11738_v46, %v183_v31 }
 0x350   :  { %v10305_v12 = vpack.c.bf16 %v3537_v15, %v3535_v19  ;;  %v2953_v2 = vadd.f32 %v2325_v56, %v1765_v5  ;;  %v2954_v63 = vadd.f32 %v2325_v56, %v1766_v62  ;;  %v10307_v28 = vpack.c.bf16 %v3538_v0, %v3536_v22  ;;  %3975 = vperm.xlu1 %6639, %v3949_v55   ;;  %v375_v19 = vld [vmem:[%s11269_s0 + $0xb20] sm:$0xff]  ;;  %v11739_v5 = vld [vmem:[#allocation56_spill] sm:$0xff] }
 0x351   :  { %v3347_v51 = vmax.f32 %v2951_v37, 0.0  ;;  %v3348_v18 = vmax.f32 %v2952_v57, 0.0  ;;  %v1768_v34 = vmul.f32 %v11738_v46, %v184_v6  ;;  %v1769_v62 = vmul.f32 %v11739_v5, %v185_v23  ;;  %v378_v37 = vld [vmem:[%s11269_s0 + $0xb38] sm:$0xff] }
 0x352   :  { %v3349_v14 = vmax.f32 %v2953_v2, 0.0  ;;  %v3350_v11 = vmax.f32 %v2954_v63, 0.0  ;;  %5689 = vmatprep.subr.bf16.mxu0 %v10307_v28  ;;  %v2705_v30 = vpop.permute.xlu1 %2704  ;;  %5176 = vmatmul.mubr.bf16.gmra.mrb[32].mxu1 %v6772_v13  ;;  %v1770_v45 = vmul.f32 %v11739_v5, %v186_v47  ;;  %v6778_v13 = vld [vmem:[%s11270_s1 + $0x3b0] ss:$52 sps:$4 sm:$0xff]   ;;  %v6757_v47 = vld [vmem:[%s11270_s1 + $0x360] ss:$52 sps:$4 sm:$0xff]  }
 0x353   :  { %v3143_v33 = vadd.f32 %v2705_v30, %v1955_v54  ;;  %v3144_v32 = vadd.f32 %v2705_v30, %v1956_v49  ;;  %v2709_v9 = vpop.permute.xlu0 %2708  ;;  %5690 = vmatpush1.bf16.msra.mxu0 %v10305_v12  ;;  %5185 = vmatprep.mubr.bf16.mxu1 %v6776_v36  ;;  %v6779_v2 = vld [vmem:[%s11270_s1 + $0x41c] ss:$52 sps:$4 sm:$0xff]   ;;  %v187_v49 = vld [vmem:[%s11269_s0 + $0x540] sm:$0xff] }
 0x354   :  { %v3831_v53 = vpack.c.bf16 %v3349_v14, %v3347_v51  ;;  %v3145_v52 = vadd.f32 %v2709_v9, %v1957_v8  ;;  %v3146_v24 = vadd.f32 %v2709_v9, %v1958_v60  ;;  %v3832_v16 = vpack.c.bf16 %v3350_v11, %v3348_v18  ;;  %3985 = vperm.xlu1 %6639, %v3951_v42   ;;  %v188_v51 = vld [vmem:[%s11269_s0 + $0x548] sm:$0xff]  ;;  %v11740_v18 = vld [vmem:[#allocation151_spill] sm:$0xff] }
 0x355   :  { %v3539_v22 = vmax.f32 %v3143_v33, 0.0  ;;  %v3540_v27 = vmax.f32 %v3144_v32, 0.0  ;;  %v1959_v6 = vmul.f32 %v11740_v18, %v375_v19  ;;  %v1960_v3 = vmul.f32 %v11740_v18, %v376_v59  ;;  %v11741_v14 = vld [vmem:[#allocation150_spill] sm:$0xff]  ;;  %v3952_v33 = vld [vmem:[%s11272_s3 + $0x18] sm:$0xff]  ;;  %v189_v9 = vld [vmem:[%s11269_s0 + $0x550] sm:$0xff] }
 0x356   :  { %v3541_v15 = vmax.f32 %v3145_v52, 0.0  ;;  %v3542_v0 = vmax.f32 %v3146_v24, 0.0  ;;  %5232 = vmatprep.subr.bf16.mxu1 %v3832_v16  ;;  %5625 = vmatmul.mubr.bf16.gmra.mrb[28].mxu0 %v6751_v41  ;;  %v2329_v10 = vpop.permute.xlu1 %2328  ;;  %v1961_v11 = vmul.f32 %v11741_v14, %v377_v39  ;;  %v1962_v30 = vmul.f32 %v11741_v14, %v378_v37  ;;  %v3950_v32 = vld [vmem:[%s11272_s3 + $0x8] sm:$0xff]  ;;  %v6782_v18 = vld [vmem:[%s11270_s1 + $0x484] ss:$52 sps:$4 sm:$0xff]  }
 0x357   :  { %v2955_v57 = vadd.f32 %v2329_v10, %v1767_v1  ;;  %v2956_v56 = vadd.f32 %v2329_v10, %v1768_v34  ;;  %v2333_v36 = vpop.permute.xlu0 %2332  ;;  %5233 = vmatpush1.bf16.msra.mxu1 %v3831_v53  ;;  %5634 = vmatprep.mubr.bf16.mxu0 %v6755_v17  ;;  %v190_v17 = vld [vmem:[%s11269_s0 + $0x558] sm:$0xff]  ;;  %v6761_v16 = vld [vmem:[%s11270_s1 + $0x3cc] ss:$52 sps:$4 sm:$0xff]  }
 0x358   :  { %v10361_v63 = vpack.c.bf16 %v3541_v15, %v3539_v22  ;;  %v2957_v31 = vadd.f32 %v2333_v36, %v1769_v62  ;;  %v2958_v21 = vadd.f32 %v2333_v36, %v1770_v45  ;;  %v10363_v54 = vpack.c.bf16 %v3542_v0, %v3540_v27  ;;  %3990 = vperm.xlu1 %6639, %v3952_v33   ;;  %v11742_v22 = vld [vmem:[#allocation59_spill] sm:$0xff]  ;;  %v379_v62 = vld [vmem:[%s11269_s0 + $0xb40] sm:$0xff]  ;;  %v380_v45 = vld [vmem:[%s11269_s0 + $0xb48] sm:$0xff] }
 0x359   :  { %v3351_v8 = vmax.f32 %v2955_v57, 0.0  ;;  %v3352_v60 = vmax.f32 %v2956_v56, 0.0  ;;  %v1771_v27 = vmul.f32 %v11742_v22, %v187_v49  ;;  %v1772_v5 = vmul.f32 %v11742_v22, %v188_v51  ;;  %3980 = vperm.xlu0 %6640, %v3950_v32   ;;  %v11743_v0 = vld [vmem:[#allocation58_spill] sm:$0xff]  ;;  %v3961_v56 = vld [vmem:[%s11272_s3 + $0x60] sm:$0xff]  ;;  %v11745_v33 = vld [vmem:[#allocation152_spill] sm:$0xff] }
 0x35a   :  { %v3353_v41 = vmax.f32 %v2957_v31, 0.0  ;;  %v3354_v55 = vmax.f32 %v2958_v21, 0.0  ;;  %5691 = vmatprep.subr.bf16.mxu0 %v10363_v54  ;;  %v2713_v23 = vpop.permute.xlu1 %2712  ;;  %5186 = vmatmul.mubr.bf16.gmra.mrb[36].mxu1 %v6778_v13  ;;  %v1773_v10 = vmul.f32 %v11743_v0, %v189_v9  ;;  %v1774_v13 = vmul.f32 %v11743_v0, %v190_v17  ;;  %v6781_v57 = vld [vmem:[%s11270_s1 + $0x418] ss:$52 sps:$4 sm:$0xff]   ;;  %v3953_v36 = vld [vmem:[%s11272_s3 + $0x20] sm:$0xff] }
 0x35b   :  { %v3147_v53 = vadd.f32 %v2713_v23, %v1959_v6  ;;  %v3148_v52 = vadd.f32 %v2713_v23, %v1960_v3  ;;  %v2717_v24 = vpop.permute.xlu0 %2716  ;;  %5692 = vmatpush1.bf16.msra.mxu0 %v10361_v63  ;;  %5195 = vmatprep.mubr.bf16.mxu1 %v6779_v2  ;;  %v381_v2 = vld [vmem:[%s11269_s0 + $0xb50] sm:$0xff]  ;;  %v382_v31 = vld [vmem:[%s11269_s0 + $0xb58] sm:$0xff]  ;;  %v191_v14 = vld [vmem:[%s11269_s0 + $0x560] sm:$0xff] }
 0x35c   :  { %v3833_v46 = vpack.c.bf16 %v3353_v41, %v3351_v8  ;;  %v3149_v1 = vadd.f32 %v2717_v24, %v1961_v11  ;;  %v3150_v34 = vadd.f32 %v2717_v24, %v1962_v30  ;;  %v3834_v19 = vpack.c.bf16 %v3354_v55, %v3352_v60  ;;  %4035 = vperm.xlu1 %6639, %v3961_v56   ;;  %v192_v11 = vld [vmem:[%s11269_s0 + $0x568] sm:$0xff]  ;;  %v11744_v30 = vld [vmem:[#allocation153_spill] sm:$0xff]  ;;  %v11747_v56 = vld [vmem:[#allocation60_spill] sm:$0xff] }
 0x35d   :  { %v3543_v59 = vmax.f32 %v3147_v53, 0.0  ;;  %v3544_v15 = vmax.f32 %v3148_v52, 0.0  ;;  %v1963_v41 = vmul.f32 %v11744_v30, %v379_v62  ;;  %v1964_v55 = vmul.f32 %v11744_v30, %v380_v45  ;;  %3995 = vperm.xlu0 %6640, %v3953_v36   ;;  %v6763_v24 = vld [vmem:[%s11270_s1 + $0x3c8] ss:$52 sps:$4 sm:$0xff]   ;;  %v11746_v0 = vld [vmem:[#allocation61_spill] sm:$0xff] }
 0x35e   :  { %v3545_v42 = vmax.f32 %v3149_v1, 0.0  ;;  %v3546_v39 = vmax.f32 %v3150_v34, 0.0  ;;  %5234 = vmatprep.subr.bf16.mxu1 %v3834_v19  ;;  %5635 = vmatmul.mubr.bf16.gmra.mrb[32].mxu0 %v6757_v47  ;;  %v2337_v37 = vpop.permute.xlu1 %2336  ;;  %v1965_v32 = vmul.f32 %v11745_v33, %v381_v2  ;;  %v1966_v9 = vmul.f32 %v11745_v33, %v382_v31  ;;  %v193_v1 = vld [vmem:[%s11269_s0 + $0x570] sm:$0xff]  ;;  %v194_v34 = vld [vmem:[%s11269_s0 + $0x578] sm:$0xff] }
 0x35f   :  { %v2959_v21 = vadd.f32 %v2337_v37, %v1771_v27  ;;  %v2960_v49 = vadd.f32 %v2337_v37, %v1772_v5  ;;  %v2341_v51 = vpop.permute.xlu0 %2340  ;;  %5235 = vmatpush1.bf16.msra.mxu1 %v3833_v46  ;;  %5644 = vmatprep.mubr.bf16.mxu0 %v6761_v16  ;;  %v3963_v16 = vld [vmem:[%s11272_s3 + $0x70] sm:$0xff]  ;;  %v3962_v46 = vld [vmem:[%s11272_s3 + $0x68] sm:$0xff]  ;;  %v1777_v36 = vmul.f32 %v11747_v56, %v193_v1 }
 0x360   :  { %v10423_v6 = vpack.c.bf16 %v3545_v42, %v3543_v59  ;;  %v2961_v3 = vadd.f32 %v2341_v51, %v1773_v10  ;;  %v2962_v8 = vadd.f32 %v2341_v51, %v1774_v13  ;;  %v10425_v60 = vpack.c.bf16 %v3546_v39, %v3544_v15  ;;  %v6767_v5 = vld [vmem:[%s11270_s1 + $0x434] ss:$52 sps:$4 sm:$0xff]   ;;  %4045 = vperm.xlu1 %6639, %v3963_v16   ;;  %v383_v42 = vld [vmem:[%s11269_s0 + $0xb60] sm:$0xff] }
 0x361   :  { %v3355_v23 = vmax.f32 %v2959_v21, 0.0  ;;  %v3356_v47 = vmax.f32 %v2960_v49, 0.0  ;;  %v1775_v10 = vmul.f32 %v11746_v0, %v191_v14  ;;  %v1776_v13 = vmul.f32 %v11746_v0, %v192_v11  ;;  %v384_v39 = vld [vmem:[%s11269_s0 + $0xb68] sm:$0xff]  ;;  %4040 = vperm.xlu0 %6640, %v3962_v46   ;;  %v6784_v51 = vld [vmem:[%s11270_s1 + $0x480] ss:$52 sps:$4 sm:$0xff]   ;;  %v386_v14 = vld [vmem:[%s11269_s0 + $0xb78] sm:$0xff] }
 0x362   :  { %v3357_v17 = vmax.f32 %v2961_v3, 0.0  ;;  %v3358_v53 = vmax.f32 %v2962_v8, 0.0  ;;  %5693 = vmatprep.subr.bf16.mxu0 %v10425_v60  ;;  %v2721_v52 = vpop.permute.xlu1 %2720  ;;  %5196 = vmatmul.mubr.bf16.gmra.mrb[40].mxu1 %v6781_v57  ;;  %v1778_v2 = vmul.f32 %v11747_v56, %v194_v34  ;;  %v3964_v3 = vld [vmem:[%s11272_s3 + $0x78] sm:$0xff]  ;;  %v385_v8 = vld [vmem:[%s11269_s0 + $0xb70] sm:$0xff]  ;;  %v11749_v1 = vld [vmem:[#allocation154_spill] sm:$0xff] }
 0x363   :  { %v3151_v19 = vadd.f32 %v2721_v52, %v1963_v41  ;;  %v3152_v22 = vadd.f32 %v2721_v52, %v1964_v55  ;;  %v2725_v27 = vpop.permute.xlu0 %2724  ;;  %5694 = vmatpush1.bf16.msra.mxu0 %v10423_v6  ;;  %5205 = vmatprep.mubr.bf16.mxu1 %v6782_v18  ;;  %v3965_v18 = vld [vmem:[%s11272_s3 + $0x80] sm:$0xff]  ;;  %v6787_v55 = vld [vmem:[%s11270_s1 + $0x14] ss:$52 sps:$4 sm:$0xff]   ;;  %v1969_v34 = vmul.f32 %v11749_v1, %v385_v8  ;;  %v198_v0 = vld [vmem:[%s11269_s0 + $0x598] sm:$0xff] }
 0x364   :  { %v3835_v62 = vpack.c.bf16 %v3357_v17, %v3355_v23  ;;  %v3153_v45 = vadd.f32 %v2725_v27, %v1965_v32  ;;  %v3154_v59 = vadd.f32 %v2725_v27, %v1966_v9  ;;  %v3836_v15 = vpack.c.bf16 %v3358_v53, %v3356_v47  ;;  %4055 = vperm.xlu1 %6639, %v3965_v18   ;;  %v195_v9 = vld [vmem:[%s11269_s0 + $0x580] sm:$0xff]  ;;  %v196_v17 = vld [vmem:[%s11269_s0 + $0x588] sm:$0xff]  ;;  %v11748_v53 = vld [vmem:[#allocation155_spill] sm:$0xff] }
 0x365   :  { %v3547_v37 = vmax.f32 %v3151_v19, 0.0  ;;  %v3548_v57 = vmax.f32 %v3152_v22, 0.0  ;;  %v1967_v52 = vmul.f32 %v11748_v53, %v383_v42  ;;  %4050 = vperm.xlu0 %6640, %v3964_v3   ;;  %v1970_v19 = vmul.f32 %v11749_v1, %v386_v14  ;;  %v11751_v3 = vld [vmem:[#allocation62_spill] sm:$0xff] }
 0x366   :  { %v3549_v31 = vmax.f32 %v3153_v45, 0.0  ;;  %v3550_v21 = vmax.f32 %v3154_v59, 0.0  ;;  %5236 = vmatprep.subr.bf16.mxu1 %v3836_v15  ;;  %5645 = vmatmul.mubr.bf16.gmra.mrb[36].mxu0 %v6763_v24  ;;  %v2345_v49 = vpop.permute.xlu1 %2344  ;;  %v1968_v24 = vmul.f32 %v11748_v53, %v384_v39  ;;  %v3967_v45 = vld [vmem:[%s11272_s3 + $0x90] sm:$0xff]  ;;  %v3966_v59 = vld [vmem:[%s11272_s3 + $0x88] sm:$0xff]  ;;  %v1782_v14 = vmul.f32 %v11751_v3, %v198_v0 }
 0x367   :  { %v2963_v11 = vadd.f32 %v2345_v49, %v1775_v10  ;;  %v2964_v30 = vadd.f32 %v2345_v49, %v1776_v13  ;;  %v2349_v41 = vpop.permute.xlu0 %2348  ;;  %5237 = vmatpush1.bf16.msra.mxu1 %v3835_v62  ;;  %5654 = vmatprep.mubr.bf16.mxu0 %v6767_v5  ;;  %v6769_v62 = vld [vmem:[%s11270_s1 + $0x430] ss:$52 sps:$4 sm:$0xff]  }
 0x368   :  { %v10485_v23 = vpack.c.bf16 %v3549_v31, %v3547_v37  ;;  %v2965_v47 = vadd.f32 %v2349_v41, %v1777_v36  ;;  %v2966_v33 = vadd.f32 %v2349_v41, %v1778_v2  ;;  %v10487_v32 = vpack.c.bf16 %v3550_v21, %v3548_v57  ;;  %v197_v15 = vld [vmem:[%s11269_s0 + $0x590] sm:$0xff]  ;;  %4065 = vperm.xlu1 %6639, %v3967_v45   ;;  %v387_v49 = vld [vmem:[%s11269_s0 + $0xb80] sm:$0xff] }
 0x369   :  { %v3359_v16 = vmax.f32 %v2963_v11, 0.0  ;;  %v3360_v46 = vmax.f32 %v2964_v30, 0.0  ;;  %v6773_v39 = vld [vmem:[%s11270_s1 + $0x49c] ss:$52 sps:$4 sm:$0xff]   ;;  %4060 = vperm.xlu0 %6640, %v3966_v59   ;;  %v1781_v8 = vmul.f32 %v11751_v3, %v197_v15  ;;  %v388_v11 = vld [vmem:[%s11269_s0 + $0xb88] sm:$0xff] }
 0x36a   :  { %v3361_v22 = vmax.f32 %v2965_v47, 0.0  ;;  %v3362_v27 = vmax.f32 %v2966_v33, 0.0  ;;  %5695 = vmatprep.subr.bf16.mxu0 %v10487_v32  ;;  %v2729_v5 = vpop.permute.xlu1 %2728  ;;  %5206 = vmatmul.mubr.bf16.gmra.mrb[44].mxu1 %v6784_v51  ;;  %v11750_v2 = vld [vmem:[#allocation63_spill] sm:$0xff]  ;;  %v3969_v47 = vld [vmem:[%s11272_s3 + $0xa0] sm:$0xff]  ;;  %v3968_v33 = vld [vmem:[%s11272_s3 + $0x98] sm:$0xff] }
 0x36b   :  { %v3155_v10 = vadd.f32 %v2729_v5, %v1967_v52  ;;  %v3156_v13 = vadd.f32 %v2729_v5, %v1968_v24  ;;  %v2733_v42 = vpop.permute.xlu0 %2732  ;;  %5696 = vmatpush1.bf16.msra.mxu0 %v10485_v23  ;;  %5248 = vmatprep.mubr.bf16.mxu1 %v6787_v55  ;;  %v1779_v31 = vmul.f32 %v11750_v2, %v195_v9  ;;  %v389_v9 = vld [vmem:[%s11269_s0 + $0xb90] sm:$0xff]  ;;  %v11753_v15 = vld [vmem:[#allocation156_spill] sm:$0xff] }
 0x36c   :  { %v3837_v37 = vpack.c.bf16 %v3361_v22, %v3359_v16  ;;  %v3157_v57 = vadd.f32 %v2733_v42, %v1969_v34  ;;  %v3158_v56 = vadd.f32 %v2733_v42, %v1970_v19  ;;  %v3838_v36 = vpack.c.bf16 %v3362_v27, %v3360_v46  ;;  %4075 = vperm.xlu1 %6639, %v3969_v47   ;;  %v199_v19 = vld [vmem:[%s11269_s0 + $0x5a0] sm:$0xff]  ;;  %v200_v22 = vld [vmem:[%s11269_s0 + $0x5a8] sm:$0xff] }
 0x36d   :  { %v1780_v21 = vmul.f32 %v11750_v2, %v196_v17  ;;  %v3551_v51 = vmax.f32 %v3155_v10, 0.0  ;;  %v3552_v18 = vmax.f32 %v3156_v13, 0.0  ;;  %v390_v17 = vld [vmem:[%s11269_s0 + $0xb98] sm:$0xff]  ;;  %v11752_v27 = vld [vmem:[#allocation157_spill] sm:$0xff]  ;;  %4070 = vperm.xlu0 %6640, %v3968_v33   ;;  %v1973_v0 = vmul.f32 %v11753_v15, %v389_v9 }
 0x36e   :  { %v3553_v30 = vmax.f32 %v3157_v57, 0.0  ;;  %v3554_v41 = vmax.f32 %v3158_v56, 0.0  ;;  %5238 = vmatprep.subr.bf16.mxu1 %v3838_v36  ;;  %5655 = vmatmul.mubr.bf16.gmra.mrb[40].mxu0 %v6769_v62  ;;  %v2353_v55 = vpop.permute.xlu1 %2352  ;;  %v1971_v5 = vmul.f32 %v11752_v27, %v387_v49  ;;  %v1972_v62 = vmul.f32 %v11752_v27, %v388_v11  ;;  %v3971_v57 = vld [vmem:[%s11272_s3 + $0xb0] sm:$0xff]  ;;  %v3970_v56 = vld [vmem:[%s11272_s3 + $0xa8] sm:$0xff]  ;;  %v202_v2 = vld [vmem:[%s11269_s0 + $0x5b8] sm:$0xff] }
 0x36f   :  { %v2967_v53 = vadd.f32 %v2353_v55, %v1779_v31  ;;  %v2968_v52 = vadd.f32 %v2353_v55, %v1780_v21  ;;  %v2357_v24 = vpop.permute.xlu0 %2356  ;;  %5239 = vmatpush1.bf16.msra.mxu1 %v3837_v37  ;;  %5664 = vmatprep.mubr.bf16.mxu0 %v6773_v39  ;;  %v1974_v10 = vmul.f32 %v11753_v15, %v390_v17  ;;  %v6775_v37 = vld [vmem:[%s11270_s1 + $0x498] ss:$52 sps:$4 sm:$0xff]   ;;  %v201_v36 = vld [vmem:[%s11269_s0 + $0x5b0] sm:$0xff]  ;;  %v11754_v11 = vld [vmem:[#allocation65_spill] sm:$0xff] }
 0x370   :  { %v10541_v16 = vpack.c.bf16 %v3553_v30, %v3551_v51  ;;  %v2969_v46 = vadd.f32 %v2357_v24, %v1781_v8  ;;  %v2970_v1 = vadd.f32 %v2357_v24, %v1782_v14  ;;  %v10543_v34 = vpack.c.bf16 %v3554_v41, %v3552_v18  ;;  %v6790_v51 = vld [vmem:[%s11270_s1 + $0x2c] ss:$52 sps:$4 sm:$0xff]   ;;  %4085 = vperm.xlu1 %6639, %v3971_v57   ;;  %v11755_v9 = vld [vmem:[#allocation64_spill] sm:$0xff]  ;;  %v393_v27 = vld [vmem:[%s11269_s0 + $0xbb0] sm:$0xff] }
 0x371   :  { %v3363_v45 = vmax.f32 %v2967_v53, 0.0  ;;  %v3364_v59 = vmax.f32 %v2968_v52, 0.0  ;;  %v1783_v30 = vmul.f32 %v11754_v11, %v199_v19  ;;  %v1784_v41 = vmul.f32 %v11754_v11, %v200_v22  ;;  %v391_v55 = vld [vmem:[%s11269_s0 + $0xba0] sm:$0xff]  ;;  %4080 = vperm.xlu0 %6640, %v3970_v56   ;;  %v392_v52 = vld [vmem:[%s11269_s0 + $0xba8] sm:$0xff]  ;;  %v3972_v22 = vld [vmem:[%s11272_s3 + $0xb8] sm:$0xff] }
 0x372   :  { %v3365_v13 = vmax.f32 %v2969_v46, 0.0  ;;  %v3366_v42 = vmax.f32 %v2970_v1, 0.0  ;;  %5697 = vmatprep.subr.bf16.mxu0 %v10543_v34  ;;  %v2737_v39 = vpop.permute.xlu1 %2736  ;;  %v1785_v17 = vmul.f32 %v11755_v9, %v201_v36  ;;  %v1786_v53 = vmul.f32 %v11755_v9, %v202_v2  ;;  %v3954_v19 = vld [vmem:[%s11272_s3 + $0x28] sm:$0xff]  ;;  %v203_v36 = vld [vmem:[%s11269_s0 + $0x5c0] sm:$0xff]  ;;  %v206_v11 = vld [vmem:[%s11269_s0 + $0x5d8] sm:$0xff] }
 0x373   :  { %v3159_v31 = vadd.f32 %v2737_v39, %v1971_v5  ;;  %v3160_v21 = vadd.f32 %v2737_v39, %v1972_v62  ;;  %v2741_v49 = vpop.permute.xlu0 %2740  ;;  %5698 = vmatpush1.bf16.msra.mxu0 %v10541_v16  ;;  %v394_v5 = vld [vmem:[%s11269_s0 + $0xbb8] sm:$0xff]  ;;  %v204_v2 = vld [vmem:[%s11269_s0 + $0x5c8] sm:$0xff] }
 0x374   :  { %v3839_v18 = vpack.c.bf16 %v3365_v13, %v3363_v45  ;;  %v3161_v3 = vadd.f32 %v2741_v49, %v1973_v0  ;;  %v3162_v8 = vadd.f32 %v2741_v49, %v1974_v10  ;;  %v3840_v14 = vpack.c.bf16 %v3366_v42, %v3364_v59  ;;  %4000 = vperm.xlu1 %6639, %v3954_v19   ;;  %v11756_v42 = vld [vmem:[#allocation159_spill] sm:$0xff]  ;;  %v11759_v19 = vld [vmem:[#allocation66_spill] sm:$0xff] }
 0x375   :  { %v3555_v47 = vmax.f32 %v3159_v31, 0.0  ;;  %v3556_v33 = vmax.f32 %v3160_v21, 0.0  ;;  %v1975_v39 = vmul.f32 %v11756_v42, %v391_v55  ;;  %4090 = vperm.xlu0 %6640, %v3972_v22   ;;  %v11757_v31 = vld [vmem:[#allocation158_spill] sm:$0xff] }
 0x376   :  { %v3557_v24 = vmax.f32 %v3161_v3, 0.0  ;;  %v3558_v46 = vmax.f32 %v3162_v8, 0.0  ;;  %5240 = vmatprep.subr.bf16.mxu1 %v3840_v14  ;;  %5665 = vmatmul.mubr.bf16.gmra.mrb[44].mxu0 %v6775_v37  ;;  %v2361_v1 = vpop.permute.xlu1 %2360  ;;  %v1976_v37 = vmul.f32 %v11756_v42, %v392_v52  ;;  %v1977_v21 = vmul.f32 %v11757_v31, %v393_v27  ;;  %v3955_v8 = vld [vmem:[%s11272_s3 + $0x30] sm:$0xff] }
 0x377   :  { %v2971_v62 = vadd.f32 %v2361_v1, %v1783_v30  ;;  %v2972_v45 = vadd.f32 %v2361_v1, %v1784_v41  ;;  %v2365_v59 = vpop.permute.xlu0 %2364  ;;  %5241 = vmatpush1.bf16.msra.mxu1 %v3839_v18  ;;  %5707 = vmatprep.mubr.bf16.mxu0 %v6790_v51  ;;  %v1978_v49 = vmul.f32 %v11757_v31, %v394_v5  ;;  %v205_v14 = vld [vmem:[%s11269_s0 + $0x5d0] sm:$0xff]  ;;  %v395_v5 = vld [vmem:[%s11269_s0 + $0xbc0] sm:$0xff] }
 0x378   :  { %v10597_v15 = vpack.c.bf16 %v3557_v24, %v3555_v47  ;;  %v2973_v0 = vadd.f32 %v2365_v59, %v1785_v17  ;;  %v2974_v10 = vadd.f32 %v2365_v59, %v1786_v53  ;;  %v10599_v13 = vpack.c.bf16 %v3558_v46, %v3556_v33  ;;  %v11758_v53 = vld [vmem:[#allocation67_spill] sm:$0xff] }
 0x379   :  { %v3367_v57 = vmax.f32 %v2971_v62, 0.0  ;;  %v3368_v56 = vmax.f32 %v2972_v45, 0.0  ;;  %v1787_v52 = vmul.f32 %v11758_v53, %v203_v36  ;;  %v1788_v24 = vmul.f32 %v11758_v53, %v204_v2  ;;  %4005 = vperm.xlu0 %6640, %v3955_v8   ;;  %v396_v62 = vld [vmem:[%s11269_s0 + $0xbc8] sm:$0xff]  ;;  %v397_v42 = vld [vmem:[%s11269_s0 + $0xbd0] sm:$0xff] }
 0x37a   :  { %v3369_v51 = vmax.f32 %v2973_v0, 0.0  ;;  %v3370_v18 = vmax.f32 %v2974_v10, 0.0  ;;  %5699 = vmatprep.subr.bf16.mxu0 %v10599_v13  ;;  %v2745_v3 = vpop.permute.xlu1 %2744  ;;  %v1789_v22 = vmul.f32 %v11759_v19, %v205_v14  ;;  %v1790_v27 = vmul.f32 %v11759_v19, %v206_v11  ;;  %v3956_v10 = vld [vmem:[%s11272_s3 + $0x38] sm:$0xff]  ;;  %v207_v14 = vld [vmem:[%s11269_s0 + $0x5e0] sm:$0xff]  ;;  %v208_v11 = vld [vmem:[%s11269_s0 + $0x5e8] sm:$0xff] }
 0x37b   :  { %v3163_v30 = vadd.f32 %v2745_v3, %v1975_v39  ;;  %v3164_v41 = vadd.f32 %v2745_v3, %v1976_v37  ;;  %v2749_v55 = vpop.permute.xlu0 %2748  ;;  %5700 = vmatpush1.bf16.msra.mxu0 %v10597_v15  ;;  %v398_v39 = vld [vmem:[%s11269_s0 + $0xbd8] sm:$0xff]  ;;  %4010 = vperm.xlu1 %6639, %v3956_v10   ;;  %v209_v53 = vld [vmem:[%s11269_s0 + $0x5f0] sm:$0xff] }
 0x37c   :  { %v3841_v47 = vpack.c.bf16 %v3369_v51, %v3367_v57  ;;  %v3165_v33 = vadd.f32 %v2749_v55, %v1977_v21  ;;  %v3166_v9 = vadd.f32 %v2749_v55, %v1978_v49  ;;  %v3842_v17 = vpack.c.bf16 %v3370_v18, %v3368_v56  ;;  %v11760_v49 = vld [vmem:[#allocation161_spill] sm:$0xff] }
 0x37d   :  { %v3559_v46 = vmax.f32 %v3163_v30, 0.0  ;;  %v3560_v1 = vmax.f32 %v3164_v41, 0.0  ;;  %v1979_v51 = vmul.f32 %v11760_v49, %v395_v5  ;;  %v1980_v18 = vmul.f32 %v11760_v49, %v396_v62  ;;  %v11761_v30 = vld [vmem:[#allocation160_spill] sm:$0xff]  ;;  %v11762_v62 = vld [vmem:[#allocation69_spill] sm:$0xff] }
 0x37e   :  { %v3561_v45 = vmax.f32 %v3165_v33, 0.0  ;;  %v3562_v59 = vmax.f32 %v3166_v9, 0.0  ;;  %5242 = vmatprep.subr.bf16.mxu1 %v3842_v17  ;;  %v2369_v0 = vpop.permute.xlu1 %2368  ;;  %v1981_v41 = vmul.f32 %v11761_v30, %v397_v42  ;;  %v1982_v55 = vmul.f32 %v11761_v30, %v398_v39  ;;  %v3957_v17 = vld [vmem:[%s11272_s3 + $0x40] sm:$0xff]  ;;  %v11763_v42 = vld [vmem:[#allocation68_spill] sm:$0xff] }
 0x37f   :  { %v2975_v37 = vadd.f32 %v2369_v0, %v1787_v52  ;;  %v2976_v57 = vadd.f32 %v2369_v0, %v1788_v24  ;;  %v2373_v56 = vpop.permute.xlu0 %2372  ;;  %5243 = vmatpush1.bf16.msra.mxu1 %v3841_v47  ;;  %v210_v52 = vld [vmem:[%s11269_s0 + $0x5f8] sm:$0xff]  ;;  %4015 = vperm.xlu0 %6640, %v3957_v17   ;;  %v1793_v39 = vmul.f32 %v11763_v42, %v209_v53 }
 0x380   :  { %v10641_v36 = vpack.c.bf16 %v3561_v45, %v3559_v46  ;;  %v2977_v2 = vadd.f32 %v2373_v56, %v1789_v22  ;;  %v2978_v31 = vadd.f32 %v2373_v56, %v1790_v27  ;;  %v10643_v21 = vpack.c.bf16 %v3562_v59, %v3560_v1  ;;  %v400_v56 = vld [vmem:[%s11269_s0 + $0xbe8] sm:$0xff] }
 0x381   :  { %v3371_v3 = vmax.f32 %v2975_v37, 0.0  ;;  %v3372_v8 = vmax.f32 %v2976_v57, 0.0  ;;  %v1791_v45 = vmul.f32 %v11762_v62, %v207_v14  ;;  %v1792_v59 = vmul.f32 %v11762_v62, %v208_v11  ;;  %v399_v57 = vld [vmem:[%s11269_s0 + $0xbe0] sm:$0xff] }
 0x382   :  { %v3373_v47 = vmax.f32 %v2977_v2, 0.0  ;;  %v3374_v33 = vmax.f32 %v2978_v31, 0.0  ;;  %5701 = vmatprep.subr.bf16.mxu0 %v10643_v21  ;;  %v2753_v9 = vpop.permute.xlu1 %2752  ;;  %v1794_v37 = vmul.f32 %v11763_v42, %v210_v52 }
 0x383   :  { %v3167_v24 = vadd.f32 %v2753_v9, %v1979_v51  ;;  %v3168_v46 = vadd.f32 %v2753_v9, %v1980_v18  ;;  %v2757_v1 = vpop.permute.xlu0 %2756  ;;  %5702 = vmatpush1.bf16.msra.mxu0 %v10641_v36  ;;  %v3958_v51 = vld [vmem:[%s11272_s3 + $0x48] sm:$0xff]  ;;  %v401_v18 = vld [vmem:[%s11269_s0 + $0xbf0] sm:$0xff] }
 0x384   :  { %v3843_v19 = vpack.c.bf16 %v3373_v47, %v3371_v3  ;;  %v3169_v22 = vadd.f32 %v2757_v1, %v1981_v41  ;;  %v3170_v27 = vadd.f32 %v2757_v1, %v1982_v55  ;;  %v3844_v5 = vpack.c.bf16 %v3374_v33, %v3372_v8  ;;  %v402_v3 = vld [vmem:[%s11269_s0 + $0xbf8] sm:$0xff]  ;;  %4020 = vperm.xlu1 %6639, %v3958_v51   ;;  %v11764_v33 = vld [vmem:[#allocation163_spill] sm:$0xff] }
 0x385   :  { %v3563_v0 = vmax.f32 %v3167_v24, 0.0  ;;  %v3564_v10 = vmax.f32 %v3168_v46, 0.0  ;;  %v1983_v9 = vmul.f32 %v11764_v33, %v399_v57  ;;  %v1984_v17 = vmul.f32 %v11764_v33, %v400_v56  ;;  %v11765_v24 = vld [vmem:[#allocation162_spill] sm:$0xff] }
 0x386   :  { %v3565_v2 = vmax.f32 %v3169_v22, 0.0  ;;  %v3566_v31 = vmax.f32 %v3170_v27, 0.0  ;;  %5244 = vmatprep.subr.bf16.mxu1 %v3844_v5  ;;  %v2377_v49 = vpop.permute.xlu1 %2376  ;;  %v1985_v46 = vmul.f32 %v11765_v24, %v401_v18  ;;  %v1986_v1 = vmul.f32 %v11765_v24, %v402_v3  ;;  %v404_v22 = vld [vmem:[%s11269_s0 + $0xc08] sm:$0xff]  ;;  %v407_v18 = vld [vmem:[%s11269_s0 + $0xc20] sm:$0xff]  ;;  %v409_v24 = vld [vmem:[%s11269_s0 + $0xc30] sm:$0xff] }
 0x387   :  { %v2979_v8 = vadd.f32 %v2377_v49, %v1791_v45  ;;  %v2980_v14 = vadd.f32 %v2377_v49, %v1792_v59  ;;  %v2381_v11 = vpop.permute.xlu0 %2380  ;;  %5245 = vmatpush1.bf16.msra.mxu1 %v3843_v19  ;;  %v403_v19 = vld [vmem:[%s11269_s0 + $0xc00] sm:$0xff]  ;;  %v3959_v45 = vld [vmem:[%s11272_s3 + $0x50] sm:$0xff] }
 0x388   :  { %v10685_v30 = vpack.c.bf16 %v3565_v2, %v3563_v0  ;;  %v2981_v41 = vadd.f32 %v2381_v11, %v1793_v39  ;;  %v2982_v55 = vadd.f32 %v2381_v11, %v1794_v37  ;;  %v10687_v47 = vpack.c.bf16 %v3566_v31, %v3564_v10  ;;  %v405_v59 = vld [vmem:[%s11269_s0 + $0xc10] sm:$0xff]  ;;  %v406_v0 = vld [vmem:[%s11269_s0 + $0xc18] sm:$0xff]  ;;  %4025 = vperm.xlu0 %6640, %v3959_v45   ;;  %v11766_v31 = vld [vmem:[#allocation165_spill] sm:$0xff] }
 0x389   :  { %v3375_v53 = vmax.f32 %v2979_v8, 0.0  ;;  %v3376_v52 = vmax.f32 %v2980_v14, 0.0  ;;  %v1987_v49 = vmul.f32 %v11766_v31, %v403_v19  ;;  %v1988_v51 = vmul.f32 %v11766_v31, %v404_v22  ;;  %v11767_v14 = vld [vmem:[#allocation164_spill] sm:$0xff]  ;;  %v412_v31 = vld [vmem:[%s11269_s0 + $0xc48] sm:$0xff] }
 0x38a   :  { %v3377_v27 = vmax.f32 %v2981_v41, 0.0  ;;  %v3378_v5 = vmax.f32 %v2982_v55, 0.0  ;;  %5703 = vmatprep.subr.bf16.mxu0 %v10687_v47  ;;  %v2761_v62 = vpop.permute.xlu1 %2760  ;;  %v1989_v11 = vmul.f32 %v11767_v14, %v405_v59  ;;  %v1990_v41 = vmul.f32 %v11767_v14, %v406_v0  ;;  %v408_v55 = vld [vmem:[%s11269_s0 + $0xc28] sm:$0xff]  ;;  %v11768_v59 = vld [vmem:[#allocation167_spill] sm:$0xff]  ;;  %v414_v14 = vld [vmem:[%s11269_s0 + $0xc58] sm:$0xff] }
 0x38b   :  { %v3171_v10 = vadd.f32 %v2761_v62, %v1983_v9  ;;  %v3172_v42 = vadd.f32 %v2761_v62, %v1984_v17  ;;  %v2765_v39 = vpop.permute.xlu0 %2764  ;;  %5704 = vmatpush1.bf16.msra.mxu0 %v10685_v30  ;;  %v1991_v0 = vmul.f32 %v11768_v59, %v407_v18 }
 0x38c   :  { %v3845_v37 = vpack.c.bf16 %v3377_v27, %v3375_v53  ;;  %v3173_v57 = vadd.f32 %v2765_v39, %v1985_v46  ;;  %v3174_v56 = vadd.f32 %v2765_v39, %v1986_v1  ;;  %v3846_v2 = vpack.c.bf16 %v3378_v5, %v3376_v52  ;;  %v6785_v53 = vld [vmem:[%s11270_s1 + $0x10] ss:$52 sps:$4 sm:$0xff]   ;;  %v3960_v52 = vld [vmem:[%s11272_s3 + $0x58] sm:$0xff] }
 0x38d   :  { %v3567_v3 = vmax.f32 %v3171_v10, 0.0  ;;  %v3568_v8 = vmax.f32 %v3172_v42, 0.0  ;;  %v410_v46 = vld [vmem:[%s11269_s0 + $0xc38] sm:$0xff]  ;;  %4030 = vperm.xlu1 %6639, %v3960_v52   ;;  %v1992_v10 = vmul.f32 %v11768_v59, %v408_v55  ;;  %v11770_v52 = vld [vmem:[#allocation169_spill] sm:$0xff] }
 0x38e   :  { %v3569_v33 = vmax.f32 %v3173_v57, 0.0  ;;  %v3570_v9 = vmax.f32 %v3174_v56, 0.0  ;;  %5246 = vmatprep.subr.bf16.mxu1 %v3846_v2  ;;  %v2769_v17 = vpop.permute.xlu1 %2768  ;;  %v6791_v57 = vld [vmem:[%s11270_s1 + $0x7c] ss:$52 sps:$4 sm:$0xff]  }
 0x38f   :  { %v3175_v1 = vadd.f32 %v2769_v17, %v1987_v49  ;;  %v3176_v19 = vadd.f32 %v2769_v17, %v1988_v51  ;;  %v2773_v22 = vpop.permute.xlu0 %2772  ;;  %5247 = vmatpush1.bf16.msra.mxu1 %v3845_v37  ;;  %v11769_v37 = vld [vmem:[#allocation166_spill] sm:$0xff] }
 0x390   :  { %v10732_v27 = vpack.c.bf16 %v3569_v33, %v3567_v3  ;;  %v3177_v5 = vadd.f32 %v2773_v22, %v1989_v11  ;;  %v3178_v62 = vadd.f32 %v2773_v22, %v1990_v41  ;;  %6262 = vmatprep.subr.bf16.mxu1 %v9958_v35  ;;  %v10735_v45 = vpack.c.bf16 %v3570_v9, %v3568_v8  ;;  %v411_v35 = vld [vmem:[%s11269_s0 + $0xc40] sm:$0xff]  ;;  %v6788_v3 = vld [vmem:[%s11270_s1 + $0x28] ss:$52 sps:$4 sm:$0xff]   ;;  %v413_v8 = vld [vmem:[%s11269_s0 + $0xc50] sm:$0xff] }
 0x391   :  { %v3571_v42 = vmax.f32 %v3175_v1, 0.0  ;;  %v3572_v39 = vmax.f32 %v3176_v19, 0.0  ;;  %v1993_v56 = vmul.f32 %v11769_v37, %v409_v24  ;;  %v1994_v2 = vmul.f32 %v11769_v37, %v410_v46  ;;  %v6794_v22 = vld [vmem:[%s11270_s1 + $0x94] ss:$52 sps:$4 sm:$0xff]  }
 0x392   :  { %v3573_v49 = vmax.f32 %v3177_v5, 0.0  ;;  %v3574_v51 = vmax.f32 %v3178_v62, 0.0  ;;  %5249 = vmatmul.mubr.bf16.vlgmr.msra.gmra.mrb[0].mxu1 %v6785_v53  ;;  %5705 = vmatprep.subr.bf16.mxu0 %v10735_v45  ;;  %v2777_v18 = vpop.permute.xlu1 %2776  ;;  %v1995_v24 = vmul.f32 %v11770_v52, %v411_v35  ;;  %v1996_v46 = vmul.f32 %v11770_v52, %v412_v31  ;;  %v6797_v31 = vld [vmem:[%s11270_s1 + $0xe4] ss:$52 sps:$4 sm:$0xff]  }
 0x393   :  { %v3179_v11 = vadd.f32 %v2777_v18, %v1991_v0  ;;  %v3180_v41 = vadd.f32 %v2777_v18, %v1992_v10  ;;  %v2781_v55 = vpop.permute.xlu0 %2780  ;;  %6278 = vmatpush1.bf16.msra.mxu1 %v9982_v43  ;;  %5706 = vmatpush1.bf16.msra.mxu0 %v10732_v27  ;;  %v11771_v43 = vld [vmem:[#allocation168_spill] sm:$0xff] }
 0x394   :  { %v3943_v33 = vpack.c.bf16 %v3573_v49, %v3571_v42  ;;  %v3181_v9 = vadd.f32 %v2781_v55, %v1993_v56  ;;  %v3182_v17 = vadd.f32 %v2781_v55, %v1994_v2  ;;  %6263 = vmatprep.subr.bf16.mxu1 %v10007_v26  ;;  %v3944_v53 = vpack.c.bf16 %v3574_v51, %v3572_v39  ;;  %v6793_v10 = vld [vmem:[%s11270_s1 + $0x78] ss:$52 sps:$4 sm:$0xff]   ;;  %v6840_v55 = vld [vmem:[%s11270_s1 + $0x1d0] ss:$52 sps:$4 sm:$0xff]  }
 0x395   :  { %v3575_v1 = vmax.f32 %v3179_v11, 0.0  ;;  %v3576_v19 = vmax.f32 %v3180_v41, 0.0  ;;  %5258 = vmatprep.mubr.bf16.mxu1 %v6791_v57  ;;  %v1997_v5 = vmul.f32 %v11771_v43, %v413_v8  ;;  %v1998_v62 = vmul.f32 %v11771_v43, %v414_v14  ;;  %v6800_v14 = vld [vmem:[%s11270_s1 + $0xfc] ss:$52 sps:$4 sm:$0xff]   ;;  %v6799_v11 = vld [vmem:[%s11270_s1 + $0xe0] ss:$52 sps:$4 sm:$0xff]  }
 0x396   :  { %v3577_v59 = vmax.f32 %v3181_v9, 0.0  ;;  %v3578_v0 = vmax.f32 %v3182_v17, 0.0  ;;  %5708 = vmatmul.mubr.bf16.vlgmr.msra.gmra.mrb[0].mxu0 %v6788_v3  ;;  %5828 = vmatprep.subr.bf16.mxu0 %v3944_v53  ;;  %v2785_v26 = vpop.permute.xlu1 %2784  ;;  %v6809_v41 = vld [vmem:[%s11270_s1 + $0x1b4] ss:$52 sps:$4 sm:$0xff]   ;;  %v6847_v9 = vld [vmem:[%s11270_s1 + $0x29c] ss:$52 sps:$4 sm:$0xff]  }
 0x397   :  { %v3183_v42 = vadd.f32 %v2785_v26, %v1995_v24  ;;  %v3184_v39 = vadd.f32 %v2785_v26, %v1996_v46  ;;  %v2789_v57 = vpop.permute.xlu0 %2788  ;;  %6279 = vmatpush1.bf16.msra.mxu1 %v10005_v44  ;;  %5829 = vmatpush1.bf16.msra.mxu0 %v3943_v33  ;;  %v6796_v44 = vld [vmem:[%s11270_s1 + $0x90] ss:$52 sps:$4 sm:$0xff]   ;;  %v6843_v33 = vld [vmem:[%s11270_s1 + $0x488] ss:$52 sps:$4 sm:$0xff]   ;;  %v6844_v17 = vld [vmem:[%s11270_s1 + $0x238] ss:$52 sps:$4 sm:$0xff]  }
 0x398   :  { %v3945_v37 = vpack.c.bf16 %v3577_v59, %v3575_v1  ;;  %v3185_v56 = vadd.f32 %v2789_v57, %v1997_v5  ;;  %v3186_v2 = vadd.f32 %v2789_v57, %v1998_v62  ;;  %6264 = vmatprep.subr.bf16.mxu1 %v10057_v7  ;;  %v3946_v35 = vpack.c.bf16 %v3578_v0, %v3576_v19  ;;  %v6845_v53 = vld [vmem:[%s11270_s1 + $0x298] ss:$52 sps:$4 sm:$0xff]   ;;  %v6848_v24 = vld [vmem:[%s11270_s1 + $0x2a0] ss:$52 sps:$4 sm:$0xff]   ;;  %v6852_v19 = vld [vmem:[%s11270_s1 + $0x308] ss:$52 sps:$4 sm:$0xff]  }
 0x399   :  { %v3579_v49 = vmax.f32 %v3183_v42, 0.0  ;;  %v3580_v51 = vmax.f32 %v3184_v39, 0.0  ;;  %5717 = vmatprep.mubr.bf16.mxu0 %v6794_v22  ;;  %v6849_v52 = vld [vmem:[%s11270_s1 + $0x304] ss:$52 sps:$4 sm:$0xff]   ;;  %v6851_v46 = vld [vmem:[%s11270_s1 + $0x300] ss:$52 sps:$4 sm:$0xff]  }
 0x39a   :  { %v3581_v18 = vmax.f32 %v3185_v56, 0.0  ;;  %v3582_v3 = vmax.f32 %v3186_v2, 0.0  ;;  %5259 = vmatmul.mubr.bf16.gmra.mrb[4].mxu1 %v6793_v10  ;;  %5830 = vmatprep.subr.bf16.mxu0 %v3946_v35  ;;  %v6853_v1 = vld [vmem:[%s11270_s1 + $0x36c] ss:$52 sps:$4 sm:$0xff]   ;;  %v6855_v22 = vld [vmem:[%s11270_s1 + $0x368] ss:$52 sps:$4 sm:$0xff]  }
 0x39b   :  { %6280 = vmatpush1.bf16.msra.mxu1 %v10055_v25  ;;  %5831 = vmatpush1.bf16.msra.mxu0 %v3945_v37  ;;  %v6803_v25 = vld [vmem:[%s11270_s1 + $0x14c] ss:$52 sps:$4 sm:$0xff]   ;;  %v6857_v43 = vld [vmem:[%s11270_s1 + $0x3d4] ss:$52 sps:$4 sm:$0xff]   ;;  %v6856_v5 = vld [vmem:[%s11270_s1 + $0x370] ss:$52 sps:$4 sm:$0xff]  }
 0x39c   :  { %v3947_v7 = vpack.c.bf16 %v3581_v18, %v3579_v49  ;;  %6265 = vmatprep.subr.bf16.mxu1 %v10107_v50  ;;  %v3948_v8 = vpack.c.bf16 %v3582_v3, %v3580_v51  ;;  %5268 = vmatprep.mubr.bf16.mxu1 %v6797_v31  ;;  %v6802_v50 = vld [vmem:[%s11270_s1 + $0xf8] ss:$52 sps:$4 sm:$0xff]   ;;  %v6859_v62 = vld [vmem:[%s11270_s1 + $0x3d0] ss:$52 sps:$4 sm:$0xff]   ;;  %v6864_v42 = vld [vmem:[%s11270_s1 + $0x440] ss:$52 sps:$4 sm:$0xff]  }
 0x39d   :  { %v6861_v59 = vld [vmem:[%s11270_s1 + $0x43c] ss:$52 sps:$4 sm:$0xff]   ;;  %v6860_v0 = vld [vmem:[%s11270_s1 + $0x3d8] ss:$52 sps:$4 sm:$0xff]   ;;  %v6867_v39 = vld [vmem:[%s11270_s1 + $0x4a0] ss:$52 sps:$4 sm:$0xff]  }
 0x39e   :  { %5718 = vmatmul.mubr.bf16.gmra.mrb[4].mxu0 %v6796_v44  ;;  %5832 = vmatprep.subr.bf16.mxu0 %v3948_v8  ;;  %v6863_v26 = vld [vmem:[%s11270_s1 + $0x438] ss:$52 sps:$4 sm:$0xff]   ;;  %v6868_v57 = vld [vmem:[%s11270_s1 + $0x4a8] ss:$52 sps:$4 sm:$0xff]  }
 0x39f   :  { %6281 = vmatpush1.bf16.msra.mxu1 %v10105_v40  ;;  %5833 = vmatpush1.bf16.msra.mxu0 %v3947_v7  ;;  %v6806_v40 = vld [vmem:[%s11270_s1 + $0x164] ss:$52 sps:$4 sm:$0xff]  }
 0x3a0   :  { %6266 = vmatprep.subr.bf16.mxu1 %v10157_v61  ;;  %5727 = vmatprep.mubr.bf16.mxu0 %v6800_v14  ;;  %v6805_v61 = vld [vmem:[%s11270_s1 + $0x148] ss:$52 sps:$4 sm:$0xff]   ;;  %v6865_v10 = vld [vmem:[%s11270_s1 + $0x4a4] ss:$52 sps:$4 sm:$0xff]  }
 0x3a2   :  { %5269 = vmatmul.mubr.bf16.gmra.mrb[8].mxu1 %v6799_v11 }
 0x3a3   :  { %6282 = vmatpush1.bf16.msra.mxu1 %v10155_v4  ;;  %5278 = vmatprep.mubr.bf16.mxu1 %v6803_v25  ;;  %v6808_v4 = vld [vmem:[%s11270_s1 + $0x160] ss:$52 sps:$4 sm:$0xff]  }
 0x3a4   :  { %6267 = vmatprep.subr.bf16.mxu1 %v10207_v48  ;;  %v6812_v48 = vld [vmem:[%s11270_s1 + $0x1cc] ss:$52 sps:$4 sm:$0xff]  }
 0x3a6   :  { %5728 = vmatmul.mubr.bf16.gmra.mrb[8].mxu0 %v6802_v50 }
 0x3a7   :  { %6283 = vmatpush1.bf16.msra.mxu1 %v10205_v20  ;;  %5737 = vmatprep.mubr.bf16.mxu0 %v6806_v40  ;;  %v6811_v20 = vld [vmem:[%s11270_s1 + $0x1b0] ss:$52 sps:$4 sm:$0xff]  }
 0x3a8   :  { %6268 = vmatprep.subr.bf16.mxu1 %v10257_v38  ;;  %v6815_v38 = vld [vmem:[%s11270_s1 + $0x21c] ss:$52 sps:$4 sm:$0xff]  }
 0x3aa   :  { %5279 = vmatmul.mubr.bf16.gmra.mrb[12].mxu1 %v6805_v61 }
 0x3ab   :  { %6284 = vmatpush1.bf16.msra.mxu1 %v10255_v29  ;;  %5288 = vmatprep.mubr.bf16.mxu1 %v6809_v41  ;;  %v6814_v29 = vld [vmem:[%s11270_s1 + $0x1c8] ss:$52 sps:$4 sm:$0xff]  }
 0x3ac   :  { %6269 = vmatprep.subr.bf16.mxu1 %v10307_v28  ;;  %v6818_v28 = vld [vmem:[%s11270_s1 + $0x234] ss:$52 sps:$4 sm:$0xff]  }
 0x3ae   :  { %5738 = vmatmul.mubr.bf16.gmra.mrb[12].mxu0 %v6808_v4 }
 0x3af   :  { %6285 = vmatpush1.bf16.msra.mxu1 %v10305_v12  ;;  %5747 = vmatprep.mubr.bf16.mxu0 %v6812_v48  ;;  %v6817_v12 = vld [vmem:[%s11270_s1 + $0x218] ss:$52 sps:$4 sm:$0xff]  }
 0x3b0   :  { %6270 = vmatprep.subr.bf16.mxu1 %v10363_v54  ;;  %v6821_v54 = vld [vmem:[%s11270_s1 + $0x284] ss:$52 sps:$4 sm:$0xff]  }
 0x3b2   :  { %5289 = vmatmul.mubr.bf16.gmra.mrb[16].mxu1 %v6811_v20 }
 0x3b3   :  { %6286 = vmatpush1.bf16.msra.mxu1 %v10361_v63  ;;  %5298 = vmatprep.mubr.bf16.mxu1 %v6815_v38  ;;  %v6820_v63 = vld [vmem:[%s11270_s1 + $0x230] ss:$52 sps:$4 sm:$0xff]  }
 0x3b4   :  { %6271 = vmatprep.subr.bf16.mxu1 %v10425_v60  ;;  %v6825_v60 = vld [vmem:[%s11270_s1 + $0x2ec] ss:$52 sps:$4 sm:$0xff]  }
 0x3b6   :  { %5748 = vmatmul.mubr.bf16.gmra.mrb[16].mxu0 %v6814_v29 }
 0x3b7   :  { %6287 = vmatpush1.bf16.msra.mxu1 %v10423_v6  ;;  %5757 = vmatprep.mubr.bf16.mxu0 %v6818_v28  ;;  %v6823_v6 = vld [vmem:[%s11270_s1 + $0x280] ss:$52 sps:$4 sm:$0xff]  }
 0x3b8   :  { %6272 = vmatprep.subr.bf16.mxu1 %v10487_v32  ;;  %v6827_v32 = vld [vmem:[%s11270_s1 + $0x2e8] ss:$52 sps:$4 sm:$0xff]  }
 0x3ba   :  { %5299 = vmatmul.mubr.bf16.gmra.mrb[20].mxu1 %v6817_v12 }
 0x3bb   :  { %6288 = vmatpush1.bf16.msra.mxu1 %v10485_v23  ;;  %5308 = vmatprep.mubr.bf16.mxu1 %v6821_v54  ;;  %v6824_v23 = vld [vmem:[%s11270_s1 + $0x30] ss:$52 sps:$4 sm:$0xff]  }
 0x3bc   :  { %6273 = vmatprep.subr.bf16.mxu1 %v10543_v34  ;;  %v6828_v34 = vld [vmem:[%s11270_s1 + $0x98] ss:$52 sps:$4 sm:$0xff]  }
 0x3be   :  { %5758 = vmatmul.mubr.bf16.gmra.mrb[20].mxu0 %v6820_v63 }
 0x3bf   :  { %6289 = vmatpush1.bf16.msra.mxu1 %v10541_v16  ;;  %5860 = vmatprep.mubr.bf16.mxu0 %v11710_v58  ;;  %v6829_v16 = vld [vmem:[%s11270_s1 + $0x354] ss:$52 sps:$4 sm:$0xff]  }
 0x3c0   :  { %6274 = vmatprep.subr.bf16.mxu1 %v10599_v13  ;;  %v6833_v13 = vld [vmem:[%s11270_s1 + $0x3bc] ss:$52 sps:$4 sm:$0xff]  }
 0x3c2   :  { %5309 = vmatmul.mubr.bf16.gmra.mrb[24].mxu1 %v6823_v6 }
 0x3c3   :  { %6290 = vmatpush1.bf16.msra.mxu1 %v10597_v15  ;;  %5318 = vmatprep.mubr.bf16.mxu1 %v6825_v60  ;;  %v6831_v15 = vld [vmem:[%s11270_s1 + $0x350] ss:$52 sps:$4 sm:$0xff]  }
 0x3c4   :  { %6275 = vmatprep.subr.bf16.mxu1 %v10643_v21  ;;  %v6835_v21 = vld [vmem:[%s11270_s1 + $0x3b8] ss:$52 sps:$4 sm:$0xff]  }
 0x3c6   :  { %6250 = vmatmul.mubr.msk.bf16.vlgmr.msra.gmra.mrb[0].mxu0 %vm4873_vm0, %v6824_v23 }
 0x3c7   :  { %6291 = vmatpush1.bf16.msra.mxu1 %v10641_v36  ;;  %5870 = vmatprep.mubr.bf16.mxu0 %v11710_v58  ;;  %v6832_v36 = vld [vmem:[%s11270_s1 + $0x100] ss:$52 sps:$4 sm:$0xff]  }
 0x3c8   :  { %6276 = vmatprep.subr.bf16.mxu1 %v10687_v47  ;;  %v6836_v47 = vld [vmem:[%s11270_s1 + $0x168] ss:$52 sps:$4 sm:$0xff]  }
 0x3ca   :  { %5319 = vmatmul.mubr.bf16.gmra.mrb[28].mxu1 %v6827_v32 }
 0x3cb   :  { %6292 = vmatpush1.bf16.msra.mxu1 %v10685_v30  ;;  %5328 = vmatprep.mubr.bf16.mxu1 %v6829_v16  ;;  %v6837_v30 = vld [vmem:[%s11270_s1 + $0x424] ss:$52 sps:$4 sm:$0xff]  }
 0x3cc   :  { %6277 = vmatprep.subr.bf16.mxu1 %v10735_v45  ;;  %v6841_v45 = vld [vmem:[%s11270_s1 + $0x48c] ss:$52 sps:$4 sm:$0xff]  }
 0x3ce   :  { %6251 = vmatmul.mubr.msk.bf16.gmra.mrb[4].mxu0 %vm4873_vm0, %v6828_v34 }
 0x3cf   :  { %6293 = vmatpush1.bf16.msra.mxu1 %v10732_v27  ;;  %5880 = vmatprep.mubr.bf16.mxu0 %v11710_v58  ;;  %v6839_v27 = vld [vmem:[%s11270_s1 + $0x420] ss:$52 sps:$4 sm:$0xff]   ;;  %v3976_v23 = vpop.permute.xlu1 %3975  ;;  %s7069_s1 = smov [#allocation2]  }
 0x3d0   :  { %s6083_s11 = sshll.u32 %s7069_s1, 4  ;;  %s6084_s11 = int_to_ptr.vmem [resolvable:$true] %s6083_s11 }
 0x3d1   :  { %s7043_s12 = scalar_lea.vmem %s6084_s11, 6144  ;;  %p7048_p1 = scmp.lt.s32.totalorder %s6084_s11, %s6084_s11 }
 0x3d2   :  { %5329 = vmatmul.mubr.bf16.gmra.mrb[32].mxu1 %v6831_v15  ;;  %p7044_p0 = scmp.ne.s32.totalorder %s6084_s11, %s7043_s12  ;;  %p7049_p2 = scmp.lt.s32.totalorder %s7043_s12, %s7043_s12 }
 0x3d3   :  { %5338 = vmatprep.mubr.bf16.mxu1 %v6833_v13  ;;  %v11043_v34 = vpop.permute.xlu1 %3985 }
 0x3d4   :  { %p7050_p3 = por %p7049_p2, %p7048_p1 }
 0x3d6   :  { %6252 = vmatmul.mubr.msk.bf16.gmra.mrb[8].mxu0 %vm4873_vm0, %v6832_v36  ;;  %p7051_p4 = pnand %p7050_p3, %p7044_p0 }
 0x3d7   :  { %5890 = vmatprep.mubr.bf16.mxu0 %v11710_v58 }
 0x3da   :  { %5339 = vmatmul.mubr.bf16.gmra.mrb[36].mxu1 %v6835_v21  ;;  %v11051_v21 = vpop.permute.xlu1 %3990 }
 0x3db   :  { %5348 = vmatprep.mubr.bf16.mxu1 %v6837_v30  ;;  %v3981_v30 = vpop.permute.xlu0 %3980 }
 0x3de   :  { %6253 = vmatmul.mubr.msk.bf16.gmra.mrb[12].mxu0 %vm4873_vm0, %v6836_v47 }
 0x3df   :  { %5900 = vmatprep.mubr.bf16.mxu0 %v11710_v58 }
 0x3e2   :  { %5349 = vmatmul.mubr.bf16.gmra.mrb[40].mxu1 %v6839_v27 }
 0x3e3   :  { %5358 = vmatprep.mubr.bf16.mxu1 %v6841_v45 }
 0x3e6   :  { %6254 = vmatmul.mubr.msk.bf16.gmra.mrb[16].mxu0 %vm4873_vm0, %v6840_v55 }
 0x3e7   :  { %5910 = vmatprep.mubr.bf16.mxu0 %v11710_v58 }
 0x3ea   :  { %5359 = vmatmul.mubr.bf16.gmra.mrb[44].mxu1 %v6843_v33  ;;  %v4036_v33 = vpop.permute.xlu1 %4035 }
 0x3eb   :  { %5767 = vmatprep.mubr.bf16.mxu1 %v6847_v9  ;;  %v11061_v9 = vpop.permute.xlu0 %3995 }
 0x3ee   :  { %6255 = vmatmul.mubr.msk.bf16.gmra.mrb[20].mxu0 %vm4873_vm0, %v6844_v17 }
 0x3ef   :  { %5920 = vmatprep.mubr.bf16.mxu0 %v11710_v58 }
 0x3f2   :  { %5768 = vmatmul.mubr.bf16.vlgmr.msra.gmra.mrb[48].mxu1 %v6845_v53 }
 0x3f3   :  { %5777 = vmatprep.mubr.bf16.mxu1 %v6849_v52 }
 0x3f6   :  { %6256 = vmatmul.mubr.msk.bf16.gmra.mrb[48].mxu0 %vm4873_vm0, %v6848_v24  ;;  %v4046_v24 = vpop.permute.xlu1 %4045 }
 0x3f7   :  { %5930 = vmatprep.mubr.bf16.mxu0 %v11710_v58 }
 0x3fa   :  { %5778 = vmatmul.mubr.bf16.gmra.mrb[52].mxu1 %v6851_v46 }
 0x3fb   :  { %5787 = vmatprep.mubr.bf16.mxu1 %v6853_v1  ;;  %v4041_v1 = vpop.permute.xlu0 %4040 }
 0x3fe   :  { %6257 = vmatmul.mubr.msk.bf16.gmra.mrb[52].mxu0 %vm4873_vm0, %v6852_v19 }
 0x3ff   :  { %5940 = vmatprep.mubr.bf16.mxu0 %v11710_v58 }
 0x402   :  { %5788 = vmatmul.mubr.bf16.gmra.mrb[56].mxu1 %v6855_v22  ;;  %v11073_v22 = vpop.permute.xlu1 %4055 }
 0x403   :  { %5797 = vmatprep.mubr.bf16.mxu1 %v6857_v43 }
 0x406   :  { %6258 = vmatmul.mubr.msk.bf16.gmra.mrb[56].mxu0 %vm4873_vm0, %v6856_v5  ;;  %v4051_v5 = vpop.permute.xlu0 %4050 }
 0x407   :  { %5950 = vmatprep.mubr.bf16.mxu0 %v11710_v58 }
 0x40a   :  { %5798 = vmatmul.mubr.bf16.gmra.mrb[60].mxu1 %v6859_v62 }
 0x40b   :  { %5807 = vmatprep.mubr.bf16.mxu1 %v6861_v59 }
 0x40e   :  { %6259 = vmatmul.mubr.msk.bf16.gmra.mrb[60].mxu0 %vm4873_vm0, %v6860_v0  ;;  %v11081_v0 = vpop.permute.xlu1 %4065 }
 0x40f   :  { %5960 = vmatprep.mubr.bf16.mxu0 %v11710_v58 }
 0x412   :  { %5808 = vmatmul.mubr.bf16.gmra.mrb[64].mxu1 %v6863_v26  ;;  %v11083_v26 = vpop.permute.xlu0 %4060 }
 0x413   :  { %5817 = vmatprep.mubr.bf16.mxu1 %v6865_v10 }
 0x416   :  { %6260 = vmatmul.mubr.msk.bf16.gmra.mrb[64].mxu0 %vm4873_vm0, %v6864_v42 }
 0x417   :  { %5970 = vmatprep.mubr.bf16.mxu0 %v11710_v58 }
 0x41a   :  { %5818 = vmatmul.mubr.bf16.gmra.mrb[68].mxu1 %v6867_v39 }
 0x41e   :  { %6261 = vmatmul.mubr.msk.bf16.gmra.mrb[68].mxu0 %vm4873_vm0, %v6868_v57 }
 0x421   :  { %v10985_v37 = vpop.f32.mrb[24].mxu0 }
 0x422   :  { %v10987_v56 = vpop.f32.mrb[25].mxu0 }
 0x423   :  { %v10989_v2 = vpop.f32.mrb[26].mxu0 }
 0x424   :  { %v10991_v35 = vpop.f32.mrb[27].mxu0 }
 0x429   :  { %v10993_v31 = vpop.f32.mrb[28].mxu0 }
 0x42a   :  { %v10995_v49 = vpop.f32.mrb[29].mxu0 }
 0x42b   :  { %v10997_v58 = vpop.f32.mrb[30].mxu0 }
 0x42c   :  { %v10999_v51 = vpop.f32.mrb[31].mxu0 }
 0x431   :  { %v11001_v18 = vpop.f32.mrb[32].mxu0 }
 0x432   :  { %v11003_v3 = vpop.f32.mrb[33].mxu0 }
 0x433   :  { %v11005_v44 = vpop.f32.mrb[34].mxu0 }
 0x434   :  { %v11007_v7 = vpop.f32.mrb[35].mxu0 }
 0x439   :  { %v11009_v8 = vpop.f32.mrb[36].mxu0 }
 0x43a   :  { %v11011_v14 = vpop.f32.mrb[37].mxu0 }
 0x43b   :  { %v11013_v11 = vpop.f32.mrb[38].mxu0 }
 0x43c   :  { %v11015_v25 = vpop.f32.mrb[39].mxu0 }
 0x441   :  { %v11017_v50 = vpop.f32.mrb[40].mxu0 }
 0x442   :  { %v11019_v40 = vpop.f32.mrb[41].mxu0 }
 0x443   :  { %v11021_v61 = vpop.f32.mrb[42].mxu0 }
 0x444   :  { %11772 = vst [vmem:[#allocation5_spill] sm:$0xff] %v11021_v61  ;;  %v11023_v41 = vpop.f32.mrb[43].mxu0  ;;  %v11091_v61 = vpop.permute.xlu1 %4075 }
 0x445   :  { %11773 = vst [vmem:[#allocation7_spill] sm:$0xff] %v11023_v41 }
 0x449   :  { %v11025_v4 = vpop.f32.mrb[44].mxu0 }
 0x44a   :  { %11774 = vst [vmem:[#allocation6_spill] sm:$0xff] %v11025_v4  ;;  %v11027_v48 = vpop.f32.mrb[45].mxu0 }
 0x44b   :  { %11775 = vst [vmem:[#allocation9_spill] sm:$0xff] %v11027_v48  ;;  %v11029_v20 = vpop.f32.mrb[46].mxu0 }
 0x44c   :  { %11776 = vst [vmem:[#allocation8_spill] sm:$0xff] %v11029_v20  ;;  %v11031_v38 = vpop.f32.mrb[47].mxu0 }
 0x44d   :  { %11777 = vst [vmem:[#allocation11_spill] sm:$0xff] %v11031_v38 }
 0x465   :  { %v5250_v29 = vpop.f32.mrb[0].mxu1 }
 0x466   :  { %v5252_v28 = vpop.f32.mrb[1].mxu1  ;;  %v6294_v20 = vadd.f32 %v5250_v29, %v3976_v23 }
 0x467   :  { %v5254_v12 = vpop.f32.mrb[2].mxu1 }
 0x468   :  { %v5256_v54 = vpop.f32.mrb[3].mxu1 }
 0x469   :  { %v6300_v29 = vadd.f32 %v5256_v54, %v3981_v30 }
 0x46d   :  { %v11033_v63 = vpop.f32.mrb[4].mxu1 }
 0x46e   :  { %v11035_v6 = vpop.f32.mrb[5].mxu1 }
 0x46f   :  { %v11037_v60 = vpop.f32.mrb[6].mxu1 }
 0x470   :  { %v11039_v32 = vpop.f32.mrb[7].mxu1 }
 0x475   :  { %v11041_v16 = vpop.f32.mrb[8].mxu1 }
 0x476   :  { %v11045_v15 = vpop.f32.mrb[9].mxu1 }
 0x477   :  { %v11047_v13 = vpop.f32.mrb[10].mxu1 }
 0x478   :  { %v11049_v36 = vpop.f32.mrb[11].mxu1 }
 0x47d   :  { %v11053_v47 = vpop.f32.mrb[12].mxu1 }
 0x47e   :  { %v11055_v27 = vpop.f32.mrb[13].mxu1 }
 0x47f   :  { %v11057_v45 = vpop.f32.mrb[14].mxu1 }
 0x480   :  { %v11059_v55 = vpop.f32.mrb[15].mxu1 }
 0x485   :  { %v11063_v17 = vpop.f32.mrb[16].mxu1 }
 0x486   :  { %v11065_v53 = vpop.f32.mrb[17].mxu1 }
 0x487   :  { %v11067_v52 = vpop.f32.mrb[18].mxu1 }
 0x488   :  { %11778 = vst [vmem:[#allocation10_spill] sm:$0xff] %v11067_v52  ;;  %v11069_v46 = vpop.f32.mrb[19].mxu1 }
 0x489   :  { %11779 = vst [vmem:[#allocation13_spill] sm:$0xff] %v11069_v46  ;;  %v6298_v46 = vadd.f32 %v5254_v12, %v3981_v30 }
 0x48d   :  { %v11071_v19 = vpop.f32.mrb[20].mxu1 }
 0x48e   :  { %11780 = vst [vmem:[#allocation12_spill] sm:$0xff] %v11071_v19  ;;  %v11075_v43 = vpop.f32.mrb[21].mxu1 }
 0x48f   :  { %11781 = vst [vmem:[#allocation15_spill] sm:$0xff] %v11075_v43  ;;  %v11077_v62 = vpop.f32.mrb[22].mxu1  ;;  %v6296_v43 = vadd.f32 %v5252_v28, %v3976_v23 }
 0x490   :  { %11782 = vst [vmem:[#allocation14_spill] sm:$0xff] %v11077_v62  ;;  %v11079_v59 = vpop.f32.mrb[23].mxu1 }
 0x491   :  { %11783 = vst [vmem:[#allocation17_spill] sm:$0xff] %v11079_v59 }
 0x495   :  { %v5310_v10 = vpop.f32.mrb[24].mxu1 }
 0x496   :  { %v6342_v42 = vadd.f32 %v5310_v10, %v4036_v33  ;;  %v5312_v39 = vpop.f32.mrb[25].mxu1 }
 0x497   :  { %v6346_v57 = vadd.f32 %v5312_v39, %v4036_v33  ;;  %v5314_v38 = vpop.f32.mrb[26].mxu1 }
 0x498   :  { %v6350_v48 = vadd.f32 %v5314_v38, %v4041_v1  ;;  %v5316_v4 = vpop.f32.mrb[27].mxu1  ;;  %v11086_v19 = vadd.f32 %v6342_v42, %v10985_v37  ;;  %v11096_v38 = vpop.permute.xlu0 %4070 }
 0x499   :  { %v6354_v41 = vadd.f32 %v5316_v4, %v4041_v1  ;;  %v5862_v62 = vpop.f32.mrb[0].mxu0  ;;  %v11089_v59 = vadd.f32 %v6346_v57, %v10987_v56  ;;  %v6304_v57 = vadd.f32 %v11035_v6, %v11043_v34  ;;  %v6308_v6 = vadd.f32 %v11039_v32, %v11051_v21 }
 0x49a   :  { %v6295_v52 = vadd.f32 %v6294_v20, %v5862_v62  ;;  %v5864_v10 = vpop.f32.mrb[1].mxu0  ;;  %v11094_v33 = vadd.f32 %v6350_v48, %v10989_v2 }
 0x49b   :  { %v6297_v39 = vadd.f32 %v6296_v43, %v5864_v10  ;;  %v5866_v37 = vpop.f32.mrb[2].mxu0  ;;  %v11099_v28 = vadd.f32 %v6354_v41, %v10991_v35  ;;  %v6302_v35 = vadd.f32 %v11033_v63, %v11043_v34  ;;  %v11104_v41 = vpop.permute.xlu1 %4085  ;;  %v6306_v63 = vadd.f32 %v11037_v60, %v11051_v21 }
 0x49c   :  { %v5981_v4 = vmax.f32 %v6295_v52, 0.0  ;;  %v6299_v56 = vadd.f32 %v6298_v46, %v5866_v37  ;;  %v5868_v23 = vpop.f32.mrb[3].mxu0  ;;  %v11111_v10 = vpop.permute.xlu0 %4080 }
 0x49d   :  { %v5982_v12 = vmax.f32 %v6297_v39, 0.0  ;;  %v6301_v1 = vadd.f32 %v6300_v29, %v5868_v23  ;;  %v5320_v42 = vpop.f32.mrb[28].mxu1 }
 0x49e   :  { %6029 = vst [vmem:[#allocation2] sm:$0xff] %v5981_v4  ;;  %v5983_v20 = vmax.f32 %v6299_v56, 0.0  ;;  %v6358_v62 = vadd.f32 %v5320_v42, %v4046_v24  ;;  %v5322_v2 = vpop.f32.mrb[29].mxu1 }
 0x49f   :  { %6031 = vst.msk [vmem:[#allocation2 + $0x8] sm:$0xff] %vm6030_vm1, %v5982_v12  ;;  %v5984_v48 = vmax.f32 %v6301_v1, 0.0  ;;  %v6362_v54 = vadd.f32 %v5322_v2, %v4046_v24  ;;  %v5324_v30 = vpop.f32.mrb[30].mxu1  ;;  %v4001_v60 = vpop.permute.xlu1 %4000 }
 0x4a0   :  { %6032 = vst [vmem:[#allocation2 + $0x10] sm:$0xff] %v5983_v20  ;;  %v6366_v52 = vadd.f32 %v5324_v30, %v4051_v5  ;;  %v5326_v46 = vpop.f32.mrb[31].mxu1  ;;  %v11107_v43 = vadd.f32 %v6358_v62, %v10993_v31 }
 0x4a1   :  { %6033 = vst.msk [vmem:[#allocation2 + $0x18] sm:$0xff] %vm6030_vm1, %v5984_v48  ;;  %v6370_v24 = vadd.f32 %v5326_v46, %v4051_v5  ;;  %v5872_v29 = vpop.f32.mrb[4].mxu0  ;;  %v11115_v39 = vadd.f32 %v6362_v54, %v10995_v49  ;;  %v11128_v48 = vpop.permute.xlu0 %4090  ;;  %v6310_v54 = vadd.f32 %v11041_v16, %v11061_v9  ;;  %v6312_v46 = vadd.f32 %v11045_v15, %v11061_v9 }
 0x4a2   :  { %v6303_v37 = vadd.f32 %v6302_v35, %v5872_v29  ;;  %v5874_v4 = vpop.f32.mrb[5].mxu0  ;;  %v11120_v31 = vadd.f32 %v6366_v52, %v10997_v58  ;;  %v6314_v16 = vadd.f32 %v11047_v13, %v4001_v60 }
 0x4a3   :  { %v6305_v34 = vadd.f32 %v6304_v57, %v5874_v4  ;;  %v5876_v56 = vpop.f32.mrb[6].mxu0  ;;  %v11125_v23 = vadd.f32 %v6370_v24, %v10999_v51 }
 0x4a4   :  { %v5985_v5 = vmax.f32 %v6303_v37, 0.0  ;;  %v6307_v12 = vadd.f32 %v6306_v63, %v5876_v56  ;;  %v5878_v49 = vpop.f32.mrb[7].mxu0 }
 0x4a5   :  { %v5986_v1 = vmax.f32 %v6305_v34, 0.0  ;;  %v6309_v42 = vadd.f32 %v6308_v6, %v5878_v49  ;;  %v5330_v20 = vpop.f32.mrb[32].mxu1  ;;  %v4006_v56 = vpop.permute.xlu0 %4005 }
 0x4a6   :  { %6034 = vst [vmem:[#allocation2 + $0x20] sm:$0xff] %v5985_v5  ;;  %v5987_v62 = vmax.f32 %v6307_v12, 0.0  ;;  %v6374_v58 = vadd.f32 %v5330_v20, %v11073_v22  ;;  %v5332_v2 = vpop.f32.mrb[33].mxu1  ;;  %v6318_v20 = vadd.f32 %v11053_v47, %v4006_v56 }
 0x4a7   :  { %6035 = vst.msk [vmem:[#allocation2 + $0x28] sm:$0xff] %vm6030_vm1, %v5986_v1  ;;  %v5988_v32 = vmax.f32 %v6309_v42, 0.0  ;;  %v6378_v51 = vadd.f32 %v5332_v2, %v11073_v22  ;;  %v5334_v21 = vpop.f32.mrb[34].mxu1  ;;  %v4011_v1 = vpop.permute.xlu1 %4010  ;;  %v6320_v2 = vadd.f32 %v11055_v27, %v4006_v56 }
 0x4a8   :  { %6036 = vst [vmem:[#allocation2 + $0x30] sm:$0xff] %v5987_v62  ;;  %v6382_v30 = vadd.f32 %v5334_v21, %v11083_v26  ;;  %v5336_v35 = vpop.f32.mrb[35].mxu1  ;;  %v11136_v52 = vadd.f32 %v6374_v58, %v11001_v18  ;;  %v6316_v18 = vadd.f32 %v11049_v36, %v4001_v60 }
 0x4a9   :  { %6037 = vst.msk [vmem:[#allocation2 + $0x38] sm:$0xff] %vm6030_vm1, %v5988_v32  ;;  %v6386_v57 = vadd.f32 %v5336_v35, %v11083_v26  ;;  %v5882_v24 = vpop.f32.mrb[8].mxu0  ;;  %v11143_v22 = vadd.f32 %v6378_v51, %v11003_v3 }
 0x4aa   :  { %v6311_v29 = vadd.f32 %v6310_v54, %v5882_v24  ;;  %v5884_v63 = vpop.f32.mrb[9].mxu0  ;;  %v11147_v37 = vadd.f32 %v6382_v30, %v11005_v44 }
 0x4ab   :  { %v6313_v4 = vadd.f32 %v6312_v46, %v5884_v63  ;;  %v5886_v6 = vpop.f32.mrb[10].mxu0  ;;  %v11151_v15 = vadd.f32 %v6386_v57, %v11007_v7 }
 0x4ac   :  { %v5989_v9 = vmax.f32 %v6311_v29, 0.0  ;;  %v6315_v26 = vadd.f32 %v6314_v16, %v5886_v6  ;;  %v5888_v34 = vpop.f32.mrb[11].mxu0  ;;  %v4016_v16 = vpop.permute.xlu0 %4015 }
 0x4ad   :  { %v5990_v3 = vmax.f32 %v6313_v4, 0.0  ;;  %v6317_v5 = vadd.f32 %v6316_v18, %v5888_v34  ;;  %v5340_v12 = vpop.f32.mrb[36].mxu1  ;;  %v4021_v4 = vpop.permute.xlu1 %4020 }
 0x4ae   :  { %6038 = vst [vmem:[#allocation2 + $0x40] sm:$0xff] %v5989_v9  ;;  %v5991_v13 = vmax.f32 %v6315_v26, 0.0  ;;  %v6390_v49 = vadd.f32 %v5340_v12, %v11081_v0  ;;  %v5342_v44 = vpop.f32.mrb[37].mxu1  ;;  %v6326_v9 = vadd.f32 %v11063_v17, %v4016_v16 }
 0x4af   :  { %6039 = vst.msk [vmem:[#allocation2 + $0x48] sm:$0xff] %vm6030_vm1, %v5990_v3  ;;  %v5992_v36 = vmax.f32 %v6317_v5, 0.0  ;;  %v6394_v42 = vadd.f32 %v5342_v44, %v11081_v0  ;;  %v5344_v7 = vpop.f32.mrb[38].mxu1  ;;  %v6322_v0 = vadd.f32 %v11057_v45, %v4011_v1  ;;  %v6328_v3 = vadd.f32 %v11065_v53, %v4016_v16  ;;  %v11787_v53 = vld [vmem:[#allocation7_spill] sm:$0xff] }
 0x4b0   :  { %6040 = vst [vmem:[#allocation2 + $0x50] sm:$0xff] %v5991_v13  ;;  %v6398_v60 = vadd.f32 %v5344_v7, %v11096_v38  ;;  %v5346_v62 = vpop.f32.mrb[39].mxu1  ;;  %v11159_v58 = vadd.f32 %v6390_v49, %v11009_v8  ;;  %v6324_v8 = vadd.f32 %v11059_v55, %v4011_v1  ;;  %v11785_v1 = vld [vmem:[#allocation5_spill] sm:$0xff] }
 0x4b1   :  { %6041 = vst.msk [vmem:[#allocation2 + $0x58] sm:$0xff] %vm6030_vm1, %v5992_v36  ;;  %v6402_v32 = vadd.f32 %v5346_v62, %v11096_v38  ;;  %v5892_v51 = vpop.f32.mrb[12].mxu0  ;;  %v11165_v21 = vadd.f32 %v6394_v42, %v11011_v14  ;;  %v11786_v42 = vld [vmem:[#allocation13_spill] sm:$0xff] }
 0x4b2   :  { %v6319_v47 = vadd.f32 %v6318_v20, %v5892_v51  ;;  %v5894_v54 = vpop.f32.mrb[13].mxu0  ;;  %v11169_v30 = vadd.f32 %v6398_v60, %v11013_v11 }
 0x4b3   :  { %v6321_v35 = vadd.f32 %v6320_v2, %v5894_v54  ;;  %v5896_v46 = vpop.f32.mrb[14].mxu0  ;;  %v11173_v27 = vadd.f32 %v6402_v32, %v11015_v25  ;;  %v4026_v32 = vpop.permute.xlu0 %4025 }
 0x4b4   :  { %v5993_v57 = vmax.f32 %v6319_v47, 0.0  ;;  %v6323_v38 = vadd.f32 %v6322_v0, %v5896_v46  ;;  %v5898_v24 = vpop.f32.mrb[15].mxu0 }
 0x4b5   :  { %v5994_v14 = vmax.f32 %v6321_v35, 0.0  ;;  %v6325_v29 = vadd.f32 %v6324_v8, %v5898_v24  ;;  %v5350_v63 = vpop.f32.mrb[40].mxu1  ;;  %v4031_v35 = vpop.permute.xlu1 %4030  ;;  %v11788_v24 = vld [vmem:[#allocation12_spill] sm:$0xff] }
 0x4b6   :  { %6042 = vst [vmem:[#allocation2 + $0x60] sm:$0xff] %v5993_v57  ;;  %v5995_v45 = vmax.f32 %v6323_v38, 0.0  ;;  %v6406_v18 = vadd.f32 %v5350_v63, %v11091_v61  ;;  %v5352_v11 = vpop.f32.mrb[41].mxu1  ;;  %v6334_v16 = vadd.f32 %v11788_v24, %v4026_v32  ;;  %v11789_v63 = vld [vmem:[#allocation6_spill] sm:$0xff] }
 0x4b7   :  { %6043 = vst.msk [vmem:[#allocation2 + $0x68] sm:$0xff] %vm6030_vm1, %v5994_v14  ;;  %v5996_v55 = vmax.f32 %v6325_v29, 0.0  ;;  %v6410_v6 = vadd.f32 %v5352_v11, %v11091_v61  ;;  %v5354_v25 = vpop.f32.mrb[42].mxu1  ;;  %v11784_v61 = vld [vmem:[#allocation10_spill] sm:$0xff] }
 0x4b8   :  { %6044 = vst [vmem:[#allocation2 + $0x70] sm:$0xff] %v5995_v45  ;;  %v6414_v26 = vadd.f32 %v5354_v25, %v11111_v10  ;;  %v5356_v34 = vpop.f32.mrb[43].mxu1  ;;  %v11181_v56 = vadd.f32 %v6406_v18, %v11017_v50  ;;  %v6330_v49 = vadd.f32 %v11784_v61, %v4021_v4  ;;  %v6332_v50 = vadd.f32 %v11786_v42, %v4021_v4  ;;  %v11790_v18 = vld [vmem:[#allocation15_spill] sm:$0xff] }
 0x4b9   :  { %6045 = vst.msk [vmem:[#allocation2 + $0x78] sm:$0xff] %vm6030_vm1, %v5996_v55  ;;  %v6418_v5 = vadd.f32 %v5356_v34, %v11111_v10  ;;  %v5902_v12 = vpop.f32.mrb[16].mxu0  ;;  %v11187_v13 = vadd.f32 %v6410_v6, %v11019_v40  ;;  %v6336_v11 = vadd.f32 %v11790_v18, %v4026_v32  ;;  %v11791_v6 = vld [vmem:[#allocation9_spill] sm:$0xff] }
 0x4ba   :  { %v6327_v17 = vadd.f32 %v6326_v9, %v5902_v12  ;;  %v5904_v44 = vpop.f32.mrb[17].mxu0  ;;  %v11191_v36 = vadd.f32 %v6414_v26, %v11785_v1  ;;  %v11794_v12 = vld [vmem:[#allocation17_spill] sm:$0xff] }
 0x4bb   :  { %v6329_v7 = vadd.f32 %v6328_v3, %v5904_v44  ;;  %v5906_v20 = vpop.f32.mrb[18].mxu0  ;;  %v11195_v60 = vadd.f32 %v6418_v5, %v11787_v53  ;;  %v11793_v3 = vld [vmem:[#allocation8_spill] sm:$0xff]  ;;  %v6340_v61 = vadd.f32 %v11794_v12, %v4031_v35  ;;  %v11795_v44 = vld [vmem:[#allocation11_spill] sm:$0xff] }
 0x4bc   :  { %v5997_v62 = vmax.f32 %v6327_v17, 0.0  ;;  %v6331_v10 = vadd.f32 %v6330_v49, %v5906_v20  ;;  %v5908_v2 = vpop.f32.mrb[19].mxu0 }
 0x4bd   :  { %v5998_v40 = vmax.f32 %v6329_v7, 0.0  ;;  %v6333_v51 = vadd.f32 %v6332_v50, %v5908_v2  ;;  %v5360_v0 = vpop.f32.mrb[44].mxu1 }
 0x4be   :  { %6046 = vst [vmem:[#allocation2 + $0x80] sm:$0xff] %v5997_v62  ;;  %v5999_v47 = vmax.f32 %v6331_v10, 0.0  ;;  %v6422_v54 = vadd.f32 %v5360_v0, %v11104_v41  ;;  %v5362_v8 = vpop.f32.mrb[45].mxu1 }
 0x4bf   :  { %6047 = vst.msk [vmem:[#allocation2 + $0x88] sm:$0xff] %vm6030_vm1, %v5998_v40  ;;  %v6000_v46 = vmax.f32 %v6333_v51, 0.0  ;;  %v6426_v57 = vadd.f32 %v5362_v8, %v11104_v41  ;;  %v5364_v38 = vpop.f32.mrb[46].mxu1  ;;  %v11792_v41 = vld [vmem:[#allocation14_spill] sm:$0xff] }
 0x4c0   :  { %6048 = vst [vmem:[#allocation2 + $0x90] sm:$0xff] %v5999_v47  ;;  %v6430_v14 = vadd.f32 %v5364_v38, %v11128_v48  ;;  %v5366_v29 = vpop.f32.mrb[47].mxu1  ;;  %v11203_v45 = vadd.f32 %v6422_v54, %v11789_v63  ;;  %v6338_v9 = vadd.f32 %v11792_v41, %v4031_v35 }
 0x4c1   :  { %6049 = vst.msk [vmem:[#allocation2 + $0x98] sm:$0xff] %vm6030_vm1, %v6000_v46  ;;  %v6434_v4 = vadd.f32 %v5366_v29, %v11128_v48  ;;  %v5912_v55 = vpop.f32.mrb[20].mxu0  ;;  %v11209_v25 = vadd.f32 %v6426_v57, %v11791_v6 }
 0x4c2   :  { %v6335_v26 = vadd.f32 %v6334_v16, %v5912_v55  ;;  %v5914_v34 = vpop.f32.mrb[21].mxu0  ;;  %v11213_v5 = vadd.f32 %v6430_v14, %v11793_v3 }
 0x4c3   :  { %v6337_v49 = vadd.f32 %v6336_v11, %v5914_v34  ;;  %v5916_v17 = vpop.f32.mrb[22].mxu0  ;;  %v11217_v1 = vadd.f32 %v6434_v4, %v11795_v44 }
 0x4c4   :  { %v6001_v42 = vmax.f32 %v6335_v26, 0.0  ;;  %v6339_v48 = vadd.f32 %v6338_v9, %v5916_v17  ;;  %v5918_v50 = vpop.f32.mrb[23].mxu0 }
 0x4c5   :  { %v6002_v7 = vmax.f32 %v6337_v49, 0.0  ;;  %v6341_v20 = vadd.f32 %v6340_v61, %v5918_v50  ;;  %v5769_v53 = vpop.f32.mrb[48].mxu1 }
 0x4c6   :  { %6050 = vst [vmem:[#allocation2 + $0xa0] sm:$0xff] %v6001_v42  ;;  %v6003_v62 = vmax.f32 %v6339_v48, 0.0  ;;  %v6344_v10 = vadd.f32 %v11086_v19, %v5769_v53  ;;  %v5771_v2 = vpop.f32.mrb[49].mxu1 }
 0x4c7   :  { %6051 = vst.msk [vmem:[#allocation2 + $0xa8] sm:$0xff] %vm6030_vm1, %v6002_v7  ;;  %v6004_v32 = vmax.f32 %v6341_v20, 0.0  ;;  %v6348_v40 = vadd.f32 %v11089_v59, %v5771_v2  ;;  %v5773_v51 = vpop.f32.mrb[50].mxu1 }
 0x4c8   :  { %6052 = vst [vmem:[#allocation2 + $0xb0] sm:$0xff] %v6003_v62  ;;  %v6352_v0 = vadd.f32 %v11094_v33, %v5773_v51  ;;  %v5775_v47 = vpop.f32.mrb[51].mxu1 }
 0x4c9   :  { %6053 = vst.msk [vmem:[#allocation2 + $0xb8] sm:$0xff] %vm6030_vm1, %v6004_v32  ;;  %v6356_v54 = vadd.f32 %v11099_v28, %v5775_v47  ;;  %v5922_v8 = vpop.f32.mrb[48].mxu0 }
 0x4ca   :  { %v6345_v35 = vadd.f32 %v6344_v10, %v5922_v8  ;;  %v5924_v46 = vpop.f32.mrb[49].mxu0 }
 0x4cb   :  { %v6349_v57 = vadd.f32 %v6348_v40, %v5924_v46  ;;  %v5926_v19 = vpop.f32.mrb[50].mxu0 }
 0x4cc   :  { %v6005_v38 = vmax.f32 %v6345_v35, 0.0  ;;  %v6353_v24 = vadd.f32 %v6352_v0, %v5926_v19  ;;  %v5928_v16 = vpop.f32.mrb[51].mxu0 }
 0x4cd   :  { %v6006_v14 = vmax.f32 %v6349_v57, 0.0  ;;  %v6357_v29 = vadd.f32 %v6356_v54, %v5928_v16  ;;  %v5779_v59 = vpop.f32.mrb[52].mxu1 }
 0x4ce   :  { %6054 = vst [vmem:[#allocation2 + $0xc0] sm:$0xff] %v6005_v38  ;;  %v6007_v63 = vmax.f32 %v6353_v24, 0.0  ;;  %v6360_v33 = vadd.f32 %v11107_v43, %v5779_v59  ;;  %v5781_v18 = vpop.f32.mrb[53].mxu1 }
 0x4cf   :  { %6055 = vst.msk [vmem:[#allocation2 + $0xc8] sm:$0xff] %vm6030_vm1, %v6006_v14  ;;  %v6008_v11 = vmax.f32 %v6357_v29, 0.0  ;;  %v6364_v28 = vadd.f32 %v11115_v39, %v5781_v18  ;;  %v5783_v4 = vpop.f32.mrb[54].mxu1 }
 0x4d0   :  { %6056 = vst [vmem:[#allocation2 + $0xd0] sm:$0xff] %v6007_v63  ;;  %v6368_v55 = vadd.f32 %v11120_v31, %v5783_v4  ;;  %v5785_v6 = vpop.f32.mrb[55].mxu1 }
 0x4d1   :  { %6057 = vst.msk [vmem:[#allocation2 + $0xd8] sm:$0xff] %vm6030_vm1, %v6008_v11  ;;  %v6372_v41 = vadd.f32 %v11125_v23, %v5785_v6  ;;  %v5932_v9 = vpop.f32.mrb[52].mxu0 }
 0x4d2   :  { %v6361_v26 = vadd.f32 %v6360_v33, %v5932_v9  ;;  %v5934_v34 = vpop.f32.mrb[53].mxu0 }
 0x4d3   :  { %v6365_v3 = vadd.f32 %v6364_v28, %v5934_v34  ;;  %v5936_v43 = vpop.f32.mrb[54].mxu0 }
 0x4d4   :  { %v6009_v12 = vmax.f32 %v6361_v26, 0.0  ;;  %v6369_v61 = vadd.f32 %v6368_v55, %v5936_v43  ;;  %v5938_v49 = vpop.f32.mrb[55].mxu0 }
 0x4d5   :  { %v6010_v17 = vmax.f32 %v6365_v3, 0.0  ;;  %v6373_v44 = vadd.f32 %v6372_v41, %v5938_v49  ;;  %v5789_v39 = vpop.f32.mrb[56].mxu1 }
 0x4d6   :  { %6058 = vst [vmem:[#allocation2 + $0xe0] sm:$0xff] %v6009_v12  ;;  %v6011_v42 = vmax.f32 %v6369_v61, 0.0  ;;  %v6376_v31 = vadd.f32 %v11136_v52, %v5789_v39  ;;  %v5791_v48 = vpop.f32.mrb[57].mxu1 }
 0x4d7   :  { %6059 = vst.msk [vmem:[#allocation2 + $0xe8] sm:$0xff] %vm6030_vm1, %v6010_v17  ;;  %v6012_v50 = vmax.f32 %v6373_v44, 0.0  ;;  %v6380_v23 = vadd.f32 %v11143_v22, %v5791_v48  ;;  %v5793_v7 = vpop.f32.mrb[58].mxu1 }
 0x4d8   :  { %6060 = vst [vmem:[#allocation2 + $0xf0] sm:$0xff] %v6011_v42  ;;  %v6384_v20 = vadd.f32 %v11147_v37, %v5793_v7  ;;  %v5795_v53 = vpop.f32.mrb[59].mxu1 }
 0x4d9   :  { %6061 = vst.msk [vmem:[#allocation2 + $0xf8] sm:$0xff] %vm6030_vm1, %v6012_v50  ;;  %v6388_v62 = vadd.f32 %v11151_v15, %v5795_v53  ;;  %v5942_v10 = vpop.f32.mrb[56].mxu0 }
 0x4da   :  { %v6377_v2 = vadd.f32 %v6376_v31, %v5942_v10  ;;  %v5944_v32 = vpop.f32.mrb[57].mxu0 }
 0x4db   :  { %v6381_v40 = vadd.f32 %v6380_v23, %v5944_v32  ;;  %v5946_v52 = vpop.f32.mrb[58].mxu0 }
 0x4dc   :  { %v6013_v51 = vmax.f32 %v6377_v2, 0.0  ;;  %v6385_v0 = vadd.f32 %v6384_v20, %v5946_v52  ;;  %v5948_v47 = vpop.f32.mrb[59].mxu0 }
 0x4dd   :  { %v6014_v54 = vmax.f32 %v6381_v40, 0.0  ;;  %v6389_v8 = vadd.f32 %v6388_v62, %v5948_v47  ;;  %v5799_v22 = vpop.f32.mrb[60].mxu1 }
 0x4de   :  { %6062 = vst [vmem:[#allocation2 + $0x100] sm:$0xff] %v6013_v51  ;;  %v6015_v35 = vmax.f32 %v6385_v0, 0.0  ;;  %v6392_v37 = vadd.f32 %v11159_v58, %v5799_v22  ;;  %v5801_v46 = vpop.f32.mrb[61].mxu1 }
 0x4df   :  { %6063 = vst.msk [vmem:[#allocation2 + $0x108] sm:$0xff] %vm6030_vm1, %v6014_v54  ;;  %v6016_v57 = vmax.f32 %v6389_v8, 0.0  ;;  %v6396_v15 = vadd.f32 %v11165_v21, %v5801_v46  ;;  %v5803_v19 = vpop.f32.mrb[62].mxu1 }
 0x4e0   :  { %6064 = vst [vmem:[#allocation2 + $0x110] sm:$0xff] %v6015_v35  ;;  %v6400_v38 = vadd.f32 %v11169_v30, %v5803_v19  ;;  %v5805_v24 = vpop.f32.mrb[63].mxu1 }
 0x4e1   :  { %6065 = vst.msk [vmem:[#allocation2 + $0x118] sm:$0xff] %vm6030_vm1, %v6016_v57  ;;  %v6404_v16 = vadd.f32 %v11173_v27, %v5805_v24  ;;  %v5952_v14 = vpop.f32.mrb[60].mxu0 }
 0x4e2   :  { %v6393_v29 = vadd.f32 %v6392_v37, %v5952_v14  ;;  %v5954_v59 = vpop.f32.mrb[61].mxu0 }
 0x4e3   :  { %v6397_v63 = vadd.f32 %v6396_v15, %v5954_v59  ;;  %v5956_v58 = vpop.f32.mrb[62].mxu0 }
 0x4e4   :  { %v6017_v33 = vmax.f32 %v6393_v29, 0.0  ;;  %v6401_v18 = vadd.f32 %v6400_v38, %v5956_v58  ;;  %v5958_v11 = vpop.f32.mrb[63].mxu0 }
 0x4e5   :  { %v6018_v28 = vmax.f32 %v6397_v63, 0.0  ;;  %v6405_v4 = vadd.f32 %v6404_v16, %v5958_v11  ;;  %v5809_v21 = vpop.f32.mrb[64].mxu1 }
 0x4e6   :  { %6066 = vst [vmem:[#allocation2 + $0x120] sm:$0xff] %v6017_v33  ;;  %v6019_v55 = vmax.f32 %v6401_v18, 0.0  ;;  %v6408_v30 = vadd.f32 %v11181_v56, %v5809_v21  ;;  %v5811_v6 = vpop.f32.mrb[65].mxu1 }
 0x4e7   :  { %6067 = vst.msk [vmem:[#allocation2 + $0x128] sm:$0xff] %vm6030_vm1, %v6018_v28  ;;  %v6020_v41 = vmax.f32 %v6405_v4, 0.0  ;;  %v6412_v27 = vadd.f32 %v11187_v13, %v5811_v6  ;;  %v5813_v9 = vpop.f32.mrb[66].mxu1 }
 0x4e8   :  { %6068 = vst [vmem:[#allocation2 + $0x130] sm:$0xff] %v6019_v55  ;;  %v6416_v26 = vadd.f32 %v11191_v36, %v5813_v9  ;;  %v5815_v34 = vpop.f32.mrb[67].mxu1 }
 0x4e9   :  { %6069 = vst.msk [vmem:[#allocation2 + $0x138] sm:$0xff] %vm6030_vm1, %v6020_v41  ;;  %v6420_v3 = vadd.f32 %v11195_v60, %v5815_v34  ;;  %v5962_v43 = vpop.f32.mrb[64].mxu0 }
 0x4ea   :  { %v6409_v12 = vadd.f32 %v6408_v30, %v5962_v43  ;;  %v5964_v61 = vpop.f32.mrb[65].mxu0 }
 0x4eb   :  { %v6413_v49 = vadd.f32 %v6412_v27, %v5964_v61  ;;  %v5966_v56 = vpop.f32.mrb[66].mxu0 }
 0x4ec   :  { %v6021_v17 = vmax.f32 %v6409_v12, 0.0  ;;  %v6417_v44 = vadd.f32 %v6416_v26, %v5966_v56  ;;  %v5968_v39 = vpop.f32.mrb[67].mxu0 }
 0x4ed   :  { %v6022_v42 = vmax.f32 %v6413_v49, 0.0  ;;  %v6421_v31 = vadd.f32 %v6420_v3, %v5968_v39  ;;  %v5819_v13 = vpop.f32.mrb[68].mxu1 }
 0x4ee   :  { %6070 = vst [vmem:[#allocation2 + $0x140] sm:$0xff] %v6021_v17  ;;  %v6023_v48 = vmax.f32 %v6417_v44, 0.0  ;;  %v6424_v36 = vadd.f32 %v11203_v45, %v5819_v13  ;;  %v5821_v50 = vpop.f32.mrb[69].mxu1 }
 0x4ef   :  { %6071 = vst.msk [vmem:[#allocation2 + $0x148] sm:$0xff] %vm6030_vm1, %v6022_v42  ;;  %v6024_v23 = vmax.f32 %v6421_v31, 0.0  ;;  %v6428_v60 = vadd.f32 %v11209_v25, %v5821_v50  ;;  %v5823_v7 = vpop.f32.mrb[70].mxu1 }
 0x4f0   :  { %6072 = vst [vmem:[#allocation2 + $0x150] sm:$0xff] %v6023_v48  ;;  %v6432_v20 = vadd.f32 %v11213_v5, %v5823_v7  ;;  %v5825_v53 = vpop.f32.mrb[71].mxu1 }
 0x4f1   :  { %6073 = vst.msk [vmem:[#allocation2 + $0x158] sm:$0xff] %vm6030_vm1, %v6024_v23  ;;  %v6436_v62 = vadd.f32 %v11217_v1, %v5825_v53  ;;  %v5972_v10 = vpop.f32.mrb[68].mxu0 }
 0x4f2   :  { %v6425_v2 = vadd.f32 %v6424_v36, %v5972_v10  ;;  %v5974_v32 = vpop.f32.mrb[69].mxu0 }
 0x4f3   :  { %v6429_v40 = vadd.f32 %v6428_v60, %v5974_v32  ;;  %v5976_v45 = vpop.f32.mrb[70].mxu0 }
 0x4f4   :  { %v6025_v52 = vmax.f32 %v6425_v2, 0.0  ;;  %v6433_v51 = vadd.f32 %v6432_v20, %v5976_v45  ;;  %v5978_v0 = vpop.f32.mrb[71].mxu0 }
 0x4f5   :  { %v6026_v25 = vmax.f32 %v6429_v40, 0.0  ;;  %v6437_v47 = vadd.f32 %v6436_v62, %v5978_v0 }
 0x4f6   :  { %6074 = vst [vmem:[#allocation2 + $0x160] sm:$0xff] %v6025_v52  ;;  %v6027_v54 = vmax.f32 %v6433_v51, 0.0 }
 0x4f7   :  { %6075 = vst.msk [vmem:[#allocation2 + $0x168] sm:$0xff] %vm6030_vm1, %v6026_v25  ;;  %v6028_v5 = vmax.f32 %v6437_v47, 0.0 }
 0x4f8   :  { %6076 = vst [vmem:[#allocation2 + $0x170] sm:$0xff] %v6027_v54 }
 0x4f9   :  { %6077 = vst.msk [vmem:[#allocation2 + $0x178] sm:$0xff] %vm6030_vm1, %v6028_v5 }
 0x4fa   :  { %7054 = shalt.err (!%p7051_p4)
}
 0x4fb   :  { %s7055_s15 = scalar_lea.hbm %s11273_s4, 6144 }
 0x4fc   :  { %p7056_p5 = scmp.ne.s32.totalorder %s11273_s4, %s7055_s15  ;;  %p7059_p6 = scmp.lt.u32.totalorder %s7055_s15, %s11273_s4 }
 0x4fe   :  { %p7061_p7 = pnand %p7059_p6, %p7056_p5 }
 0x500   :  { %7064 = shalt.err (!%p7061_p7)
}
 0x501   :  { %s7070_s19 = smov 256   ;;  %s7071_s20 = smov 16  }
 0x502   :  { %6089 = dma.vmem_to_hbm [thread:$0]  %s6084_s11, 6144, %s11273_s4, [#allocation3], %s7070_s19, %s7070_s19, %s7071_s20  }
 0x503   :  { %7065 = dma.done.wait [#allocation3], 6144  }
 0x504   :  { %7066 = vsyncadd [#allocation3], 4294961152 }
 0x505   :  { %6093 = vsyncpa [#allocation3], 1 }

</bundles_post_ra>
